<compile_context>
chip_gen: v7x
topology: tpu7x:2x2x1
jax: 0.10.0
libtpu: 0.0.40
codegen_flags: <defaults>
</compile_context>

<pallas_src>
import functools

import jax
import jax.numpy as jnp
from jax.experimental import pallas as pl
from jax.experimental.pallas import tpu as pltpu


def actor_kernel(x_ref, w1_ref, b1_ref, w2_ref, b2_ref, w3_ref, b3_ref, o_ref):
    # HIGHEST precision only matters for the exact-f32 path; bf16 is native.
    prec = (jax.lax.Precision.HIGHEST if w1_ref.dtype == jnp.float32
            else jax.lax.Precision.DEFAULT)
    dot = functools.partial(jnp.dot, preferred_element_type=jnp.float32,
                            precision=prec)
    # fc1 + relu  (MXU matmul, f32 accumulation; epilogue in f32)
    h1 = jnp.maximum(dot(x_ref[...], w1_ref[...]) + b1_ref[...], 0.0)
    # fc2 + relu  (feed the matmul in the weight dtype: bf16 or f32)
    h2 = jnp.maximum(dot(h1.astype(w2_ref.dtype), w2_ref[...]) + b2_ref[...], 0.0)
    # fc3 + tanh  (tanh on the EUP, f32)
    h3 = dot(h2.astype(w3_ref.dtype), w3_ref[...]) + b3_ref[...]
    o_ref[...] = jnp.tanh(h3).astype(o_ref.dtype)


def _round_up(x, m):
    return (x + m - 1) // m * m


def _pad2(a, rows, cols):
    return jnp.pad(a, ((0, rows - a.shape[0]), (0, cols - a.shape[1])))


def prepare_actor_params(params, *, use_bf16=True):
    """Pad + cast the Actor weights ONCE (keeps the per-call wrapper cast/pad free).

    params: (w1 (S,400), b1 (1,400), w2 (400,300), b2 (1,300),
             w3 (300,A), b3 (1,A)) in (in, out) layout so the kernel does x @ W + b.
    """
    w1, b1, w2, b2, w3, b3 = params
    state_dim, h1_dim = w1.shape
    h2_dim = w2.shape[1]
    action_dim = w3.shape[1]

    compute_dtype = jnp.bfloat16 if use_bf16 else jnp.float32
    sub = 16 if use_bf16 else 8               # sublane multiple for packed dtype
    sp = _round_up(state_dim, sub)            # fc1 contraction dim
    h1p = _round_up(h1_dim, 128)              # 400 -> 512
    h2p = _round_up(h2_dim, 128)              # 300 -> 384
    outp = _round_up(max(action_dim, 1), 128)  # action_dim -> 128 (lane-dense)

    # Zero padding is exact: relu(0)=0 and zero weight rows/cols add nothing.
    return dict(
        w1=_pad2(w1, sp, h1p).astype(compute_dtype),
        b1=_pad2(b1, 1, h1p).astype(jnp.float32),
        w2=_pad2(w2, h1p, h2p).astype(compute_dtype),
        b2=_pad2(b2, 1, h2p).astype(jnp.float32),
        w3=_pad2(w3, h2p, outp).astype(compute_dtype),
        b3=_pad2(b3, 1, outp).astype(jnp.float32),
        state_dim=state_dim, state_dim_padded=sp,
        action_dim=action_dim, out_padded=outp,
        compute_dtype=compute_dtype,
    )


def actor_forward(state, prep, *, tile_batch=1024, out_dtype=jnp.float32):
    """Fused relu(fc1) -> relu(fc2) -> tanh(fc3).

    state: (batch, state_dim) float32.
    prep:  output of prepare_actor_params (padded, pre-cast weights).
    tile_batch: batch rows per grid step.  1024-2048 keeps the ~0.35 us
      per-grid-step overhead negligible; total VMEM footprint is only a few
      MiB, so this is fine on v5e/v6e (128 MiB) and v7x (64 MiB).  Large eval
      batches yield >=2 "parallel" steps -> 2-TC sharding on v7x.
    out_dtype: jnp.bfloat16 halves the (tb,128) output writeback at large eval
      batches; default f32 matches the PyTorch module.
    """
    w1, b1, w2, b2, w3, b3 = (prep["w1"], prep["b1"], prep["w2"],
                              prep["b2"], prep["w3"], prep["b3"])
    batch, state_dim = state.shape
    assert state_dim == prep["state_dim"]
    sp = prep["state_dim_padded"]
    outp = prep["out_padded"]
    action_dim = prep["action_dim"]
    compute_dtype = prep["compute_dtype"]

    # Batch tile: multiple of 8 sublanes; pad batch to a whole number of tiles.
    tb = min(_round_up(tile_batch, 8), _round_up(batch, 8))
    bp = _round_up(batch, tb)
    xp = jnp.pad(state, ((0, bp - batch), (0, sp - state_dim))).astype(compute_dtype)

    grid = (bp // tb,)
    resident = lambda i: (0, 0)   # constant block index -> weights stay in VMEM
    # (The six weight/bias blocks could also be pl.Buffered(1) to drop their
    #  second pipeline buffer; total VMEM use is only ~2-4 MiB so default
    #  double-buffering is harmless and kept for lowering simplicity.)

    itemsize = jnp.dtype(compute_dtype).itemsize
    h1p, h2p = w1.shape[1], w2.shape[1]
    weight_bytes = (sum(a.size for a in (w1, w2, w3)) * itemsize
                    + sum(a.size for a in (b1, b2, b3)) * 4)
    cost = pl.CostEstimate(
        flops=2 * bp * (sp * h1p + h1p * h2p + h2p * outp),
        transcendentals=bp * outp,
        bytes_accessed=(weight_bytes + xp.size * itemsize
                        + bp * outp * jnp.dtype(out_dtype).itemsize),
    )

    out = pl.pallas_call(
        actor_kernel,
        out_shape=jax.ShapeDtypeStruct((bp, outp), out_dtype),
        grid=grid,
        in_specs=[
            pl.BlockSpec((tb, sp), lambda i: (i, 0)),   # streamed activations
            pl.BlockSpec(w1.shape, resident),           # VMEM-resident weights
            pl.BlockSpec(b1.shape, resident),
            pl.BlockSpec(w2.shape, resident),
            pl.BlockSpec(b2.shape, resident),
            pl.BlockSpec(w3.shape, resident),
            pl.BlockSpec(b3.shape, resident),
        ],
        out_specs=pl.BlockSpec((tb, outp), lambda i: (i, 0)),  # lane-dense store
        compiler_params=pltpu.CompilerParams(
            dimension_semantics=("parallel",),          # batch axis shards over TCs
        ),
        cost_estimate=cost,
    )(xp, w1, b1, w2, b2, w3, b3)

    return out[:batch, :action_dim].astype(jnp.float32)


def init_actor_params(key, state_dim, action_dim):
    """Deterministic init mimicking nn.Linear's U(-1/sqrt(fan_in), 1/sqrt(fan_in))."""
    dims = [(state_dim, 400), (400, 300), (300, action_dim)]
    params = []
    for fan_in, fan_out in dims:
        kw, kb, key = jax.random.split(key, 3)
        bound = 1.0 / (fan_in ** 0.5)
        w = jax.random.uniform(kw, (fan_in, fan_out), jnp.float32, -bound, bound)
        b = jax.random.uniform(kb, (1, fan_out), jnp.float32, -bound, bound)
        params += [w, b]
    return tuple(params)


def actor_reference(state, params):
    w1, b1, w2, b2, w3, b3 = params
    dot = functools.partial(jnp.dot, precision=jax.lax.Precision.HIGHEST)
    x = jnp.maximum(dot(state, w1) + b1, 0.0)
    x = jnp.maximum(dot(x, w2) + b2, 0.0)
    return jnp.tanh(dot(x, w3) + b3)


if __name__ == "__main__":
    key = jax.random.PRNGKey(0)
    state_dim, action_dim = 8, 4
    kx1, kx2, kp = jax.random.split(key, 3)
    params = init_actor_params(kp, state_dim, action_dim)

    # 1) Exact f32 path, small batch (parity with the PyTorch module).
    prep_f32 = prepare_actor_params(params, use_bf16=False)
    state1 = jax.random.normal(kx1, (2, state_dim), jnp.float32)
    out1 = jax.block_until_ready(actor_forward(state1, prep_f32))
    ref1 = actor_reference(state1, params)
    assert out1.shape == (2, action_dim)
    assert jnp.allclose(out1, ref1, atol=1e-4, rtol=1e-4), "f32 mismatch vs reference"

    # 2) Default bf16 weights/operands (f32 accumulation + epilogues), batch grid
    #    with multiple streamed tiles (padding + VMEM-resident weights exercised).
    prep_bf16 = prepare_actor_params(params)              # use_bf16=True default
    state2 = jax.random.normal(kx2, (300, state_dim), jnp.float32)
    out2 = jax.block_until_ready(actor_forward(state2, prep_bf16, tile_batch=128))
    ref2 = actor_reference(state2, params)
    assert out2.shape == (300, action_dim)
    assert jnp.allclose(out2, ref2, atol=5e-2, rtol=5e-2), "bf16 mismatch vs reference"

    print("KERNEL_OK")
</pallas_src>

<mosaic_0001>
module attributes {stable_mosaic.version = 11 : i64} {
  func.func @actor_kernel(%arg0: i32, %arg1: memref<8x8xf32, #tpu.memory_space<vmem>>, %arg2: memref<8x512xf32, #tpu.memory_space<vmem>>, %arg3: memref<1x512xf32, #tpu.memory_space<vmem>>, %arg4: memref<512x384xf32, #tpu.memory_space<vmem>>, %arg5: memref<1x384xf32, #tpu.memory_space<vmem>>, %arg6: memref<384x128xf32, #tpu.memory_space<vmem>>, %arg7: memref<1x128xf32, #tpu.memory_space<vmem>>, %arg8: memref<8x128xf32, #tpu.memory_space<vmem>>) attributes {dimension_semantics = [#tpu.dimension_semantics<parallel>], iteration_bounds = array<i64: 1>, scalar_prefetch = 0 : i64, scratch_operands = 0 : i64, tpu.core_type = #tpu.core_type<tc>, window_params = [{transform_indices = @transform_0, window_bounds = array<i64: 8, 8>}, {pipeline_mode = #tpu.pipeline_mode<synchronous>, transform_indices = @transform_1, window_bounds = array<i64: 8, 512>}, {pipeline_mode = #tpu.pipeline_mode<synchronous>, transform_indices = @transform_2, window_bounds = array<i64: 1, 512>}, {pipeline_mode = #tpu.pipeline_mode<synchronous>, transform_indices = @transform_3, window_bounds = array<i64: 512, 384>}, {pipeline_mode = #tpu.pipeline_mode<synchronous>, transform_indices = @transform_4, window_bounds = array<i64: 1, 384>}, {pipeline_mode = #tpu.pipeline_mode<synchronous>, transform_indices = @transform_5, window_bounds = array<i64: 384, 128>}, {pipeline_mode = #tpu.pipeline_mode<synchronous>, transform_indices = @transform_6, window_bounds = array<i64: 1, 128>}, {transform_indices = @transform_7, window_bounds = array<i64: 8, 128>}]} {
    %c0 = arith.constant 0 : index
    %c0_0 = arith.constant 0 : index
    %0 = vector.load %arg1[%c0, %c0_0] : memref<8x8xf32, #tpu.memory_space<vmem>>, vector<8x8xf32>
    %c0_1 = arith.constant 0 : index
    %c0_2 = arith.constant 0 : index
    %1 = vector.load %arg2[%c0_1, %c0_2] : memref<8x512xf32, #tpu.memory_space<vmem>>, vector<8x512xf32>
    %cst = arith.constant dense<0.000000e+00> : vector<8x512xf32>
    %2 = tpu.matmul %0, %1, %cst {dimension_numbers = #tpu.dot_dimension_numbers<[1], [0], [0], [1], [0, 0, 1, 1], [], []>, precision = #tpu.contract_precision<fp32>} : vector<8x8xf32>, vector<8x512xf32>, vector<8x512xf32> -> vector<8x512xf32>
    %c0_3 = arith.constant 0 : index
    %c0_4 = arith.constant 0 : index
    %3 = vector.load %arg3[%c0_3, %c0_4] : memref<1x512xf32, #tpu.memory_space<vmem>>, vector<1x512xf32>
    %4 = vector.broadcast %3 : vector<1x512xf32> to vector<8x512xf32>
    %5 = arith.addf %2, %4 : vector<8x512xf32>
    %cst_5 = arith.constant 0.000000e+00 : f32
    %6 = vector.broadcast %cst_5 : f32 to vector<8x512xf32>
    %7 = arith.maximumf %5, %6 : vector<8x512xf32>
    %c0_6 = arith.constant 0 : index
    %c0_7 = arith.constant 0 : index
    %8 = vector.load %arg4[%c0_6, %c0_7] : memref<512x384xf32, #tpu.memory_space<vmem>>, vector<512x384xf32>
    %cst_8 = arith.constant dense<0.000000e+00> : vector<8x384xf32>
    %9 = tpu.matmul %7, %8, %cst_8 {dimension_numbers = #tpu.dot_dimension_numbers<[1], [0], [0], [1], [0, 0, 1, 1], [], []>, precision = #tpu.contract_precision<fp32>} : vector<8x512xf32>, vector<512x384xf32>, vector<8x384xf32> -> vector<8x384xf32>
    %c0_9 = arith.constant 0 : index
    %c0_10 = arith.constant 0 : index
    %10 = vector.load %arg5[%c0_9, %c0_10] : memref<1x384xf32, #tpu.memory_space<vmem>>, vector<1x384xf32>
    %11 = vector.broadcast %10 : vector<1x384xf32> to vector<8x384xf32>
    %12 = arith.addf %9, %11 : vector<8x384xf32>
    %cst_11 = arith.constant 0.000000e+00 : f32
    %13 = vector.broadcast %cst_11 : f32 to vector<8x384xf32>
    %14 = arith.maximumf %12, %13 : vector<8x384xf32>
    %c0_12 = arith.constant 0 : index
    %c0_13 = arith.constant 0 : index
    %15 = vector.load %arg6[%c0_12, %c0_13] : memref<384x128xf32, #tpu.memory_space<vmem>>, vector<384x128xf32>
    %cst_14 = arith.constant dense<0.000000e+00> : vector<8x128xf32>
    %16 = tpu.matmul %14, %15, %cst_14 {dimension_numbers = #tpu.dot_dimension_numbers<[1], [0], [0], [1], [0, 0, 1, 1], [], []>, precision = #tpu.contract_precision<fp32>} : vector<8x384xf32>, vector<384x128xf32>, vector<8x128xf32> -> vector<8x128xf32>
    %c0_15 = arith.constant 0 : index
    %c0_16 = arith.constant 0 : index
    %17 = vector.load %arg7[%c0_15, %c0_16] : memref<1x128xf32, #tpu.memory_space<vmem>>, vector<1x128xf32>
    %18 = vector.broadcast %17 : vector<1x128xf32> to vector<8x128xf32>
    %19 = arith.addf %16, %18 : vector<8x128xf32>
    %20 = math.tanh %19 : vector<8x128xf32>
    %c0_17 = arith.constant 0 : index
    %c0_18 = arith.constant 0 : index
    %21 = vector.load %arg8[%c0_17, %c0_18] : memref<8x128xf32, #tpu.memory_space<vmem>>, vector<8x128xf32>
    tpu.vector_store %arg8[%c0_17, %c0_18], %20 {strides = array<i32>} : memref<8x128xf32, #tpu.memory_space<vmem>>, vector<8x128xf32>,
    return
  }
  func.func @transform_0(%arg0: i32) -> (i32, i32) {
    %c0_i32 = arith.constant 0 : i32
    %c0_i32_0 = arith.constant 0 : i32
    return %arg0, %c0_i32 : i32, i32
  }
  func.func @transform_1(%arg0: i32) -> (i32, i32) {
    %c0_i32 = arith.constant 0 : i32
    %c0_i32_0 = arith.constant 0 : i32
    %c0_i32_1 = arith.constant 0 : i32
    return %c0_i32, %c0_i32_0 : i32, i32
  }
  func.func @transform_2(%arg0: i32) -> (i32, i32) {
    %c0_i32 = arith.constant 0 : i32
    %c0_i32_0 = arith.constant 0 : i32
    %c0_i32_1 = arith.constant 0 : i32
    return %c0_i32, %c0_i32_0 : i32, i32
  }
  func.func @transform_3(%arg0: i32) -> (i32, i32) {
    %c0_i32 = arith.constant 0 : i32
    %c0_i32_0 = arith.constant 0 : i32
    %c0_i32_1 = arith.constant 0 : i32
    return %c0_i32, %c0_i32_0 : i32, i32
  }
  func.func @transform_4(%arg0: i32) -> (i32, i32) {
    %c0_i32 = arith.constant 0 : i32
    %c0_i32_0 = arith.constant 0 : i32
    %c0_i32_1 = arith.constant 0 : i32
    return %c0_i32, %c0_i32_0 : i32, i32
  }
  func.func @transform_5(%arg0: i32) -> (i32, i32) {
    %c0_i32 = arith.constant 0 : i32
    %c0_i32_0 = arith.constant 0 : i32
    %c0_i32_1 = arith.constant 0 : i32
    return %c0_i32, %c0_i32_0 : i32, i32
  }
  func.func @transform_6(%arg0: i32) -> (i32, i32) {
    %c0_i32 = arith.constant 0 : i32
    %c0_i32_0 = arith.constant 0 : i32
    %c0_i32_1 = arith.constant 0 : i32
    return %c0_i32, %c0_i32_0 : i32, i32
  }
  func.func @transform_7(%arg0: i32) -> (i32, i32) {
    %c0_i32 = arith.constant 0 : i32
    %c0_i32_0 = arith.constant 0 : i32
    return %arg0, %c0_i32 : i32, i32
  }
}

</mosaic_0001>

<bundles_post_ra>
// kernel: tpu_custom_call.1
= control target key start
LH: loop header
LB: loop body
LE: loop exit
PB: predicated region body
PF: predicated region fallthrough
CT: control target
= control target key end

     0   :  { %12 = vsyncpa [#allocation3], 0  ;;  %s14310_s0 = inlined_call_operand.hbm [shape: f32[8,8], index: 0, kind: input, shape index: {}]   ;;  %s14311_s1 = inlined_call_operand.hbm [shape: f32[8,512], index: 1, kind: input, shape index: {}]   ;;  %s14312_s2 = inlined_call_operand.vmem [shape: f32[1,512], index: 2, kind: input, shape index: {}]   ;;  %s14313_s3 = inlined_call_operand.hbm [shape: f32[512,384], index: 3, kind: input, shape index: {}]   ;;  %s14314_s4 = inlined_call_operand.vmem [shape: f32[1,384], index: 4, kind: input, shape index: {}]   ;;  %s14315_s5 = inlined_call_operand.hbm [shape: f32[384,128], index: 5, kind: input, shape index: {}]   ;;  %s14316_s6 = inlined_call_operand.vmem [shape: f32[1,128], index: 6, kind: input, shape index: {}]   ;;  %s14317_s7 = inlined_call_operand.hbm [shape: f32[8,128], index: 7, kind: output, shape index: {}]  }
   0x1   :  { %13 = vsyncpa [#allocation6], 0 }
   0x2   :  { %14 = vsyncpa [#allocation9], 0 }
   0x3   :  { %15 = vsyncpa [#allocation4], 0  ;;  %s9747_s24 = smov [#allocation5]   ;;  %s9748_s26 = smov [#allocation2]  }
   0x4   :  { %s32_s25 = sshll.u32 %s9747_s24, 4  ;;  %s22_s27 = sshll.u32 %s9748_s26, 4  ;;  %s33_s25 = int_to_ptr.vmem [resolvable:$true] %s32_s25  ;;  %s23_s27 = int_to_ptr.vmem [resolvable:$true] %s22_s27 }
   0x5   :  { %s9629_s30 = scalar_lea.hbm %s14311_s1, 512 }
   0x6   :  { %p9630_p0 = scmp.ne.s32.totalorder %s14311_s1, %s9629_s30  ;;  %p9633_p1 = scmp.lt.u32.totalorder %s9629_s30, %s14311_s1 }
   0x8   :  { %p9635_p2 = pnand %p9633_p1, %p9630_p0 }
   0xa   :  { %9638 = shalt.err (!%p9635_p2)
}
   0xb   :  { %s9639_s12 = scalar_lea.vmem %s33_s25, 512  ;;  %p9644_p4 = scmp.lt.s32.totalorder %s33_s25, %s33_s25 }
   0xc   :  { %p9640_p3 = scmp.ne.s32.totalorder %s33_s25, %s9639_s12  ;;  %p9645_p5 = scmp.lt.s32.totalorder %s9639_s12, %s9639_s12 }
   0xe   :  { %p9646_p6 = por %p9645_p5, %p9644_p4 }
  0x10   :  { %p9647_p7 = pnand %p9646_p6, %p9640_p3 }
  0x12   :  { %9650 = shalt.err (!%p9647_p7)
}
  0x13   :  { %35 = dma.hbm_to_vmem [thread:$0]  %s14311_s1, 512, %s33_s25, [#allocation6]  }
  0x14   :  { %s9651_s17 = scalar_lea.hbm %s14310_s0, 128 }
  0x15   :  { %p9652_p8 = scmp.ne.s32.totalorder %s14310_s0, %s9651_s17  ;;  %p9655_p9 = scmp.lt.u32.totalorder %s9651_s17, %s14310_s0 }
  0x17   :  { %p9657_p10 = pnand %p9655_p9, %p9652_p8 }
  0x19   :  { %9660 = shalt.err (!%p9657_p10)
}
  0x1a   :  { %s9661_s22 = scalar_lea.vmem %s23_s27, 128  ;;  %p9666_p12 = scmp.lt.s32.totalorder %s23_s27, %s23_s27 }
  0x1b   :  { %p9662_p11 = scmp.ne.s32.totalorder %s23_s27, %s9661_s22  ;;  %p9667_p13 = scmp.lt.s32.totalorder %s9661_s22, %s9661_s22 }
  0x1d   :  { %p9668_p0 = por %p9667_p13, %p9666_p12 }
  0x1f   :  { %p9669_p1 = pnand %p9668_p0, %p9662_p11 }
  0x21   :  { %9672 = shalt.err (!%p9669_p1)
}
  0x22   :  { %25 = dma.hbm_to_vmem [thread:$0]  %s14310_s0, 128, %s23_s27, [#allocation3]  }
  0x23   :  { %s9749_s24 = smov [#allocation7]   ;;  %s9673_s29 = scalar_lea.hbm %s14313_s3, 24576 }
  0x24   :  { %s43_s25 = sshll.u32 %s9749_s24, 4  ;;  %p9674_p2 = scmp.ne.s32.totalorder %s14313_s3, %s9673_s29  ;;  %s44_s25 = int_to_ptr.vmem [resolvable:$true] %s43_s25 }
  0x25   :  { %p9677_p3 = scmp.lt.u32.totalorder %s9673_s29, %s14313_s3 }
  0x27   :  { %p9679_p4 = pnand %p9677_p3, %p9674_p2 }
  0x29   :  { %9682 = shalt.err (!%p9679_p4)
}
  0x2a   :  { %s9683_s11 = scalar_lea.vmem %s44_s25, 24576  ;;  %p9688_p6 = scmp.lt.s32.totalorder %s44_s25, %s44_s25 }
  0x2b   :  { %p9684_p5 = scmp.ne.s32.totalorder %s44_s25, %s9683_s11  ;;  %p9689_p7 = scmp.lt.s32.totalorder %s9683_s11, %s9683_s11 }
  0x2d   :  { %p9690_p8 = por %p9689_p7, %p9688_p6 }
  0x2f   :  { %p9691_p9 = pnand %p9690_p8, %p9684_p5 }
  0x31   :  { %9694 = shalt.err (!%p9691_p9)
}
  0x32   :  { %s9750_s0 = smov 384   ;;  %s9751_s27 = smov 24  }
  0x33   :  { %49 = dma.hbm_to_vmem [thread:$0]  %s14313_s3, 24576, %s44_s25, [#allocation6], %s9750_s0, %s9750_s0, %s9751_s27  }
  0x34   :  { %s9752_s14 = smov [#allocation8]   ;;  %s9695_s18 = scalar_lea.hbm %s14315_s5, 6144 }
  0x35   :  { %s57_s15 = sshll.u32 %s9752_s14, 4  ;;  %p9696_p10 = scmp.ne.s32.totalorder %s14315_s5, %s9695_s18  ;;  %s58_s15 = int_to_ptr.vmem [resolvable:$true] %s57_s15 }
  0x36   :  { %p9699_p11 = scmp.lt.u32.totalorder %s9695_s18, %s14315_s5 }
  0x38   :  { %p9701_p12 = pnand %p9699_p11, %p9696_p10 }
  0x3a   :  { %9704 = shalt.err (!%p9701_p12)
}
  0x3b   :  { %s9705_s1 = scalar_lea.vmem %s58_s15, 6144  ;;  %p9710_p0 = scmp.lt.s32.totalorder %s58_s15, %s58_s15 }
  0x3c   :  { %p9706_p13 = scmp.ne.s32.totalorder %s58_s15, %s9705_s1  ;;  %p9711_p1 = scmp.lt.s32.totalorder %s9705_s1, %s9705_s1 }
  0x3e   :  { %p9712_p2 = por %p9711_p1, %p9710_p0 }
  0x40   :  { %p9713_p3 = pnand %p9712_p2, %p9706_p13 }
  0x42   :  { %9716 = shalt.err (!%p9713_p3)
}
  0x43   :  { %s9753_s3 = smov 128   ;;  %s9754_s23 = smov 8  }
  0x44   :  { %63 = dma.hbm_to_vmem [thread:$0]  %s14315_s5, 6144, %s58_s15, [#allocation9], %s9753_s3, %s9753_s3, %s9754_s23  }
  0x45   :  { %9739 = dma.done.wait [#allocation3], 128  }
  0x46   :  { %9740 = vsyncadd [#allocation3], 4294967168 }
  0x47   :  { %9741 = dma.done.wait [#allocation6], 25088  }
  0x48   :  { %9742 = vsyncadd [#allocation6], 4294942208 }
  0x49   :  { %9743 = dma.done.wait [#allocation9], 6144  }
  0x4a   :  { %9744 = vsyncadd [#allocation9], 4294961152  ;;  %v14341_v0 = vmov 0.0   ;;  %vm105_vm0 = vcmask 64512   ;;  %v80_v1 = vld [vmem:[#allocation5 + $0x8] sm:$0xff]  ;;  %v79_v2 = vld [vmem:[#allocation5] sm:$0xff] }
  0x4b   :  { %175 = vmatprep.mubr.f32.mxu0 %v14341_v0  ;;  %640 = vmatprep.mubr.f32.mxu1 %v14341_v0  ;;  %v78_v3 = vld [vmem:[#allocation2] sm:$0xff]  ;;  %v9849_v4 = vand.u32 4294901760, %v80_v1  ;;  %v9851_v5 = vand.u32 4294901760, %v79_v2  ;;  %v81_v8 = vld [vmem:[#allocation5 + $0x10] sm:$0xff]  ;;  %v9853_v9 = vld [vmem:[#allocation7 + $0x8] sm:$0xff]  ;;  %vm9757_vm1 = vmmov 0  }
  0x4c   :  { %v107_v6 = vsel %vm105_vm0, %v78_v3, 0  ;;  %v82_v7 = vld [vmem:[#allocation5 + $0x18] sm:$0xff]  ;;  %v9859_v12 = vand.u32 4294901760, %v81_v8  ;;  %v9861_v13 = vld [vmem:[#allocation7 + $0x20] sm:$0xff]  ;;  %v14332_v17 = vand.u32 4294901760, %v9853_v9  ;;  %v9909_v33 = vld [vmem:[#allocation7 + $0x50] sm:$0xff] }
  0x4d   :  { %v9855_v10 = vand.u32 4294901760, %v107_v6  ;;  %v9857_v11 = vand.u32 4294901760, %v82_v7  ;;  %v9863_v14 = vld [vmem:[#allocation7] sm:$0xff]  ;;  %110 = vmatprep.subr.mxu0 %v9849_v4  ;;  %v9867_v15 = vsub.f32 %v79_v2, %v9851_v5  ;;  %v9870_v16 = vsub.f32 %v80_v1, %v9849_v4  ;;  %v9874_v19 = vld [vmem:[#allocation7 + $0x18] sm:$0xff]  ;;  %v9922_v37 = vld [vmem:[#allocation7 + $0x30] sm:$0xff] }
  0x4e   :  { %v14331_v18 = vand.u32 4294901760, %v9861_v13  ;;  %112 = vmatpush1.msra.mxu0 %v9851_v5  ;;  %v9882_v21 = vsub.f32 %v81_v8, %v9859_v12  ;;  %v14329_v23 = vand.u32 4294901760, %v9863_v14  ;;  %v9894_v26 = vsub.f32 %v9853_v9, %v14332_v17  ;;  %v9907_v32 = vld [vmem:[#allocation7 + $0x38] sm:$0xff]  ;;  %v9937_v42 = vld [vmem:[#allocation7 + $0x48] sm:$0xff]  ;;  %v9943_v48 = vld [vmem:[#allocation7 + $0x80] sm:$0xff] }
  0x4f   :  { %v9878_v20 = vsub.f32 %v107_v6, %v9855_v10  ;;  %575 = vmatprep.subr.mxu1 %v9857_v11  ;;  %v9885_v22 = vsub.f32 %v82_v7, %v9857_v11  ;;  %v14340_v24 = vand.u32 4294901760, %v9870_v16  ;;  %v14335_v25 = vand.u32 4294901760, %v9867_v15  ;;  %v9941_v47 = vld [vmem:[#allocation7 + $0x68] sm:$0xff]  ;;  %v9946_v52 = vld [vmem:[#allocation7 + $0x60] sm:$0xff]  ;;  %v9948_v53 = vld [vmem:[#allocation7 + $0x78] sm:$0xff] }
  0x50   :  { %577 = vmatpush1.msra.mxu1 %v9859_v12  ;;  %15101 = vst [vmem:[#allocation15_spill] sm:$0xff] %v9894_v26  ;;  %v14328_v27 = vand.u32 4294901760, %v9874_v19  ;;  %v14334_v30 = vand.u32 4294901760, %v9882_v21  ;;  %v9905_v31 = vsub.f32 %v9861_v13, %v14331_v18  ;;  %v9920_v36 = vsub.f32 %v9863_v14, %v14329_v23  ;;  %v9961_v58 = vld [vmem:[#allocation7 + $0x98] sm:$0xff]  ;;  %v9963_v59 = vld [vmem:[#allocation7 + $0xb0] sm:$0xff]  ;;  %v9982_v6 = vld [vmem:[#allocation7 + $0xa8] sm:$0xff] }
  0x51   :  { %v9898_v28 = vand.u32 4294901760, %v9878_v20  ;;  %v14336_v29 = vand.u32 4294901760, %v9885_v22  ;;  %v190_v34 = vsub.f32 %v9870_v16, %v14340_v24  ;;  %v196_v35 = vsub.f32 %v9867_v15, %v14335_v25  ;;  %v9972_v63 = vld [vmem:[#allocation7 + $0x90] sm:$0xff]  ;;  %v10069_v25 = vld [vmem:[#allocation7 + $0x140] sm:$0xff]  ;;  %v10086_v24 = vld [vmem:[#allocation7 + $0x138] sm:$0xff] }
  0x52   :  { %15102 = vst [vmem:[#allocation16_spill] sm:$0xff] %v9905_v31  ;;  %15103 = vst [vmem:[#allocation17_spill] sm:$0xff] %v9920_v36  ;;  %v661_v40 = vsub.f32 %v9882_v21, %v14334_v30  ;;  %v9935_v41 = vsub.f32 %v9874_v19, %v14328_v27  ;;  %v14327_v45 = vand.u32 4294901760, %v9907_v32  ;;  %v14324_v46 = vand.u32 4294901760, %v9909_v33  ;;  %v10048_v23 = vld [vmem:[#allocation7 + $0xf0] sm:$0xff]  ;;  %v10067_v30 = vld [vmem:[#allocation7 + $0x128] sm:$0xff] }
  0x53   :  { %v179_v38 = vsub.f32 %v9878_v20, %v9898_v28  ;;  %v655_v39 = vsub.f32 %v9885_v22, %v14336_v29  ;;  %v191_v43 = vand.u32 4294901760, %v190_v34  ;;  %v197_v44 = vand.u32 4294901760, %v196_v35  ;;  %v10071_v29 = vld [vmem:[#allocation7 + $0x120] sm:$0xff]  ;;  %v10154_v36 = vld [vmem:[#allocation7 + $0x190] sm:$0xff] }
  0x54   :  { %15104 = vst [vmem:[#allocation18_spill] sm:$0xff] %v9935_v41  ;;  %v14323_v51 = vand.u32 4294901760, %v9922_v37  ;;  %v662_v54 = vand.u32 4294901760, %v661_v40  ;;  %v9953_v55 = vsub.f32 %v9907_v32, %v14327_v45  ;;  %v9958_v56 = vsub.f32 %v9909_v33, %v14324_v46  ;;  %v10001_v40 = vld [vmem:[#allocation7 + $0xc0] sm:$0xff] }
  0x55   :  { %v180_v49 = vand.u32 4294901760, %v179_v38  ;;  %v656_v50 = vand.u32 4294901760, %v655_v39  ;;  %192 = vmatprep.subr.mxu0 %v191_v43  ;;  %v14322_v57 = vand.u32 4294901760, %v9937_v42  ;;  %v14321_v61 = vand.u32 4294901760, %v9941_v47  ;;  %v9997_v38 = vld [vmem:[#allocation7 + $0xc8] sm:$0xff]  ;;  %v9999_v39 = vld [vmem:[#allocation7 + $0xe0] sm:$0xff] }
  0x56   :  { %15105 = vst [vmem:[#allocation19_spill] sm:$0xff] %v9953_v55  ;;  %15106 = vst [vmem:[#allocation20_spill] sm:$0xff] %v9958_v56  ;;  %v9968_v60 = vsub.f32 %v9922_v37, %v14323_v51  ;;  %v14318_v62 = vand.u32 4294901760, %v9943_v48  ;;  %v14319_v2 = vand.u32 4294901760, %v9946_v52  ;;  %v14320_v3 = vand.u32 4294901760, %v9948_v53 }
  0x57   :  { %181 = vmatmul.mubr.f32.vlgmr.msra.gmra.mrb[0].mxu0 %v180_v49  ;;  %646 = vmatmul.mubr.f32.vlgmr.msra.gmra.mrb[0].mxu1 %v180_v49  ;;  %v9978_v1 = vsub.f32 %v9937_v42, %v14322_v57  ;;  %v9988_v7 = vsub.f32 %v9941_v47, %v14321_v61  ;;  %v14325_v34 = vand.u32 4294901760, %v9961_v58  ;;  %v14326_v35 = vand.u32 4294901760, %v9963_v59 }
  0x58   :  { %15107 = vst [vmem:[#allocation21_spill] sm:$0xff] %v9968_v60  ;;  %198 = vmatpush1.msra.mxu0 %v197_v44  ;;  %261 = vmatprep.mubr.f32.mxu0 %v14341_v0  ;;  %v9993_v8 = vsub.f32 %v9943_v48, %v14318_v62  ;;  %v10007_v43 = vsub.f32 %v9946_v52, %v14319_v2  ;;  %v14330_v49 = vand.u32 4294901760, %v9972_v63  ;;  %v10017_v62 = vld [vmem:[#allocation7 + $0xf8] sm:$0xff]  ;;  %v14338_v57 = vand.u32 4294901760, %v9997_v38  ;;  %v10136_v60 = vld [vmem:[#allocation7 + $0x1a0] sm:$0xff] }
  0x59   :  { %15108 = vst [vmem:[#allocation22_spill] sm:$0xff] %v9978_v1  ;;  %271 = vmatprep.subr.mxu0 %v9870_v16  ;;  %657 = vmatprep.subr.mxu1 %v656_v50  ;;  %15109 = vst [vmem:[#allocation23_spill] sm:$0xff] %v9988_v7  ;;  %v10012_v44 = vsub.f32 %v9948_v53, %v14320_v3  ;;  %v10015_v50 = vld [vmem:[#allocation7 + $0xd8] sm:$0xff]  ;;  %v10028_v2 = vsub.f32 %v9963_v59, %v14326_v35  ;;  %v14333_v3 = vand.u32 4294901760, %v9982_v6 }
  0x5a   :  { %15110 = vst [vmem:[#allocation24_spill] sm:$0xff] %v9993_v8  ;;  %663 = vmatpush1.msra.mxu1 %v662_v54  ;;  %726 = vmatprep.mubr.f32.mxu1 %v14341_v0  ;;  %15111 = vst [vmem:[#allocation25_spill] sm:$0xff] %v10007_v43  ;;  %v10023_v54 = vsub.f32 %v9961_v58, %v14325_v34  ;;  %v10034_v61 = vsub.f32 %v9972_v63, %v14330_v49  ;;  %v14337_v51 = vand.u32 4294901760, %v9999_v39  ;;  %v10039_v34 = vld [vmem:[#allocation7 + $0x110] sm:$0xff]  ;;  %v10050_v49 = vld [vmem:[#allocation7 + $0x108] sm:$0xff] }
  0x5b   :  { %15112 = vst [vmem:[#allocation26_spill] sm:$0xff] %v10012_v44  ;;  %736 = vmatprep.subr.mxu1 %v9885_v22  ;;  %15114 = vst [vmem:[#allocation28_spill] sm:$0xff] %v10028_v2  ;;  %v14339_v46 = vand.u32 4294901760, %v10001_v40  ;;  %v10044_v35 = vsub.f32 %v9982_v6, %v14333_v3  ;;  %v14345_v45 = vand.u32 4294901760, %v10015_v50  ;;  %v14346_v27 = vand.u32 4294901760, %v10017_v62  ;;  %v10088_v0 = vld [vmem:[#allocation7 + $0x158] sm:$0xff] }
  0x5c   :  { %15113 = vst [vmem:[#allocation27_spill] sm:$0xff] %v10023_v54  ;;  %15115 = vst [vmem:[#allocation29_spill] sm:$0xff] %v10034_v61  ;;  %v10055_v18 = vsub.f32 %v9997_v38, %v14338_v57  ;;  %v10060_v17 = vsub.f32 %v9999_v39, %v14337_v51  ;;  %v14351_v57 = vand.u32 4294901760, %v10039_v34  ;;  %v10104_v54 = vld [vmem:[#allocation7 + $0x170] sm:$0xff]  ;;  %v10122_v43 = vld [vmem:[#allocation7 + $0x168] sm:$0xff]  ;;  %v15129_v8 = vand.u32 4294901760, %v10067_v30 }
  0x5d   :  { %15116 = vst [vmem:[#allocation30_spill] sm:$0xff] %v10044_v35  ;;  %v10065_v3 = vsub.f32 %v10001_v40, %v14339_v46  ;;  %v10078_v51 = vsub.f32 %v10015_v50, %v14345_v45  ;;  %v10084_v46 = vsub.f32 %v10017_v62, %v14346_v27  ;;  %v10120_v35 = vld [vmem:[#allocation7 + $0x150] sm:$0xff]  ;;  %15128 = vst [vmem:[#allocation40_spill] sm:$0xff] %v10122_v43  ;;  %v15135_v2 = vand.u32 4294901760, %v10071_v29 }
  0x5e   :  { %15117 = vst [vmem:[#allocation31_spill] sm:$0xff] %v10055_v18  ;;  %15118 = vst [vmem:[#allocation32_spill] sm:$0xff] %v10060_v17  ;;  %v15122_v17 = vmov 0.0   ;;  %v14356_v18 = vand.u32 4294901760, %v10048_v23  ;;  %v10099_v27 = vsub.f32 %v10039_v34, %v14351_v57  ;;  %v15125_v57 = vand.u32 4294901760, %v10050_v49 }
  0x5f   :  { %15119 = vst [vmem:[#allocation33_spill] sm:$0xff] %v10065_v3  ;;  %263 = vmatmul.mubr.f32.vlgmr.msra.gmra.mrb[0].mxu0 %v9855_v10  ;;  %728 = vmatmul.mubr.f32.vlgmr.msra.gmra.mrb[0].mxu1 %v9855_v10  ;;  %15120 = vst [vmem:[#allocation34_spill] sm:$0xff] %v10078_v51  ;;  %v10127_v7 = vsub.f32 %v10067_v30, %v15129_v8  ;;  %v10141_v61 = vsub.f32 %v10071_v29, %v15135_v2  ;;  %v15137_v56 = vand.u32 4294901760, %v10086_v24  ;;  %v10225_v3 = vld [vmem:[#allocation7 + $0x1b0] sm:$0xff] }
  0x60   :  { %15121 = vst [vmem:[#allocation35_spill] sm:$0xff] %v10084_v46  ;;  %274 = vmatpush1.msra.mxu0 %v9867_v15  ;;  %337 = vmatprep.mubr.f32.mxu0 %v15122_v17  ;;  %15123 = vst [vmem:[#allocation36_spill] sm:$0xff] %v10099_v27  ;;  %v10111_v45 = vsub.f32 %v10048_v23, %v14356_v18  ;;  %v10116_v44 = vsub.f32 %v10050_v49, %v15125_v57  ;;  %v15131_v18 = vand.u32 4294901760, %v10069_v25  ;;  %v10134_v57 = vld [vmem:[#allocation7 + $0x188] sm:$0xff]  ;;  %v10205_v27 = vld [vmem:[#allocation7 + $0x1d0] sm:$0xff] }
  0x61   :  { %347 = vmatprep.subr.mxu0 %v9849_v4  ;;  %739 = vmatpush1.msra.mxu1 %v9882_v21  ;;  %15127 = vst [vmem:[#allocation39_spill] sm:$0xff] %v10120_v35  ;;  %15130 = vst [vmem:[#allocation41_spill] sm:$0xff] %v10127_v7  ;;  %v10146_v55 = vsub.f32 %v10086_v24, %v15137_v56  ;;  %v14370_v8 = vand.u32 4294901760, %v10104_v54  ;;  %v15139_v41 = vand.u32 4294901760, %v10088_v0  ;;  %v14372_v7 = vand.u32 4294901760, %v10120_v35  ;;  %v10207_v46 = vld [vmem:[#allocation7 + $0x1c0] sm:$0xff] }
  0x62   :  { %802 = vmatprep.mubr.f32.mxu1 %v15122_v17  ;;  %812 = vmatprep.subr.mxu1 %v9857_v11  ;;  %15124 = vst [vmem:[#allocation37_spill] sm:$0xff] %v10111_v45  ;;  %15126 = vst [vmem:[#allocation38_spill] sm:$0xff] %v10116_v44  ;;  %v10132_v1 = vsub.f32 %v10069_v25, %v15131_v18  ;;  %v10162_v44 = vld [vmem:[#allocation7 + $0x198] sm:$0xff]  ;;  %v15145_v45 = vand.u32 4294901760, %v10122_v43  ;;  %v15153_v51 = vand.u32 4294901760, %v9870_v16  ;;  %v15159_v16 = vand.u32 4294901760, %v9885_v22 }
  0x63   :  { %15133 = vst [vmem:[#allocation43_spill] sm:$0xff] %v10134_v57  ;;  %15134 = vst [vmem:[#allocation44_spill] sm:$0xff] %v10136_v60  ;;  %v10152_v18 = vsub.f32 %v10088_v0, %v15139_v41  ;;  %v10167_v56 = vsub.f32 %v10104_v54, %v14370_v8  ;;  %v10178_v2 = vsub.f32 %v10120_v35, %v14372_v7  ;;  %v15169_v26 = vand.u32 4294901760, %v10205_v27 }
  0x64   :  { %15132 = vst [vmem:[#allocation42_spill] sm:$0xff] %v10132_v1  ;;  %15136 = vst [vmem:[#allocation45_spill] sm:$0xff] %v10141_v61  ;;  %v10156_v1 = vld [vmem:[#allocation7 + $0x1a8] sm:$0xff]  ;;  %v10160_v61 = vld [vmem:[#allocation7 + $0x180] sm:$0xff]  ;;  %v10183_v8 = vsub.f32 %v10122_v43, %v15145_v45 }
  0x65   :  { %15138 = vst [vmem:[#allocation46_spill] sm:$0xff] %v10146_v55  ;;  %15140 = vst [vmem:[#allocation47_spill] sm:$0xff] %v10152_v18  ;;  %v10171_v55 = vld [vmem:[#allocation7 + $0x10] sm:$0xff]  ;;  %v15156_v41 = vand.u32 4294901760, %v10156_v1  ;;  %v1063_v43 = vld [vmem:[#allocation7 + $0xa0] sm:$0xff] }
  0x66   :  { %15141 = vst [vmem:[#allocation48_spill] sm:$0xff] %v10160_v61  ;;  %15142 = vst [vmem:[#allocation49_spill] sm:$0xff] %v10162_v44 }
  0x67   :  { %15143 = vst [vmem:[#allocation50_spill] sm:$0xff] %v10167_v56  ;;  %340 = vmatmul.mubr.f32.vlgmr.msra.gmra.mrb[0].mxu0 %v9878_v20  ;;  %805 = vmatmul.mubr.f32.vlgmr.msra.gmra.mrb[0].mxu1 %v9878_v20  ;;  %15144 = vst [vmem:[#allocation51_spill] sm:$0xff] %v10178_v2  ;;  %v10187_v56 = vld [vmem:[#allocation7 + $0x28] sm:$0xff]  ;;  %v15147_v20 = vand.u32 4294901760, %v10134_v57  ;;  %v15149_v2 = vand.u32 4294901760, %v10136_v60  ;;  %v10220_v18 = vsub.f32 %v10156_v1, %v15156_v41 }
  0x68   :  { %15146 = vst [vmem:[#allocation52_spill] sm:$0xff] %v10183_v8  ;;  %349 = vmatpush1.msra.mxu0 %v9851_v5  ;;  %412 = vmatprep.mubr.f32.mxu0 %v15122_v17  ;;  %v10203_v8 = vld [vmem:[#allocation7 + $0x1b8] sm:$0xff]  ;;  %15152 = vst [vmem:[#allocation56_spill] sm:$0xff] %v10205_v27 }
  0x69   :  { %v10194_v7 = vsub.f32 %v10134_v57, %v15147_v20  ;;  %v10199_v45 = vsub.f32 %v10136_v60, %v15149_v2  ;;  %15151 = vst [vmem:[#allocation55_spill] sm:$0xff] %v10203_v8  ;;  %425 = vmatprep.subr.mxu0 %v15153_v51  ;;  %814 = vmatpush1.msra.mxu1 %v9859_v12  ;;  %v15154_v20 = vand.u32 4294901760, %v10154_v36  ;;  %15157 = vst [vmem:[#allocation58_spill] sm:$0xff] %v10220_v18 }
  0x6a   :  { %15158 = vst [vmem:[#allocation59_spill] sm:$0xff] %v10225_v3  ;;  %877 = vmatprep.mubr.f32.mxu1 %v15122_v17  ;;  %890 = vmatprep.subr.mxu1 %v15159_v16  ;;  %v15160_v51 = vand.u32 4294901760, %v10160_v61  ;;  %v15164_v18 = vand.u32 4294901760, %v10171_v55  ;;  %v14393_v22 = vand.u32 4294901760, %v10203_v8  ;;  %v15205_v57 = vand.u32 4294901760, %v10156_v1 }
  0x6b   :  { %15148 = vst [vmem:[#allocation53_spill] sm:$0xff] %v10194_v7  ;;  %15150 = vst [vmem:[#allocation54_spill] sm:$0xff] %v10199_v45  ;;  %v10215_v2 = vsub.f32 %v10154_v36, %v15154_v20  ;;  %v10223_v7 = vld [vmem:[#allocation7 + $0x1d8] sm:$0xff]  ;;  %v14389_v45 = vand.u32 4294901760, %v10187_v56 }
  0x6c   :  { %v10233_v20 = vsub.f32 %v10160_v61, %v15160_v51  ;;  %v10244_v31 = vsub.f32 %v10171_v55, %v15164_v18  ;;  %v10249_v51 = vld [vmem:[#allocation7 + $0x1c8] sm:$0xff]  ;;  %v10260_v18 = vld [vmem:[#allocation7 + $0x58] sm:$0xff]  ;;  %v10265_v16 = vsub.f32 %v10203_v8, %v14393_v22  ;;  %v10281_v61 = vld [vmem:[#allocation7 + $0x1f0] sm:$0xff]  ;;  %v15175_v60 = vand.u32 4294901760, %v10223_v7 }
  0x6d   :  { %15155 = vst [vmem:[#allocation57_spill] sm:$0xff] %v10215_v2  ;;  %v15162_v2 = vand.u32 4294901760, %v10162_v44  ;;  %15166 = vst [vmem:[#allocation63_spill] sm:$0xff] %v10249_v51  ;;  %v15187_v8 = vand.u32 4294901760, %v10260_v18 }
  0x6e   :  { %15161 = vst [vmem:[#allocation60_spill] sm:$0xff] %v10233_v20  ;;  %15165 = vst [vmem:[#allocation62_spill] sm:$0xff] %v10244_v31  ;;  %v10270_v31 = vsub.f32 %v10205_v27, %v15169_v26  ;;  %v10277_v20 = vld [vmem:[#allocation7 + $0x1e8] sm:$0xff]  ;;  %v10286_v22 = vsub.f32 %v10223_v7, %v15175_v60  ;;  %v15177_v26 = vand.u32 4294901760, %v10225_v3  ;;  %v15184_v60 = vand.u32 4294901760, %v9882_v21  ;;  %v10330_v27 = vld [vmem:[#allocation7 + $0x70] sm:$0xff] }
  0x6f   :  { %v10238_v41 = vsub.f32 %v10162_v44, %v15162_v2  ;;  %v10254_v2 = vsub.f32 %v10187_v56, %v14389_v45  ;;  %v10258_v44 = vld [vmem:[#allocation7 + $0x40] sm:$0xff]  ;;  %15168 = vst [vmem:[#allocation65_spill] sm:$0xff] %v10265_v16  ;;  %v15171_v45 = vand.u32 4294901760, %v10207_v46  ;;  %15173 = vst [vmem:[#allocation68_spill] sm:$0xff] %v10277_v20  ;;  %416 = vmatmul.mubr.f32.vlgmr.msra.gmra.mrb[0].mxu0 %v9898_v28  ;;  %881 = vmatmul.mubr.f32.vlgmr.msra.gmra.mrb[0].mxu1 %v9898_v28 }
  0x70   :  { %15170 = vst [vmem:[#allocation66_spill] sm:$0xff] %v10270_v31  ;;  %15176 = vst [vmem:[#allocation70_spill] sm:$0xff] %v10286_v22  ;;  %v10292_v31 = vsub.f32 %v10225_v3, %v15177_v26  ;;  %v10302_v22 = vld [vmem:[#allocation7 + $0x1f8] sm:$0xff]  ;;  %v15181_v16 = vand.u32 4294901760, %v9867_v15  ;;  %492 = vmatprep.mubr.f32.mxu0 %v15122_v17  ;;  %v15182_v26 = vand.u32 4294901760, %v10249_v51  ;;  %894 = vmatpush1.msra.mxu1 %v15184_v60  ;;  %v15185_v15 = vand.u32 4294901760, %v10258_v44 }
  0x71   :  { %15163 = vst [vmem:[#allocation61_spill] sm:$0xff] %v10238_v41  ;;  %15167 = vst [vmem:[#allocation64_spill] sm:$0xff] %v10254_v2  ;;  %v10275_v41 = vsub.f32 %v10207_v46, %v15171_v45  ;;  %v10279_v2 = vld [vmem:[#allocation7 + $0x200] sm:$0xff]  ;;  %v10294_v45 = vld [vmem:[#allocation7 + $0x208] sm:$0xff]  ;;  %957 = vmatprep.mubr.f32.mxu1 %v15122_v17  ;;  %966 = vmatprep.subr.mxu1 %v9857_v11  ;;  %v15189_v21 = vand.u32 4294901760, %v10277_v20 }
  0x72   :  { %15174 = vst [vmem:[#allocation69_spill] sm:$0xff] %v10279_v2  ;;  %15178 = vst [vmem:[#allocation71_spill] sm:$0xff] %v10292_v31  ;;  %429 = vmatpush1.msra.mxu0 %v15181_v16  ;;  %v10310_v31 = vsub.f32 %v10249_v51, %v15182_v26  ;;  %v10321_v16 = vsub.f32 %v10258_v44, %v15185_v15  ;;  %v10326_v26 = vsub.f32 %v10260_v18, %v15187_v8  ;;  %v10347_v3 = vld [vmem:[#allocation7 + $0x218] sm:$0xff]  ;;  %v1111_v28 = vld [vmem:[#allocation7 + $0x220] sm:$0xff] }
  0x73   :  { %15172 = vst [vmem:[#allocation67_spill] sm:$0xff] %v10275_v41  ;;  %v10296_v41 = vld [vmem:[#allocation7 + $0x1e0] sm:$0xff]  ;;  %15180 = vst [vmem:[#allocation73_spill] sm:$0xff] %v10302_v22  ;;  %501 = vmatprep.subr.mxu0 %v9849_v4  ;;  %v10332_v4 = vld [vmem:[#allocation7 + $0x88] sm:$0xff]  ;;  %v10339_v60 = vsub.f32 %v10277_v20, %v15189_v21  ;;  %v15191_v8 = vand.u32 4294901760, %v10279_v2 }
  0x74   :  { %15179 = vst [vmem:[#allocation72_spill] sm:$0xff] %v10296_v41  ;;  %15183 = vst [vmem:[#allocation74_spill] sm:$0xff] %v10310_v31  ;;  %v10349_v31 = vld [vmem:[#allocation7 + $0x230] sm:$0xff] }
  0x75   :  { %15186 = vst [vmem:[#allocation75_spill] sm:$0xff] %v10321_v16  ;;  %15188 = vst [vmem:[#allocation76_spill] sm:$0xff] %v10326_v26  ;;  %v10344_v15 = vsub.f32 %v10279_v2, %v15191_v8  ;;  %v15193_v26 = vand.u32 4294901760, %v10281_v61  ;;  %v15195_v16 = vand.u32 4294901760, %v10294_v45  ;;  %v15199_v2 = vand.u32 4294901760, %v10302_v22  ;;  %v10373_v51 = vld [vmem:[#allocation7 + $0x210] sm:$0xff] }
  0x76   :  { %15190 = vst [vmem:[#allocation77_spill] sm:$0xff] %v10339_v60  ;;  %v15197_v60 = vand.u32 4294901760, %v10296_v41  ;;  %v14424_v1 = vand.u32 4294901760, %v10373_v51 }
  0x77   :  { %15192 = vst [vmem:[#allocation78_spill] sm:$0xff] %v10344_v15  ;;  %v10354_v11 = vsub.f32 %v10281_v61, %v15193_v26  ;;  %v10359_v21 = vsub.f32 %v10294_v45, %v15195_v16  ;;  %v1114_v15 = vld [vmem:[#allocation7 + $0x238] sm:$0xff]  ;;  %v10369_v20 = vsub.f32 %v10302_v22, %v15199_v2  ;;  %v3833_v26 = vand.u32 4294901760, %v10330_v27  ;;  %v10375_v16 = vld [vmem:[#allocation7 + $0x228] sm:$0xff]  ;;  %494 = vmatmul.mubr.f32.vlgmr.msra.gmra.mrb[0].mxu0 %v9855_v10 }
  0x78   :  { %v10364_v8 = vsub.f32 %v10296_v41, %v15197_v60  ;;  %v15202_v60 = vand.u32 4294901760, %v9861_v13  ;;  %v15204_v41 = vand.u32 4294901760, %v10154_v36  ;;  %v14420_v22 = vand.u32 4294901760, %v10349_v31  ;;  %959 = vmatmul.mubr.f32.vlgmr.msra.gmra.mrb[0].mxu1 %v9855_v10  ;;  %503 = vmatpush1.msra.mxu0 %v9851_v5 }
  0x79   :  { %15194 = vst [vmem:[#allocation79_spill] sm:$0xff] %v10354_v11  ;;  %15196 = vst [vmem:[#allocation80_spill] sm:$0xff] %v10359_v21  ;;  %v3836_v11 = vand.u32 4294901760, %v10332_v4  ;;  %v15201_v21 = vand.u32 4294901760, %v9853_v9  ;;  %v10392_v35 = vsub.f32 %v10330_v27, %v3833_v26  ;;  %v3887_v13 = vand.u32 4294901760, %v1111_v28  ;;  %566 = vmatprep.mubr.f32.mxu0 %v15122_v17  ;;  %968 = vmatpush1.msra.mxu1 %v9859_v12 }
  0x7a   :  { %15198 = vst [vmem:[#allocation81_spill] sm:$0xff] %v10364_v8  ;;  %15200 = vst [vmem:[#allocation82_spill] sm:$0xff] %v10369_v20  ;;  %v10387_v2 = vpack.c.bf16 %v15205_v57, %v15204_v41  ;;  %v14421_v20 = vand.u32 4294901760, %v10347_v3  ;;  %v10407_v27 = vsub.f32 %v10349_v31, %v14420_v22  ;;  %v14426_v57 = vand.u32 4294901760, %v10375_v16  ;;  %1031 = vmatprep.mubr.f32.mxu1 %v15122_v17 }
  0x7b   :  { %v10381_v8 = vpack.c.bf16 %v15202_v60, %v15201_v21  ;;  %15207 = vst [vmem:[#allocation85_spill] sm:$0xff] %v10392_v35  ;;  %v10395_v9 = vsub.f32 %v10332_v4, %v3836_v11  ;;  %v3890_v21 = vand.u32 4294901760, %v1114_v15  ;;  %v1066_v60 = vld [vmem:[#allocation7 + $0xb8] sm:$0xff]  ;;  %v10413_v41 = vsub.f32 %v1111_v28, %v3887_v13 }
  0x7c   :  { %15206 = vst [vmem:[#allocation84_spill] sm:$0xff] %v10387_v2  ;;  %v10402_v36 = vsub.f32 %v10347_v3, %v14421_v20  ;;  %15210 = vst [vmem:[#allocation88_spill] sm:$0xff] %v10407_v27  ;;  %v10422_v22 = vsub.f32 %v10373_v51, %v14424_v1  ;;  %v10427_v5 = vsub.f32 %v10375_v16, %v14426_v57  ;;  %v3842_v20 = vand.u32 4294901760, %v1066_v60 }
  0x7d   :  { %15203 = vst [vmem:[#allocation83_spill] sm:$0xff] %v10381_v8  ;;  %15208 = vst [vmem:[#allocation86_spill] sm:$0xff] %v10395_v9  ;;  %v10415_v4 = vsub.f32 %v1114_v15, %v3890_v21  ;;  %v3839_v9 = vand.u32 4294901760, %v1063_v43  ;;  %8068 = vmatprep.subr.bf16.mxu0 %v10381_v8  ;;  %8836 = vmatprep.subr.bf16.mxu1 %v10387_v2  ;;  %v15216_v12 = vand.u32 4294901760, %v9863_v14  ;;  %v15217_v8 = vand.u32 4294901760, %v9874_v19 }
  0x7e   :  { %15209 = vst [vmem:[#allocation87_spill] sm:$0xff] %v10402_v36  ;;  %15211 = vst [vmem:[#allocation89_spill] sm:$0xff] %v10413_v41  ;;  %v10433_v15 = vsub.f32 %v1066_v60, %v3842_v20  ;;  %v15220_v57 = vand.u32 4294901760, %v10187_v56  ;;  %v15222_v17 = vand.u32 4294901760, %v9907_v32  ;;  %v15223_v2 = vand.u32 4294901760, %v9909_v33 }
  0x7f   :  { %15212 = vst [vmem:[#allocation90_spill] sm:$0xff] %v10422_v22  ;;  %15213 = vst [vmem:[#allocation91_spill] sm:$0xff] %v10427_v5  ;;  %v10431_v28 = vsub.f32 %v1063_v43, %v3839_v9  ;;  %v10439_v1 = vpack.c.bf16 %v15217_v8, %v15216_v12  ;;  %v15219_v22 = vand.u32 4294901760, %v10171_v55  ;;  %v15225_v60 = vand.u32 4294901760, %v10207_v46  ;;  %568 = vmatmul.mubr.f32.vlgmr.msra.gmra.mrb[0].mxu0 %v9855_v10 }
  0x80   :  { %15215 = vst [vmem:[#allocation93_spill] sm:$0xff] %v10433_v15  ;;  %v10451_v43 = vpack.c.bf16 %v15223_v2, %v15222_v17  ;;  %v15226_v14 = vand.u32 4294901760, %v10223_v7  ;;  %1033 = vmatmul.mubr.f32.vlgmr.msra.gmra.mrb[0].mxu1 %v9855_v10  ;;  %v15228_v19 = vand.u32 4294901760, %v9922_v37  ;;  %v15229_v32 = vand.u32 4294901760, %v9937_v42 }
  0x81   :  { %15214 = vst [vmem:[#allocation92_spill] sm:$0xff] %v10431_v28  ;;  %15218 = vst [vmem:[#allocation94_spill] sm:$0xff] %v10439_v1  ;;  %v10445_v5 = vpack.c.bf16 %v15220_v57, %v15219_v22  ;;  %8070 = vmatpush1.bf16.msra.mxu0 %v10439_v1  ;;  %v15231_v17 = vand.u32 4294901760, %v10258_v44  ;;  %v15232_v33 = vand.u32 4294901760, %v10260_v18  ;;  %v15234_v10 = vand.u32 4294901760, %v9941_v47  ;;  %v1135_v1 = vld [vmem:[#allocation7 + $0x2e0] sm:$0xff] }
  0x82   :  { %15224 = vst [vmem:[#allocation96_spill] sm:$0xff] %v10451_v43  ;;  %v10457_v27 = vpack.c.bf16 %v15226_v14, %v15225_v60  ;;  %v10466_v55 = vpack.c.bf16 %v15229_v32, %v15228_v19  ;;  %8072 = vmatprep.subr.bf16.mxu0 %v10451_v43  ;;  %v15235_v7 = vand.u32 4294901760, %v9943_v48  ;;  %v15237_v37 = vand.u32 4294901760, %v10281_v61  ;;  %v15275_v32 = vld [vmem:[#allocation40_spill] sm:$0xff] }
  0x83   :  { %15221 = vst [vmem:[#allocation95_spill] sm:$0xff] %v10445_v5  ;;  %8838 = vmatpush3.bf16.msra.mxu1 %v10445_v5  ;;  %v10473_v46 = vpack.c.bf16 %v15232_v33, %v15231_v17  ;;  %v15238_v42 = vand.u32 4294901760, %v10294_v45  ;;  %v15240_v44 = vand.u32 4294901760, %v9946_v52  ;;  %v15241_v18 = vand.u32 4294901760, %v9948_v53  ;;  %v1137_v43 = vld [vmem:[#allocation7 + $0x2f0] sm:$0xff]  ;;  %v15379_v5 = vld [vmem:[#allocation75_spill] sm:$0xff] }
  0x84   :  { %15227 = vst [vmem:[#allocation97_spill] sm:$0xff] %v10457_v27  ;;  %15230 = vst [vmem:[#allocation98_spill] sm:$0xff] %v10466_v55  ;;  %v10480_v56 = vpack.c.bf16 %v15235_v7, %v15234_v10  ;;  %8840 = vmatprep.subr.bf16.mxu1 %v10457_v27  ;;  %v10497_v47 = vpack.c.bf16 %v3836_v11, %v3833_v26  ;;  %v15244_v48 = vand.u32 4294901760, %v9961_v58  ;;  %v15245_v61 = vand.u32 4294901760, %v9963_v59  ;;  %v15280_v10 = vld [vmem:[#allocation44_spill] sm:$0xff] }
  0x85   :  { %15233 = vst [vmem:[#allocation99_spill] sm:$0xff] %v10473_v46  ;;  %v10487_v22 = vpack.c.bf16 %v15238_v42, %v15237_v37  ;;  %8074 = vmatpush1.bf16.msra.mxu0 %v10466_v55  ;;  %v10494_v8 = vpack.c.bf16 %v15241_v18, %v15240_v44  ;;  %v10507_v2 = vpack.c.bf16 %v3890_v21, %v3887_v13  ;;  %v15248_v52 = vand.u32 4294901760, %v9972_v63  ;;  %v15285_v42 = vld [vmem:[#allocation49_spill] sm:$0xff] }
  0x86   :  { %15236 = vst [vmem:[#allocation100_spill] sm:$0xff] %v10480_v56  ;;  %15243 = vst [vmem:[#allocation103_spill] sm:$0xff] %v10497_v47  ;;  %8076 = vmatprep.subr.bf16.mxu0 %v10480_v56  ;;  %v10504_v45 = vpack.c.bf16 %v15245_v61, %v15244_v48  ;;  %v15249_v53 = vand.u32 4294901760, %v9982_v6  ;;  %v10517_v26 = vpack.c.bf16 %v3842_v20, %v3839_v9  ;;  %v15252_v58 = vand.u32 4294901760, %v9997_v38  ;;  %v15288_v48 = vld [vmem:[#allocation55_spill] sm:$0xff]  ;;  %v1134_v55 = vld [vmem:[#allocation7 + $0x2d8] sm:$0xff] }
  0x87   :  { %15239 = vst [vmem:[#allocation101_spill] sm:$0xff] %v10487_v22  ;;  %15242 = vst [vmem:[#allocation102_spill] sm:$0xff] %v10494_v8  ;;  %8842 = vmatpush3.bf16.msra.mxu1 %v10473_v46  ;;  %v15253_v59 = vand.u32 4294901760, %v9999_v39  ;;  %v15255_v63 = vand.u32 4294901760, %v10001_v40  ;;  %v15256_v6 = vand.u32 4294901760, %v10015_v50  ;;  %v15258_v38 = vand.u32 4294901760, %v10017_v62 }
  0x88   :  { %15246 = vst [vmem:[#allocation104_spill] sm:$0xff] %v10504_v45  ;;  %8844 = vmatprep.subr.bf16.mxu1 %v10487_v22  ;;  %15247 = vst [vmem:[#allocation105_spill] sm:$0xff] %v10507_v2  ;;  %v10514_v11 = vpack.c.bf16 %v15249_v53, %v15248_v52  ;;  %v15259_v39 = vand.u32 4294901760, %v10039_v34  ;;  %v15261_v9 = vand.u32 4294901760, %v10048_v23  ;;  %v15262_v40 = vand.u32 4294901760, %v10050_v49  ;;  %v15290_v52 = vld [vmem:[#allocation56_spill] sm:$0xff] }
  0x89   :  { %8078 = vmatpush1.bf16.msra.mxu0 %v10494_v8  ;;  %15251 = vst [vmem:[#allocation107_spill] sm:$0xff] %v10517_v26  ;;  %v10524_v13 = vpack.c.bf16 %v15253_v59, %v15252_v58  ;;  %v10532_v21 = vpack.c.bf16 %v15256_v6, %v15255_v63  ;;  %v15264_v50 = vand.u32 4294901760, %v10067_v30  ;;  %v15265_v12 = vand.u32 4294901760, %v10069_v25  ;;  %v15273_v25 = vld [vmem:[#allocation39_spill] sm:$0xff] }
  0x8a   :  { %15250 = vst [vmem:[#allocation106_spill] sm:$0xff] %v10514_v11  ;;  %8080 = vmatprep.subr.bf16.mxu0 %v10504_v45  ;;  %v10540_v20 = vpack.c.bf16 %v15259_v39, %v15258_v38  ;;  %v10547_v57 = vpack.c.bf16 %v15262_v40, %v15261_v9  ;;  %v15267_v62 = vand.u32 4294901760, %v10071_v29  ;;  %v15268_v34 = vand.u32 4294901760, %v10086_v24  ;;  %v15278_v24 = vld [vmem:[#allocation43_spill] sm:$0xff]  ;;  %v15298_v9 = vld [vmem:[#allocation68_spill] sm:$0xff] }
  0x8b   :  { %8846 = vmatpush3.bf16.msra.mxu1 %v10497_v47  ;;  %15254 = vst [vmem:[#allocation108_spill] sm:$0xff] %v10524_v13  ;;  %15257 = vst [vmem:[#allocation109_spill] sm:$0xff] %v10532_v21  ;;  %v10554_v60 = vpack.c.bf16 %v15265_v12, %v15264_v50  ;;  %v15270_v23 = vand.u32 4294901760, %v10088_v0  ;;  %v15271_v49 = vand.u32 4294901760, %v10104_v54  ;;  %v15274_v30 = vand.u32 4294901760, %v15273_v25  ;;  %v15283_v0 = vld [vmem:[#allocation48_spill] sm:$0xff] }
  0x8c   :  { %8848 = vmatprep.subr.bf16.mxu1 %v10507_v2  ;;  %15260 = vst [vmem:[#allocation110_spill] sm:$0xff] %v10540_v20  ;;  %15263 = vst [vmem:[#allocation111_spill] sm:$0xff] %v10547_v57  ;;  %v10561_v14 = vpack.c.bf16 %v15268_v34, %v15267_v62  ;;  %v15276_v17 = vand.u32 4294901760, %v15275_v32  ;;  %v15279_v29 = vand.u32 4294901760, %v15278_v24  ;;  %v15281_v7 = vand.u32 4294901760, %v15280_v10  ;;  %v15293_v59 = vld [vmem:[#allocation59_spill] sm:$0xff] }
  0x8d   :  { %8082 = vmatpush1.bf16.msra.mxu0 %v10514_v11  ;;  %15266 = vst [vmem:[#allocation112_spill] sm:$0xff] %v10554_v60  ;;  %v10568_v19 = vpack.c.bf16 %v15271_v49, %v15270_v23  ;;  %v15284_v54 = vand.u32 4294901760, %v15283_v0  ;;  %v15286_v44 = vand.u32 4294901760, %v15285_v42  ;;  %v15289_v61 = vand.u32 4294901760, %v15288_v48  ;;  %v15295_v6 = vld [vmem:[#allocation63_spill] sm:$0xff]  ;;  %v15300_v50 = vld [vmem:[#allocation69_spill] sm:$0xff] }
  0x8e   :  { %8084 = vmatprep.subr.bf16.mxu0 %v10524_v13  ;;  %15269 = vst [vmem:[#allocation113_spill] sm:$0xff] %v10561_v14  ;;  %v10575_v33 = vpack.c.bf16 %v15276_v17, %v15274_v30  ;;  %v10582_v37 = vpack.c.bf16 %v15281_v7, %v15279_v29  ;;  %v15291_v53 = vand.u32 4294901760, %v15290_v52  ;;  %v15294_v63 = vand.u32 4294901760, %v15293_v59  ;;  %v15303_v34 = vld [vmem:[#allocation72_spill] sm:$0xff]  ;;  %v15305_v49 = vld [vmem:[#allocation73_spill] sm:$0xff]  ;;  %v10635_v0 = vld [vmem:[#allocation7 + $0x248] sm:$0xff] }
  0x8f   :  { %8850 = vmatpush3.bf16.msra.mxu1 %v10517_v26  ;;  %15272 = vst [vmem:[#allocation114_spill] sm:$0xff] %v10568_v19  ;;  %v10589_v18 = vpack.c.bf16 %v15286_v44, %v15284_v54  ;;  %v15296_v38 = vand.u32 4294901760, %v15295_v6  ;;  %v15299_v40 = vand.u32 4294901760, %v15298_v9  ;;  %v15301_v12 = vand.u32 4294901760, %v15300_v50  ;;  %v10637_v54 = vld [vmem:[#allocation7 + $0x260] sm:$0xff]  ;;  %v10643_v44 = vld [vmem:[#allocation7 + $0x268] sm:$0xff] }
  0x90   :  { %15277 = vst [vmem:[#allocation39_spill] sm:$0xff] %v10575_v33  ;;  %15282 = vst [vmem:[#allocation40_spill] sm:$0xff] %v10582_v37  ;;  %v10596_v58 = vpack.c.bf16 %v15291_v53, %v15289_v61  ;;  %v15304_v23 = vand.u32 4294901760, %v15303_v34  ;;  %v15306_v25 = vand.u32 4294901760, %v15305_v49  ;;  %v15308_v32 = vand.u32 4294901760, %v10347_v3  ;;  %v10639_v3 = vld [vmem:[#allocation7 + $0x250] sm:$0xff] }
  0x91   :  { %8086 = vmatpush1.bf16.msra.mxu0 %v10532_v21  ;;  %15287 = vst [vmem:[#allocation43_spill] sm:$0xff] %v10589_v18  ;;  %v10603_v39 = vpack.c.bf16 %v15296_v38, %v15294_v63  ;;  %v10610_v62 = vpack.c.bf16 %v15301_v12, %v15299_v40  ;;  %v15309_v17 = vand.u32 4294901760, %v10349_v31  ;;  %v15311_v29 = vand.u32 4294901760, %v10373_v51  ;;  %v10648_v48 = vld [vmem:[#allocation7 + $0x258] sm:$0xff]  ;;  %v10653_v59 = vld [vmem:[#allocation7 + $0xd0] sm:$0xff]  ;;  %v10655_v63 = vld [vmem:[#allocation7 + $0xe8] sm:$0xff] }
  0x92   :  { %8088 = vmatprep.subr.bf16.mxu0 %v10540_v20  ;;  %15292 = vst [vmem:[#allocation44_spill] sm:$0xff] %v10596_v58  ;;  %v10617_v30 = vpack.c.bf16 %v15306_v25, %v15304_v23  ;;  %v15312_v10 = vand.u32 4294901760, %v10375_v16  ;;  %v14439_v31 = vand.u32 4294901760, %v10635_v0  ;;  %v14438_v42 = vand.u32 4294901760, %v10637_v54  ;;  %v10646_v16 = vld [vmem:[#allocation7 + $0x240] sm:$0xff]  ;;  %v10677_v12 = vld [vmem:[#allocation7 + $0x278] sm:$0xff] }
  0x93   :  { %15297 = vst [vmem:[#allocation48_spill] sm:$0xff] %v10603_v39  ;;  %15302 = vst [vmem:[#allocation49_spill] sm:$0xff] %v10610_v62  ;;  %v10624_v24 = vpack.c.bf16 %v15309_v17, %v15308_v32  ;;  %v14437_v51 = vand.u32 4294901760, %v10639_v3  ;;  %v14434_v61 = vand.u32 4294901760, %v10643_v44  ;;  %v14433_v52 = vand.u32 4294901760, %v10646_v16  ;;  %v10679_v34 = vld [vmem:[#allocation7 + $0x290] sm:$0xff] }
  0x94   :  { %15307 = vst [vmem:[#allocation55_spill] sm:$0xff] %v10617_v30  ;;  %v10631_v7 = vpack.c.bf16 %v15312_v10, %v15311_v29  ;;  %v14432_v53 = vand.u32 4294901760, %v10648_v48  ;;  %v10661_v6 = vpack.c.bf16 %v14438_v42, %v14439_v31  ;;  %v14436_v38 = vand.u32 4294901760, %v10653_v59  ;;  %v10681_v23 = vld [vmem:[#allocation7 + $0x280] sm:$0xff]  ;;  %v1126_v17 = vld [vmem:[#allocation7 + $0x298] sm:$0xff]  ;;  %v10692_v29 = vld [vmem:[#allocation7 + $0x270] sm:$0xff] }
  0x95   :  { %8090 = vmatpush1.bf16.msra.mxu0 %v10547_v57  ;;  %15310 = vst [vmem:[#allocation56_spill] sm:$0xff] %v10624_v24  ;;  %v14435_v9 = vand.u32 4294901760, %v10655_v63  ;;  %v10669_v40 = vpack.c.bf16 %v14434_v61, %v14437_v51  ;;  %v1356_v25 = vand.u32 4294901760, %v10677_v12  ;;  %v1360_v32 = vand.u32 4294901760, %v10679_v34  ;;  %v10694_v10 = vld [vmem:[#allocation7 + $0x288] sm:$0xff]  ;;  %v1078_v51 = vld [vmem:[#allocation7 + $0x118] sm:$0xff] }
  0x96   :  { %8092 = vmatprep.subr.bf16.mxu0 %v10554_v60  ;;  %15313 = vst [vmem:[#allocation59_spill] sm:$0xff] %v10631_v7  ;;  %15314 = vst [vmem:[#allocation63_spill] sm:$0xff] %v10661_v6  ;;  %v10675_v50 = vpack.c.bf16 %v14432_v53, %v14433_v52  ;;  %v3899_v53 = vand.u32 4294901760, %v10681_v23  ;;  %v3902_v52 = vand.u32 4294901760, %v1126_v17  ;;  %v1358_v61 = vand.u32 4294901760, %v10692_v29  ;;  %v1081_v21 = vld [vmem:[#allocation7 + $0x130] sm:$0xff] }
  0x97   :  { %15315 = vst [vmem:[#allocation68_spill] sm:$0xff] %v10669_v40  ;;  %v10688_v49 = vpack.c.bf16 %v14435_v9, %v14436_v38  ;;  %8852 = vmatprep.subr.bf16.mxu1 %v10669_v40  ;;  %v1362_v9 = vand.u32 4294901760, %v10694_v10  ;;  %v1075_v38 = vld [vmem:[#allocation7 + $0x100] sm:$0xff]  ;;  %v10702_v42 = vpack.c.bf16 %v1360_v32, %v1356_v25  ;;  %v1084_v13 = vld [vmem:[#allocation7 + $0x148] sm:$0xff]  ;;  %v3857_v11 = vand.u32 4294901760, %v1081_v21 }
  0x98   :  { %15316 = vst [vmem:[#allocation69_spill] sm:$0xff] %v10675_v50  ;;  %v3851_v31 = vand.u32 4294901760, %v1075_v38  ;;  %v3860_v45 = vand.u32 4294901760, %v1084_v13  ;;  %v3911_v40 = vand.u32 4294901760, %v1135_v1  ;;  %v15328_v2 = vand.u32 4294901760, %v10637_v54 }
  0x99   :  { %8094 = vmatpush1.bf16.msra.mxu0 %v10561_v14  ;;  %15317 = vst [vmem:[#allocation72_spill] sm:$0xff] %v10688_v49  ;;  %8854 = vmatpush3.bf16.msra.mxu1 %v10688_v49  ;;  %15318 = vst [vmem:[#allocation73_spill] sm:$0xff] %v10702_v42  ;;  %v1130_v14 = vld [vmem:[#allocation7 + $0x2b8] sm:$0xff]  ;;  %v1376_v49 = vand.u32 4294901760, %v1137_v43  ;;  %v15330_v22 = vand.u32 4294901760, %v10639_v3 }
  0x9a   :  { %8096 = vmatprep.subr.bf16.mxu0 %v10568_v19  ;;  %v1127_v19 = vld [vmem:[#allocation7 + $0x2a0] sm:$0xff]  ;;  %v1370_v20 = vand.u32 4294901760, %v1130_v14  ;;  %v10731_v47 = vsub.f32 %v10637_v54, %v15328_v2  ;;  %v15336_v2 = vand.u32 4294901760, %v10648_v48 }
  0x9b   :  { %v1366_v57 = vand.u32 4294901760, %v1127_v19  ;;  %v10736_v46 = vsub.f32 %v10639_v3, %v15330_v22  ;;  %v15338_v22 = vand.u32 4294901760, %v10653_v59 }
  0x9c   :  { %15329 = vst [vmem:[#allocation123_spill] sm:$0xff] %v10731_v47  ;;  %v10752_v54 = vsub.f32 %v10648_v48, %v15336_v2  ;;  %v10772_v48 = vsub.f32 %v10681_v23, %v3899_v53  ;;  %v10774_v2 = vsub.f32 %v1126_v17, %v3902_v52  ;;  %v1133_v23 = vld [vmem:[#allocation7 + $0x2d0] sm:$0xff]  ;;  %v1136_v17 = vld [vmem:[#allocation7 + $0x2e8] sm:$0xff] }
  0x9d   :  { %8098 = vmatpush1.bf16.msra.mxu0 %v10575_v33  ;;  %v10718_v56 = vpack.c.bf16 %v1370_v20, %v1366_v57  ;;  %15331 = vst [vmem:[#allocation124_spill] sm:$0xff] %v10736_v46  ;;  %v10757_v3 = vsub.f32 %v10653_v59, %v15338_v22  ;;  %v10778_v59 = vsub.f32 %v10692_v29, %v1358_v61 }
  0x9e   :  { %8100 = vmatprep.subr.bf16.mxu0 %v10582_v37  ;;  %v1132_v37 = vld [vmem:[#allocation7 + $0x2c8] sm:$0xff]  ;;  %15337 = vst [vmem:[#allocation127_spill] sm:$0xff] %v10752_v54  ;;  %15344 = vst [vmem:[#allocation132_spill] sm:$0xff] %v10772_v48  ;;  %v10783_v22 = vsub.f32 %v1075_v38, %v3851_v31  ;;  %v10795_v29 = vsub.f32 %v1127_v19, %v1366_v57 }
  0x9f   :  { %v3908_v60 = vand.u32 4294901760, %v1132_v37  ;;  %15324 = vst [vmem:[#allocation120_spill] sm:$0xff] %v10718_v56  ;;  %15339 = vst [vmem:[#allocation128_spill] sm:$0xff] %v10757_v3 }
  0xa0   :  { %15345 = vst [vmem:[#allocation133_spill] sm:$0xff] %v10774_v2  ;;  %15346 = vst [vmem:[#allocation134_spill] sm:$0xff] %v10778_v59 }
  0xa1   :  { %8102 = vmatpush1.bf16.msra.mxu0 %v10589_v18  ;;  %15348 = vst [vmem:[#allocation136_spill] sm:$0xff] %v10783_v22  ;;  %15354 = vst [vmem:[#allocation142_spill] sm:$0xff] %v10795_v29 }
  0xa2   :  { %8104 = vmatprep.subr.bf16.mxu0 %v10596_v58 }
  0xa5   :  { %8106 = vmatpush1.bf16.msra.mxu0 %v10603_v39 }
  0xa6   :  { %8108 = vmatprep.subr.bf16.mxu0 %v10610_v62  ;;  %v1129_v62 = vld [vmem:[#allocation7 + $0x2b0] sm:$0xff] }
  0xa7   :  { %v3905_v33 = vand.u32 4294901760, %v1129_v62 }
  0xa9   :  { %8110 = vmatpush1.bf16.msra.mxu0 %v10617_v30  ;;  %v1131_v30 = vld [vmem:[#allocation7 + $0x2c0] sm:$0xff]  ;;  %v10716_v8 = vpack.c.bf16 %v3908_v60, %v3905_v33 }
  0xaa   :  { %8112 = vmatprep.subr.bf16.mxu0 %v10624_v24  ;;  %v10706_v24 = vpack.c.bf16 %v1362_v9, %v1358_v61  ;;  %v1368_v18 = vand.u32 4294901760, %v1131_v30  ;;  %v1087_v61 = vld [vmem:[#allocation7 + $0x160] sm:$0xff] }
  0xab   :  { %15323 = vst [vmem:[#allocation119_spill] sm:$0xff] %v10716_v8  ;;  %v3863_v57 = vand.u32 4294901760, %v1087_v61 }
  0xac   :  { %15320 = vst [vmem:[#allocation116_spill] sm:$0xff] %v10706_v24 }
  0xad   :  { %8114 = vmatpush1.bf16.msra.mxu0 %v10631_v7  ;;  %v10704_v7 = vpack.c.bf16 %v3902_v52, %v3899_v53  ;;  %v10791_v53 = vsub.f32 %v1129_v62, %v3905_v33  ;;  %v10793_v52 = vsub.f32 %v1132_v37, %v3908_v60  ;;  %v10807_v33 = vsub.f32 %v1137_v43, %v1376_v49 }
  0xae   :  { %8116 = vmatprep.subr.bf16.mxu0 %v10661_v6  ;;  %v3854_v6 = vand.u32 4294901760, %v1078_v51  ;;  %v10809_v37 = vsub.f32 %v1135_v1, %v3911_v40  ;;  %v1374_v62 = vand.u32 4294901760, %v1133_v23  ;;  %v10823_v1 = vsub.f32 %v1087_v61, %v3863_v57  ;;  %v15374_v61 = vld [vmem:[#allocation62_spill] sm:$0xff] }
  0xaf   :  { %15319 = vst [vmem:[#allocation115_spill] sm:$0xff] %v10704_v7  ;;  %8856 = vmatprep.subr.bf16.mxu1 %v10704_v7  ;;  %v1372_v7 = vand.u32 4294901760, %v1134_v55  ;;  %15352 = vst [vmem:[#allocation140_spill] sm:$0xff] %v10791_v53 }
  0xb0   :  { %v10709_v39 = vpack.c.bf16 %v3854_v6, %v3851_v31  ;;  %15353 = vst [vmem:[#allocation141_spill] sm:$0xff] %v10793_v52  ;;  %v10799_v31 = vsub.f32 %v1081_v21, %v3857_v11  ;;  %15360 = vst [vmem:[#allocation148_spill] sm:$0xff] %v10807_v33 }
  0xb1   :  { %8118 = vmatpush1.bf16.msra.mxu0 %v10675_v50  ;;  %v1128_v50 = vld [vmem:[#allocation7 + $0x2a8] sm:$0xff]  ;;  %15361 = vst [vmem:[#allocation149_spill] sm:$0xff] %v10809_v37  ;;  %15368 = vst [vmem:[#allocation155_spill] sm:$0xff] %v10823_v1 }
  0xb2   :  { %8120 = vmatprep.subr.bf16.mxu0 %v10702_v42  ;;  %15321 = vst [vmem:[#allocation117_spill] sm:$0xff] %v10709_v39  ;;  %v1364_v58 = vand.u32 4294901760, %v1128_v50  ;;  %8858 = vmatpush3.bf16.msra.mxu1 %v10709_v39  ;;  %v15326_v39 = vand.u32 4294901760, %v10635_v0  ;;  %15356 = vst [vmem:[#allocation144_spill] sm:$0xff] %v10799_v31 }
  0xb3   :  { %8860 = vmatprep.subr.bf16.mxu1 %v10716_v8 }
  0xb4   :  { %v10714_v42 = vpack.c.bf16 %v1368_v18, %v1364_v58  ;;  %v10726_v26 = vsub.f32 %v10635_v0, %v15326_v39  ;;  %v15334_v39 = vand.u32 4294901760, %v10646_v16 }
  0xb5   :  { %8122 = vmatpush1.bf16.msra.mxu0 %v10706_v24  ;;  %v10721_v24 = vpack.c.bf16 %v3860_v45, %v3857_v11 }
  0xb6   :  { %15322 = vst [vmem:[#allocation118_spill] sm:$0xff] %v10714_v42  ;;  %8124 = vmatprep.subr.bf16.mxu0 %v10714_v42  ;;  %15327 = vst [vmem:[#allocation122_spill] sm:$0xff] %v10726_v26  ;;  %v15332_v42 = vand.u32 4294901760, %v10643_v44  ;;  %v10747_v0 = vsub.f32 %v10646_v16, %v15334_v39  ;;  %v10766_v16 = vsub.f32 %v10677_v12, %v1356_v25  ;;  %v1138_v25 = vld [vmem:[#allocation7 + $0x2f8] sm:$0xff] }
  0xb7   :  { %15325 = vst [vmem:[#allocation121_spill] sm:$0xff] %v10721_v24  ;;  %v10769_v39 = vsub.f32 %v10679_v34, %v1360_v32  ;;  %8862 = vmatpush3.bf16.msra.mxu1 %v10721_v24  ;;  %v10785_v12 = vsub.f32 %v1078_v51, %v3854_v6  ;;  %v10787_v34 = vsub.f32 %v1128_v50, %v1364_v58  ;;  %v1090_v6 = vld [vmem:[#allocation7 + $0x178] sm:$0xff]  ;;  %v3914_v60 = vand.u32 4294901760, %v1138_v25 }
  0xb8   :  { %v10741_v27 = vsub.f32 %v10643_v44, %v15332_v42  ;;  %15335 = vst [vmem:[#allocation126_spill] sm:$0xff] %v10747_v0  ;;  %v15340_v42 = vand.u32 4294901760, %v10655_v63  ;;  %15342 = vst [vmem:[#allocation130_spill] sm:$0xff] %v10766_v16  ;;  %v10789_v32 = vsub.f32 %v1131_v30, %v1368_v18  ;;  %v10801_v51 = vsub.f32 %v1084_v13, %v3860_v45  ;;  %v15364_v13 = vld [vmem:[#allocation15_spill] sm:$0xff] }
  0xb9   :  { %8126 = vmatpush1.bf16.msra.mxu0 %v10718_v56  ;;  %15343 = vst [vmem:[#allocation131_spill] sm:$0xff] %v10769_v39  ;;  %15349 = vst [vmem:[#allocation137_spill] sm:$0xff] %v10785_v12  ;;  %v10803_v58 = vpack.c.bf16 %v1376_v49, %v1372_v7  ;;  %v10805_v18 = vsub.f32 %v1134_v55, %v1372_v7  ;;  %v1378_v30 = vand.u32 4294901760, %v1136_v17  ;;  %v3866_v45 = vand.u32 4294901760, %v1090_v6  ;;  %v15372_v49 = vld [vmem:[#allocation57_spill] sm:$0xff] }
  0xba   :  { %15333 = vst [vmem:[#allocation125_spill] sm:$0xff] %v10741_v27  ;;  %v10762_v44 = vsub.f32 %v10655_v63, %v15340_v42  ;;  %v10781_v63 = vsub.f32 %v10694_v10, %v1362_v9  ;;  %15350 = vst [vmem:[#allocation138_spill] sm:$0xff] %v10787_v34  ;;  %v10797_v9 = vsub.f32 %v1130_v14, %v1370_v20  ;;  %v14517_v21 = vand.u32 4294901760, %v15364_v13  ;;  %v15373_v42 = vld [vmem:[#allocation58_spill] sm:$0xff] }
  0xbb   :  { %15351 = vst [vmem:[#allocation139_spill] sm:$0xff] %v10789_v32  ;;  %15357 = vst [vmem:[#allocation145_spill] sm:$0xff] %v10801_v51  ;;  %8128 = vmatprep.subr.bf16.mxu0 %v10803_v58  ;;  %v10812_v20 = vpack.c.bf16 %v3914_v60, %v3911_v40  ;;  %v10814_v11 = vsub.f32 %v1138_v25, %v3914_v60  ;;  %v10817_v14 = vpack.c.bf16 %v1378_v30, %v1374_v62  ;;  %v15371_v40 = vld [vmem:[#allocation16_spill] sm:$0xff] }
  0xbc   :  { %15341 = vst [vmem:[#allocation129_spill] sm:$0xff] %v10762_v44  ;;  %15347 = vst [vmem:[#allocation135_spill] sm:$0xff] %v10781_v63  ;;  %v10819_v55 = vsub.f32 %v1133_v23, %v1374_v62  ;;  %v10821_v43 = vsub.f32 %v1136_v17, %v1378_v30  ;;  %v10826_v19 = vpack.c.bf16 %v3866_v45, %v3863_v57  ;;  %v14516_v50 = vand.u32 4294901760, %v15371_v40  ;;  %v15375_v60 = vld [vmem:[#allocation64_spill] sm:$0xff] }
  0xbd   :  { %15355 = vst [vmem:[#allocation143_spill] sm:$0xff] %v10797_v9  ;;  %15358 = vst [vmem:[#allocation146_spill] sm:$0xff] %v10803_v58  ;;  %8864 = vmatprep.subr.bf16.mxu1 %v10812_v20  ;;  %v10828_v7 = vsub.f32 %v1090_v6, %v3866_v45  ;;  %v1400_v38 = vsub.f32 %v15364_v13, %v14517_v21  ;;  %8130 = vmatpush1.bf16.msra.mxu0 %v10817_v14  ;;  %v14528_v10 = vand.u32 4294901760, %v15372_v49 }
  0xbe   :  { %15359 = vst [vmem:[#allocation147_spill] sm:$0xff] %v10805_v18  ;;  %15362 = vst [vmem:[#allocation150_spill] sm:$0xff] %v10812_v20  ;;  %v14533_v25 = vand.u32 4294901760, %v15373_v42  ;;  %8866 = vmatpush3.bf16.msra.mxu1 %v10826_v19  ;;  %v1412_v17 = vsub.f32 %v15371_v40, %v14516_v50  ;;  %v14534_v6 = vand.u32 4294901760, %v15374_v61  ;;  %v14537_v62 = vand.u32 4294901760, %v15375_v60 }
  0xbf   :  { %15363 = vst [vmem:[#allocation151_spill] sm:$0xff] %v10814_v11  ;;  %15365 = vst [vmem:[#allocation152_spill] sm:$0xff] %v10817_v14  ;;  %v1401_v23 = vand.u32 4294901760, %v1400_v38  ;;  %v4048_v30 = vsub.f32 %v15372_v49, %v14528_v10  ;;  %v15376_v10 = vld [vmem:[#allocation67_spill] sm:$0xff]  ;;  %v14568_v18 = vand.u32 4294901760, %v10774_v2 }
  0xc0   :  { %15366 = vst [vmem:[#allocation153_spill] sm:$0xff] %v10819_v55  ;;  %15367 = vst [vmem:[#allocation154_spill] sm:$0xff] %v10821_v43  ;;  %v4055_v57 = vsub.f32 %v15373_v42, %v14533_v25  ;;  %v1413_v45 = vand.u32 4294901760, %v1412_v17  ;;  %v3936_v38 = vsub.f32 %v15374_v61, %v14534_v6  ;;  %v3943_v50 = vsub.f32 %v15375_v60, %v14537_v62  ;;  %v15378_v17 = vld [vmem:[#allocation70_spill] sm:$0xff]  ;;  %v15424_v49 = vld [vmem:[#allocation71_spill] sm:$0xff] }
  0xc1   :  { %15369 = vst [vmem:[#allocation156_spill] sm:$0xff] %v10826_v19  ;;  %15370 = vst [vmem:[#allocation157_spill] sm:$0xff] %v10828_v7  ;;  %v4049_v21 = vand.u32 4294901760, %v4048_v30  ;;  %v14538_v24 = vand.u32 4294901760, %v15376_v10  ;;  %v14539_v25 = vand.u32 4294901760, %v15378_v17  ;;  %v14542_v62 = vand.u32 4294901760, %v15379_v5 }
  0xc2   :  { %v4056_v14 = vand.u32 4294901760, %v4055_v57  ;;  %v8131_v58 = vpack.c.bf16 %v1413_v45, %v1401_v23  ;;  %v3937_v56 = vand.u32 4294901760, %v3936_v38  ;;  %v3944_v19 = vand.u32 4294901760, %v3943_v50  ;;  %v15380_v50 = vld [vmem:[#allocation76_spill] sm:$0xff]  ;;  %v15382_v45 = vld [vmem:[#allocation79_spill] sm:$0xff] }
  0xc3   :  { %v4062_v6 = vsub.f32 %v15376_v10, %v14538_v24  ;;  %v4069_v23 = vsub.f32 %v15378_v17, %v14539_v25  ;;  %v14543_v38 = vand.u32 4294901760, %v15382_v45  ;;  %v15383_v24 = vld [vmem:[#allocation80_spill] sm:$0xff]  ;;  %v14615_v42 = vand.u32 4294901760, %v15424_v49  ;;  %v15427_v10 = vld [vmem:[#allocation77_spill] sm:$0xff]  ;;  %v15428_v17 = vld [vmem:[#allocation78_spill] sm:$0xff] }
  0xc4   :  { %v8867_v20 = vpack.c.bf16 %v4056_v14, %v4049_v21  ;;  %8132 = vmatprep.subr.bf16.mxu0 %v8131_v58  ;;  %v10856_v8 = vpack.c.bf16 %v3944_v19, %v3937_v56  ;;  %v14541_v21 = vand.u32 4294901760, %v15380_v50  ;;  %v3950_v56 = vsub.f32 %v15379_v5, %v14542_v62  ;;  %v15429_v5 = vld [vmem:[#allocation81_spill] sm:$0xff] }
  0xc5   :  { %v4063_v14 = vand.u32 4294901760, %v4062_v6  ;;  %v4070_v58 = vand.u32 4294901760, %v4069_v23  ;;  %v14545_v25 = vand.u32 4294901760, %v15383_v24  ;;  %v4076_v6 = vsub.f32 %v15382_v45, %v14543_v38 }
  0xc6   :  { %15377 = vst [vmem:[#allocation158_spill] sm:$0xff] %v10856_v8  ;;  %8868 = vmatprep.subr.bf16.mxu1 %v8867_v20  ;;  %v3957_v20 = vsub.f32 %v15380_v50, %v14541_v21  ;;  %v3951_v19 = vand.u32 4294901760, %v3950_v56  ;;  %v14548_v23 = vand.u32 4294901760, %v10392_v35  ;;  %v15385_v56 = vld [vmem:[#allocation86_spill] sm:$0xff]  ;;  %v14623_v50 = vand.u32 4294901760, %v15429_v5 }
  0xc7   :  { %v10873_v30 = vpack.c.bf16 %v4070_v58, %v4063_v14  ;;  %v4083_v21 = vsub.f32 %v15383_v24, %v14545_v25  ;;  %v14546_v14 = vand.u32 4294901760, %v15385_v56  ;;  %v4077_v58 = vand.u32 4294901760, %v4076_v6 }
  0xc8   :  { %v3958_v57 = vand.u32 4294901760, %v3957_v20  ;;  %v3964_v20 = vsub.f32 %v10392_v35, %v14548_v23  ;;  %v14549_v25 = vand.u32 4294901760, %v10415_v4 }
  0xc9   :  { %15381 = vst [vmem:[#allocation159_spill] sm:$0xff] %v10873_v30  ;;  %v4084_v62 = vand.u32 4294901760, %v4083_v21 }
  0xca   :  { %v10877_v40 = vpack.c.bf16 %v3958_v57, %v3951_v19  ;;  %v3971_v19 = vsub.f32 %v15385_v56, %v14546_v14  ;;  %v3965_v57 = vand.u32 4294901760, %v3964_v20  ;;  %v4097_v21 = vsub.f32 %v10415_v4, %v14549_v25 }
  0xcb   :  { %v10893_v38 = vpack.c.bf16 %v4084_v62, %v4077_v58  ;;  %v14551_v14 = vand.u32 4294901760, %v10431_v28  ;;  %v14550_v62 = vand.u32 4294901760, %v10433_v15  ;;  %v14552_v25 = vand.u32 4294901760, %v10736_v46 }
  0xcc   :  { %15384 = vst [vmem:[#allocation160_spill] sm:$0xff] %v10877_v40  ;;  %v3972_v13 = vand.u32 4294901760, %v3971_v19  ;;  %v14547_v40 = vand.u32 4294901760, %v10413_v41  ;;  %v4098_v20 = vand.u32 4294901760, %v4097_v21 }
  0xcd   :  { %15386 = vst [vmem:[#allocation161_spill] sm:$0xff] %v10893_v38  ;;  %v3978_v19 = vsub.f32 %v10431_v28, %v14551_v14  ;;  %v15389_v38 = vld [vmem:[#allocation33_spill] sm:$0xff]  ;;  %v4104_v21 = vsub.f32 %v10736_v46, %v14552_v25  ;;  %v14564_v14 = vand.u32 4294901760, %v10762_v44  ;;  %v14640_v28 = vand.u32 4294901760, %v10747_v0 }
  0xce   :  { %v10897_v30 = vpack.c.bf16 %v3972_v13, %v3965_v57  ;;  %v4090_v6 = vsub.f32 %v10413_v41, %v14547_v40  ;;  %v3985_v13 = vsub.f32 %v10433_v15, %v14550_v62  ;;  %v14555_v8 = vand.u32 4294901760, %v15389_v38 }
  0xcf   :  { %v3979_v40 = vand.u32 4294901760, %v3978_v19  ;;  %v14639_v41 = vand.u32 4294901760, %v10731_v47 }
  0xd0   :  { %15387 = vst [vmem:[#allocation162_spill] sm:$0xff] %v10897_v30  ;;  %v4091_v58 = vand.u32 4294901760, %v4090_v6  ;;  %v3986_v23 = vand.u32 4294901760, %v3985_v13  ;;  %v14554_v30 = vand.u32 4294901760, %v10741_v27  ;;  %v1502_v19 = vsub.f32 %v15389_v38, %v14555_v8 }
  0xd1   :  { %v14562_v13 = vand.u32 4294901760, %v10757_v3  ;;  %v3999_v8 = vsub.f32 %v10762_v44, %v14564_v14  ;;  %v11291_v44 = vld [vmem:[%s14312_s2] sm:$0xf] }
  0xd2   :  { %v10913_v57 = vpack.c.bf16 %v4098_v20, %v4091_v58  ;;  %v10918_v6 = vpack.c.bf16 %v3986_v23, %v3979_v40  ;;  %v4111_v62 = vsub.f32 %v10741_v27, %v14554_v30  ;;  %v15391_v58 = vld [vmem:[#allocation34_spill] sm:$0xff]  ;;  %v4105_v40 = vand.u32 4294901760, %v4104_v21  ;;  %v15394_v21 = vld [vmem:[#allocation36_spill] sm:$0xff]  ;;  %v15452_v27 = vld [vmem:[#allocation41_spill] sm:$0xff]  ;;  %15461 = vst [vmem:[#allocation187_spill] sm:$0xff] %v11291_v44 }
  0xd3   :  { %v14558_v20 = vand.u32 4294901760, %v15391_v58  ;;  %v1503_v43 = vand.u32 4294901760, %v1502_v19  ;;  %v3992_v30 = vsub.f32 %v10757_v3, %v14562_v13  ;;  %v4000_v33 = vand.u32 4294901760, %v3999_v8 }
  0xd4   :  { %15388 = vst [vmem:[#allocation163_spill] sm:$0xff] %v10913_v57  ;;  %15390 = vst [vmem:[#allocation164_spill] sm:$0xff] %v10918_v6  ;;  %v4112_v23 = vand.u32 4294901760, %v4111_v62  ;;  %v15392_v6 = vld [vmem:[#allocation35_spill] sm:$0xff]  ;;  %v14567_v19 = vand.u32 4294901760, %v10772_v48  ;;  %v4125_v8 = vsub.f32 %v10774_v2, %v14568_v18 }
  0xd5   :  { %v1514_v25 = vsub.f32 %v15391_v58, %v14558_v20  ;;  %v14565_v57 = vand.u32 4294901760, %v15392_v6  ;;  %v14566_v20 = vand.u32 4294901760, %v15394_v21  ;;  %v3993_v58 = vand.u32 4294901760, %v3992_v30 }
  0xd6   :  { %v10942_v38 = vpack.c.bf16 %v4112_v23, %v4105_v40  ;;  %v4118_v30 = vsub.f32 %v10772_v48, %v14567_v19  ;;  %v14657_v48 = vand.u32 4294901760, %v10789_v32 }
  0xd7   :  { %v1515_v55 = vand.u32 4294901760, %v1514_v25  ;;  %v1520_v62 = vsub.f32 %v15392_v6, %v14565_v57  ;;  %v1532_v40 = vsub.f32 %v15394_v21, %v14566_v20  ;;  %v15396_v25 = vld [vmem:[#allocation37_spill] sm:$0xff]  ;;  %v10956_v14 = vpack.c.bf16 %v4000_v33, %v3993_v58  ;;  %v15398_v57 = vld [vmem:[#allocation38_spill] sm:$0xff] }
  0xd8   :  { %15393 = vst [vmem:[#allocation165_spill] sm:$0xff] %v10942_v38  ;;  %v14570_v23 = vand.u32 4294901760, %v15396_v25  ;;  %v14574_v20 = vand.u32 4294901760, %v10783_v22  ;;  %v14576_v33 = vand.u32 4294901760, %v10785_v12  ;;  %v4119_v58 = vand.u32 4294901760, %v4118_v30 }
  0xd9   :  { %v10950_v13 = vpack.c.bf16 %v1515_v55, %v1503_v43  ;;  %v1521_v9 = vand.u32 4294901760, %v1520_v62  ;;  %15397 = vst [vmem:[#allocation167_spill] sm:$0xff] %v10956_v14  ;;  %v14572_v55 = vand.u32 4294901760, %v15398_v57  ;;  %v1533_v43 = vand.u32 4294901760, %v1532_v40 }
  0xda   :  { %v1526_v62 = vsub.f32 %v15396_v25, %v14570_v23  ;;  %v4126_v14 = vand.u32 4294901760, %v4125_v8  ;;  %v4006_v40 = vsub.f32 %v10783_v22, %v14574_v20  ;;  %v4013_v23 = vsub.f32 %v10785_v12, %v14576_v33 }
  0xdb   :  { %15395 = vst [vmem:[#allocation166_spill] sm:$0xff] %v10950_v13  ;;  %v1538_v19 = vsub.f32 %v15398_v57, %v14572_v55  ;;  %v15399_v13 = vld [vmem:[#allocation41_spill] sm:$0xff]  ;;  %v10974_v18 = vpack.c.bf16 %v1533_v43, %v1521_v9  ;;  %v15402_v55 = vld [vmem:[#allocation42_spill] sm:$0xff]  ;;  %v14662_v22 = vand.u32 4294901760, %v10795_v29 }
  0xdc   :  { %v14577_v38 = vand.u32 4294901760, %v15399_v13  ;;  %v1527_v21 = vand.u32 4294901760, %v1526_v62  ;;  %v10982_v25 = vpack.c.bf16 %v4126_v14, %v4119_v58  ;;  %v14578_v57 = vand.u32 4294901760, %v15402_v55 }
  0xdd   :  { %15400 = vst [vmem:[#allocation168_spill] sm:$0xff] %v10974_v18  ;;  %v1539_v30 = vand.u32 4294901760, %v1538_v19  ;;  %v4007_v9 = vand.u32 4294901760, %v4006_v40  ;;  %v4014_v43 = vand.u32 4294901760, %v4013_v23  ;;  %v14579_v62 = vand.u32 4294901760, %v10791_v53  ;;  %v15404_v19 = vld [vmem:[#allocation45_spill] sm:$0xff] }
  0xde   :  { %15401 = vst [vmem:[#allocation169_spill] sm:$0xff] %v10982_v25  ;;  %v1544_v8 = vsub.f32 %v15399_v13, %v14577_v38  ;;  %v14580_v18 = vand.u32 4294901760, %v10793_v52  ;;  %v1556_v14 = vsub.f32 %v15402_v55, %v14578_v57  ;;  %v14582_v58 = vand.u32 4294901760, %v15404_v19  ;;  %v15406_v38 = vld [vmem:[#allocation46_spill] sm:$0xff] }
  0xdf   :  { %v10990_v20 = vpack.c.bf16 %v1539_v30, %v1527_v21  ;;  %v10996_v33 = vpack.c.bf16 %v4014_v43, %v4007_v9  ;;  %v4132_v40 = vsub.f32 %v10791_v53, %v14579_v62  ;;  %v14584_v21 = vand.u32 4294901760, %v15406_v38 }
  0xe0   :  { %v1545_v6 = vand.u32 4294901760, %v1544_v8  ;;  %v4139_v23 = vsub.f32 %v10793_v52, %v14580_v18  ;;  %v1557_v30 = vand.u32 4294901760, %v1556_v14  ;;  %v1550_v8 = vsub.f32 %v15404_v19, %v14582_v58 }
  0xe1   :  { %15403 = vst [vmem:[#allocation170_spill] sm:$0xff] %v10990_v20  ;;  %15405 = vst [vmem:[#allocation171_spill] sm:$0xff] %v10996_v33  ;;  %v14586_v57 = vand.u32 4294901760, %v10799_v31  ;;  %v14588_v9 = vand.u32 4294901760, %v10801_v51  ;;  %v4133_v43 = vand.u32 4294901760, %v4132_v40  ;;  %v1562_v62 = vsub.f32 %v15406_v38, %v14584_v21  ;;  %v15407_v20 = vld [vmem:[#allocation47_spill] sm:$0xff] }
  0xe2   :  { %v4140_v33 = vand.u32 4294901760, %v4139_v23  ;;  %v14589_v25 = vand.u32 4294901760, %v15407_v20  ;;  %v11014_v18 = vpack.c.bf16 %v1557_v30, %v1545_v6  ;;  %v1551_v55 = vand.u32 4294901760, %v1550_v8  ;;  %v15410_v21 = vld [vmem:[#allocation50_spill] sm:$0xff] }
  0xe3   :  { %v4020_v14 = vsub.f32 %v10799_v31, %v14586_v57  ;;  %v4027_v58 = vsub.f32 %v10801_v51, %v14588_v9  ;;  %v1563_v40 = vand.u32 4294901760, %v1562_v62  ;;  %v14590_v38 = vand.u32 4294901760, %v15410_v21  ;;  %v15412_v62 = vld [vmem:[#allocation51_spill] sm:$0xff] }
  0xe4   :  { %15408 = vst [vmem:[#allocation172_spill] sm:$0xff] %v11014_v18  ;;  %v11022_v19 = vpack.c.bf16 %v4140_v33, %v4133_v43  ;;  %v1568_v23 = vsub.f32 %v15407_v20, %v14589_v25  ;;  %v14591_v8 = vand.u32 4294901760, %v10809_v37  ;;  %v14592_v18 = vand.u32 4294901760, %v10814_v11  ;;  %v15414_v25 = vld [vmem:[#allocation52_spill] sm:$0xff] }
  0xe5   :  { %v4021_v6 = vand.u32 4294901760, %v4020_v14  ;;  %v4028_v30 = vand.u32 4294901760, %v4027_v58  ;;  %v11030_v57 = vpack.c.bf16 %v1563_v40, %v1551_v55  ;;  %v1580_v33 = vsub.f32 %v15410_v21, %v14590_v38 }
  0xe6   :  { %15409 = vst [vmem:[#allocation173_spill] sm:$0xff] %v11022_v19  ;;  %v1569_v13 = vand.u32 4294901760, %v1568_v23  ;;  %v14594_v43 = vand.u32 4294901760, %v15412_v62  ;;  %v4146_v14 = vsub.f32 %v10809_v37, %v14591_v8  ;;  %v4153_v58 = vsub.f32 %v10814_v11, %v14592_v18 }
  0xe7   :  { %15411 = vst [vmem:[#allocation174_spill] sm:$0xff] %v11030_v57  ;;  %v11036_v9 = vpack.c.bf16 %v4028_v30, %v4021_v6  ;;  %v14596_v55 = vand.u32 4294901760, %v15414_v25  ;;  %v1581_v40 = vand.u32 4294901760, %v1580_v33  ;;  %v14598_v38 = vand.u32 4294901760, %v10823_v1  ;;  %v15415_v57 = vld [vmem:[#allocation53_spill] sm:$0xff] }
  0xe8   :  { %v1574_v23 = vsub.f32 %v15412_v62, %v14594_v43  ;;  %v14602_v6 = vand.u32 4294901760, %v10828_v7  ;;  %v4147_v30 = vand.u32 4294901760, %v4146_v14  ;;  %v14603_v19 = vand.u32 4294901760, %v15415_v57 }
  0xe9   :  { %15413 = vst [vmem:[#allocation175_spill] sm:$0xff] %v11036_v9  ;;  %v4154_v9 = vand.u32 4294901760, %v4153_v58  ;;  %v1586_v8 = vsub.f32 %v15414_v25, %v14596_v55  ;;  %v11054_v18 = vpack.c.bf16 %v1581_v40, %v1569_v13  ;;  %v4034_v33 = vsub.f32 %v10823_v1, %v14598_v38  ;;  %v15417_v55 = vld [vmem:[#allocation54_spill] sm:$0xff] }
  0xea   :  { %v1575_v21 = vand.u32 4294901760, %v1574_v23  ;;  %v4041_v43 = vsub.f32 %v10828_v7, %v14602_v6  ;;  %v1592_v58 = vsub.f32 %v15415_v57, %v14603_v19  ;;  %v14604_v25 = vand.u32 4294901760, %v15417_v55  ;;  %v15422_v19 = vld [vmem:[#allocation65_spill] sm:$0xff]  ;;  %v15449_v7 = vld [vmem:[#allocation36_spill] sm:$0xff] }
  0xeb   :  { %15416 = vst [vmem:[#allocation176_spill] sm:$0xff] %v11054_v18  ;;  %v11062_v62 = vpack.c.bf16 %v4154_v9, %v4147_v30  ;;  %v1587_v14 = vand.u32 4294901760, %v1586_v8  ;;  %v4035_v13 = vand.u32 4294901760, %v4034_v33  ;;  %v15418_v18 = vld [vmem:[#allocation60_spill] sm:$0xff]  ;;  %v15420_v8 = vld [vmem:[#allocation61_spill] sm:$0xff]  ;;  %v14611_v23 = vand.u32 4294901760, %v15422_v19 }
  0xec   :  { %v4042_v40 = vand.u32 4294901760, %v4041_v43  ;;  %v14605_v38 = vand.u32 4294901760, %v15418_v18  ;;  %v1593_v1 = vand.u32 4294901760, %v1592_v58  ;;  %v1604_v9 = vsub.f32 %v15417_v55, %v14604_v25  ;;  %v15423_v58 = vld [vmem:[#allocation66_spill] sm:$0xff] }
  0xed   :  { %v11071_v20 = vpack.c.bf16 %v1587_v14, %v1575_v21  ;;  %v14610_v30 = vand.u32 4294901760, %v15420_v8  ;;  %v14614_v25 = vand.u32 4294901760, %v15423_v58  ;;  %v15425_v33 = vld [vmem:[#allocation74_spill] sm:$0xff] }
  0xee   :  { %v11077_v6 = vpack.c.bf16 %v4042_v40, %v4035_v13  ;;  %v1598_v43 = vsub.f32 %v15418_v18, %v14605_v38  ;;  %v1605_v21 = vand.u32 4294901760, %v1604_v9  ;;  %v1616_v38 = vsub.f32 %v15422_v19, %v14611_v23 }
  0xef   :  { %15419 = vst [vmem:[#allocation177_spill] sm:$0xff] %v11071_v20  ;;  %v1610_v14 = vsub.f32 %v15420_v8, %v14610_v30  ;;  %v14618_v61 = vand.u32 4294901760, %v15425_v33  ;;  %v1628_v30 = vsub.f32 %v15423_v58, %v14614_v25 }
  0xf0   :  { %15421 = vst [vmem:[#allocation178_spill] sm:$0xff] %v11077_v6  ;;  %v1599_v40 = vand.u32 4294901760, %v1598_v43  ;;  %v11096_v60 = vpack.c.bf16 %v1605_v21, %v1593_v1  ;;  %v1617_v13 = vand.u32 4294901760, %v1616_v38  ;;  %v1622_v43 = vsub.f32 %v15424_v49, %v14615_v42 }
  0xf1   :  { %v1611_v9 = vand.u32 4294901760, %v1610_v14  ;;  %v1634_v23 = vsub.f32 %v15425_v33, %v14618_v61  ;;  %v14619_v1 = vand.u32 4294901760, %v15427_v10  ;;  %v1629_v14 = vand.u32 4294901760, %v1628_v30  ;;  %v15430_v30 = vld [vmem:[#allocation82_spill] sm:$0xff] }
  0xf2   :  { %15426 = vst [vmem:[#allocation179_spill] sm:$0xff] %v11096_v60  ;;  %v14620_v60 = vand.u32 4294901760, %v15428_v17  ;;  %v1623_v6 = vand.u32 4294901760, %v1622_v43  ;;  %v1646_v43 = vsub.f32 %v15429_v5, %v14623_v50  ;;  %v15434_v50 = vld [vmem:[#allocation91_spill] sm:$0xff]  ;;  %v15462_v5 = vld [vmem:[#allocation17_spill] sm:$0xff] }
  0xf3   :  { %v11110_v21 = vpack.c.bf16 %v1611_v9, %v1599_v40  ;;  %v1635_v38 = vand.u32 4294901760, %v1634_v23  ;;  %v1640_v42 = vsub.f32 %v15427_v10, %v14619_v1  ;;  %v11119_v20 = vpack.c.bf16 %v1629_v14, %v1617_v13  ;;  %v15463_v10 = vld [vmem:[#allocation18_spill] sm:$0xff] }
  0xf4   :  { %v1652_v40 = vsub.f32 %v15428_v17, %v14620_v60  ;;  %v14627_v9 = vand.u32 4294901760, %v15430_v30  ;;  %v14628_v1 = vand.u32 4294901760, %v10402_v36  ;;  %v15432_v60 = vld [vmem:[#allocation88_spill] sm:$0xff]  ;;  %v1647_v61 = vand.u32 4294901760, %v1646_v43 }
  0xf5   :  { %v11127_v25 = vpack.c.bf16 %v1635_v38, %v1623_v6  ;;  %v1641_v23 = vand.u32 4294901760, %v1640_v42  ;;  %v14631_v45 = vand.u32 4294901760, %v15432_v60  ;;  %v15433_v6 = vld [vmem:[#allocation90_spill] sm:$0xff]  ;;  %v14637_v35 = vand.u32 4294901760, %v15434_v50 }
  0xf6   :  { %v1653_v13 = vand.u32 4294901760, %v1652_v40  ;;  %v1658_v14 = vsub.f32 %v15430_v30, %v14627_v9  ;;  %v1664_v42 = vsub.f32 %v10402_v36, %v14628_v1  ;;  %v14632_v38 = vand.u32 4294901760, %v15433_v6 }
  0xf7   :  { %15431 = vst [vmem:[#allocation180_spill] sm:$0xff] %v11127_v25  ;;  %v1676_v9 = vsub.f32 %v15432_v60, %v14631_v45  ;;  %v1682_v1 = vsub.f32 %v15434_v50, %v14637_v35  ;;  %v14707_v30 = vand.u32 4294901760, %v15462_v5  ;;  %v14710_v17 = vand.u32 4294901760, %v15463_v10  ;;  %v15465_v60 = vld [vmem:[#allocation20_spill] sm:$0xff] }
  0xf8   :  { %v11144_v56 = vpack.c.bf16 %v1653_v13, %v1641_v23  ;;  %v1659_v40 = vand.u32 4294901760, %v1658_v14  ;;  %v1665_v24 = vand.u32 4294901760, %v1664_v42  ;;  %v1670_v43 = vsub.f32 %v15433_v6, %v14632_v38 }
  0xf9   :  { %v14638_v23 = vand.u32 4294901760, %v10726_v26  ;;  %v1677_v14 = vand.u32 4294901760, %v1676_v9  ;;  %v1683_v42 = vand.u32 4294901760, %v1682_v1  ;;  %v14641_v9 = vand.u32 4294901760, %v10752_v54 }
  0xfa   :  { %v11158_v13 = vpack.c.bf16 %v1659_v40, %v1647_v61  ;;  %v1671_v25 = vand.u32 4294901760, %v1670_v43  ;;  %v1700_v61 = vsub.f32 %v10731_v47, %v14639_v41  ;;  %v1694_v43 = vsub.f32 %v10747_v0, %v14640_v28 }
  0xfb   :  { %v1688_v38 = vsub.f32 %v10726_v26, %v14638_v23  ;;  %v11167_v15 = vpack.c.bf16 %v1677_v14, %v1665_v24  ;;  %v14644_v23 = vand.u32 4294901760, %v10766_v16  ;;  %v1706_v14 = vsub.f32 %v10752_v54, %v14641_v9  ;;  %v15466_v26 = vld [vmem:[#allocation21_spill] sm:$0xff] }
  0xfc   :  { %v11175_v35 = vpack.c.bf16 %v1683_v42, %v1671_v25  ;;  %v1701_v24 = vand.u32 4294901760, %v1700_v61  ;;  %v14647_v41 = vand.u32 4294901760, %v10769_v39  ;;  %v1695_v40 = vand.u32 4294901760, %v1694_v43 }
  0xfd   :  { %v1689_v1 = vand.u32 4294901760, %v1688_v38  ;;  %v1712_v25 = vsub.f32 %v10766_v16, %v14644_v23  ;;  %v14648_v38 = vand.u32 4294901760, %v10778_v59  ;;  %v14653_v42 = vand.u32 4294901760, %v10781_v63 }
  0xfe   :  { %v1707_v61 = vand.u32 4294901760, %v1706_v14  ;;  %v1724_v9 = vsub.f32 %v10769_v39, %v14647_v41  ;;  %v15472_v0 = vand.u32 4294901760, %v15465_v60 }
  0xff   :  { %v11192_v28 = vpack.c.bf16 %v1701_v24, %v1689_v1  ;;  %v1713_v45 = vand.u32 4294901760, %v1712_v25  ;;  %v1718_v43 = vsub.f32 %v10778_v59, %v14648_v38  ;;  %v1730_v23 = vsub.f32 %v10781_v63, %v14653_v42 }
 0x100   :  { %v14654_v1 = vand.u32 4294901760, %v10787_v34  ;;  %v11206_v24 = vpack.c.bf16 %v1707_v61, %v1695_v40  ;;  %v1725_v14 = vand.u32 4294901760, %v1724_v9  ;;  %v1748_v40 = vsub.f32 %v10789_v32, %v14657_v48  ;;  %v15437_v9 = vld [vmem:[#allocation143_spill] sm:$0xff]  ;;  %v15440_v48 = vld [vmem:[#allocation148_spill] sm:$0xff]  ;;  %v15479_v32 = vld [vmem:[#allocation26_spill] sm:$0xff] }
 0x101   :  { %v1719_v3 = vand.u32 4294901760, %v1718_v43  ;;  %v1731_v25 = vand.u32 4294901760, %v1730_v23  ;;  %v14667_v61 = vand.u32 4294901760, %v15437_v9  ;;  %v1742_v43 = vsub.f32 %v10795_v29, %v14662_v22  ;;  %v15442_v22 = vld [vmem:[#allocation154_spill] sm:$0xff] }
 0x102   :  { %15435 = vst [vmem:[#allocation181_spill] sm:$0xff] %v11206_v24  ;;  %v1736_v38 = vsub.f32 %v10787_v34, %v14654_v1  ;;  %v11215_v12 = vpack.c.bf16 %v1725_v14, %v1713_v45  ;;  %v15439_v1 = vld [vmem:[#allocation147_spill] sm:$0xff]  ;;  %v1749_v45 = vand.u32 4294901760, %v1748_v40  ;;  %v14673_v52 = vand.u32 4294901760, %v15440_v48  ;;  %v15451_v24 = vld [vmem:[#allocation38_spill] sm:$0xff] }
 0x103   :  { %v11223_v41 = vpack.c.bf16 %v1731_v25, %v1719_v3  ;;  %v14668_v53 = vand.u32 4294901760, %v15439_v1  ;;  %v1754_v14 = vsub.f32 %v15437_v9, %v14667_v61  ;;  %v1743_v42 = vand.u32 4294901760, %v1742_v43  ;;  %v15481_v9 = vld [vmem:[#allocation28_spill] sm:$0xff] }
 0x104   :  { %15436 = vst [vmem:[#allocation182_spill] sm:$0xff] %v11215_v12  ;;  %v1737_v23 = vand.u32 4294901760, %v1736_v38  ;;  %v15441_v38 = vld [vmem:[#allocation153_spill] sm:$0xff]  ;;  %v14683_v31 = vand.u32 4294901760, %v15442_v22  ;;  %v1772_v61 = vsub.f32 %v15440_v48, %v14673_v52  ;;  %v15447_v12 = vld [vmem:[#allocation34_spill] sm:$0xff] }
 0x105   :  { %15438 = vst [vmem:[#allocation183_spill] sm:$0xff] %v11223_v41  ;;  %v1760_v3 = vsub.f32 %v15439_v1, %v14668_v53  ;;  %v14678_v25 = vand.u32 4294901760, %v15441_v38  ;;  %v1755_v40 = vand.u32 4294901760, %v1754_v14  ;;  %v15448_v41 = vld [vmem:[#allocation35_spill] sm:$0xff]  ;;  %v15486_v48 = vld [vmem:[#allocation30_spill] sm:$0xff] }
 0x106   :  { %v11240_v51 = vpack.c.bf16 %v1749_v45, %v1737_v23  ;;  %v1778_v53 = vsub.f32 %v15442_v22, %v14683_v31  ;;  %v1773_v23 = vand.u32 4294901760, %v1772_v61  ;;  %v15453_v31 = vld [vmem:[#allocation42_spill] sm:$0xff]  ;;  %v15489_v22 = vld [vmem:[#allocation32_spill] sm:$0xff] }
 0x107   :  { %v1761_v2 = vand.u32 4294901760, %v1760_v3  ;;  %v1766_v43 = vsub.f32 %v15441_v38, %v14678_v25  ;;  %v11253_v37 = vpack.c.bf16 %v1755_v40, %v1743_v42  ;;  %v15450_v25 = vld [vmem:[#allocation37_spill] sm:$0xff]  ;;  %v15455_v61 = vld [vmem:[#allocation46_spill] sm:$0xff]  ;;  %v15468_v42 = vld [vmem:[#allocation23_spill] sm:$0xff] }
 0x108   :  { %15443 = vst [vmem:[#allocation184_spill] sm:$0xff] %v11240_v51  ;;  %v1779_v14 = vand.u32 4294901760, %v1778_v53  ;;  %v15454_v40 = vld [vmem:[#allocation45_spill] sm:$0xff]  ;;  %v85_v51 = vlaneseq  ;;  %v15488_v38 = vld [vmem:[#allocation31_spill] sm:$0xff] }
 0x109   :  { %v1767_v45 = vand.u32 4294901760, %v1766_v43  ;;  %v11255_v11 = vpack.c.bf16 %v1773_v23, %v1761_v2 }
 0x10a   :  { %v11281_v43 = vshrl.u32 %v85_v51, 7 }
 0x10b   :  { %v11257_v52 = vpack.c.bf16 %v1779_v14, %v1767_v45 }
 0x10c   :  { %15460 = vst [vmem:[#allocation186_spill] sm:$0xff] %v11281_v43  ;;  %v14692_v3 = vsub.s32 0, %v11281_v43  ;;  %v14693_v46 = vsub.s32 1, %v11281_v43 }
 0x10d   :  { %15445 = vst [vmem:[#allocation185_spill] sm:$0xff] %v11257_v52 }
 0x10e   :  { %v88_v23 = vrot.slane %v11291_v44, %v14692_v3  ;;  %v92_v52 = vrot.slane %v11291_v44, %v14693_v46  ;;  %v1406_v3 = vsub.f32 %v15462_v5, %v14707_v30  ;;  %v1418_v46 = vsub.f32 %v15463_v10, %v14710_v17  ;;  %v15464_v44 = vld [vmem:[#allocation19_spill] sm:$0xff]  ;;  %v15470_v17 = vld [vmem:[#allocation24_spill] sm:$0xff] }
 0x10f   :  { %v15471_v47 = vand.u32 4294901760, %v15464_v44  ;;  %v15473_v30 = vand.u32 4294901760, %v15466_v26 }
 0x110   :  { %v1407_v49 = vand.u32 4294901760, %v1406_v3  ;;  %v1419_v19 = vand.u32 4294901760, %v1418_v46 }
 0x111   :  { %v1430_v59 = vsub.f32 %v15466_v26, %v15473_v30  ;;  %v15477_v30 = vand.u32 4294901760, %v15470_v17 }
 0x112   :  { %v8133_v58 = vpack.c.bf16 %v1419_v19, %v1407_v49 }
 0x113   :  { %v1460_v43 = vsub.f32 %v15470_v17, %v15477_v30  ;;  %v1431_v39 = vand.u32 4294901760, %v1430_v59  ;;  %v15485_v59 = vld [vmem:[#allocation29_spill] sm:$0xff] }
 0x114   :  { %v15491_v2 = vand.u32 4294901760, %v15485_v59 }
 0x152   :  { %v569_v33 = vpop.f32.mrb[0].mxu0 }
 0x153   :  { %v9555_v51 = vadd.f32 %v569_v33, %v88_v23  ;;  %v571_v6 = vpop.f32.mrb[1].mxu0  ;;  %v1424_v33 = vsub.f32 %v15464_v44, %v15471_v47 }
 0x154   :  { %v9556_v50 = vadd.f32 %v571_v6, %v92_v52  ;;  %v15467_v52 = vld [vmem:[#allocation22_spill] sm:$0xff]  ;;  %v1436_v6 = vsub.f32 %v15465_v60, %v15472_v0 }
 0x155   :  { %v1039_v36 = vmax.f32 %v9555_v51, 0.0  ;;  %v15474_v3 = vand.u32 4294901760, %v15467_v52  ;;  %v1425_v18 = vand.u32 4294901760, %v1424_v33  ;;  %v1461_v33 = vand.u32 4294901760, %v1460_v43 }
 0x156   :  { %v1040_v23 = vmax.f32 %v9556_v50, 0.0  ;;  %v1437_v29 = vand.u32 4294901760, %v1436_v6  ;;  %v15483_v6 = vand.u32 4294901760, %v15479_v32 }
 0x157   :  { %v11325_v54 = vand.u32 4294901760, %v1039_v36  ;;  %v1442_v47 = vsub.f32 %v15467_v52, %v15474_v3 }
 0x158   :  { %v11328_v51 = vand.u32 4294901760, %v1040_v23  ;;  %v1466_v57 = vsub.f32 %v15479_v32, %v15483_v6 }
 0x159   :  { %15469 = vst [vmem:[#allocation17_spill] sm:$0xff] %v11325_v54  ;;  %v11334_v50 = vsub.f32 %v1039_v36, %v11325_v54  ;;  %v15475_v36 = vand.u32 4294901760, %v15468_v42  ;;  %v1443_v55 = vand.u32 4294901760, %v1442_v47  ;;  %v15490_v47 = vld [vmem:[#allocation158_spill] sm:$0xff] }
 0x15a   :  { %v11345_v46 = vsub.f32 %v1040_v23, %v11328_v51  ;;  %v15478_v23 = vld [vmem:[#allocation25_spill] sm:$0xff] }
 0x15b   :  { %v1448_v63 = vsub.f32 %v15468_v42, %v15475_v36  ;;  %v11356_v16 = vand.u32 4294901760, %v11334_v50  ;;  %v15480_v36 = vld [vmem:[#allocation27_spill] sm:$0xff]  ;;  %v15482_v8 = vand.u32 4294901760, %v15478_v23  ;;  %v8137_v6 = vpack.c.bf16 %v1443_v55, %v1431_v39 }
 0x15c   :  { %v11364_v3 = vand.u32 4294901760, %v11345_v46  ;;  %v15484_v30 = vand.u32 4294901760, %v15480_v36 }
 0x15d   :  { %15476 = vst [vmem:[#allocation18_spill] sm:$0xff] %v11356_v16  ;;  %v1389_v0 = vsub.f32 %v11334_v50, %v11356_v16  ;;  %v1449_v19 = vand.u32 4294901760, %v1448_v63  ;;  %v1454_v16 = vsub.f32 %v15478_v23, %v15482_v8  ;;  %v15487_v63 = vand.u32 4294901760, %v15481_v9 }
 0x15e   :  { %v1383_v34 = vsub.f32 %v11345_v46, %v11364_v3  ;;  %v1472_v1 = vsub.f32 %v15480_v36, %v15484_v30  ;;  %v15492_v8 = vand.u32 4294901760, %v15486_v48 }
 0x15f   :  { %v1390_v49 = vand.u32 4294901760, %v1389_v0  ;;  %v1484_v43 = vsub.f32 %v15481_v9, %v15487_v63  ;;  %v8139_v30 = vpack.c.bf16 %v1461_v33, %v1449_v19  ;;  %v1455_v14 = vand.u32 4294901760, %v1454_v16 }
 0x160   :  { %v1384_v45 = vand.u32 4294901760, %v1383_v34  ;;  %v8135_v34 = vpack.c.bf16 %v1437_v29, %v1425_v18  ;;  %v1467_v0 = vand.u32 4294901760, %v1466_v57  ;;  %v1478_v63 = vsub.f32 %v15485_v59, %v15491_v2  ;;  %v15496_v2 = vld [vmem:[#allocation160_spill] sm:$0xff] }
 0x161   :  { %v1490_v53 = vsub.f32 %v15486_v48, %v15492_v8  ;;  %v1473_v29 = vand.u32 4294901760, %v1472_v1  ;;  %v1485_v39 = vand.u32 4294901760, %v1484_v43  ;;  %v15493_v18 = vand.u32 4294901760, %v15488_v38  ;;  %v15497_v1 = vld [vmem:[#allocation161_spill] sm:$0xff]  ;;  %v15498_v8 = vld [vmem:[#allocation162_spill] sm:$0xff] }
 0x162   :  { %1385 = vmatprep.mubr.f32.mxu0 %v1384_v45  ;;  %3921 = vmatprep.mubr.f32.mxu1 %v1384_v45  ;;  %v15494_v16 = vand.u32 4294901760, %v15489_v22  ;;  %v8141_v45 = vpack.c.bf16 %v1467_v0, %v1455_v14  ;;  %v15501_v14 = vld [vmem:[#allocation165_spill] sm:$0xff]  ;;  %v15504_v0 = vld [vmem:[#allocation168_spill] sm:$0xff] }
 0x163   :  { %1391 = vmatmul.mubr.f32.vlgmr.msra.gmra.mrb[2].mxu0 %v1390_v49  ;;  %3927 = vmatmul.mubr.f32.vlgmr.msra.gmra.mrb[2].mxu1 %v1390_v49  ;;  %v1496_v55 = vsub.f32 %v15488_v38, %v15493_v18  ;;  %v1479_v49 = vand.u32 4294901760, %v1478_v63  ;;  %v1491_v19 = vand.u32 4294901760, %v1490_v53  ;;  %v8143_v33 = vpack.c.bf16 %v1485_v39, %v1473_v29  ;;  %v15502_v53 = vld [vmem:[#allocation166_spill] sm:$0xff]  ;;  %v15505_v63 = vld [vmem:[#allocation169_spill] sm:$0xff]  ;;  %v15507_v39 = vld [vmem:[#allocation171_spill] sm:$0xff] }
 0x164   :  { %8134 = vmatpush1.bf16.msra.mxu0 %v8133_v58  ;;  %8870 = vmatpush3.bf16.msra.mxu1 %v15490_v47  ;;  %v1508_v57 = vsub.f32 %v15489_v22, %v15494_v16  ;;  %v15495_v58 = vld [vmem:[#allocation159_spill] sm:$0xff]  ;;  %v15506_v29 = vld [vmem:[#allocation170_spill] sm:$0xff] }
 0x165   :  { %1782 = vmatprep.mubr.f32.mxu0 %v11328_v51  ;;  %4157 = vmatprep.mubr.f32.mxu1 %v11328_v51  ;;  %v1497_v47 = vand.u32 4294901760, %v1496_v55  ;;  %v8145_v18 = vpack.c.bf16 %v1491_v19, %v1479_v49  ;;  %v15508_v55 = vld [vmem:[#allocation172_spill] sm:$0xff]  ;;  %v15513_v49 = vld [vmem:[#allocation177_spill] sm:$0xff]  ;;  %v15514_v19 = vld [vmem:[#allocation178_spill] sm:$0xff] }
 0x166   :  { %8136 = vmatprep.subr.bf16.mxu0 %v8135_v34  ;;  %8872 = vmatprep.subr.bf16.mxu1 %v15495_v58  ;;  %v1509_v43 = vand.u32 4294901760, %v1508_v57  ;;  %v15499_v34 = vld [vmem:[#allocation163_spill] sm:$0xff]  ;;  %v15509_v57 = vld [vmem:[#allocation173_spill] sm:$0xff]  ;;  %v15510_v58 = vld [vmem:[#allocation174_spill] sm:$0xff] }
 0x168   :  { %8138 = vmatpush1.bf16.msra.mxu0 %v8137_v6  ;;  %8874 = vmatpush3.bf16.msra.mxu1 %v15496_v2  ;;  %v8147_v16 = vpack.c.bf16 %v1509_v43, %v1497_v47  ;;  %v15500_v6 = vld [vmem:[#allocation164_spill] sm:$0xff]  ;;  %v15511_v2 = vld [vmem:[#allocation175_spill] sm:$0xff]  ;;  %v15517_v47 = vld [vmem:[#allocation57_spill] sm:$0xff] }
 0x169   :  { %8140 = vmatprep.subr.bf16.mxu0 %v8139_v30  ;;  %8876 = vmatprep.subr.bf16.mxu1 %v15497_v1  ;;  %v15503_v30 = vld [vmem:[#allocation167_spill] sm:$0xff] }
 0x16a   :  { %v15515_v1 = vld [vmem:[#allocation179_spill] sm:$0xff] }
 0x16c   :  { %8142 = vmatpush1.bf16.msra.mxu0 %v8141_v45  ;;  %8878 = vmatpush3.bf16.msra.mxu1 %v15498_v8  ;;  %v15512_v45 = vld [vmem:[#allocation176_spill] sm:$0xff] }
 0x16d   :  { %8144 = vmatprep.subr.bf16.mxu0 %v8143_v33  ;;  %8880 = vmatprep.subr.bf16.mxu1 %v15499_v34  ;;  %v15516_v33 = vld [vmem:[#allocation58_spill] sm:$0xff]  ;;  %v15519_v8 = vld [vmem:[#allocation64_spill] sm:$0xff] }
 0x16e   :  { %v15518_v43 = vpack.c.bf16 %v15516_v33, %v15517_v47 }
 0x170   :  { %8146 = vmatpush1.bf16.msra.mxu0 %v8145_v18  ;;  %8882 = vmatpush3.bf16.msra.mxu1 %v15500_v6  ;;  %v15520_v18 = vld [vmem:[#allocation62_spill] sm:$0xff] }
 0x171   :  { %8148 = vmatprep.subr.bf16.mxu0 %v8147_v16  ;;  %8884 = vmatprep.subr.bf16.mxu1 %v15501_v14  ;;  %v15521_v34 = vpack.c.bf16 %v15519_v8, %v15520_v18  ;;  %v15523_v16 = vld [vmem:[#allocation67_spill] sm:$0xff]  ;;  %v15525_v14 = vld [vmem:[#allocation180_spill] sm:$0xff] }
 0x174   :  { %8150 = vmatpush1.bf16.msra.mxu0 %v15502_v53  ;;  %8886 = vmatpush3.bf16.msra.mxu1 %v15503_v30  ;;  %v15526_v53 = vld [vmem:[#allocation76_spill] sm:$0xff]  ;;  %v15527_v30 = vld [vmem:[#allocation75_spill] sm:$0xff] }
 0x175   :  { %8152 = vmatprep.subr.bf16.mxu0 %v15504_v0  ;;  %8888 = vmatprep.subr.bf16.mxu1 %v15505_v63  ;;  %v15528_v0 = vpack.c.bf16 %v15526_v53, %v15527_v30  ;;  %v15530_v63 = vld [vmem:[#allocation79_spill] sm:$0xff] }
 0x178   :  { %8154 = vmatpush1.bf16.msra.mxu0 %v15506_v29  ;;  %8890 = vmatpush3.bf16.msra.mxu1 %v15507_v39  ;;  %v15532_v39 = vld [vmem:[#allocation86_spill] sm:$0xff] }
 0x179   :  { %8156 = vmatprep.subr.bf16.mxu0 %v15508_v55  ;;  %8892 = vmatprep.subr.bf16.mxu1 %v15509_v57  ;;  %v15535_v57 = vld [vmem:[#allocation89_spill] sm:$0xff] }
 0x17c   :  { %8158 = vmatpush1.bf16.msra.mxu0 %v15510_v58  ;;  %8894 = vmatpush3.bf16.msra.mxu1 %v15511_v2  ;;  %v15536_v58 = vpack.c.bf16 %v10415_v4, %v15535_v57  ;;  %v15537_v2 = vld [vmem:[#allocation93_spill] sm:$0xff] }
 0x17d   :  { %8160 = vmatprep.subr.bf16.mxu0 %v15512_v45  ;;  %8896 = vmatprep.subr.bf16.mxu1 %v11062_v62  ;;  %v15522_v62 = vld [vmem:[#allocation70_spill] sm:$0xff] }
 0x17e   :  { %v15524_v6 = vpack.c.bf16 %v15522_v62, %v15523_v16 }
 0x180   :  { %8162 = vmatpush1.bf16.msra.mxu0 %v15513_v49  ;;  %8898 = vmatpush3.bf16.msra.mxu1 %v15514_v19  ;;  %v15540_v49 = vld [vmem:[#allocation125_spill] sm:$0xff] }
 0x181   :  { %8164 = vmatprep.subr.bf16.mxu0 %v15515_v1  ;;  %8900 = vmatprep.subr.bf16.mxu1 %v15518_v43  ;;  %v11466_v1 = vpop.f32.mrb[0].mxu1 }
 0x182   :  { %15543 = vst [vmem:[#allocation19_spill] sm:$0xff] %v11466_v1  ;;  %v11468_v43 = vpop.f32.mrb[1].mxu1  ;;  %v15557_v1 = vld [vmem:[#allocation184_spill] sm:$0xff] }
 0x183   :  { %4159 = vmatmul.mubr.f32.vlgmr.msra.gmra.mrb[4].mxu1 %v11325_v54  ;;  %15544 = vst [vmem:[#allocation23_spill] sm:$0xff] %v11468_v43  ;;  %v15558_v43 = vld [vmem:[#allocation141_spill] sm:$0xff] }
 0x184   :  { %8166 = vmatpush1.bf16.msra.mxu0 %v11110_v21  ;;  %8902 = vmatpush3.bf16.msra.mxu1 %v15521_v34  ;;  %v15529_v21 = vld [vmem:[#allocation80_spill] sm:$0xff]  ;;  %v15546_v34 = vld [vmem:[#allocation129_spill] sm:$0xff] }
 0x185   :  { %4294 = vmatprep.mubr.f32.mxu1 %v11345_v46  ;;  %8168 = vmatprep.subr.bf16.mxu0 %v11119_v20  ;;  %v15531_v29 = vpack.c.bf16 %v15529_v21, %v15530_v63  ;;  %v15533_v20 = vld [vmem:[#allocation85_spill] sm:$0xff] }
 0x186   :  { %8904 = vmatprep.subr.bf16.mxu1 %v15524_v6  ;;  %v15534_v55 = vpack.c.bf16 %v15532_v39, %v15533_v20  ;;  %v15547_v6 = vld [vmem:[#allocation128_spill] sm:$0xff] }
 0x188   :  { %8170 = vmatpush1.bf16.msra.mxu0 %v15525_v14  ;;  %8906 = vmatpush3.bf16.msra.mxu1 %v15528_v0  ;;  %v15548_v14 = vpack.c.bf16 %v15546_v34, %v15547_v6  ;;  %v15550_v0 = vld [vmem:[#allocation133_spill] sm:$0xff] }
 0x189   :  { %8172 = vmatprep.subr.bf16.mxu0 %v11144_v56  ;;  %8908 = vmatprep.subr.bf16.mxu1 %v15531_v29  ;;  %v15538_v56 = vld [vmem:[#allocation92_spill] sm:$0xff] }
 0x18a   :  { %v15539_v45 = vpack.c.bf16 %v15537_v2, %v15538_v56  ;;  %v15551_v29 = vld [vmem:[#allocation132_spill] sm:$0xff] }
 0x18c   :  { %8174 = vmatpush1.bf16.msra.mxu0 %v11158_v13  ;;  %8910 = vmatpush3.bf16.msra.mxu1 %v15534_v55  ;;  %v15541_v13 = vld [vmem:[#allocation124_spill] sm:$0xff]  ;;  %v15552_v55 = vpack.c.bf16 %v15550_v0, %v15551_v29  ;;  %v15570_v29 = vld [vmem:[#allocation157_spill] sm:$0xff] }
 0x18d   :  { %8176 = vmatprep.subr.bf16.mxu0 %v11167_v15  ;;  %8912 = vmatprep.subr.bf16.mxu1 %v15536_v58  ;;  %v15542_v19 = vpack.c.bf16 %v15540_v49, %v15541_v13  ;;  %v15545_v15 = vld [vmem:[#allocation181_spill] sm:$0xff] }
 0x18e   :  { %v15554_v58 = vld [vmem:[#allocation137_spill] sm:$0xff] }
 0x190   :  { %8178 = vmatpush1.bf16.msra.mxu0 %v11175_v35  ;;  %8914 = vmatpush3.bf16.msra.mxu1 %v15539_v45  ;;  %v15549_v35 = vld [vmem:[#allocation182_spill] sm:$0xff]  ;;  %v15555_v45 = vld [vmem:[#allocation136_spill] sm:$0xff] }
 0x191   :  { %8180 = vmatprep.subr.bf16.mxu0 %v11192_v28  ;;  %8916 = vmatprep.subr.bf16.mxu1 %v15542_v19  ;;  %v15553_v28 = vld [vmem:[#allocation183_spill] sm:$0xff]  ;;  %v15556_v19 = vpack.c.bf16 %v15554_v58, %v15555_v45 }
 0x192   :  { %v15567_v58 = vld [vmem:[#allocation15_spill] sm:$0xff] }
 0x194   :  { %8182 = vmatpush1.bf16.msra.mxu0 %v15545_v15  ;;  %8918 = vmatpush3.bf16.msra.mxu1 %v15548_v14  ;;  %v15559_v15 = vld [vmem:[#allocation140_spill] sm:$0xff]  ;;  %v15561_v14 = vld [vmem:[#allocation145_spill] sm:$0xff] }
 0x195   :  { %8184 = vmatprep.subr.bf16.mxu0 %v15549_v35  ;;  %8920 = vmatprep.subr.bf16.mxu1 %v15552_v55  ;;  %v15560_v49 = vpack.c.bf16 %v15558_v43, %v15559_v15  ;;  %v15562_v35 = vld [vmem:[#allocation144_spill] sm:$0xff]  ;;  %v15564_v55 = vld [vmem:[#allocation151_spill] sm:$0xff] }
 0x196   :  { %v15563_v34 = vpack.c.bf16 %v15561_v14, %v15562_v35  ;;  %v15571_v43 = vld [vmem:[#allocation155_spill] sm:$0xff] }
 0x198   :  { %8186 = vmatpush1.bf16.msra.mxu0 %v15553_v28  ;;  %8922 = vmatpush3.bf16.msra.mxu1 %v15556_v19  ;;  %v15565_v28 = vld [vmem:[#allocation149_spill] sm:$0xff]  ;;  %v15568_v19 = vld [vmem:[#allocation16_spill] sm:$0xff] }
 0x199   :  { %8188 = vmatprep.subr.bf16.mxu0 %v15557_v1  ;;  %8924 = vmatprep.subr.bf16.mxu1 %v15560_v49  ;;  %v15566_v0 = vpack.c.bf16 %v15564_v55, %v15565_v28  ;;  %v8195_v45 = vpack.c.bf16 %v15568_v19, %v15567_v58  ;;  %v15569_v1 = vld [vmem:[#allocation185_spill] sm:$0xff]  ;;  %v15572_v49 = vpack.c.bf16 %v15570_v29, %v15571_v43 }
 0x19c   :  { %8190 = vmatpush1.bf16.msra.mxu0 %v11253_v37  ;;  %8926 = vmatpush3.bf16.msra.mxu1 %v15563_v34  ;;  %v8197_v37 = vpack.c.bf16 %v15463_v10, %v15462_v5  ;;  %v15573_v34 = vld [vmem:[#allocation84_spill] sm:$0xff] }
 0x19d   :  { %8192 = vmatprep.subr.bf16.mxu0 %v11255_v11  ;;  %8928 = vmatprep.subr.bf16.mxu1 %v15566_v0  ;;  %v8199_v11 = vpack.c.bf16 %v15465_v60, %v15464_v44  ;;  %v8201_v0 = vpack.c.bf16 %v15467_v52, %v15466_v26  ;;  %v8205_v60 = vpack.c.bf16 %v15479_v32, %v15478_v23  ;;  %v15577_v52 = vld [vmem:[#allocation101_spill] sm:$0xff]  ;;  %v15580_v32 = vld [vmem:[#allocation107_spill] sm:$0xff] }
 0x19e   :  { %v8209_v26 = vpack.c.bf16 %v15486_v48, %v15485_v59  ;;  %v15586_v48 = vld [vmem:[#allocation115_spill] sm:$0xff]  ;;  %v15602_v59 = vld [vmem:[#allocation156_spill] sm:$0xff] }
 0x1a0   :  { %8194 = vmatpush1.bf16.msra.mxu0 %v15569_v1  ;;  %8930 = vmatpush3.bf16.msra.mxu1 %v15572_v49  ;;  %v15574_v1 = vld [vmem:[#allocation95_spill] sm:$0xff]  ;;  %v15575_v49 = vld [vmem:[#allocation97_spill] sm:$0xff] }
 0x1a1   :  { %8196 = vmatprep.subr.bf16.mxu0 %v8195_v45  ;;  %8932 = vmatprep.subr.bf16.mxu1 %v15573_v34  ;;  %v8203_v45 = vpack.c.bf16 %v15470_v17, %v15468_v42  ;;  %v15578_v17 = vld [vmem:[#allocation103_spill] sm:$0xff] }
 0x1a3   :  { %1784 = vmatmul.mubr.f32.vlgmr.msra.gmra.mrb[2].mxu0 %v11325_v54  ;;  %4297 = vmatmul.mubr.f32.vlgmr.msra.gmra.mrb[6].mxu1 %v11334_v50 }
 0x1a4   :  { %8198 = vmatpush1.bf16.msra.mxu0 %v8197_v37  ;;  %1984 = vmatprep.mubr.f32.mxu0 %v11345_v46  ;;  %v15576_v37 = vld [vmem:[#allocation99_spill] sm:$0xff]  ;;  %v8207_v46 = vpack.c.bf16 %v15481_v9, %v15480_v36  ;;  %v15582_v9 = vld [vmem:[#allocation33_spill] sm:$0xff]  ;;  %v15584_v36 = vld [vmem:[#allocation72_spill] sm:$0xff] }
 0x1a5   :  { %8934 = vmatpush3.bf16.msra.mxu1 %v15574_v1  ;;  %4401 = vmatprep.mubr.f32.mxu1 %v11364_v3 }
 0x1a6   :  { %8200 = vmatprep.subr.bf16.mxu0 %v8199_v11  ;;  %8936 = vmatprep.subr.bf16.mxu1 %v15575_v49  ;;  %v8211_v11 = vpack.c.bf16 %v15489_v22, %v15488_v38  ;;  %v15588_v22 = vld [vmem:[#allocation117_spill] sm:$0xff] }
 0x1a8   :  { %8202 = vmatpush1.bf16.msra.mxu0 %v8201_v0  ;;  %v15579_v0 = vld [vmem:[#allocation105_spill] sm:$0xff] }
 0x1a9   :  { %8938 = vmatpush3.bf16.msra.mxu1 %v15576_v37  ;;  %8204 = vmatprep.subr.bf16.mxu0 %v8203_v45  ;;  %v15581_v45 = vld [vmem:[#allocation68_spill] sm:$0xff] }
 0x1aa   :  { %8940 = vmatprep.subr.bf16.mxu1 %v15577_v52 }
 0x1ac   :  { %8206 = vmatpush1.bf16.msra.mxu0 %v8205_v60  ;;  %v15583_v60 = vpack.c.bf16 %v15447_v12, %v15582_v9  ;;  %v15590_v12 = vld [vmem:[#allocation119_spill] sm:$0xff] }
 0x1ad   :  { %8942 = vmatpush3.bf16.msra.mxu1 %v15578_v17  ;;  %8208 = vmatprep.subr.bf16.mxu0 %v8207_v46  ;;  %v15585_v46 = vpack.c.bf16 %v15449_v7, %v15448_v41  ;;  %v15592_v7 = vld [vmem:[#allocation121_spill] sm:$0xff]  ;;  %v15594_v41 = vld [vmem:[#allocation47_spill] sm:$0xff] }
 0x1ae   :  { %8944 = vmatprep.subr.bf16.mxu1 %v15579_v0 }
 0x1b0   :  { %8210 = vmatpush1.bf16.msra.mxu0 %v8209_v26  ;;  %v15587_v26 = vpack.c.bf16 %v15451_v24, %v15450_v25  ;;  %v15596_v24 = vld [vmem:[#allocation150_spill] sm:$0xff]  ;;  %v15598_v25 = vand.u32 4294901760, %v15516_v33 }
 0x1b1   :  { %8946 = vmatpush3.bf16.msra.mxu1 %v15580_v32  ;;  %8212 = vmatprep.subr.bf16.mxu0 %v8211_v11  ;;  %v15589_v11 = vpack.c.bf16 %v15453_v31, %v15452_v27  ;;  %v15600_v27 = vld [vmem:[#allocation51_spill] sm:$0xff] }
 0x1b2   :  { %8948 = vmatprep.subr.bf16.mxu1 %v15581_v45 }
 0x1b4   :  { %8214 = vmatpush1.bf16.msra.mxu0 %v15583_v60  ;;  %v15591_v60 = vpack.c.bf16 %v15455_v61, %v15454_v40  ;;  %v15604_v61 = vld [vmem:[#allocation53_spill] sm:$0xff] }
 0x1b5   :  { %8950 = vmatpush3.bf16.msra.mxu1 %v15584_v36  ;;  %8216 = vmatprep.subr.bf16.mxu0 %v15585_v46  ;;  %v15593_v46 = vld [vmem:[#allocation50_spill] sm:$0xff] }
 0x1b6   :  { %8952 = vmatprep.subr.bf16.mxu1 %v15586_v48  ;;  %v15595_v9 = vpack.c.bf16 %v15593_v46, %v15594_v41  ;;  %v15606_v46 = vand.u32 4294901760, %v15520_v18 }
 0x1b8   :  { %8218 = vmatpush1.bf16.msra.mxu0 %v15587_v26  ;;  %v15597_v26 = vand.u32 4294901760, %v15517_v47  ;;  %v15608_v47 = vand.u32 4294901760, %v15523_v16 }
 0x1b9   :  { %8954 = vmatpush3.bf16.msra.mxu1 %v15588_v22  ;;  %8220 = vmatprep.subr.bf16.mxu0 %v15589_v11  ;;  %v15599_v11 = vld [vmem:[#allocation52_spill] sm:$0xff] }
 0x1ba   :  { %8956 = vmatprep.subr.bf16.mxu1 %v15590_v12  ;;  %v8963_v31 = vpack.c.bf16 %v15598_v25, %v15597_v26  ;;  %v15601_v38 = vpack.c.bf16 %v15599_v11, %v15600_v27  ;;  %v15609_v25 = vand.u32 4294901760, %v15522_v62  ;;  %v15610_v26 = vld [vmem:[#allocation18_spill] sm:$0xff]  ;;  %v15612_v11 = vld [vmem:[#allocation60_spill] sm:$0xff]  ;;  %v15619_v62 = vand.u32 4294901760, %v15530_v63 }
 0x1bb   :  { %v15629_v63 = vand.u32 4294901760, %v15535_v57  ;;  %v15639_v57 = vand.u32 4294901760, %v15541_v13 }
 0x1bc   :  { %8222 = vmatpush1.bf16.msra.mxu0 %v15591_v60  ;;  %v15603_v60 = vld [vmem:[#allocation54_spill] sm:$0xff]  ;;  %v8967_v33 = vpack.c.bf16 %v15609_v25, %v15608_v47 }
 0x1bd   :  { %8958 = vmatpush3.bf16.msra.mxu1 %v15592_v7  ;;  %8224 = vmatprep.subr.bf16.mxu0 %v15595_v9  ;;  %v15605_v40 = vpack.c.bf16 %v15603_v60, %v15604_v61  ;;  %v15607_v9 = vand.u32 4294901760, %v15519_v8  ;;  %v15615_v8 = vand.u32 4294901760, %v15526_v53  ;;  %v15621_v25 = vld [vmem:[#allocation74_spill] sm:$0xff]  ;;  %v15627_v53 = vand.u32 4294901760, %v15533_v20  ;;  %v15734_v60 = vld [vmem:[#allocation59_spill] sm:$0xff] }
 0x1be   :  { %8960 = vmatprep.subr.bf16.mxu1 %v15596_v24  ;;  %v15637_v20 = vand.u32 4294901760, %v15538_v56  ;;  %v15648_v56 = vand.u32 4294901760, %v15547_v6 }
 0x1bf   :  { %v8965_v41 = vpack.c.bf16 %v15607_v9, %v15606_v46  ;;  %v15617_v46 = vld [vmem:[#allocation65_spill] sm:$0xff]  ;;  %v15620_v9 = vand.u32 4294901760, %v15529_v21  ;;  %v15630_v21 = vand.u32 4294901760, %v10415_v4 }
 0x1c0   :  { %8226 = vmatpush1.bf16.msra.mxu0 %v15601_v38  ;;  %v15611_v38 = vld [vmem:[#allocation61_spill] sm:$0xff] }
 0x1c1   :  { %8962 = vmatpush3.bf16.msra.mxu1 %v15602_v59  ;;  %8228 = vmatprep.subr.bf16.mxu0 %v15605_v40  ;;  %v15613_v27 = vpack.c.bf16 %v15611_v38, %v15612_v11  ;;  %v15614_v40 = vand.u32 4294901760, %v15527_v30  ;;  %v8971_v47 = vpack.c.bf16 %v15620_v9, %v15619_v62  ;;  %v15624_v38 = vld [vmem:[#allocation78_spill] sm:$0xff]  ;;  %v15625_v30 = vld [vmem:[#allocation77_spill] sm:$0xff] }
 0x1c2   :  { %8964 = vmatprep.subr.bf16.mxu1 %v8963_v31  ;;  %v15616_v31 = vld [vmem:[#allocation66_spill] sm:$0xff]  ;;  %v15626_v11 = vpack.c.bf16 %v15624_v38, %v15625_v30  ;;  %v15632_v62 = vld [vmem:[#allocation81_spill] sm:$0xff]  ;;  %v15731_v30 = vld [vmem:[#allocation56_spill] sm:$0xff] }
 0x1c3   :  { %v8969_v18 = vpack.c.bf16 %v15615_v8, %v15614_v40  ;;  %v15618_v16 = vpack.c.bf16 %v15616_v31, %v15617_v46  ;;  %v15628_v40 = vand.u32 4294901760, %v15532_v39  ;;  %v15638_v39 = vand.u32 4294901760, %v15537_v2  ;;  %v1177_v31 = vld [vmem:[#allocation7 + $0x430] sm:$0xff]  ;;  %v1234_v46 = vld [vmem:[#allocation7 + $0x5f8] sm:$0xff] }
 0x1c4   :  { %4405 = vmatmul.mubr.f32.vlgmr.msra.gmra.mrb[8].mxu1 %v15610_v26  ;;  %8230 = vmatpush1.bf16.msra.mxu0 %v15613_v27  ;;  %v15622_v27 = vld [vmem:[#allocation71_spill] sm:$0xff] }
 0x1c5   :  { %8966 = vmatpush3.bf16.msra.mxu1 %v8965_v41  ;;  %4571 = vmatprep.mubr.f32.mxu1 %v11328_v51  ;;  %v15623_v41 = vpack.c.bf16 %v15621_v25, %v15622_v27  ;;  %v8973_v8 = vpack.c.bf16 %v15628_v40, %v15627_v53  ;;  %v15642_v40 = vld [vmem:[#allocation91_spill] sm:$0xff] }
 0x1c6   :  { %8232 = vmatprep.subr.bf16.mxu0 %v15618_v16  ;;  %8968 = vmatprep.subr.bf16.mxu1 %v8967_v33  ;;  %v8975_v33 = vpack.c.bf16 %v15630_v21, %v15629_v63  ;;  %v15631_v16 = vld [vmem:[#allocation82_spill] sm:$0xff] }
 0x1c7   :  { %v15633_v9 = vpack.c.bf16 %v15631_v16, %v15632_v62  ;;  %v15643_v63 = vld [vmem:[#allocation90_spill] sm:$0xff] }
 0x1c8   :  { %8234 = vmatpush1.bf16.msra.mxu0 %v15623_v41  ;;  %v15635_v41 = vld [vmem:[#allocation87_spill] sm:$0xff]  ;;  %v15644_v21 = vpack.c.bf16 %v15642_v40, %v15643_v63  ;;  %v1219_v63 = vld [vmem:[#allocation7 + $0x580] sm:$0xff] }
 0x1c9   :  { %8970 = vmatpush3.bf16.msra.mxu1 %v8969_v18  ;;  %8236 = vmatprep.subr.bf16.mxu0 %v15626_v11  ;;  %v15634_v18 = vld [vmem:[#allocation88_spill] sm:$0xff]  ;;  %v8977_v11 = vpack.c.bf16 %v15638_v39, %v15637_v20  ;;  %v15653_v39 = vld [vmem:[#allocation133_spill] sm:$0xff] }
 0x1ca   :  { %8972 = vmatprep.subr.bf16.mxu1 %v8971_v47  ;;  %v15636_v38 = vpack.c.bf16 %v15634_v18, %v15635_v41  ;;  %v15640_v47 = vld [vmem:[#allocation125_spill] sm:$0xff]  ;;  %v15656_v41 = vld [vmem:[#allocation126_spill] sm:$0xff] }
 0x1cb   :  { %v15641_v4 = vand.u32 4294901760, %v15640_v47  ;;  %v15654_v47 = vand.u32 4294901760, %v15653_v39  ;;  %v15668_v39 = vld [vmem:[#allocation135_spill] sm:$0xff] }
 0x1cc   :  { %8238 = vmatpush1.bf16.msra.mxu0 %v15633_v9  ;;  %v15646_v9 = vld [vmem:[#allocation122_spill] sm:$0xff] }
 0x1cd   :  { %8974 = vmatpush3.bf16.msra.mxu1 %v8973_v8  ;;  %8240 = vmatprep.subr.bf16.mxu0 %v15636_v38  ;;  %v8979_v53 = vpack.c.bf16 %v15641_v4, %v15639_v57  ;;  %v15645_v8 = vld [vmem:[#allocation123_spill] sm:$0xff]  ;;  %v15649_v38 = vld [vmem:[#allocation129_spill] sm:$0xff] }
 0x1ce   :  { %8976 = vmatprep.subr.bf16.mxu1 %v8975_v33  ;;  %v15647_v18 = vpack.c.bf16 %v15645_v8, %v15646_v9  ;;  %v15650_v2 = vand.u32 4294901760, %v15649_v38  ;;  %v15651_v33 = vld [vmem:[#allocation132_spill] sm:$0xff]  ;;  %v15655_v4 = vld [vmem:[#allocation127_spill] sm:$0xff]  ;;  %v15663_v9 = vld [vmem:[#allocation137_spill] sm:$0xff] }
 0x1cf   :  { %v15652_v13 = vand.u32 4294901760, %v15651_v33  ;;  %v15657_v40 = vpack.c.bf16 %v15655_v4, %v15656_v41  ;;  %v15664_v38 = vand.u32 4294901760, %v15663_v9  ;;  %v15675_v9 = vand.u32 4294901760, %v15561_v14 }
 0x1d0   :  { %8242 = vmatpush1.bf16.msra.mxu0 %v15644_v21  ;;  %v8981_v20 = vpack.c.bf16 %v15650_v2, %v15648_v56  ;;  %v15659_v21 = vld [vmem:[#allocation130_spill] sm:$0xff]  ;;  %v15666_v2 = vld [vmem:[#allocation141_spill] sm:$0xff]  ;;  %v15685_v14 = vand.u32 4294901760, %v15570_v29  ;;  %v15692_v29 = vld [vmem:[#allocation96_spill] sm:$0xff] }
 0x1d1   :  { %8978 = vmatpush3.bf16.msra.mxu1 %v8977_v11  ;;  %8244 = vmatprep.subr.bf16.mxu0 %v15647_v18  ;;  %v8983_v57 = vpack.c.bf16 %v15654_v47, %v15652_v13  ;;  %v15658_v11 = vld [vmem:[#allocation131_spill] sm:$0xff]  ;;  %v15661_v18 = vld [vmem:[#allocation136_spill] sm:$0xff]  ;;  %v15667_v33 = vand.u32 4294901760, %v15666_v2  ;;  %v15669_v47 = vld [vmem:[#allocation134_spill] sm:$0xff] }
 0x1d2   :  { %8980 = vmatprep.subr.bf16.mxu1 %v8979_v53  ;;  %v15660_v8 = vpack.c.bf16 %v15658_v11, %v15659_v21  ;;  %v15662_v6 = vand.u32 4294901760, %v15661_v18  ;;  %v15665_v53 = vand.u32 4294901760, %v15559_v15  ;;  %v15670_v4 = vpack.c.bf16 %v15668_v39, %v15669_v47  ;;  %v1165_v39 = vld [vmem:[#allocation7 + $0x3d0] sm:$0xff]  ;;  %v1168_v47 = vld [vmem:[#allocation7 + $0x3e8] sm:$0xff] }
 0x1d3   :  { %v15676_v15 = vand.u32 4294901760, %v15565_v28  ;;  %v15687_v28 = vld [vmem:[#allocation153_spill] sm:$0xff]  ;;  %v15724_v21 = vld [vmem:[#allocation48_spill] sm:$0xff] }
 0x1d4   :  { %8246 = vmatpush1.bf16.msra.mxu0 %v15657_v40  ;;  %v8985_v56 = vpack.c.bf16 %v15664_v38, %v15662_v6  ;;  %v8987_v13 = vpack.c.bf16 %v15667_v33, %v15665_v53  ;;  %v15671_v40 = vld [vmem:[#allocation139_spill] sm:$0xff]  ;;  %v15679_v53 = vld [vmem:[#allocation142_spill] sm:$0xff] }
 0x1d5   :  { %8982 = vmatpush3.bf16.msra.mxu1 %v8981_v20  ;;  %8248 = vmatprep.subr.bf16.mxu0 %v15660_v8  ;;  %v15672_v20 = vld [vmem:[#allocation138_spill] sm:$0xff]  ;;  %v15674_v8 = vand.u32 4294901760, %v15562_v35  ;;  %v15678_v38 = vld [vmem:[#allocation143_spill] sm:$0xff]  ;;  %v15684_v35 = vand.u32 4294901760, %v15571_v43 }
 0x1d6   :  { %8984 = vmatprep.subr.bf16.mxu1 %v8983_v57  ;;  %v15673_v11 = vpack.c.bf16 %v15671_v40, %v15672_v20  ;;  %v15677_v57 = vand.u32 4294901760, %v15564_v55  ;;  %v15680_v2 = vpack.c.bf16 %v15678_v38, %v15679_v53  ;;  %v15689_v55 = vld [vmem:[#allocation83_spill] sm:$0xff]  ;;  %v15691_v43 = vld [vmem:[#allocation94_spill] sm:$0xff]  ;;  %v1162_v53 = vld [vmem:[#allocation7 + $0x3b8] sm:$0xff] }
 0x1d7   :  { %v8989_v18 = vpack.c.bf16 %v15675_v9, %v15674_v8  ;;  %v15690_v9 = vld [vmem:[#allocation186_spill] sm:$0xff]  ;;  %v15719_v40 = vld [vmem:[#allocation19_spill] sm:$0xff] }
 0x1d8   :  { %8250 = vmatpush1.bf16.msra.mxu0 %v15670_v4  ;;  %v8991_v6 = vpack.c.bf16 %v15677_v57, %v15676_v15  ;;  %v15681_v4 = vld [vmem:[#allocation148_spill] sm:$0xff]  ;;  %v15693_v15 = vld [vmem:[#allocation187_spill] sm:$0xff] }
 0x1d9   :  { %8986 = vmatpush3.bf16.msra.mxu1 %v8985_v56  ;;  %8252 = vmatprep.subr.bf16.mxu0 %v15673_v11  ;;  %v15682_v56 = vld [vmem:[#allocation147_spill] sm:$0xff]  ;;  %v8993_v11 = vpack.c.bf16 %v15685_v14, %v15684_v35  ;;  %v15702_v35 = vld [vmem:[#allocation109_spill] sm:$0xff]  ;;  %v1189_v14 = vld [vmem:[#allocation7 + $0x490] sm:$0xff] }
 0x1da   :  { %8988 = vmatprep.subr.bf16.mxu1 %v8987_v13  ;;  %v15683_v33 = vpack.c.bf16 %v15681_v4, %v15682_v56  ;;  %v15686_v13 = vld [vmem:[#allocation154_spill] sm:$0xff] }
 0x1db   :  { %v15688_v8 = vpack.c.bf16 %v15686_v13, %v15687_v28  ;;  %v1153_v28 = vld [vmem:[#allocation7 + $0x370] sm:$0xff] }
 0x1dc   :  { %8254 = vmatpush1.bf16.msra.mxu0 %v15680_v2  ;;  %v15697_v2 = vld [vmem:[#allocation102_spill] sm:$0xff] }
 0x1dd   :  { %8990 = vmatpush3.bf16.msra.mxu1 %v8989_v18  ;;  %8256 = vmatprep.subr.bf16.mxu0 %v15683_v33  ;;  %v99_v18 = vsub.s32 3, %v15690_v9 }
 0x1de   :  { %8992 = vmatprep.subr.bf16.mxu1 %v8991_v6  ;;  %v15696_v6 = vld [vmem:[#allocation23_spill] sm:$0xff] }
 0x1df   :  { %v100_v57 = vrot.slane %v15693_v15, %v99_v18 }
 0x1e0   :  { %8258 = vmatpush1.bf16.msra.mxu0 %v15688_v8  ;;  %v4731_v8 = vand.u32 4294901760, %v1189_v14 }
 0x1e1   :  { %8994 = vmatpush3.bf16.msra.mxu1 %v8993_v11  ;;  %8260 = vmatprep.subr.bf16.mxu0 %v15689_v55  ;;  %v1192_v11 = vld [vmem:[#allocation7 + $0x4a8] sm:$0xff] }
 0x1e2   :  { %8996 = vmatprep.subr.bf16.mxu1 %v15573_v34  ;;  %v15694_v34 = vld [vmem:[#allocation98_spill] sm:$0xff]  ;;  %v4734_v18 = vand.u32 4294901760, %v1192_v11  ;;  %v11734_v56 = vsub.f32 %v1189_v14, %v4731_v8  ;;  %v15720_v14 = vld [vmem:[#allocation44_spill] sm:$0xff] }
 0x1e3   :  { %1987 = vmatmul.mubr.f32.vlgmr.msra.gmra.mrb[2].mxu0 %v11334_v50  ;;  %v15695_v50 = vld [vmem:[#allocation100_spill] sm:$0xff] }
 0x1e4   :  { %4573 = vmatmul.mubr.f32.vlgmr.msra.gmra.mrb[10].mxu1 %v11325_v54  ;;  %8262 = vmatpush1.bf16.msra.mxu0 %v15691_v43 }
 0x1e5   :  { %2124 = vmatprep.mubr.f32.mxu0 %v11364_v3  ;;  %8998 = vmatpush3.bf16.msra.mxu1 %v15574_v1  ;;  %v9558_v3 = vadd.f32 %v15696_v6, %v100_v57  ;;  %v15698_v1 = vld [vmem:[#allocation104_spill] sm:$0xff]  ;;  %v1144_v57 = vld [vmem:[#allocation7 + $0x328] sm:$0xff] }
 0x1e6   :  { %4675 = vmatprep.mubr.f32.mxu1 %v11328_v51  ;;  %8264 = vmatprep.subr.bf16.mxu0 %v15692_v29 }
 0x1e7   :  { %9000 = vmatprep.subr.bf16.mxu1 %v15575_v49  ;;  %v1042_v33 = vmax.f32 %v9558_v3, 0.0  ;;  %v15699_v49 = vld [vmem:[#allocation106_spill] sm:$0xff]  ;;  %v1198_v3 = vld [vmem:[#allocation7 + $0x4d8] sm:$0xff] }
 0x1e8   :  { %8266 = vmatpush1.bf16.msra.mxu0 %v15694_v34 }
 0x1e9   :  { %9002 = vmatpush3.bf16.msra.mxu1 %v15576_v37  ;;  %8268 = vmatprep.subr.bf16.mxu0 %v15695_v50  ;;  %v15700_v37 = vld [vmem:[#allocation108_spill] sm:$0xff]  ;;  %v1204_v50 = vld [vmem:[#allocation7 + $0x508] sm:$0xff] }
 0x1ea   :  { %9004 = vmatprep.subr.bf16.mxu1 %v15577_v52  ;;  %v11696_v52 = vand.u32 4294901760, %v1042_v33  ;;  %v4746_v13 = vand.u32 4294901760, %v1204_v50 }
 0x1ec   :  { %8270 = vmatpush1.bf16.msra.mxu0 %v15697_v2  ;;  %15701 = vst [vmem:[#allocation25_spill] sm:$0xff] %v11696_v52 }
 0x1ed   :  { %9006 = vmatpush3.bf16.msra.mxu1 %v15578_v17  ;;  %8272 = vmatprep.subr.bf16.mxu0 %v15698_v1  ;;  %v15703_v17 = vld [vmem:[#allocation110_spill] sm:$0xff]  ;;  %v1150_v1 = vld [vmem:[#allocation7 + $0x358] sm:$0xff] }
 0x1ee   :  { %9008 = vmatprep.subr.bf16.mxu1 %v15579_v0  ;;  %v11703_v0 = vsub.f32 %v1042_v33, %v11696_v52  ;;  %v15708_v33 = vld [vmem:[#allocation113_spill] sm:$0xff]  ;;  %v4692_v43 = vand.u32 4294901760, %v1150_v1 }
 0x1f0   :  { %8274 = vmatpush1.bf16.msra.mxu0 %v15699_v49  ;;  %15704 = vst [vmem:[#allocation158_spill] sm:$0xff] %v11703_v0  ;;  %v11710_v6 = vand.u32 4294901760, %v11703_v0  ;;  %v1147_v49 = vld [vmem:[#allocation7 + $0x340] sm:$0xff] }
 0x1f1   :  { %9010 = vmatpush3.bf16.msra.mxu1 %v15580_v32  ;;  %8276 = vmatprep.subr.bf16.mxu0 %v15700_v37  ;;  %v15705_v32 = vld [vmem:[#allocation111_spill] sm:$0xff]  ;;  %v4740_v37 = vand.u32 4294901760, %v1198_v3  ;;  %v4689_v29 = vand.u32 4294901760, %v1147_v49 }
 0x1f2   :  { %9012 = vmatprep.subr.bf16.mxu1 %v15581_v45  ;;  %v15706_v45 = vld [vmem:[#allocation112_spill] sm:$0xff]  ;;  %15707 = vst [vmem:[#allocation159_spill] sm:$0xff] %v11710_v6  ;;  %v2667_v2 = vsub.f32 %v11703_v0, %v11710_v6 }
 0x1f4   :  { %8278 = vmatpush1.bf16.msra.mxu0 %v15702_v35  ;;  %v11732_v4 = vand.u32 4294901760, %v2667_v2 }
 0x1f5   :  { %9014 = vmatpush3.bf16.msra.mxu1 %v15584_v36  ;;  %8280 = vmatprep.subr.bf16.mxu0 %v15703_v17  ;;  %v1141_v36 = vld [vmem:[#allocation7 + $0x310] sm:$0xff]  ;;  %v15711_v17 = vld [vmem:[#allocation39_spill] sm:$0xff] }
 0x1f6   :  { %9016 = vmatprep.subr.bf16.mxu1 %v15586_v48  ;;  %v1195_v48 = vld [vmem:[#allocation7 + $0x4c0] sm:$0xff]  ;;  %15716 = vst [vmem:[#allocation163_spill] sm:$0xff] %v11732_v4 }
 0x1f7   :  { %v4737_v35 = vand.u32 4294901760, %v1195_v48 }
 0x1f8   :  { %8282 = vmatpush1.bf16.msra.mxu0 %v15705_v32  ;;  %v4686_v32 = vand.u32 4294901760, %v1144_v57 }
 0x1f9   :  { %9018 = vmatpush3.bf16.msra.mxu1 %v15588_v22  ;;  %8284 = vmatprep.subr.bf16.mxu0 %v15706_v45  ;;  %v15709_v22 = vld [vmem:[#allocation114_spill] sm:$0xff]  ;;  %v4683_v45 = vand.u32 4294901760, %v1141_v36  ;;  %v11730_v55 = vpack.c.bf16 %v4740_v37, %v4737_v35 }
 0x1fa   :  { %9020 = vmatprep.subr.bf16.mxu1 %v15590_v12  ;;  %v11717_v12 = vpack.c.bf16 %v4734_v18, %v4731_v8  ;;  %v11746_v2 = vsub.f32 %v1144_v57, %v4686_v32  ;;  %v11749_v8 = vpack.c.bf16 %v4692_v43, %v4689_v29  ;;  %v11759_v57 = vsub.f32 %v1147_v49, %v4689_v29 }
 0x1fb   :  { %v11727_v34 = vpack.c.bf16 %v4686_v32, %v4683_v45  ;;  %15715 = vst [vmem:[#allocation162_spill] sm:$0xff] %v11730_v55  ;;  %v11740_v38 = vsub.f32 %v1141_v36, %v4683_v45  ;;  %v11757_v32 = vsub.f32 %v1198_v3, %v4740_v37  ;;  %v15725_v37 = vld [vmem:[#allocation49_spill] sm:$0xff] }
 0x1fc   :  { %8286 = vmatpush1.bf16.msra.mxu0 %v15708_v33  ;;  %15710 = vst [vmem:[#allocation160_spill] sm:$0xff] %v11717_v12  ;;  %v1201_v33 = vld [vmem:[#allocation7 + $0x4f0] sm:$0xff]  ;;  %15721 = vst [vmem:[#allocation165_spill] sm:$0xff] %v11749_v8 }
 0x1fd   :  { %9022 = vmatpush3.bf16.msra.mxu1 %v15592_v7  ;;  %8288 = vmatprep.subr.bf16.mxu0 %v15709_v22  ;;  %v15712_v7 = vsub.s32 2, %v15690_v9  ;;  %15714 = vst [vmem:[#allocation161_spill] sm:$0xff] %v11727_v34  ;;  %v4743_v6 = vand.u32 4294901760, %v1201_v33 }
 0x1fe   :  { %9024 = vmatprep.subr.bf16.mxu1 %v15596_v24  ;;  %v15713_v24 = vld [vmem:[#allocation40_spill] sm:$0xff] }
 0x1ff   :  { %v96_v22 = vrot.slane %v15693_v15, %v15712_v7  ;;  %v1207_v15 = vld [vmem:[#allocation7 + $0x520] sm:$0xff]  ;;  %v11737_v7 = vsub.f32 %v1192_v11, %v4734_v18  ;;  %v11752_v18 = vsub.f32 %v1195_v48, %v4737_v35  ;;  %v11754_v45 = vpack.c.bf16 %v4746_v13, %v4743_v6 }
 0x200   :  { %8290 = vmatpush1.bf16.msra.mxu0 %v15711_v17  ;;  %v1156_v17 = vld [vmem:[#allocation7 + $0x388] sm:$0xff]  ;;  %v4749_v36 = vand.u32 4294901760, %v1207_v15  ;;  %v11762_v35 = vsub.f32 %v1150_v1, %v4692_v43  ;;  %v11764_v48 = vsub.f32 %v1201_v33, %v4743_v6  ;;  %v1171_v43 = vld [vmem:[#allocation7 + $0x400] sm:$0xff]  ;;  %v1174_v1 = vld [vmem:[#allocation7 + $0x418] sm:$0xff]  ;;  %v4710_v6 = vand.u32 4294901760, %v1168_v47 }
 0x201   :  { %9026 = vmatpush3.bf16.msra.mxu1 %v15602_v59  ;;  %8292 = vmatprep.subr.bf16.mxu0 %v15713_v24  ;;  %v1210_v59 = vld [vmem:[#allocation7 + $0x538] sm:$0xff]  ;;  %15717 = vst [vmem:[#allocation164_spill] sm:$0xff] %v11737_v7  ;;  %v15718_v24 = vld [vmem:[#allocation43_spill] sm:$0xff]  ;;  %v11743_v20 = vadd.f32 %v15719_v40, %v96_v22  ;;  %v4698_v11 = vand.u32 4294901760, %v1156_v17  ;;  %15722 = vst [vmem:[#allocation166_spill] sm:$0xff] %v11752_v18  ;;  %v4713_v0 = vand.u32 4294901760, %v1171_v43 }
 0x202   :  { %9028 = vmatprep.subr.bf16.mxu1 %v11717_v12  ;;  %v1159_v12 = vld [vmem:[#allocation7 + $0x3a0] sm:$0xff]  ;;  %15723 = vst [vmem:[#allocation167_spill] sm:$0xff] %v11754_v45  ;;  %v1213_v40 = vld [vmem:[#allocation7 + $0x550] sm:$0xff]  ;;  %v1216_v22 = vld [vmem:[#allocation7 + $0x568] sm:$0xff]  ;;  %v11780_v33 = vsub.f32 %v1207_v15, %v4749_v36 }
 0x203   :  { %v1041_v41 = vmax.f32 %v11743_v20, 0.0  ;;  %v4755_v3 = vand.u32 4294901760, %v1213_v40  ;;  %v4707_v20 = vand.u32 4294901760, %v1165_v39 }
 0x204   :  { %4677 = vmatmul.mubr.f32.vlgmr.msra.gmra.mrb[12].mxu1 %v11325_v54  ;;  %8294 = vmatpush1.bf16.msra.mxu0 %v15718_v24  ;;  %v4695_v54 = vand.u32 4294901760, %v1153_v28  ;;  %v4752_v24 = vand.u32 4294901760, %v1210_v59 }
 0x205   :  { %9030 = vmatpush3.bf16.msra.mxu1 %v11727_v34  ;;  %8296 = vmatprep.subr.bf16.mxu0 %v15720_v14  ;;  %v4701_v14 = vand.u32 4294901760, %v1159_v12  ;;  %v4704_v34 = vand.u32 4294901760, %v1162_v53  ;;  %v11787_v16 = vand.u32 4294901760, %v1041_v41  ;;  %v11802_v25 = vpack.c.bf16 %v4710_v6, %v4707_v20 }
 0x206   :  { %9032 = vmatprep.subr.bf16.mxu1 %v11730_v55  ;;  %4783 = vmatprep.mubr.f32.mxu1 %v11732_v4  ;;  %v11766_v55 = vsub.f32 %v1204_v50, %v4746_v13  ;;  %v11771_v29 = vpack.c.bf16 %v4698_v11, %v4695_v54  ;;  %v11773_v49 = vsub.f32 %v1153_v28, %v4695_v54  ;;  %v4758_v4 = vand.u32 4294901760, %v1216_v22  ;;  %v15729_v28 = vld [vmem:[#allocation55_spill] sm:$0xff] }
 0x207   :  { %v11776_v13 = vsub.f32 %v1156_v17, %v4698_v11  ;;  %v11778_v50 = vpack.c.bf16 %v4752_v24, %v4749_v36  ;;  %v4761_v54 = vand.u32 4294901760, %v1219_v63  ;;  %15730 = vst [vmem:[#allocation171_spill] sm:$0xff] %v11787_v16  ;;  %v1225_v17 = vld [vmem:[#allocation7 + $0x5b0] sm:$0xff]  ;;  %v1228_v11 = vld [vmem:[#allocation7 + $0x5c8] sm:$0xff]  ;;  %v11791_v15 = vsub.f32 %v1159_v12, %v4701_v14  ;;  %15733 = vst [vmem:[#allocation173_spill] sm:$0xff] %v11802_v25 }
 0x208   :  { %8298 = vmatpush1.bf16.msra.mxu0 %v15724_v21  ;;  %15726 = vst [vmem:[#allocation168_spill] sm:$0xff] %v11771_v29  ;;  %v1222_v21 = vld [vmem:[#allocation7 + $0x598] sm:$0xff]  ;;  %v11798_v36 = vsub.f32 %v1213_v40, %v4755_v3  ;;  %v11804_v27 = vsub.f32 %v1165_v39, %v4707_v20  ;;  %v4767_v12 = vand.u32 4294901760, %v1225_v17  ;;  %v11812_v40 = vsub.f32 %v1041_v41, %v11787_v16  ;;  %v1183_v20 = vld [vmem:[#allocation7 + $0x460] sm:$0xff] }
 0x209   :  { %9034 = vmatpush3.bf16.msra.mxu1 %v11749_v8  ;;  %8300 = vmatprep.subr.bf16.mxu0 %v15725_v37  ;;  %15727 = vst [vmem:[#allocation169_spill] sm:$0xff] %v11778_v50  ;;  %v11782_v37 = vsub.f32 %v1210_v59, %v4752_v24  ;;  %v11784_v8 = vpack.c.bf16 %v4704_v34, %v4701_v14  ;;  %v4764_v62 = vand.u32 4294901760, %v1222_v21  ;;  %v1231_v14 = vld [vmem:[#allocation7 + $0x5e0] sm:$0xff]  ;;  %v4725_v41 = vand.u32 4294901760, %v1183_v20  ;;  %v15742_v16 = vld [vmem:[#allocation73_spill] sm:$0xff] }
 0x20a   :  { %9036 = vmatprep.subr.bf16.mxu1 %v11754_v45  ;;  %v4716_v45 = vand.u32 4294901760, %v1174_v1  ;;  %v11793_v24 = vsub.f32 %v1162_v53, %v4704_v34  ;;  %v11795_v59 = vpack.c.bf16 %v4758_v4, %v4755_v3  ;;  %v4770_v53 = vand.u32 4294901760, %v1228_v11  ;;  %v1180_v34 = vld [vmem:[#allocation7 + $0x448] sm:$0xff]  ;;  %15735 = vst [vmem:[#allocation174_spill] sm:$0xff] %v11812_v40 }
 0x20b   :  { %15728 = vst [vmem:[#allocation170_spill] sm:$0xff] %v11784_v8 }
 0x20c   :  { %8302 = vmatpush1.bf16.msra.mxu0 %v15729_v28  ;;  %15732 = vst [vmem:[#allocation172_spill] sm:$0xff] %v11795_v59  ;;  %v11800_v28 = vsub.f32 %v1216_v22, %v4758_v4  ;;  %v11814_v4 = vpack.c.bf16 %v4764_v62, %v4761_v54  ;;  %v11816_v22 = vsub.f32 %v1222_v21, %v4764_v62  ;;  %v4719_v62 = vand.u32 4294901760, %v1177_v31 }
 0x20d   :  { %9038 = vmatpush3.bf16.msra.mxu1 %v11771_v29  ;;  %8304 = vmatprep.subr.bf16.mxu0 %v15731_v30  ;;  %v11806_v29 = vsub.f32 %v1168_v47, %v4710_v6  ;;  %v11808_v30 = vsub.f32 %v1219_v63, %v4761_v54  ;;  %v11818_v39 = vpack.c.bf16 %v4716_v45, %v4713_v0  ;;  %v15738_v63 = vld [vmem:[#allocation63_spill] sm:$0xff]  ;;  %v11826_v6 = vld [vmem:[#allocation7 + $0x478] sm:$0xff]  ;;  %v4722_v21 = vand.u32 4294901760, %v1180_v34 }
 0x20e   :  { %9040 = vmatprep.subr.bf16.mxu1 %v11778_v50  ;;  %15736 = vst [vmem:[#allocation175_spill] sm:$0xff] %v11814_v4  ;;  %v11822_v47 = vsub.f32 %v1171_v43, %v4713_v0  ;;  %v11824_v3 = vsub.f32 %v1174_v1, %v4716_v45  ;;  %v4776_v50 = vand.u32 4294901760, %v1234_v46  ;;  %v11838_v43 = vand.u32 4294901760, %v11812_v40  ;;  %v15741_v1 = vld [vmem:[#allocation69_spill] sm:$0xff] }
 0x20f   :  { %15737 = vst [vmem:[#allocation176_spill] sm:$0xff] %v11818_v39  ;;  %v11841_v54 = vsub.f32 %v1228_v11, %v4770_v53  ;;  %v15744_v45 = vand.u32 4294901760, %v11737_v7  ;;  %v15748_v11 = vand.u32 4294901760, %v11746_v2 }
 0x210   :  { %8306 = vmatpush1.bf16.msra.mxu0 %v15734_v60  ;;  %v4773_v60 = vand.u32 4294901760, %v1231_v14  ;;  %15740 = vst [vmem:[#allocation178_spill] sm:$0xff] %v11838_v43 }
 0x211   :  { %9042 = vmatpush3.bf16.msra.mxu1 %v11784_v8  ;;  %8308 = vmatprep.subr.bf16.mxu0 %v15738_v63  ;;  %v11831_v8 = vpack.c.bf16 %v4770_v53, %v4767_v12  ;;  %v11833_v63 = vsub.f32 %v1225_v17, %v4767_v12  ;;  %v15743_v17 = vand.u32 4294901760, %v11734_v56  ;;  %v4917_v0 = vsub.f32 %v11737_v7, %v15744_v45  ;;  %v15749_v7 = vld [vmem:[#allocation116_spill] sm:$0xff] }
 0x212   :  { %9044 = vmatprep.subr.bf16.mxu1 %v11795_v59  ;;  %v11855_v53 = vpack.c.bf16 %v4722_v21, %v4719_v62  ;;  %v11857_v59 = vsub.f32 %v1177_v31, %v4719_v62  ;;  %v15747_v45 = vand.u32 4294901760, %v11740_v38  ;;  %v15750_v31 = vand.u32 4294901760, %v11826_v6 }
 0x213   :  { %15739 = vst [vmem:[#allocation177_spill] sm:$0xff] %v11831_v8  ;;  %v4910_v12 = vsub.f32 %v11734_v56, %v15743_v17  ;;  %v11865_v17 = vsub.f32 %v1234_v46, %v4776_v50  ;;  %v15756_v46 = vand.u32 4294901760, %v15568_v19 }
 0x214   :  { %8310 = vmatpush1.bf16.msra.mxu0 %v15741_v1  ;;  %15745 = vst [vmem:[#allocation179_spill] sm:$0xff] %v11855_v53  ;;  %v11859_v1 = vsub.f32 %v1180_v34, %v4722_v21  ;;  %v4798_v61 = vsub.f32 %v11740_v38, %v15747_v45  ;;  %v11876_v34 = vpack.c.bf16 %v15750_v31, %v4725_v41  ;;  %v4918_v21 = vand.u32 4294901760, %v4917_v0 }
 0x215   :  { %9046 = vmatpush3.bf16.msra.mxu1 %v11802_v25  ;;  %8312 = vmatprep.subr.bf16.mxu0 %v15742_v16  ;;  %v11861_v16 = vpack.c.bf16 %v4776_v50, %v4773_v60  ;;  %v11863_v25 = vsub.f32 %v1231_v14, %v4773_v60  ;;  %v2673_v60 = vsub.f32 %v11812_v40, %v11838_v43  ;;  %v15752_v14 = vld [vmem:[#allocation118_spill] sm:$0xff]  ;;  %v4911_v62 = vand.u32 4294901760, %v4910_v12 }
 0x216   :  { %9048 = vmatprep.subr.bf16.mxu1 %v11814_v4  ;;  %v4805_v4 = vsub.f32 %v11746_v2, %v15748_v11  ;;  %15751 = vst [vmem:[#allocation57_spill] sm:$0xff] %v11876_v34  ;;  %v15753_v11 = vand.u32 4294901760, %v11752_v18  ;;  %v15754_v31 = vand.u32 4294901760, %v11757_v32  ;;  %v11891_v43 = vsub.f32 %v1183_v20, %v4725_v41 }
 0x217   :  { %15746 = vst [vmem:[#allocation58_spill] sm:$0xff] %v11861_v16  ;;  %v15755_v50 = vand.u32 4294901760, %v15567_v58  ;;  %v14801_v12 = vand.u32 4294901760, %v11764_v48  ;;  %v15759_v20 = vand.u32 4294901760, %v15462_v5  ;;  %v15760_v58 = vand.u32 4294901760, %v15463_v10 }
 0x218   :  { %8314 = vmatpush1.bf16.msra.mxu0 %v15749_v7  ;;  %v4924_v45 = vsub.f32 %v11752_v18, %v15753_v11  ;;  %v4931_v7 = vsub.f32 %v11757_v32, %v15754_v31  ;;  %v4806_v40 = vand.u32 4294901760, %v4805_v4  ;;  %v15757_v31 = vld [vmem:[#allocation120_spill] sm:$0xff]  ;;  %v15761_v41 = vand.u32 4294901760, %v11759_v57 }
 0x219   :  { %9050 = vmatpush3.bf16.msra.mxu1 %v11818_v39  ;;  %8316 = vmatprep.subr.bf16.mxu0 %v15752_v14  ;;  %v8323_v39 = vpack.c.bf16 %v15756_v46, %v15755_v50  ;;  %v4799_v14 = vand.u32 4294901760, %v4798_v61  ;;  %v8325_v19 = vpack.c.bf16 %v15760_v58, %v15759_v20  ;;  %v15762_v61 = vand.u32 4294901760, %v11762_v35  ;;  %v15763_v50 = vld [vmem:[#allocation146_spill] sm:$0xff]  ;;  %v15765_v11 = vld [vmem:[#allocation20_spill] sm:$0xff] }
 0x21a   :  { %9052 = vmatprep.subr.bf16.mxu1 %v11831_v8  ;;  %v11902_v8 = vand.u32 4294901760, %v2673_v60  ;;  %v4812_v46 = vsub.f32 %v11759_v57, %v15761_v41  ;;  %v9059_v18 = vpack.c.bf16 %v4918_v21, %v4911_v62  ;;  %v15764_v60 = vand.u32 4294901760, %v15464_v44  ;;  %v15768_v21 = vld [vmem:[#allocation21_spill] sm:$0xff] }
 0x21b   :  { %v4819_v4 = vsub.f32 %v11762_v35, %v15762_v61  ;;  %v15766_v5 = vand.u32 4294901760, %v15765_v11  ;;  %v4925_v10 = vand.u32 4294901760, %v4924_v45  ;;  %v4932_v20 = vand.u32 4294901760, %v4931_v7 }
 0x21c   :  { %8318 = vmatpush1.bf16.msra.mxu0 %v15757_v31  ;;  %15758 = vst [vmem:[#allocation64_spill] sm:$0xff] %v11902_v8  ;;  %v4938_v58 = vsub.f32 %v11764_v48, %v14801_v12  ;;  %v15767_v41 = vand.u32 4294901760, %v11766_v55  ;;  %v9061_v44 = vpack.c.bf16 %v4806_v40, %v4799_v14  ;;  %v15769_v11 = vand.u32 4294901760, %v15768_v21  ;;  %v15776_v40 = vld [vmem:[#allocation24_spill] sm:$0xff] }
 0x21d   :  { %9054 = vmatpush3.bf16.msra.mxu1 %v11855_v53  ;;  %8320 = vmatprep.subr.bf16.mxu0 %v15763_v50  ;;  %v8327_v0 = vpack.c.bf16 %v15766_v5, %v15764_v60  ;;  %v15770_v60 = vld [vmem:[#allocation22_spill] sm:$0xff]  ;;  %v15772_v5 = vand.u32 4294901760, %v11773_v49  ;;  %v15773_v12 = vand.u32 4294901760, %v11776_v13  ;;  %v15774_v53 = vld [vmem:[#allocation152_spill] sm:$0xff]  ;;  %v4820_v50 = vand.u32 4294901760, %v4819_v4 }
 0x21e   :  { %9056 = vmatprep.subr.bf16.mxu1 %v11861_v16  ;;  %v4945_v61 = vsub.f32 %v11766_v55, %v15767_v41  ;;  %v15771_v45 = vand.u32 4294901760, %v15770_v60  ;;  %v4813_v41 = vand.u32 4294901760, %v4812_v46  ;;  %v15775_v62 = vand.u32 4294901760, %v15468_v42 }
 0x21f   :  { %v4826_v31 = vsub.f32 %v11773_v49, %v15772_v5  ;;  %v4833_v16 = vsub.f32 %v11776_v13, %v15773_v12  ;;  %v15777_v14 = vand.u32 4294901760, %v15776_v40  ;;  %v14806_v60 = vand.u32 4294901760, %v11791_v15 }
 0x220   :  { %v8329_v7 = vpack.c.bf16 %v15771_v45, %v15769_v11  ;;  %8322 = vmatpush1.bf16.msra.mxu0 %v15774_v53  ;;  %v9063_v11 = vpack.c.bf16 %v4932_v20, %v4925_v10  ;;  %v14807_v45 = vand.u32 4294901760, %v11793_v24  ;;  %v14811_v12 = vand.u32 4294901760, %v11800_v28 }
 0x221   :  { %v8331_v21 = vpack.c.bf16 %v15777_v14, %v15775_v62  ;;  %9058 = vmatpush3.bf16.msra.mxu1 %v11876_v34  ;;  %8324 = vmatprep.subr.bf16.mxu0 %v8323_v39  ;;  %v4939_v46 = vand.u32 4294901760, %v4938_v58  ;;  %v4946_v4 = vand.u32 4294901760, %v4945_v61  ;;  %v15778_v42 = vand.u32 4294901760, %v11780_v33 }
 0x222   :  { %9060 = vmatprep.subr.bf16.mxu1 %v9059_v18  ;;  %v15779_v62 = vand.u32 4294901760, %v11782_v37  ;;  %v4827_v39 = vand.u32 4294901760, %v4826_v31  ;;  %v4834_v10 = vand.u32 4294901760, %v4833_v16  ;;  %v9065_v18 = vpack.c.bf16 %v4820_v50, %v4813_v41 }
 0x223   :  { %v4952_v40 = vsub.f32 %v11780_v33, %v15778_v42  ;;  %2128 = vmatmul.mubr.f32.vlgmr.msra.gmra.mrb[2].mxu0 %v15610_v26  ;;  %v4840_v58 = vsub.f32 %v11791_v15, %v14806_v60  ;;  %v4847_v26 = vsub.f32 %v11793_v24, %v14807_v45  ;;  %v15780_v16 = vand.u32 4294901760, %v11798_v36  ;;  %v15784_v45 = vld [vmem:[#allocation27_spill] sm:$0xff] }
 0x224   :  { %v4959_v14 = vsub.f32 %v11782_v37, %v15779_v62  ;;  %4789 = vmatmul.mubr.f32.vlgmr.msra.gmra.mrb[14].mxu1 %v11902_v8  ;;  %8326 = vmatpush1.bf16.msra.mxu0 %v8325_v19  ;;  %v4973_v19 = vsub.f32 %v11800_v28, %v14811_v12  ;;  %v9067_v50 = vpack.c.bf16 %v4946_v4, %v4939_v46  ;;  %v15781_v41 = vand.u32 4294901760, %v15478_v23  ;;  %v15782_v62 = vld [vmem:[#allocation26_spill] sm:$0xff]  ;;  %v15786_v8 = vld [vmem:[#allocation28_spill] sm:$0xff] }
 0x225   :  { %2391 = vmatprep.mubr.f32.mxu0 %v11328_v51  ;;  %9062 = vmatpush3.bf16.msra.mxu1 %v9061_v44  ;;  %v4966_v31 = vsub.f32 %v11798_v36, %v15780_v16  ;;  %v15783_v60 = vand.u32 4294901760, %v15782_v62  ;;  %v4953_v42 = vand.u32 4294901760, %v4952_v40  ;;  %v9069_v5 = vpack.c.bf16 %v4834_v10, %v4827_v39  ;;  %v15793_v62 = vld [vmem:[#allocation29_spill] sm:$0xff] }
 0x226   :  { %8328 = vmatprep.subr.bf16.mxu0 %v8327_v0  ;;  %9064 = vmatprep.subr.bf16.mxu1 %v9063_v11  ;;  %v4960_v61 = vand.u32 4294901760, %v4959_v14  ;;  %v15785_v20 = vand.u32 4294901760, %v15784_v45  ;;  %v15787_v53 = vand.u32 4294901760, %v15786_v8  ;;  %v15788_v34 = vand.u32 4294901760, %v11804_v27 }
 0x227   :  { %v8333_v44 = vpack.c.bf16 %v15783_v60, %v15781_v41  ;;  %v15789_v0 = vand.u32 4294901760, %v11806_v29  ;;  %5019 = vmatprep.mubr.f32.mxu1 %v11696_v52  ;;  %v15790_v23 = vand.u32 4294901760, %v11808_v30  ;;  %v15791_v45 = vand.u32 4294901760, %v11816_v22 }
 0x228   :  { %v8335_v16 = vpack.c.bf16 %v15787_v53, %v15785_v20  ;;  %v4854_v12 = vsub.f32 %v11804_v27, %v15788_v34  ;;  %8330 = vmatpush1.bf16.msra.mxu0 %v8329_v7  ;;  %v4841_v34 = vand.u32 4294901760, %v4840_v58  ;;  %v4848_v4 = vand.u32 4294901760, %v4847_v26  ;;  %v15797_v58 = vld [vmem:[#allocation31_spill] sm:$0xff] }
 0x229   :  { %v4861_v11 = vsub.f32 %v11806_v29, %v15789_v0  ;;  %v4980_v60 = vsub.f32 %v11808_v30, %v15790_v23  ;;  %v4987_v8 = vsub.f32 %v11816_v22, %v15791_v45  ;;  %9066 = vmatpush3.bf16.msra.mxu1 %v9065_v18  ;;  %8332 = vmatprep.subr.bf16.mxu0 %v8331_v21  ;;  %v4967_v40 = vand.u32 4294901760, %v4966_v31  ;;  %v15795_v23 = vld [vmem:[#allocation30_spill] sm:$0xff]  ;;  %v15799_v31 = vld [vmem:[#allocation32_spill] sm:$0xff] }
 0x22a   :  { %v4974_v14 = vand.u32 4294901760, %v4973_v19  ;;  %v15792_v7 = vand.u32 4294901760, %v11826_v6  ;;  %9068 = vmatprep.subr.bf16.mxu1 %v9067_v50  ;;  %v9071_v10 = vpack.c.bf16 %v4960_v61, %v4953_v42  ;;  %v14812_v20 = vand.u32 4294901760, %v11833_v63 }
 0x22b   :  { %v14813_v41 = vand.u32 4294901760, %v11841_v54  ;;  %v15794_v0 = vand.u32 4294901760, %v15793_v62  ;;  %v15796_v18 = vand.u32 4294901760, %v15795_v23  ;;  %v15798_v26 = vand.u32 4294901760, %v15797_v58 }
 0x22c   :  { %v12000_v39 = vsub.f32 %v11826_v6, %v15792_v7  ;;  %v15800_v19 = vand.u32 4294901760, %v15799_v31  ;;  %v4855_v46 = vand.u32 4294901760, %v4854_v12  ;;  %v4862_v53 = vand.u32 4294901760, %v4861_v11  ;;  %8334 = vmatpush1.bf16.msra.mxu0 %v8333_v44 }
 0x22d   :  { %v8337_v21 = vpack.c.bf16 %v15796_v18, %v15794_v0  ;;  %v4981_v6 = vand.u32 4294901760, %v4980_v60  ;;  %v4988_v50 = vand.u32 4294901760, %v4987_v8  ;;  %v15801_v61 = vand.u32 4294901760, %v11822_v47  ;;  %9070 = vmatpush3.bf16.msra.mxu1 %v9069_v5  ;;  %8336 = vmatprep.subr.bf16.mxu0 %v8335_v16  ;;  %v15803_v16 = vld [vmem:[#allocation33_spill] sm:$0xff] }
 0x22e   :  { %v8339_v45 = vpack.c.bf16 %v15800_v19, %v15798_v26  ;;  %v15802_v7 = vand.u32 4294901760, %v11824_v3  ;;  %v9073_v0 = vpack.c.bf16 %v4848_v4, %v4841_v34  ;;  %v9075_v23 = vpack.c.bf16 %v4974_v14, %v4967_v40  ;;  %9072 = vmatprep.subr.bf16.mxu1 %v9071_v10  ;;  %v15805_v34 = vld [vmem:[#allocation34_spill] sm:$0xff]  ;;  %v15807_v14 = vld [vmem:[#allocation35_spill] sm:$0xff]  ;;  %v15809_v10 = vld [vmem:[#allocation36_spill] sm:$0xff] }
 0x22f   :  { %v4868_v42 = vsub.f32 %v11822_v47, %v15801_v61  ;;  %v14819_v18 = vand.u32 4294901760, %v11857_v59  ;;  %v14818_v12 = vand.u32 4294901760, %v11859_v1  ;;  %v4994_v44 = vsub.f32 %v11833_v63, %v14812_v20 }
 0x230   :  { %v4875_v62 = vsub.f32 %v11824_v3, %v15802_v7  ;;  %v5001_v11 = vsub.f32 %v11841_v54, %v14813_v41  ;;  %v14815_v60 = vand.u32 4294901760, %v11863_v25  ;;  %v14814_v5 = vand.u32 4294901760, %v11865_v17  ;;  %8338 = vmatpush1.bf16.msra.mxu0 %v8337_v21 }
 0x231   :  { %v15804_v8 = vand.u32 4294901760, %v15803_v16  ;;  %v15806_v4 = vand.u32 4294901760, %v15805_v34  ;;  %v15808_v58 = vand.u32 4294901760, %v15807_v14  ;;  %v15810_v26 = vand.u32 4294901760, %v15809_v10  ;;  %9074 = vmatpush3.bf16.msra.mxu1 %v9073_v0  ;;  %8340 = vmatprep.subr.bf16.mxu0 %v8339_v45  ;;  %v15817_v14 = vld [vmem:[#allocation42_spill] sm:$0xff] }
 0x232   :  { %v9077_v19 = vpack.c.bf16 %v4862_v53, %v4855_v46  ;;  %v9079_v61 = vpack.c.bf16 %v4988_v50, %v4981_v6  ;;  %v4869_v7 = vand.u32 4294901760, %v4868_v42  ;;  %v4876_v20 = vand.u32 4294901760, %v4875_v62  ;;  %9076 = vmatprep.subr.bf16.mxu1 %v9075_v23  ;;  %v1235_v6 = vld [vmem:[%s14314_s4] sm:$0x7]  ;;  %v15813_v62 = vld [vmem:[#allocation38_spill] sm:$0xff] }
 0x233   :  { %v8341_v40 = vpack.c.bf16 %v15806_v4, %v15804_v8  ;;  %v8343_v31 = vpack.c.bf16 %v15810_v26, %v15808_v58  ;;  %v4882_v41 = vsub.f32 %v11857_v59, %v14819_v18  ;;  %v4889_v16 = vsub.f32 %v11859_v1, %v14818_v12  ;;  %v15811_v50 = vld [vmem:[#allocation37_spill] sm:$0xff] }
 0x234   :  { %v14817_v8 = vand.u32 4294901760, %v11891_v43  ;;  %v14816_v34 = vand.u32 4294901760, %v12000_v39  ;;  %v4995_v21 = vand.u32 4294901760, %v4994_v44  ;;  %v5002_v53 = vand.u32 4294901760, %v5001_v11  ;;  %v15815_v11 = vld [vmem:[#allocation41_spill] sm:$0xff] }
 0x235   :  { %v5008_v46 = vsub.f32 %v11863_v25, %v14815_v60  ;;  %v5015_v45 = vsub.f32 %v11865_v17, %v14814_v5  ;;  %8342 = vmatpush1.bf16.msra.mxu0 %v8341_v40  ;;  %v15812_v42 = vand.u32 4294901760, %v15811_v50  ;;  %v15814_v0 = vand.u32 4294901760, %v15813_v62  ;;  %9078 = vmatpush3.bf16.msra.mxu1 %v9077_v19 }
 0x236   :  { %v9081_v44 = vpack.c.bf16 %v4876_v20, %v4869_v7  ;;  %v15816_v4 = vand.u32 4294901760, %v15815_v11  ;;  %v15818_v58 = vand.u32 4294901760, %v15817_v14  ;;  %8344 = vmatprep.subr.bf16.mxu0 %v8343_v31  ;;  %v4883_v26 = vand.u32 4294901760, %v4882_v41  ;;  %v7157_v50 = vpop.f32.mrb[2].mxu1  ;;  %9080 = vmatprep.subr.bf16.mxu1 %v9079_v61  ;;  %v15820_v31 = vld [vmem:[#allocation45_spill] sm:$0xff]  ;;  %v15822_v11 = vld [vmem:[#allocation46_spill] sm:$0xff] }
 0x237   :  { %v8345_v23 = vpack.c.bf16 %v15814_v0, %v15812_v42  ;;  %v4890_v5 = vand.u32 4294901760, %v4889_v16  ;;  %v4896_v60 = vsub.f32 %v11891_v43, %v14817_v8  ;;  %v4903_v40 = vsub.f32 %v12000_v39, %v14816_v34  ;;  %v7158_v19 = vpop.f32.mrb[3].mxu1  ;;  %v15824_v34 = vld [vmem:[#allocation47_spill] sm:$0xff]  ;;  %v15826_v61 = vld [vmem:[#allocation50_spill] sm:$0xff] }
 0x238   :  { %v8347_v10 = vpack.c.bf16 %v15818_v58, %v15816_v4  ;;  %v15819_v20 = vsub.s32 2, %v15690_v9  ;;  %v9083_v42 = vpack.c.bf16 %v5002_v53, %v4995_v21  ;;  %v5009_v62 = vand.u32 4294901760, %v5008_v46  ;;  %v15936_v9 = vld [vmem:[#allocation57_spill] sm:$0xff] }
 0x239   :  { %v5016_v0 = vand.u32 4294901760, %v5015_v45  ;;  %8346 = vmatpush1.bf16.msra.mxu0 %v8345_v23  ;;  %v7159_v41 = vadd.f32 %v7158_v19, %v7157_v50  ;;  %v15821_v16 = vand.u32 4294901760, %v15820_v31  ;;  %v15823_v4 = vand.u32 4294901760, %v15822_v11  ;;  %9082 = vmatpush3.bf16.msra.mxu1 %v9081_v44  ;;  %v15828_v45 = vld [vmem:[#allocation51_spill] sm:$0xff]  ;;  %v15830_v50 = vld [vmem:[#allocation52_spill] sm:$0xff]  ;;  %v15832_v44 = vld [vmem:[#allocation53_spill] sm:$0xff] }
 0x23a   :  { %v1248_v7 = vrot.slane %v1235_v6, %v15819_v20  ;;  %8348 = vmatprep.subr.bf16.mxu0 %v8347_v10  ;;  %v9085_v58 = vpack.c.bf16 %v4890_v5, %v4883_v26  ;;  %v15825_v8 = vand.u32 4294901760, %v15824_v34  ;;  %v15827_v12 = vand.u32 4294901760, %v15826_v61  ;;  %9084 = vmatprep.subr.bf16.mxu1 %v9083_v42  ;;  %v15834_v10 = vld [vmem:[#allocation54_spill] sm:$0xff]  ;;  %v15839_v42 = vld [vmem:[#allocation61_spill] sm:$0xff]  ;;  %v15846_v61 = vld [vmem:[#allocation171_spill] sm:$0xff] }
 0x23b   :  { %v8349_v14 = vpack.c.bf16 %v15823_v4, %v15821_v16  ;;  %v4897_v6 = vand.u32 4294901760, %v4896_v60  ;;  %v4904_v21 = vand.u32 4294901760, %v4903_v40  ;;  %v9087_v46 = vpack.c.bf16 %v5016_v0, %v5009_v62  ;;  %v15836_v60 = vld [vmem:[#allocation164_spill] sm:$0xff]  ;;  %v15843_v16 = vld [vmem:[#allocation66_spill] sm:$0xff] }
 0x23c   :  { %v8351_v18 = vpack.c.bf16 %v15827_v12, %v15825_v8  ;;  %v12077_v53 = vadd.f32 %v7159_v41, %v1248_v7  ;;  %v15829_v23 = vand.u32 4294901760, %v15828_v45  ;;  %v15831_v20 = vand.u32 4294901760, %v15830_v50  ;;  %v15837_v40 = vld [vmem:[#allocation60_spill] sm:$0xff]  ;;  %v15841_v41 = vld [vmem:[#allocation65_spill] sm:$0xff] }
 0x23d   :  { %8350 = vmatpush1.bf16.msra.mxu0 %v8349_v14  ;;  %9086 = vmatpush3.bf16.msra.mxu1 %v9085_v58  ;;  %v9089_v5 = vpack.c.bf16 %v4904_v21, %v4897_v6  ;;  %v15833_v34 = vand.u32 4294901760, %v15832_v44  ;;  %v15835_v26 = vand.u32 4294901760, %v15834_v10  ;;  %v9091_v8 = vpack.c.bf16 %v15836_v60, %v11734_v56  ;;  %v15845_v14 = vld [vmem:[#allocation166_spill] sm:$0xff]  ;;  %v15847_v6 = vld [vmem:[#allocation71_spill] sm:$0xff] }
 0x23e   :  { %v8353_v19 = vpack.c.bf16 %v15831_v20, %v15829_v23  ;;  %8352 = vmatprep.subr.bf16.mxu0 %v8351_v18  ;;  %9088 = vmatprep.subr.bf16.mxu1 %v9087_v46  ;;  %v15838_v7 = vand.u32 4294901760, %v15837_v40  ;;  %v15840_v62 = vand.u32 4294901760, %v15839_v42  ;;  %v9093_v18 = vpack.c.bf16 %v11746_v2, %v11740_v38  ;;  %v15849_v46 = vld [vmem:[#allocation74_spill] sm:$0xff]  ;;  %v15851_v20 = vld [vmem:[#allocation77_spill] sm:$0xff] }
 0x23f   :  { %v8355_v12 = vpack.c.bf16 %v15835_v26, %v15833_v34  ;;  %v15842_v31 = vand.u32 4294901760, %v15841_v41  ;;  %v15844_v11 = vand.u32 4294901760, %v15843_v16  ;;  %v9095_v58 = vpack.c.bf16 %v11757_v32, %v15845_v14  ;;  %v15855_v26 = vld [vmem:[#allocation158_spill] sm:$0xff]  ;;  %v15862_v41 = vld [vmem:[#allocation88_spill] sm:$0xff] }
 0x240   :  { %v8357_v0 = vpack.c.bf16 %v15840_v62, %v15838_v7  ;;  %v15848_v21 = vand.u32 4294901760, %v15847_v6  ;;  %v15850_v45 = vand.u32 4294901760, %v15849_v46  ;;  %v9097_v50 = vpack.c.bf16 %v11762_v35, %v11759_v57  ;;  %v15858_v40 = vld [vmem:[#allocation82_spill] sm:$0xff]  ;;  %v15866_v6 = vld [vmem:[#allocation91_spill] sm:$0xff] }
 0x241   :  { %8354 = vmatpush1.bf16.msra.mxu0 %v8353_v19  ;;  %9090 = vmatpush3.bf16.msra.mxu1 %v9089_v5  ;;  %v8359_v4 = vpack.c.bf16 %v15844_v11, %v15842_v31  ;;  %v15852_v19 = vand.u32 4294901760, %v15851_v20  ;;  %v15853_v5 = vld [vmem:[#allocation78_spill] sm:$0xff]  ;;  %v9099_v10 = vpack.c.bf16 %v11766_v55, %v11764_v48  ;;  %v15859_v7 = vand.u32 4294901760, %v15858_v40  ;;  %v15870_v20 = vld [vmem:[#allocation123_spill] sm:$0xff] }
 0x242   :  { %8356 = vmatprep.subr.bf16.mxu0 %v8355_v12  ;;  %9092 = vmatprep.subr.bf16.mxu1 %v9091_v8  ;;  %v8361_v23 = vpack.c.bf16 %v15850_v45, %v15848_v21  ;;  %v15854_v44 = vand.u32 4294901760, %v15853_v5  ;;  %v15856_v12 = vld [vmem:[#allocation81_spill] sm:$0xff]  ;;  %v9101_v62 = vpack.c.bf16 %v11776_v13, %v11773_v49  ;;  %v15863_v31 = vand.u32 4294901760, %v15862_v41 }
 0x243   :  { %v15857_v8 = vand.u32 4294901760, %v15856_v12  ;;  %v9103_v11 = vpack.c.bf16 %v11782_v37, %v11780_v33  ;;  %v15867_v21 = vand.u32 4294901760, %v15866_v6  ;;  %v9105_v45 = vpack.c.bf16 %v11793_v24, %v11791_v15  ;;  %v15874_v12 = vld [vmem:[#allocation127_spill] sm:$0xff] }
 0x244   :  { %5021 = vmatmul.mubr.f32.vlgmr.msra.gmra.mrb[16].mxu1 %v15846_v61  ;;  %v8363_v34 = vpack.c.bf16 %v15854_v44, %v15852_v19  ;;  %v15871_v19 = vand.u32 4294901760, %v15870_v20  ;;  %v9107_v44 = vpack.c.bf16 %v11800_v28, %v11798_v36 }
 0x245   :  { %8358 = vmatpush1.bf16.msra.mxu0 %v8357_v0  ;;  %9094 = vmatpush3.bf16.msra.mxu1 %v9093_v18  ;;  %v8365_v42 = vpack.c.bf16 %v15859_v7, %v15857_v8  ;;  %v15860_v0 = vld [vmem:[#allocation87_spill] sm:$0xff]  ;;  %v15875_v8 = vand.u32 4294901760, %v15874_v12  ;;  %v9109_v7 = vpack.c.bf16 %v11806_v29, %v11804_v27 }
 0x246   :  { %8360 = vmatprep.subr.bf16.mxu0 %v8359_v4  ;;  %9096 = vmatprep.subr.bf16.mxu1 %v9095_v58  ;;  %v15861_v18 = vand.u32 4294901760, %v15860_v0  ;;  %v15864_v4 = vld [vmem:[#allocation90_spill] sm:$0xff]  ;;  %v15878_v0 = vld [vmem:[#allocation131_spill] sm:$0xff] }
 0x247   :  { %5156 = vmatprep.mubr.f32.mxu1 %v15855_v26  ;;  %v15865_v58 = vand.u32 4294901760, %v15864_v4  ;;  %v15882_v4 = vld [vmem:[#allocation135_spill] sm:$0xff] }
 0x248   :  { %v8367_v16 = vpack.c.bf16 %v15863_v31, %v15861_v18  ;;  %v15879_v18 = vand.u32 4294901760, %v15878_v0  ;;  %v9111_v31 = vpack.c.bf16 %v11816_v22, %v11808_v30 }
 0x249   :  { %8362 = vmatpush1.bf16.msra.mxu0 %v8361_v23  ;;  %9098 = vmatpush3.bf16.msra.mxu1 %v9097_v50  ;;  %v8369_v46 = vpack.c.bf16 %v15867_v21, %v15865_v58  ;;  %v15868_v23 = vld [vmem:[#allocation122_spill] sm:$0xff]  ;;  %v15883_v58 = vand.u32 4294901760, %v15882_v4  ;;  %v9113_v21 = vpack.c.bf16 %v11824_v3, %v11822_v47  ;;  %v15896_v4 = vld [vmem:[#allocation153_spill] sm:$0xff] }
 0x24a   :  { %8364 = vmatprep.subr.bf16.mxu0 %v8363_v34  ;;  %9100 = vmatprep.subr.bf16.mxu1 %v9099_v10  ;;  %v15869_v50 = vand.u32 4294901760, %v15868_v23  ;;  %v15872_v34 = vld [vmem:[#allocation126_spill] sm:$0xff]  ;;  %v15886_v23 = vld [vmem:[#allocation139_spill] sm:$0xff] }
 0x24b   :  { %v15873_v10 = vand.u32 4294901760, %v15872_v34 }
 0x24c   :  { %v8371_v5 = vpack.c.bf16 %v15871_v19, %v15869_v50  ;;  %v15887_v50 = vand.u32 4294901760, %v15886_v23  ;;  %v15900_v23 = vld [vmem:[#allocation83_spill] sm:$0xff] }
 0x24d   :  { %8366 = vmatpush1.bf16.msra.mxu0 %v8365_v42  ;;  %9102 = vmatpush3.bf16.msra.mxu1 %v9101_v62  ;;  %v8373_v40 = vpack.c.bf16 %v15875_v8, %v15873_v10  ;;  %v15876_v42 = vld [vmem:[#allocation130_spill] sm:$0xff]  ;;  %v15890_v8 = vld [vmem:[#allocation143_spill] sm:$0xff] }
 0x24e   :  { %8368 = vmatprep.subr.bf16.mxu0 %v8367_v16  ;;  %9104 = vmatprep.subr.bf16.mxu1 %v9103_v11  ;;  %v15877_v62 = vand.u32 4294901760, %v15876_v42  ;;  %v15880_v16 = vld [vmem:[#allocation134_spill] sm:$0xff]  ;;  %v9117_v42 = vpack.c.bf16 %v11859_v1, %v11857_v59 }
 0x24f   :  { %v15881_v11 = vand.u32 4294901760, %v15880_v16  ;;  %v15888_v10 = vld [vmem:[#allocation142_spill] sm:$0xff] }
 0x250   :  { %v8375_v41 = vpack.c.bf16 %v15879_v18, %v15877_v62  ;;  %v15889_v12 = vand.u32 4294901760, %v15888_v10  ;;  %v15892_v62 = vld [vmem:[#allocation147_spill] sm:$0xff]  ;;  %v15894_v18 = vld [vmem:[#allocation148_spill] sm:$0xff] }
 0x251   :  { %8370 = vmatpush1.bf16.msra.mxu0 %v8369_v46  ;;  %9106 = vmatpush3.bf16.msra.mxu1 %v9105_v45  ;;  %v8377_v6 = vpack.c.bf16 %v15883_v58, %v15881_v11  ;;  %v15884_v46 = vld [vmem:[#allocation138_spill] sm:$0xff]  ;;  %v15893_v0 = vand.u32 4294901760, %v15892_v62  ;;  %v9119_v11 = vpack.c.bf16 %v11865_v17, %v11863_v25  ;;  %v15897_v58 = vand.u32 4294901760, %v15896_v4  ;;  %v15908_v10 = vld [vmem:[#allocation159_spill] sm:$0xff]  ;;  %v15914_v62 = vld [vmem:[#allocation168_spill] sm:$0xff] }
 0x252   :  { %8372 = vmatprep.subr.bf16.mxu0 %v8371_v5  ;;  %9108 = vmatprep.subr.bf16.mxu1 %v9107_v44  ;;  %v15885_v45 = vand.u32 4294901760, %v15884_v46  ;;  %v9115_v5 = vpack.c.bf16 %v11841_v54, %v11833_v63  ;;  %v15921_v4 = vld [vmem:[#allocation109_spill] sm:$0xff] }
 0x254   :  { %v8379_v20 = vpack.c.bf16 %v15887_v50, %v15885_v45  ;;  %v9121_v45 = vpack.c.bf16 %v12000_v39, %v11891_v43  ;;  %v15902_v50 = vld [vmem:[#allocation17_spill] sm:$0xff] }
 0x255   :  { %8374 = vmatpush1.bf16.msra.mxu0 %v8373_v40  ;;  %9110 = vmatpush3.bf16.msra.mxu1 %v9109_v7  ;;  %v15891_v40 = vand.u32 4294901760, %v15890_v8  ;;  %v15910_v8 = vld [vmem:[#allocation165_spill] sm:$0xff] }
 0x256   :  { %8376 = vmatprep.subr.bf16.mxu0 %v8375_v41  ;;  %v7192_v19 = vpop.f32.mrb[4].mxu1  ;;  %9112 = vmatprep.subr.bf16.mxu1 %v9111_v31  ;;  %v15895_v41 = vand.u32 4294901760, %v15894_v18  ;;  %v15917_v18 = vld [vmem:[#allocation106_spill] sm:$0xff] }
 0x257   :  { %v7193_v44 = vpop.f32.mrb[5].mxu1  ;;  %v8381_v7 = vpack.c.bf16 %v15891_v40, %v15889_v12  ;;  %v15909_v12 = vld [vmem:[#allocation98_spill] sm:$0xff]  ;;  %v15911_v40 = vld [vmem:[#allocation100_spill] sm:$0xff] }
 0x258   :  { %v7194_v34 = vadd.f32 %v7193_v44, %v7192_v19  ;;  %v8383_v31 = vpack.c.bf16 %v15895_v41, %v15893_v0  ;;  %v15904_v19 = vld [vmem:[#allocation94_spill] sm:$0xff]  ;;  %v15906_v44 = vld [vmem:[#allocation96_spill] sm:$0xff]  ;;  %v15916_v0 = vld [vmem:[#allocation169_spill] sm:$0xff] }
 0x259   :  { %8378 = vmatpush1.bf16.msra.mxu0 %v8377_v6  ;;  %9114 = vmatpush3.bf16.msra.mxu1 %v9113_v21  ;;  %v15898_v6 = vld [vmem:[#allocation154_spill] sm:$0xff] }
 0x25a   :  { %8380 = vmatprep.subr.bf16.mxu0 %v8379_v20  ;;  %v4161_v16 = vadd.f32 %v7194_v34, %v12077_v53  ;;  %9116 = vmatprep.subr.bf16.mxu1 %v9115_v5  ;;  %v15899_v21 = vand.u32 4294901760, %v15898_v6  ;;  %v15901_v53 = vld [vmem:[#allocation160_spill] sm:$0xff]  ;;  %v15903_v20 = vld [vmem:[#allocation174_spill] sm:$0xff]  ;;  %v15905_v5 = vld [vmem:[#allocation161_spill] sm:$0xff] }
 0x25b   :  { %v15907_v34 = vld [vmem:[#allocation162_spill] sm:$0xff] }
 0x25c   :  { %v8385_v46 = vpack.c.bf16 %v15899_v21, %v15897_v58  ;;  %v15918_v41 = vld [vmem:[#allocation170_spill] sm:$0xff]  ;;  %v15922_v58 = vld [vmem:[#allocation173_spill] sm:$0xff] }
 0x25d   :  { %8382 = vmatpush1.bf16.msra.mxu0 %v8381_v7  ;;  %9118 = vmatpush3.bf16.msra.mxu1 %v9117_v42  ;;  %v15912_v7 = vld [vmem:[#allocation167_spill] sm:$0xff]  ;;  %v15913_v42 = vld [vmem:[#allocation102_spill] sm:$0xff] }
 0x25e   :  { %8384 = vmatprep.subr.bf16.mxu0 %v8383_v31  ;;  %9120 = vmatprep.subr.bf16.mxu1 %v9119_v11  ;;  %v15919_v31 = vld [vmem:[#allocation108_spill] sm:$0xff]  ;;  %v15923_v6 = vld [vmem:[#allocation110_spill] sm:$0xff] }
 0x25f   :  { %v15920_v11 = vld [vmem:[#allocation172_spill] sm:$0xff] }
 0x261   :  { %8386 = vmatpush1.bf16.msra.mxu0 %v8385_v46  ;;  %9122 = vmatpush3.bf16.msra.mxu1 %v9121_v45  ;;  %v15924_v46 = vld [vmem:[#allocation175_spill] sm:$0xff] }
 0x262   :  { %8388 = vmatprep.subr.bf16.mxu0 %v15900_v23  ;;  %9124 = vmatprep.subr.bf16.mxu1 %v15901_v53 }
 0x264   :  { %2393 = vmatmul.mubr.f32.vlgmr.msra.gmra.mrb[2].mxu0 %v15902_v50  ;;  %5159 = vmatmul.mubr.f32.vlgmr.msra.gmra.mrb[18].mxu1 %v15903_v20  ;;  %v15942_v20 = vld [vmem:[#allocation178_spill] sm:$0xff] }
 0x265   :  { %8390 = vmatpush1.bf16.msra.mxu0 %v15904_v19  ;;  %2528 = vmatprep.mubr.f32.mxu0 %v11328_v51  ;;  %v15915_v51 = vld [vmem:[#allocation104_spill] sm:$0xff]  ;;  %v15925_v19 = vld [vmem:[#allocation111_spill] sm:$0xff] }
 0x266   :  { %9126 = vmatpush3.bf16.msra.mxu1 %v15905_v5  ;;  %8392 = vmatprep.subr.bf16.mxu0 %v15906_v44  ;;  %v15926_v44 = vld [vmem:[#allocation176_spill] sm:$0xff] }
 0x267   :  { %9128 = vmatprep.subr.bf16.mxu1 %v15907_v34  ;;  %5263 = vmatprep.mubr.f32.mxu1 %v15908_v10  ;;  %v15941_v10 = vand.u32 4294901760, %v11757_v32  ;;  %v15949_v32 = vld [vmem:[#allocation48_spill] sm:$0xff] }
 0x269   :  { %8394 = vmatpush1.bf16.msra.mxu0 %v15909_v12  ;;  %v15927_v12 = vld [vmem:[#allocation112_spill] sm:$0xff] }
 0x26a   :  { %9130 = vmatpush3.bf16.msra.mxu1 %v15910_v8  ;;  %8396 = vmatprep.subr.bf16.mxu0 %v15911_v40 }
 0x26b   :  { %9132 = vmatprep.subr.bf16.mxu1 %v15912_v7 }
 0x26d   :  { %8398 = vmatpush1.bf16.msra.mxu0 %v15913_v42  ;;  %v15928_v42 = vld [vmem:[#allocation177_spill] sm:$0xff] }
 0x26e   :  { %9134 = vmatpush3.bf16.msra.mxu1 %v15914_v62  ;;  %8400 = vmatprep.subr.bf16.mxu0 %v15915_v51  ;;  %v15929_v51 = vld [vmem:[#allocation113_spill] sm:$0xff] }
 0x26f   :  { %9136 = vmatprep.subr.bf16.mxu1 %v15916_v0 }
 0x271   :  { %8402 = vmatpush1.bf16.msra.mxu0 %v15917_v18  ;;  %v15930_v18 = vld [vmem:[#allocation179_spill] sm:$0xff] }
 0x272   :  { %9138 = vmatpush3.bf16.msra.mxu1 %v15918_v41  ;;  %8404 = vmatprep.subr.bf16.mxu0 %v15919_v31  ;;  %v15931_v31 = vld [vmem:[#allocation114_spill] sm:$0xff] }
 0x273   :  { %9140 = vmatprep.subr.bf16.mxu1 %v15920_v11 }
 0x275   :  { %8406 = vmatpush1.bf16.msra.mxu0 %v15921_v4  ;;  %v15932_v4 = vld [vmem:[#allocation58_spill] sm:$0xff] }
 0x276   :  { %9142 = vmatpush3.bf16.msra.mxu1 %v15922_v58  ;;  %8408 = vmatprep.subr.bf16.mxu0 %v15923_v6  ;;  %v7227_v21 = vpop.f32.mrb[6].mxu1  ;;  %v15933_v6 = vand.u32 4294901760, %v11734_v56 }
 0x277   :  { %9144 = vmatprep.subr.bf16.mxu1 %v15924_v46  ;;  %v7228_v45 = vpop.f32.mrb[7].mxu1 }
 0x278   :  { %v7229_v23 = vadd.f32 %v7228_v45, %v7227_v21  ;;  %v15934_v21 = vand.u32 4294901760, %v15836_v60  ;;  %v15943_v60 = vld [vmem:[#allocation43_spill] sm:$0xff] }
 0x279   :  { %8410 = vmatpush1.bf16.msra.mxu0 %v15925_v19  ;;  %v15935_v19 = vld [vmem:[#allocation39_spill] sm:$0xff] }
 0x27a   :  { %9146 = vmatpush3.bf16.msra.mxu1 %v15926_v44  ;;  %8412 = vmatprep.subr.bf16.mxu0 %v15927_v12  ;;  %v4299_v40 = vadd.f32 %v7229_v23, %v4161_v16  ;;  %v9155_v45 = vpack.c.bf16 %v15934_v21, %v15933_v6  ;;  %v15937_v16 = vld [vmem:[#allocation40_spill] sm:$0xff]  ;;  %v15938_v23 = vand.u32 4294901760, %v11740_v38  ;;  %v15939_v12 = vand.u32 4294901760, %v11746_v2 }
 0x27b   :  { %9148 = vmatprep.subr.bf16.mxu1 %v15928_v42  ;;  %v15944_v6 = vld [vmem:[#allocation44_spill] sm:$0xff]  ;;  %v15945_v21 = vand.u32 4294901760, %v11759_v57  ;;  %v15946_v38 = vand.u32 4294901760, %v11762_v35  ;;  %v15947_v2 = vand.u32 4294901760, %v11764_v48  ;;  %v15952_v57 = vand.u32 4294901760, %v11776_v13 }
 0x27c   :  { %v15953_v35 = vand.u32 4294901760, %v11780_v33  ;;  %v15954_v48 = vand.u32 4294901760, %v11782_v37  ;;  %v15960_v13 = vand.u32 4294901760, %v11800_v28  ;;  %v15961_v33 = vld [vmem:[#allocation59_spill] sm:$0xff]  ;;  %v15968_v28 = vld [vmem:[#allocation73_spill] sm:$0xff] }
 0x27d   :  { %8414 = vmatpush1.bf16.msra.mxu0 %v15929_v51  ;;  %v9157_v51 = vpack.c.bf16 %v15939_v12, %v15938_v23  ;;  %v15962_v37 = vld [vmem:[#allocation63_spill] sm:$0xff] }
 0x27e   :  { %9150 = vmatpush3.bf16.msra.mxu1 %v15930_v18  ;;  %8416 = vmatprep.subr.bf16.mxu0 %v15931_v31  ;;  %v15940_v31 = vand.u32 4294901760, %v15845_v14  ;;  %v15948_v14 = vand.u32 4294901760, %v11766_v55  ;;  %v9167_v12 = vpack.c.bf16 %v15954_v48, %v15953_v35  ;;  %v15955_v55 = vld [vmem:[#allocation55_spill] sm:$0xff]  ;;  %v15976_v48 = vand.u32 4294901760, %v11859_v1 }
 0x27f   :  { %9152 = vmatprep.subr.bf16.mxu1 %v15932_v4 }
 0x280   :  { %v9159_v56 = vpack.c.bf16 %v15941_v10, %v15940_v31  ;;  %v15950_v10 = vld [vmem:[#allocation49_spill] sm:$0xff]  ;;  %v15957_v31 = vand.u32 4294901760, %v11791_v15  ;;  %v15965_v15 = vand.u32 4294901760, %v11808_v30  ;;  %v12283_v30 = vld [vmem:[#allocation7 + $0x308] sm:$0xff] }
 0x281   :  { %8418 = vmatpush1.bf16.msra.mxu0 %v15935_v19  ;;  %v9161_v19 = vpack.c.bf16 %v15946_v38, %v15945_v21  ;;  %v15963_v21 = vand.u32 4294901760, %v11804_v27  ;;  %v15964_v38 = vand.u32 4294901760, %v11806_v29  ;;  %v15971_v27 = vand.u32 4294901760, %v11833_v63 }
 0x282   :  { %9154 = vmatpush3.bf16.msra.mxu1 %v15936_v9  ;;  %8420 = vmatprep.subr.bf16.mxu0 %v15937_v16  ;;  %v15951_v16 = vand.u32 4294901760, %v11773_v49  ;;  %v15959_v49 = vand.u32 4294901760, %v11798_v36  ;;  %v15967_v36 = vld [vmem:[#allocation69_spill] sm:$0xff]  ;;  %v15972_v29 = vand.u32 4294901760, %v11841_v54  ;;  %v14844_v54 = vand.u32 4294901760, %v12283_v30 }
 0x283   :  { %9156 = vmatprep.subr.bf16.mxu1 %v9155_v45  ;;  %v9163_v45 = vpack.c.bf16 %v15948_v14, %v15947_v2  ;;  %v15969_v14 = vand.u32 4294901760, %v11822_v47  ;;  %v15974_v47 = vld [vmem:[#allocation118_spill] sm:$0xff] }
 0x284   :  { %v9165_v23 = vpack.c.bf16 %v15952_v57, %v15951_v16 }
 0x285   :  { %5267 = vmatmul.mubr.f32.vlgmr.msra.gmra.mrb[20].mxu1 %v15942_v20  ;;  %8422 = vmatpush1.bf16.msra.mxu0 %v15943_v60 }
 0x286   :  { %9158 = vmatpush3.bf16.msra.mxu1 %v9157_v51  ;;  %8424 = vmatprep.subr.bf16.mxu0 %v15944_v6  ;;  %v15956_v51 = vld [vmem:[#allocation56_spill] sm:$0xff]  ;;  %v9171_v6 = vpack.c.bf16 %v15960_v13, %v15959_v49  ;;  %v12303_v49 = vld [vmem:[#allocation7 + $0x338] sm:$0xff] }
 0x287   :  { %9160 = vmatprep.subr.bf16.mxu1 %v9159_v56  ;;  %5433 = vmatprep.mubr.f32.mxu1 %v11696_v52  ;;  %v15958_v56 = vand.u32 4294901760, %v11793_v24  ;;  %v15966_v24 = vand.u32 4294901760, %v11816_v22  ;;  %v12285_v22 = vld [vmem:[#allocation7 + $0x320] sm:$0xff]  ;;  %v15979_v13 = vld [vmem:[#allocation120_spill] sm:$0xff] }
 0x289   :  { %8426 = vmatpush1.bf16.msra.mxu0 %v15949_v32  ;;  %v9169_v60 = vpack.c.bf16 %v15958_v56, %v15957_v31  ;;  %v9175_v2 = vpack.c.bf16 %v15966_v24, %v15965_v15  ;;  %v15977_v31 = vand.u32 4294901760, %v11863_v25  ;;  %v15978_v56 = vand.u32 4294901760, %v11865_v17  ;;  %v12325_v15 = vld [vmem:[#allocation7 + $0x330] sm:$0xff]  ;;  %v12327_v24 = vld [vmem:[#allocation7 + $0x348] sm:$0xff] }
 0x28a   :  { %9162 = vmatpush3.bf16.msra.mxu1 %v9161_v19  ;;  %8428 = vmatprep.subr.bf16.mxu0 %v15950_v10  ;;  %v9173_v19 = vpack.c.bf16 %v15964_v38, %v15963_v21  ;;  %v9179_v10 = vpack.c.bf16 %v15972_v29, %v15971_v27  ;;  %v15981_v25 = vand.u32 4294901760, %v11891_v43  ;;  %v15982_v17 = vand.u32 4294901760, %v12000_v39  ;;  %v12331_v43 = vld [vmem:[#allocation7 + $0x380] sm:$0xff]  ;;  %v15984_v39 = vld [vmem:[#allocation152_spill] sm:$0xff] }
 0x28b   :  { %9164 = vmatprep.subr.bf16.mxu1 %v9163_v45  ;;  %v15970_v45 = vand.u32 4294901760, %v11824_v3  ;;  %v15975_v3 = vand.u32 4294901760, %v11857_v59  ;;  %v12305_v59 = vld [vmem:[#allocation7 + $0x350] sm:$0xff]  ;;  %v14836_v38 = vand.u32 4294901760, %v12303_v49  ;;  %v14825_v27 = vand.u32 4294901760, %v12331_v43  ;;  %v12351_v29 = vld [vmem:[#allocation7 + $0x360] sm:$0xff] }
 0x28c   :  { %v9185_v21 = vpack.c.bf16 %v15982_v17, %v15981_v25 }
 0x28d   :  { %8430 = vmatpush1.bf16.msra.mxu0 %v15955_v55  ;;  %v9177_v32 = vpack.c.bf16 %v15970_v45, %v15969_v14  ;;  %v9181_v63 = vpack.c.bf16 %v15976_v48, %v15975_v3  ;;  %v12295_v55 = vld [vmem:[#allocation7 + $0x300] sm:$0xff]  ;;  %v14831_v14 = vand.u32 4294901760, %v12327_v24  ;;  %v12381_v48 = vld [vmem:[#allocation7 + $0x390] sm:$0xff] }
 0x28e   :  { %9166 = vmatpush3.bf16.msra.mxu1 %v9165_v23  ;;  %8432 = vmatprep.subr.bf16.mxu0 %v15956_v51  ;;  %v15973_v23 = vld [vmem:[#allocation116_spill] sm:$0xff]  ;;  %v12297_v51 = vld [vmem:[#allocation7 + $0x318] sm:$0xff] }
 0x28f   :  { %9168 = vmatprep.subr.bf16.mxu1 %v9167_v12  ;;  %v14841_v12 = vand.u32 4294901760, %v12285_v22 }
 0x291   :  { %8434 = vmatpush1.bf16.msra.mxu0 %v15961_v33  ;;  %v14839_v33 = vand.u32 4294901760, %v12297_v51 }
 0x292   :  { %9170 = vmatpush3.bf16.msra.mxu1 %v9169_v60  ;;  %8436 = vmatprep.subr.bf16.mxu0 %v15962_v37  ;;  %v9183_v60 = vpack.c.bf16 %v15978_v56, %v15977_v31  ;;  %v15980_v37 = vld [vmem:[#allocation146_spill] sm:$0xff]  ;;  %v15989_v56 = vld [vmem:[#allocation163_spill] sm:$0xff] }
 0x293   :  { %9172 = vmatprep.subr.bf16.mxu1 %v9171_v6  ;;  %v14840_v6 = vand.u32 4294901760, %v12295_v55  ;;  %v12389_v31 = vld [vmem:[#allocation7 + $0x3e0] sm:$0xff] }
 0x294   :  { %v14829_v17 = vand.u32 4294901760, %v12389_v31 }
 0x295   :  { %8438 = vmatpush1.bf16.msra.mxu0 %v15967_v36  ;;  %v12338_v36 = vpack.c.bf16 %v14839_v33, %v14840_v6 }
 0x296   :  { %9174 = vmatpush3.bf16.msra.mxu1 %v9173_v19  ;;  %8440 = vmatprep.subr.bf16.mxu0 %v15968_v28  ;;  %v14833_v19 = vand.u32 4294901760, %v12305_v59  ;;  %v14832_v28 = vand.u32 4294901760, %v12325_v15 }
 0x297   :  { %9176 = vmatprep.subr.bf16.mxu1 %v9175_v2  ;;  %v7262_v16 = vpop.f32.mrb[8].mxu1  ;;  %v12329_v2 = vld [vmem:[#allocation7 + $0x368] sm:$0xff]  ;;  %15985 = vst [vmem:[#allocation70_spill] sm:$0xff] %v12338_v36 }
 0x298   :  { %v7263_v57 = vpop.f32.mrb[9].mxu1  ;;  %v12347_v45 = vpack.c.bf16 %v14833_v19, %v14836_v38  ;;  %v12472_v38 = vld [vmem:[#allocation7 + $0x458] sm:$0xff] }
 0x299   :  { %8442 = vmatpush1.bf16.msra.mxu0 %v15973_v23  ;;  %v7264_v35 = vadd.f32 %v7263_v57, %v7262_v16  ;;  %v12356_v16 = vld [vmem:[#allocation7 + $0x398] sm:$0xff]  ;;  %v12358_v57 = vld [vmem:[#allocation7 + $0x3b0] sm:$0xff]  ;;  %v12367_v23 = vpack.c.bf16 %v14831_v14, %v14832_v28 }
 0x29a   :  { %9178 = vmatpush3.bf16.msra.mxu1 %v9177_v32  ;;  %8444 = vmatprep.subr.bf16.mxu0 %v15974_v47  ;;  %15986 = vst [vmem:[#allocation67_spill] sm:$0xff] %v12347_v45  ;;  %v14828_v32 = vand.u32 4294901760, %v12329_v2  ;;  %v14822_v47 = vand.u32 4294901760, %v12356_v16  ;;  %v14821_v3 = vand.u32 4294901760, %v12358_v57 }
 0x29b   :  { %9180 = vmatprep.subr.bf16.mxu1 %v9179_v10  ;;  %v12307_v1 = vadd.f32 %v7264_v35, %v4299_v40  ;;  %v12321_v40 = vpack.c.bf16 %v14841_v12, %v14844_v54  ;;  %v12353_v10 = vld [vmem:[#allocation7 + $0x378] sm:$0xff]  ;;  %15987 = vst [vmem:[#allocation180_spill] sm:$0xff] %v12367_v23  ;;  %v14824_v35 = vand.u32 4294901760, %v12351_v29  ;;  %v12500_v54 = vld [vmem:[#allocation7 + $0x488] sm:$0xff] }
 0x29c   :  { %v12525_v12 = vld [vmem:[#allocation7 + $0x498] sm:$0xff] }
 0x29d   :  { %8446 = vmatpush1.bf16.msra.mxu0 %v15979_v13  ;;  %15983 = vst [vmem:[#allocation62_spill] sm:$0xff] %v12321_v40  ;;  %v14827_v13 = vand.u32 4294901760, %v12381_v48 }
 0x29e   :  { %9182 = vmatpush3.bf16.msra.mxu1 %v9181_v63  ;;  %8448 = vmatprep.subr.bf16.mxu0 %v15980_v37  ;;  %v12383_v63 = vld [vmem:[#allocation7 + $0x3a8] sm:$0xff]  ;;  %v12407_v37 = vpack.c.bf16 %v14821_v3, %v14822_v47 }
 0x29f   :  { %9184 = vmatprep.subr.bf16.mxu1 %v9183_v60 }
 0x2a0   :  { %15991 = vst [vmem:[#allocation80_spill] sm:$0xff] %v12407_v37 }
 0x2a1   :  { %8450 = vmatpush1.bf16.msra.mxu0 %v15984_v39  ;;  %v12413_v39 = vld [vmem:[#allocation7 + $0x3d8] sm:$0xff] }
 0x2a2   :  { %9186 = vmatpush3.bf16.msra.mxu1 %v9185_v21  ;;  %8452 = vmatprep.subr.bf16.mxu0 %v12321_v40  ;;  %v12411_v21 = vld [vmem:[#allocation7 + $0x3c0] sm:$0xff] }
 0x2a3   :  { %9188 = vmatprep.subr.bf16.mxu1 %v15901_v53  ;;  %v14823_v53 = vand.u32 4294901760, %v12353_v10  ;;  %v14835_v47 = vand.u32 4294901760, %v12411_v21  ;;  %v12675_v40 = vld [vmem:[#allocation7 + $0x560] sm:$0xff] }
 0x2a4   :  { %2530 = vmatmul.mubr.f32.vlgmr.msra.gmra.mrb[2].mxu0 %v15902_v50  ;;  %v12377_v50 = vpack.c.bf16 %v14825_v27, %v14828_v32  ;;  %v12444_v32 = vld [vmem:[#allocation7 + $0x428] sm:$0xff]  ;;  %16040 = vst [vmem:[#allocation84_spill] sm:$0xff] %v12675_v40 }
 0x2a5   :  { %5435 = vmatmul.mubr.f32.vlgmr.msra.gmra.mrb[22].mxu1 %v15846_v61  ;;  %8454 = vmatpush1.bf16.msra.mxu0 %v12338_v36  ;;  %v12397_v60 = vpack.c.bf16 %v14823_v53, %v14824_v35  ;;  %v14834_v53 = vand.u32 4294901760, %v12413_v39  ;;  %v14846_v28 = vand.u32 4294901760, %v12444_v32  ;;  %v12673_v36 = vld [vmem:[#allocation7 + $0x548] sm:$0xff] }
 0x2a6   :  { %9190 = vmatpush3.bf16.msra.mxu1 %v15905_v5  ;;  %8456 = vmatprep.subr.bf16.mxu0 %v12347_v45  ;;  %15988 = vst [vmem:[#allocation76_spill] sm:$0xff] %v12377_v50  ;;  %v12387_v5 = vld [vmem:[#allocation7 + $0x3c8] sm:$0xff]  ;;  %v16035_v45 = vand.u32 4294901760, %v12329_v2 }
 0x2a7   :  { %9192 = vmatprep.subr.bf16.mxu1 %v15907_v34  ;;  %5537 = vmatprep.mubr.f32.mxu1 %v11696_v52  ;;  %15990 = vst [vmem:[#allocation75_spill] sm:$0xff] %v12397_v60  ;;  %v14826_v34 = vand.u32 4294901760, %v12383_v63  ;;  %v14830_v25 = vand.u32 4294901760, %v12387_v5  ;;  %v16047_v26 = vand.u32 4294901760, %v12387_v5  ;;  %v12751_v52 = vld [vmem:[#allocation7 + $0x590] sm:$0xff] }
 0x2a8   :  { %2669 = vmatprep.mubr.f32.mxu0 %v15989_v56  ;;  %v12416_v56 = vld [vmem:[#allocation7 + $0x3f8] sm:$0xff]  ;;  %16065 = vst [vmem:[#allocation117_spill] sm:$0xff] %v12751_v52 }
 0x2a9   :  { %8458 = vmatpush1.bf16.msra.mxu0 %v12367_v23  ;;  %v12425_v3 = vpack.c.bf16 %v14826_v34, %v14827_v13  ;;  %v14838_v35 = vand.u32 4294901760, %v12416_v56  ;;  %v12439_v34 = vld [vmem:[#allocation7 + $0x3f0] sm:$0xff]  ;;  %v12441_v13 = vld [vmem:[#allocation7 + $0x408] sm:$0xff]  ;;  %v16026_v23 = vand.u32 4294901760, %v12325_v15 }
 0x2aa   :  { %9194 = vmatpush3.bf16.msra.mxu1 %v15910_v8  ;;  %8460 = vmatprep.subr.bf16.mxu0 %v12377_v50  ;;  %v12418_v8 = vld [vmem:[#allocation7 + $0x410] sm:$0xff]  ;;  %v14842_v14 = vand.u32 4294901760, %v12441_v13 }
 0x2ab   :  { %9196 = vmatprep.subr.bf16.mxu1 %v15912_v7  ;;  %15992 = vst [vmem:[#allocation79_spill] sm:$0xff] %v12425_v3  ;;  %v12435_v7 = vpack.c.bf16 %v14829_v17, %v14830_v25  ;;  %v14837_v27 = vand.u32 4294901760, %v12418_v8  ;;  %v12453_v17 = vpack.c.bf16 %v14834_v53, %v14835_v47  ;;  %v14843_v25 = vand.u32 4294901760, %v12439_v34  ;;  %v12467_v53 = vld [vmem:[#allocation7 + $0x420] sm:$0xff]  ;;  %v12469_v47 = vld [vmem:[#allocation7 + $0x438] sm:$0xff] }
 0x2ad   :  { %8462 = vmatpush1.bf16.msra.mxu0 %v12397_v60  ;;  %15993 = vst [vmem:[#allocation86_spill] sm:$0xff] %v12435_v7  ;;  %15994 = vst [vmem:[#allocation85_spill] sm:$0xff] %v12453_v17  ;;  %v16021_v60 = vand.u32 4294901760, %v12297_v51 }
 0x2ae   :  { %9198 = vmatpush3.bf16.msra.mxu1 %v15914_v62  ;;  %8464 = vmatprep.subr.bf16.mxu0 %v12407_v37  ;;  %v12446_v62 = vld [vmem:[#allocation7 + $0x440] sm:$0xff]  ;;  %v16019_v37 = vand.u32 4294901760, %v12295_v55 }
 0x2af   :  { %9200 = vmatprep.subr.bf16.mxu1 %v15916_v0  ;;  %v12463_v0 = vpack.c.bf16 %v14837_v27, %v14838_v35  ;;  %v14845_v19 = vand.u32 4294901760, %v12446_v62  ;;  %v12481_v27 = vpack.c.bf16 %v14842_v14, %v14843_v25  ;;  %v12495_v14 = vld [vmem:[#allocation7 + $0x450] sm:$0xff]  ;;  %v12497_v25 = vld [vmem:[#allocation7 + $0x468] sm:$0xff]  ;;  %v12608_v50 = vsub.f32 %v12297_v51, %v16021_v60 }
 0x2b0   :  { %v14859_v20 = vand.u32 4294901760, %v12497_v25 }
 0x2b1   :  { %8466 = vmatpush1.bf16.msra.mxu0 %v12425_v3  ;;  %15995 = vst [vmem:[#allocation89_spill] sm:$0xff] %v12463_v0  ;;  %15996 = vst [vmem:[#allocation93_spill] sm:$0xff] %v12481_v27 }
 0x2b2   :  { %9202 = vmatpush3.bf16.msra.mxu1 %v15918_v41  ;;  %8468 = vmatprep.subr.bf16.mxu0 %v12435_v7  ;;  %v12474_v41 = vld [vmem:[#allocation7 + $0x470] sm:$0xff]  ;;  %v12559_v7 = vld [vmem:[#allocation7 + $0x4e8] sm:$0xff]  ;;  %16022 = vst [vmem:[#allocation149_spill] sm:$0xff] %v12608_v50 }
 0x2b3   :  { %9204 = vmatprep.subr.bf16.mxu1 %v15920_v11  ;;  %v12491_v11 = vpack.c.bf16 %v14845_v19, %v14846_v28  ;;  %v15998_v19 = vand.u32 4294901760, %v12467_v53  ;;  %v15999_v28 = vand.u32 4294901760, %v12469_v47 }
 0x2b5   :  { %8470 = vmatpush1.bf16.msra.mxu0 %v12453_v17  ;;  %15997 = vst [vmem:[#allocation92_spill] sm:$0xff] %v12491_v11  ;;  %v12509_v6 = vpack.c.bf16 %v15999_v28, %v15998_v19  ;;  %v16002_v17 = vand.u32 4294901760, %v12474_v41  ;;  %v12523_v28 = vld [vmem:[#allocation7 + $0x480] sm:$0xff] }
 0x2b6   :  { %9206 = vmatpush3.bf16.msra.mxu1 %v15922_v58  ;;  %8472 = vmatprep.subr.bf16.mxu0 %v12463_v0  ;;  %v12502_v58 = vld [vmem:[#allocation7 + $0x4a0] sm:$0xff]  ;;  %v14868_v19 = vand.u32 4294901760, %v12523_v28 }
 0x2b7   :  { %9208 = vmatprep.subr.bf16.mxu1 %v15924_v46  ;;  %v7297_v33 = vpop.f32.mrb[10].mxu1  ;;  %16000 = vst [vmem:[#allocation124_spill] sm:$0xff] %v12509_v6  ;;  %v16001_v46 = vand.u32 4294901760, %v12472_v38 }
 0x2b8   :  { %v7298_v35 = vpop.f32.mrb[11].mxu1 }
 0x2b9   :  { %8474 = vmatpush1.bf16.msra.mxu0 %v12481_v27  ;;  %v7299_v0 = vadd.f32 %v7298_v35, %v7297_v33  ;;  %v12519_v27 = vpack.c.bf16 %v16002_v17, %v16001_v46  ;;  %v12528_v33 = vld [vmem:[#allocation7 + $0x4b8] sm:$0xff]  ;;  %v16004_v17 = vand.u32 4294901760, %v12495_v14 }
 0x2ba   :  { %9210 = vmatpush3.bf16.msra.mxu1 %v15926_v44  ;;  %8476 = vmatprep.subr.bf16.mxu0 %v12491_v11  ;;  %v12530_v44 = vld [vmem:[#allocation7 + $0x4d0] sm:$0xff]  ;;  %v16016_v11 = vand.u32 4294901760, %v12285_v22 }
 0x2bb   :  { %16003 = vst [vmem:[#allocation181_spill] sm:$0xff] %v12519_v27  ;;  %9212 = vmatprep.subr.bf16.mxu1 %v15928_v42  ;;  %v12533_v35 = vadd.f32 %v7299_v0, %v12307_v1  ;;  %v12540_v46 = vpack.c.bf16 %v14859_v20, %v16004_v17  ;;  %v16006_v42 = vand.u32 4294901760, %v12500_v54  ;;  %v16007_v1 = vand.u32 4294901760, %v12502_v58  ;;  %v12554_v17 = vld [vmem:[#allocation7 + $0x4b0] sm:$0xff]  ;;  %v12556_v20 = vld [vmem:[#allocation7 + $0x4c8] sm:$0xff] }
 0x2bc   :  { %v16027_v51 = vand.u32 4294901760, %v12554_v17  ;;  %v16028_v60 = vand.u32 4294901760, %v12556_v20 }
 0x2bd   :  { %8478 = vmatpush1.bf16.msra.mxu0 %v12509_v6  ;;  %16005 = vst [vmem:[#allocation128_spill] sm:$0xff] %v12540_v46  ;;  %v12550_v0 = vpack.c.bf16 %v16007_v1, %v16006_v42  ;;  %v16009_v42 = vand.u32 4294901760, %v12525_v12  ;;  %v16014_v6 = vand.u32 4294901760, %v12283_v30 }
 0x2be   :  { %9214 = vmatpush3.bf16.msra.mxu1 %v15930_v18  ;;  %8480 = vmatprep.subr.bf16.mxu0 %v12519_v27  ;;  %v12561_v18 = vld [vmem:[#allocation7 + $0x500] sm:$0xff]  ;;  %v16012_v27 = vand.u32 4294901760, %v12530_v44 }
 0x2bf   :  { %16008 = vst [vmem:[#allocation182_spill] sm:$0xff] %v12550_v0  ;;  %9216 = vmatprep.subr.bf16.mxu1 %v15932_v4  ;;  %v12568_v1 = vpack.c.bf16 %v16009_v42, %v14868_v19  ;;  %v16011_v4 = vand.u32 4294901760, %v12528_v33  ;;  %v12582_v42 = vld [vmem:[#allocation7 + $0x4e0] sm:$0xff]  ;;  %v12584_v19 = vld [vmem:[#allocation7 + $0x4f8] sm:$0xff] }
 0x2c1   :  { %8482 = vmatpush1.bf16.msra.mxu0 %v12540_v46  ;;  %16010 = vst [vmem:[#allocation183_spill] sm:$0xff] %v12568_v1  ;;  %v12578_v3 = vpack.c.bf16 %v16012_v27, %v16011_v4  ;;  %v12596_v27 = vld [vmem:[#allocation7 + $0x518] sm:$0xff]  ;;  %v12598_v4 = vld [vmem:[#allocation7 + $0x530] sm:$0xff]  ;;  %v12603_v46 = vsub.f32 %v12295_v55, %v16019_v37  ;;  %v12623_v55 = vsub.f32 %v12325_v15, %v16026_v23  ;;  %v16032_v15 = vand.u32 4294901760, %v12559_v7 }
 0x2c2   :  { %9218 = vmatpush3.bf16.msra.mxu1 %v15936_v9  ;;  %8484 = vmatprep.subr.bf16.mxu0 %v12550_v0  ;;  %v12589_v9 = vsub.f32 %v12283_v30, %v16014_v6  ;;  %v12594_v0 = vsub.f32 %v12285_v22, %v16016_v11  ;;  %16018 = vst [vmem:[#allocation144_spill] sm:$0xff] %v12598_v4  ;;  %v16023_v30 = vand.u32 4294901760, %v12303_v49  ;;  %v16024_v22 = vand.u32 4294901760, %v12305_v59  ;;  %v12649_v37 = vld [vmem:[#allocation7 + $0x510] sm:$0xff] }
 0x2c3   :  { %16013 = vst [vmem:[#allocation184_spill] sm:$0xff] %v12578_v3  ;;  %16020 = vst [vmem:[#allocation151_spill] sm:$0xff] %v12603_v46  ;;  %v16033_v23 = vand.u32 4294901760, %v12561_v18 }
 0x2c4   :  { %16015 = vst [vmem:[#allocation140_spill] sm:$0xff] %v12589_v9  ;;  %16017 = vst [vmem:[#allocation145_spill] sm:$0xff] %v12594_v0  ;;  %v12613_v6 = vsub.f32 %v12303_v49, %v16023_v30  ;;  %v12618_v11 = vsub.f32 %v12305_v59, %v16024_v22  ;;  %v12631_v49 = vpack.c.bf16 %v16028_v60, %v16027_v51  ;;  %v16030_v30 = vand.u32 4294901760, %v12327_v24  ;;  %v12651_v59 = vld [vmem:[#allocation7 + $0x528] sm:$0xff] }
 0x2c5   :  { %5539 = vmatmul.mubr.f32.vlgmr.msra.gmra.mrb[24].mxu1 %v15846_v61  ;;  %8486 = vmatpush1.bf16.msra.mxu0 %v12568_v1  ;;  %v12645_v1 = vpack.c.bf16 %v16033_v23, %v16032_v15  ;;  %v16037_v15 = vand.u32 4294901760, %v12351_v29  ;;  %v16038_v60 = vand.u32 4294901760, %v12353_v10  ;;  %v16058_v61 = vand.u32 4294901760, %v12411_v21 }
 0x2c6   :  { %16025 = vst [vmem:[#allocation15_spill] sm:$0xff] %v12618_v11  ;;  %16029 = vst [vmem:[#allocation16_spill] sm:$0xff] %v12631_v49  ;;  %v12638_v22 = vsub.f32 %v12327_v24, %v16030_v30  ;;  %8488 = vmatprep.subr.bf16.mxu0 %v12578_v3  ;;  %v12656_v24 = vsub.f32 %v12329_v2, %v16035_v45  ;;  %v16036_v30 = vand.u32 4294901760, %v12331_v43  ;;  %v16041_v2 = vand.u32 4294901760, %v12356_v16 }
 0x2c7   :  { %16034 = vst [vmem:[#allocation157_spill] sm:$0xff] %v12645_v1  ;;  %v12666_v23 = vsub.f32 %v12351_v29, %v16037_v15  ;;  %v12671_v51 = vsub.f32 %v12353_v10, %v16038_v60  ;;  %v16045_v29 = vand.u32 4294901760, %v12381_v48  ;;  %v16046_v10 = vand.u32 4294901760, %v12383_v63 }
 0x2c8   :  { %16031 = vst [vmem:[#allocation185_spill] sm:$0xff] %v12638_v22  ;;  %v12661_v3 = vsub.f32 %v12331_v43, %v16036_v30  ;;  %v12680_v45 = vsub.f32 %v12356_v16, %v16041_v2  ;;  %v16043_v43 = vand.u32 4294901760, %v12358_v57  ;;  %v12700_v16 = vsub.f32 %v12387_v5, %v16047_v26 }
 0x2c9   :  { %16039 = vst [vmem:[#allocation155_spill] sm:$0xff] %v12671_v51  ;;  %v12690_v15 = vsub.f32 %v12381_v48, %v16045_v29  ;;  %v12695_v60 = vsub.f32 %v12383_v63, %v16046_v10  ;;  %8490 = vmatpush1.bf16.msra.mxu0 %v12631_v49  ;;  %v16050_v2 = vand.u32 4294901760, %v12584_v19  ;;  %v16052_v63 = vand.u32 4294901760, %v12389_v31  ;;  %v12725_v48 = vld [vmem:[#allocation7 + $0x540] sm:$0xff]  ;;  %v12727_v29 = vld [vmem:[#allocation7 + $0x558] sm:$0xff] }
 0x2ca   :  { %16042 = vst [vmem:[#allocation95_spill] sm:$0xff] %v12680_v45  ;;  %v12685_v30 = vsub.f32 %v12358_v57, %v16043_v43  ;;  %16048 = vst [vmem:[#allocation99_spill] sm:$0xff] %v12700_v16  ;;  %v16049_v57 = vand.u32 4294901760, %v12582_v42  ;;  %8492 = vmatprep.subr.bf16.mxu0 %v12645_v1  ;;  %v16054_v26 = vand.u32 4294901760, %v12596_v27  ;;  %v16055_v5 = vand.u32 4294901760, %v12598_v4  ;;  %v12749_v4 = vld [vmem:[#allocation7 + $0x578] sm:$0xff] }
 0x2cb   :  { %v12714_v10 = vsub.f32 %v12389_v31, %v16052_v63  ;;  %16057 = vst [vmem:[#allocation107_spill] sm:$0xff] %v12727_v29  ;;  %v12732_v31 = vsub.f32 %v12411_v21, %v16058_v61  ;;  %v16059_v63 = vand.u32 4294901760, %v12413_v39  ;;  %v16066_v61 = vand.u32 4294901760, %v12439_v34 }
 0x2cc   :  { %16044 = vst [vmem:[#allocation97_spill] sm:$0xff] %v12685_v30  ;;  %v12707_v43 = vpack.c.bf16 %v16050_v2, %v16049_v57  ;;  %v12721_v49 = vpack.c.bf16 %v16055_v5, %v16054_v26  ;;  %v16061_v26 = vand.u32 4294901760, %v12416_v56  ;;  %v16063_v2 = vand.u32 4294901760, %v12418_v8 }
 0x2cd   :  { %16053 = vst [vmem:[#allocation103_spill] sm:$0xff] %v12714_v10  ;;  %v12737_v1 = vsub.f32 %v12413_v39, %v16059_v63  ;;  %v12756_v21 = vsub.f32 %v12439_v34, %v16066_v61  ;;  %v16068_v39 = vand.u32 4294901760, %v12441_v13  ;;  %v16077_v61 = vand.u32 4294901760, %v12651_v59 }
 0x2ce   :  { %16051 = vst [vmem:[#allocation101_spill] sm:$0xff] %v12707_v43  ;;  %16056 = vst [vmem:[#allocation105_spill] sm:$0xff] %v12721_v49  ;;  %v12742_v5 = vsub.f32 %v12416_v56, %v16061_v26  ;;  %v12747_v57 = vsub.f32 %v12418_v8, %v16063_v2  ;;  %v16070_v56 = vand.u32 4294901760, %v12444_v32  ;;  %v16072_v8 = vand.u32 4294901760, %v12446_v62  ;;  %8494 = vmatpush1.bf16.msra.mxu0 %v12707_v43 }
 0x2cf   :  { %16060 = vst [vmem:[#allocation68_spill] sm:$0xff] %v12737_v1  ;;  %16067 = vst [vmem:[#allocation119_spill] sm:$0xff] %v12756_v21  ;;  %v12761_v63 = vsub.f32 %v12441_v13, %v16068_v39  ;;  %v16076_v13 = vand.u32 4294901760, %v12649_v37  ;;  %8496 = vmatprep.subr.bf16.mxu0 %v12721_v49  ;;  %v16086_v43 = vand.u32 4294901760, %v12472_v38  ;;  %v16089_v49 = vand.u32 4294901760, %v12495_v14 }
 0x2d0   :  { %16062 = vst [vmem:[#allocation72_spill] sm:$0xff] %v12742_v5  ;;  %16064 = vst [vmem:[#allocation115_spill] sm:$0xff] %v12747_v57  ;;  %v12766_v26 = vsub.f32 %v12444_v32, %v16070_v56  ;;  %v12771_v2 = vsub.f32 %v12446_v62, %v16072_v8  ;;  %v16074_v57 = vand.u32 4294901760, %v12467_v53  ;;  %v12789_v62 = vld [vmem:[#allocation7 + $0x588] sm:$0xff]  ;;  %v16081_v8 = vand.u32 4294901760, %v12469_v47  ;;  %v12827_v32 = vld [vmem:[#allocation7 + $0x5c0] sm:$0xff] }
 0x2d1   :  { %16069 = vst [vmem:[#allocation121_spill] sm:$0xff] %v12761_v63  ;;  %v12783_v39 = vpack.c.bf16 %v16077_v61, %v16076_v13  ;;  %16080 = vst [vmem:[#allocation132_spill] sm:$0xff] %v12789_v62  ;;  %v16084_v13 = vand.u32 4294901760, %v12675_v40  ;;  %v12818_v40 = vsub.f32 %v12495_v14, %v16089_v49  ;;  %v12825_v56 = vld [vmem:[#allocation7 + $0x5a8] sm:$0xff]  ;;  %v12875_v49 = vld [vmem:[#allocation7 + $0x5f0] sm:$0xff]  ;;  %v16111_v14 = vand.u32 4294901760, %v12528_v33 }
 0x2d2   :  { %16071 = vst [vmem:[#allocation150_spill] sm:$0xff] %v12766_v26  ;;  %16073 = vst [vmem:[#allocation156_spill] sm:$0xff] %v12771_v2  ;;  %v12776_v34 = vsub.f32 %v12467_v53, %v16074_v57  ;;  %v12787_v26 = vld [vmem:[#allocation7 + $0x570] sm:$0xff]  ;;  %v12794_v53 = vsub.f32 %v12469_v47, %v16081_v8  ;;  %v16083_v57 = vand.u32 4294901760, %v12673_v36  ;;  %v16088_v47 = vand.u32 4294901760, %v12474_v41 }
 0x2d3   :  { %16078 = vst [vmem:[#allocation125_spill] sm:$0xff] %v12783_v39  ;;  %16079 = vst [vmem:[#allocation129_spill] sm:$0xff] %v12787_v26  ;;  %8498 = vmatpush1.bf16.msra.mxu0 %v12783_v39 }
 0x2d4   :  { %16075 = vst [vmem:[#allocation18_spill] sm:$0xff] %v12776_v34  ;;  %16082 = vst [vmem:[#allocation133_spill] sm:$0xff] %v12794_v53  ;;  %v12801_v61 = vpack.c.bf16 %v16084_v13, %v16083_v57  ;;  %v12808_v34 = vsub.f32 %v12472_v38, %v16086_v43  ;;  %v12813_v8 = vsub.f32 %v12474_v41, %v16088_v47  ;;  %v16091_v57 = vand.u32 4294901760, %v12497_v25 }
 0x2d5   :  { %16090 = vst [vmem:[#allocation141_spill] sm:$0xff] %v12818_v40  ;;  %16093 = vst [vmem:[#allocation23_spill] sm:$0xff] %v12825_v56  ;;  %v16095_v38 = vand.u32 4294901760, %v12500_v54  ;;  %v16097_v41 = vand.u32 4294901760, %v12502_v58 }
 0x2d6   :  { %16085 = vst [vmem:[#allocation136_spill] sm:$0xff] %v12801_v61  ;;  %16087 = vst [vmem:[#allocation137_spill] sm:$0xff] %v12808_v34  ;;  %v12823_v13 = vsub.f32 %v12497_v25, %v16091_v57  ;;  %v12841_v25 = vld [vmem:[#allocation7 + $0x5a0] sm:$0xff]  ;;  %v12843_v57 = vld [vmem:[#allocation7 + $0x5b8] sm:$0xff]  ;;  %8500 = vmatprep.subr.bf16.mxu0 %v12801_v61 }
 0x2d7   :  { %16094 = vst [vmem:[#allocation19_spill] sm:$0xff] %v12827_v32  ;;  %v12832_v43 = vsub.f32 %v12500_v54, %v16095_v38  ;;  %v12837_v47 = vsub.f32 %v12502_v58, %v16097_v41  ;;  %16099 = vst [vmem:[#allocation22_spill] sm:$0xff] %v12841_v25  ;;  %v16103_v54 = vand.u32 4294901760, %v12725_v48  ;;  %v16104_v58 = vand.u32 4294901760, %v12727_v29  ;;  %v12857_v41 = vld [vmem:[#allocation7 + $0x5d8] sm:$0xff]  ;;  %v12902_v61 = vld [vmem:[#allocation7 + $0x5e8] sm:$0xff] }
 0x2d8   :  { %16092 = vst [vmem:[#allocation187_spill] sm:$0xff] %v12823_v13  ;;  %16100 = vst [vmem:[#allocation24_spill] sm:$0xff] %v12843_v57  ;;  %v16101_v13 = vand.u32 4294901760, %v12523_v28  ;;  %v12880_v29 = vsub.f32 %v12528_v33, %v16111_v14  ;;  %v16119_v14 = vand.u32 4294901760, %v12554_v17 }
 0x2d9   :  { %16096 = vst [vmem:[#allocation20_spill] sm:$0xff] %v12832_v43  ;;  %16098 = vst [vmem:[#allocation21_spill] sm:$0xff] %v12837_v47  ;;  %v12855_v38 = vpack.c.bf16 %v16104_v58, %v16103_v54  ;;  %v16106_v47 = vand.u32 4294901760, %v12525_v12  ;;  %v16115_v58 = vand.u32 4294901760, %v12789_v62 }
 0x2da   :  { %v12848_v40 = vsub.f32 %v12523_v28, %v16101_v13  ;;  %v16108_v28 = vand.u32 4294901760, %v12749_v4  ;;  %v16109_v13 = vand.u32 4294901760, %v12751_v52  ;;  %16112 = vst [vmem:[#allocation30_spill] sm:$0xff] %v12880_v29  ;;  %v12914_v33 = vsub.f32 %v12554_v17, %v16119_v14 }
 0x2db   :  { %16105 = vst [vmem:[#allocation27_spill] sm:$0xff] %v12855_v38  ;;  %v12864_v43 = vsub.f32 %v12525_v12, %v16106_v47  ;;  %v16113_v12 = vand.u32 4294901760, %v12530_v44  ;;  %8502 = vmatpush1.bf16.msra.mxu0 %v12855_v38  ;;  %v16124_v52 = vand.u32 4294901760, %v12559_v7  ;;  %v16125_v14 = vand.u32 4294901760, %v12841_v25 }
 0x2dc   :  { %16102 = vst [vmem:[#allocation26_spill] sm:$0xff] %v12848_v40  ;;  %v12871_v39 = vpack.c.bf16 %v16109_v13, %v16108_v28  ;;  %v16114_v13 = vand.u32 4294901760, %v12787_v26  ;;  %v16117_v28 = vand.u32 4294901760, %v12589_v9 }
 0x2dd   :  { %16107 = vst [vmem:[#allocation28_spill] sm:$0xff] %v12864_v43  ;;  %v12885_v47 = vsub.f32 %v12530_v44, %v16113_v12  ;;  %v12900_v12 = vld [vmem:[#allocation7 + $0x5d0] sm:$0xff]  ;;  %v16120_v44 = vand.u32 4294901760, %v12556_v20  ;;  %v12932_v17 = vsub.f32 %v12559_v7, %v16124_v52  ;;  %v16129_v7 = vand.u32 4294901760, %v12608_v50 }
 0x2de   :  { %16110 = vst [vmem:[#allocation29_spill] sm:$0xff] %v12871_v39  ;;  %v12893_v54 = vpack.c.bf16 %v16115_v58, %v16114_v13  ;;  %v2684_v62 = vsub.f32 %v12589_v9, %v16117_v28  ;;  %v16118_v58 = vand.u32 4294901760, %v12594_v0  ;;  %8504 = vmatprep.subr.bf16.mxu0 %v12871_v39  ;;  %v16121_v28 = vand.u32 4294901760, %v12825_v56 }
 0x2df   :  { %v12919_v38 = vsub.f32 %v12556_v20, %v16120_v44  ;;  %v16122_v9 = vand.u32 4294901760, %v12827_v32  ;;  %v16126_v20 = vand.u32 4294901760, %v12843_v57  ;;  %v7332_v32 = vpop.f32.mrb[12].mxu1  ;;  %v2702_v25 = vsub.f32 %v12608_v50, %v16129_v7 }
 0x2e0   :  { %16116 = vst [vmem:[#allocation31_spill] sm:$0xff] %v12893_v54  ;;  %v2696_v13 = vsub.f32 %v12594_v0, %v16118_v58  ;;  %v16128_v58 = vand.u32 4294901760, %v12603_v46  ;;  %v7333_v57 = vpop.f32.mrb[13].mxu1  ;;  %8506 = vmatpush1.bf16.msra.mxu0 %v12893_v54  ;;  %v16134_v7 = vand.u32 4294901760, %v12618_v11 }
 0x2e1   :  { %v12926_v26 = vpack.c.bf16 %v16122_v9, %v16121_v28  ;;  %v12938_v44 = vpack.c.bf16 %v16126_v20, %v16125_v14  ;;  %v16130_v14 = vand.u32 4294901760, %v12857_v41  ;;  %v16131_v20 = vand.u32 4294901760, %v12875_v49 }
 0x2e2   :  { %v2690_v52 = vsub.f32 %v12603_v46, %v16128_v58  ;;  %v2685_v9 = vand.u32 4294901760, %v2684_v62  ;;  %v2697_v39 = vand.u32 4294901760, %v2696_v13  ;;  %v16133_v28 = vand.u32 4294901760, %v12613_v6 }
 0x2e3   :  { %16123 = vst [vmem:[#allocation32_spill] sm:$0xff] %v12926_v26  ;;  %16127 = vst [vmem:[#allocation33_spill] sm:$0xff] %v12938_v44  ;;  %v12955_v0 = vpack.c.bf16 %v16131_v20, %v16130_v14  ;;  %v7334_v58 = vadd.f32 %v7333_v57, %v7332_v32  ;;  %8508 = vmatprep.subr.bf16.mxu0 %v12926_v26  ;;  %v2720_v50 = vsub.f32 %v12618_v11, %v16134_v7 }
 0x2e4   :  { %v2708_v56 = vsub.f32 %v12613_v6, %v16133_v28  ;;  %v16135_v14 = vand.u32 4294901760, %v12623_v55  ;;  %v16136_v13 = vand.u32 4294901760, %v12638_v22  ;;  %v2691_v7 = vand.u32 4294901760, %v2690_v52  ;;  %8510 = vmatpush1.bf16.msra.mxu0 %v12938_v44 }
 0x2e5   :  { %16132 = vst [vmem:[#allocation34_spill] sm:$0xff] %v12955_v0  ;;  %v12975_v28 = vadd.f32 %v7334_v58, %v12533_v35  ;;  %v2703_v26 = vand.u32 4294901760, %v2702_v25  ;;  %v16137_v46 = vand.u32 4294901760, %v12561_v18  ;;  %v8515_v57 = vpack.c.bf16 %v2697_v39, %v2685_v9  ;;  %8512 = vmatprep.subr.bf16.mxu0 %v12955_v0  ;;  %v16151_v0 = vld [vmem:[#allocation64_spill] sm:$0xff] }
 0x2e6   :  { %v2714_v62 = vsub.f32 %v12623_v55, %v16135_v14  ;;  %v2726_v20 = vsub.f32 %v12638_v22, %v16136_v13  ;;  %v16138_v14 = vand.u32 4294901760, %v12900_v12  ;;  %v16139_v13 = vand.u32 4294901760, %v12902_v61 }
 0x2e7   :  { %v12981_v11 = vsub.f32 %v12561_v18, %v16137_v46  ;;  %v2709_v25 = vand.u32 4294901760, %v2708_v56  ;;  %v2721_v52 = vand.u32 4294901760, %v2720_v50  ;;  %v16141_v58 = vand.u32 4294901760, %v12656_v24 }
 0x2e8   :  { %v12988_v32 = vpack.c.bf16 %v16139_v13, %v16138_v14  ;;  %v16142_v18 = vand.u32 4294901760, %v12661_v3  ;;  %v2715_v44 = vand.u32 4294901760, %v2714_v62  ;;  %v2727_v22 = vand.u32 4294901760, %v2726_v20 }
 0x2e9   :  { %v2732_v46 = vsub.f32 %v12656_v24, %v16141_v58  ;;  %v16143_v14 = vand.u32 4294901760, %v12666_v23  ;;  %v16144_v9 = vand.u32 4294901760, %v12671_v51  ;;  %v16145_v50 = vand.u32 4294901760, %v12582_v42 }
 0x2ea   :  { %16140 = vst [vmem:[#allocation35_spill] sm:$0xff] %v12988_v32  ;;  %v2744_v54 = vsub.f32 %v12661_v3, %v16142_v18  ;;  %v8517_v58 = vpack.c.bf16 %v2703_v26, %v2691_v7  ;;  %v16147_v35 = vand.u32 4294901760, %v12680_v45  ;;  %8514 = vmatpush1.bf16.msra.mxu0 %v12988_v32  ;;  %v16148_v20 = vand.u32 4294901760, %v12685_v30 }
 0x2eb   :  { %v2738_v39 = vsub.f32 %v12666_v23, %v16143_v14  ;;  %v2750_v13 = vsub.f32 %v12671_v51, %v16144_v9  ;;  %v13007_v56 = vsub.f32 %v12582_v42, %v16145_v50  ;;  %v16149_v26 = vand.u32 4294901760, %v12584_v19  ;;  %8516 = vmatprep.subr.bf16.mxu0 %v8515_v57 }
 0x2ec   :  { %v2756_v18 = vsub.f32 %v12680_v45, %v16147_v35  ;;  %v2768_v14 = vsub.f32 %v12685_v30, %v16148_v20  ;;  %v8519_v35 = vpack.c.bf16 %v2721_v52, %v2709_v25  ;;  %v2733_v50 = vand.u32 4294901760, %v2732_v46  ;;  %v16157_v46 = vld [vmem:[#allocation144_spill] sm:$0xff] }
 0x2ed   :  { %16146 = vst [vmem:[#allocation36_spill] sm:$0xff] %v13007_v56  ;;  %v13023_v7 = vsub.f32 %v12584_v19, %v16149_v26  ;;  %v2745_v62 = vand.u32 4294901760, %v2744_v54  ;;  %v16150_v32 = vand.u32 4294901760, %v12596_v27  ;;  %v8521_v20 = vpack.c.bf16 %v2727_v22, %v2715_v44  ;;  %2675 = vmatmul.mubr.f32.vlgmr.msra.gmra.mrb[2].mxu0 %v16151_v0  ;;  %v16153_v54 = vld [vmem:[#allocation25_spill] sm:$0xff] }
 0x2ee   :  { %v2739_v9 = vand.u32 4294901760, %v2738_v39  ;;  %v2751_v30 = vand.u32 4294901760, %v2750_v13  ;;  %v2757_v42 = vand.u32 4294901760, %v2756_v18  ;;  %v16152_v51 = vand.u32 4294901760, %v12690_v15  ;;  %8518 = vmatpush1.bf16.msra.mxu0 %v8517_v58  ;;  %3066 = vmatprep.mubr.f32.mxu0 %v16153_v54 }
 0x2ef   :  { %v13028_v45 = vsub.f32 %v12596_v27, %v16150_v32  ;;  %v2769_v52 = vand.u32 4294901760, %v2768_v14  ;;  %v16154_v27 = vand.u32 4294901760, %v12695_v60  ;;  %v16155_v44 = vand.u32 4294901760, %v12700_v16  ;;  %8520 = vmatprep.subr.bf16.mxu0 %v8519_v35  ;;  %v16159_v14 = vld [vmem:[#allocation115_spill] sm:$0xff] }
 0x2f0   :  { %v2762_v19 = vsub.f32 %v12690_v15, %v16152_v51  ;;  %v16156_v32 = vand.u32 4294901760, %v12714_v10  ;;  %v16158_v39 = vand.u32 4294901760, %v16157_v46  ;;  %v8523_v58 = vpack.c.bf16 %v2745_v62, %v2733_v50 }
 0x2f1   :  { %v2774_v22 = vsub.f32 %v12695_v60, %v16154_v27  ;;  %v2780_v0 = vsub.f32 %v12700_v16, %v16155_v44  ;;  %v16160_v27 = vand.u32 4294901760, %v12649_v37  ;;  %v16161_v44 = vand.u32 4294901760, %v12651_v59 }
 0x2f2   :  { %v2792_v51 = vsub.f32 %v12714_v10, %v16156_v32  ;;  %v13049_v13 = vsub.f32 %v16157_v46, %v16158_v39  ;;  %v8525_v35 = vpack.c.bf16 %v2751_v30, %v2739_v9  ;;  %v2763_v62 = vand.u32 4294901760, %v2762_v19  ;;  %8522 = vmatpush1.bf16.msra.mxu0 %v8521_v20  ;;  %v16167_v19 = vld [vmem:[#allocation150_spill] sm:$0xff] }
 0x2f3   :  { %v13056_v25 = vsub.f32 %v12649_v37, %v16160_v27  ;;  %v13061_v32 = vsub.f32 %v12651_v59, %v16161_v44  ;;  %v16163_v50 = vand.u32 4294901760, %v12732_v31  ;;  %v16164_v26 = vand.u32 4294901760, %v12737_v1  ;;  %8524 = vmatprep.subr.bf16.mxu0 %v8523_v58 }
 0x2f4   :  { %v8527_v27 = vpack.c.bf16 %v2769_v52, %v2757_v42  ;;  %v2775_v18 = vand.u32 4294901760, %v2774_v22  ;;  %v2781_v54 = vand.u32 4294901760, %v2780_v0  ;;  %v2793_v59 = vand.u32 4294901760, %v2792_v51  ;;  %v16170_v22 = vld [vmem:[#allocation18_spill] sm:$0xff] }
 0x2f5   :  { %16162 = vst [vmem:[#allocation37_spill] sm:$0xff] %v13061_v32  ;;  %v2786_v39 = vsub.f32 %v12732_v31, %v16163_v50  ;;  %v2798_v37 = vsub.f32 %v12737_v1, %v16164_v26  ;;  %v16165_v44 = vand.u32 4294901760, %v12742_v5  ;;  %v16166_v30 = vand.u32 4294901760, %v16159_v14 }
 0x2f6   :  { %v16168_v26 = vand.u32 4294901760, %v12756_v21  ;;  %v16169_v20 = vand.u32 4294901760, %v12761_v63  ;;  %v16171_v58 = vand.u32 4294901760, %v12673_v36  ;;  %8526 = vmatpush1.bf16.msra.mxu0 %v8525_v35  ;;  %v14977_v0 = vand.u32 4294901760, %v12813_v8 }
 0x2f7   :  { %v2804_v46 = vsub.f32 %v12742_v5, %v16165_v44  ;;  %v2816_v9 = vsub.f32 %v16159_v14, %v16166_v30  ;;  %v2787_v30 = vand.u32 4294901760, %v2786_v39  ;;  %v2799_v50 = vand.u32 4294901760, %v2798_v37  ;;  %v16173_v14 = vld [vmem:[#allocation84_spill] sm:$0xff]  ;;  %8528 = vmatprep.subr.bf16.mxu0 %v8527_v27 }
 0x2f8   :  { %v2810_v42 = vsub.f32 %v12756_v21, %v16168_v26  ;;  %v2822_v52 = vsub.f32 %v12761_v63, %v16169_v20  ;;  %v13090_v44 = vsub.f32 %v12673_v36, %v16171_v58  ;;  %v16174_v5 = vand.u32 4294901760, %v16173_v14 }
 0x2f9   :  { %v8529_v20 = vpack.c.bf16 %v2775_v18, %v2763_v62  ;;  %v8531_v63 = vpack.c.bf16 %v2793_v59, %v2781_v54  ;;  %v2805_v51 = vand.u32 4294901760, %v2804_v46  ;;  %v2817_v21 = vand.u32 4294901760, %v2816_v9  ;;  %v16182_v9 = vld [vmem:[#allocation141_spill] sm:$0xff] }
 0x2fa   :  { %16172 = vst [vmem:[#allocation38_spill] sm:$0xff] %v13090_v44  ;;  %v13096_v26 = vsub.f32 %v16173_v14, %v16174_v5  ;;  %v16176_v36 = vand.u32 4294901760, %v16167_v19  ;;  %v16177_v37 = vand.u32 4294901760, %v12771_v2  ;;  %v2811_v57 = vand.u32 4294901760, %v2810_v42 }
 0x2fb   :  { %v2823_v1 = vand.u32 4294901760, %v2822_v52  ;;  %v16178_v5 = vand.u32 4294901760, %v16170_v22  ;;  %v16179_v54 = vand.u32 4294901760, %v12794_v53  ;;  %v16180_v46 = vand.u32 4294901760, %v12725_v48  ;;  %8530 = vmatpush1.bf16.msra.mxu0 %v8529_v20 }
 0x2fc   :  { %16175 = vst [vmem:[#allocation41_spill] sm:$0xff] %v13096_v26  ;;  %v2828_v39 = vsub.f32 %v16167_v19, %v16176_v36  ;;  %v2840_v58 = vsub.f32 %v12771_v2, %v16177_v37  ;;  %v8533_v62 = vpack.c.bf16 %v2799_v50, %v2787_v30  ;;  %v16181_v27 = vand.u32 4294901760, %v12808_v34  ;;  %v16183_v36 = vld [vmem:[#allocation187_spill] sm:$0xff]  ;;  %8532 = vmatprep.subr.bf16.mxu0 %v8531_v63 }
 0x2fd   :  { %v2834_v18 = vsub.f32 %v16170_v22, %v16178_v5  ;;  %v2846_v14 = vsub.f32 %v12794_v53, %v16179_v54  ;;  %v13114_v35 = vsub.f32 %v12725_v48, %v16180_v46  ;;  %v2864_v52 = vsub.f32 %v12813_v8, %v14977_v0  ;;  %v16184_v5 = vld [vmem:[#allocation20_spill] sm:$0xff]  ;;  %v16185_v53 = vld [vmem:[#allocation21_spill] sm:$0xff] }
 0x2fe   :  { %v2852_v59 = vsub.f32 %v12808_v34, %v16181_v27  ;;  %v8535_v48 = vpack.c.bf16 %v2817_v21, %v2805_v51  ;;  %v2829_v50 = vand.u32 4294901760, %v2828_v39  ;;  %v2841_v30 = vand.u32 4294901760, %v2840_v58 }
 0x2ff   :  { %v14978_v46 = vand.u32 4294901760, %v12848_v40  ;;  %v8537_v27 = vpack.c.bf16 %v2823_v1, %v2811_v57  ;;  %v2835_v34 = vand.u32 4294901760, %v2834_v18  ;;  %v2847_v42 = vand.u32 4294901760, %v2846_v14  ;;  %8534 = vmatpush1.bf16.msra.mxu0 %v8533_v62  ;;  %v16190_v18 = vld [vmem:[#allocation107_spill] sm:$0xff] }
 0x300   :  { %v14981_v20 = vand.u32 4294901760, %v12864_v43  ;;  %v2853_v2 = vand.u32 4294901760, %v2852_v59  ;;  %v16186_v0 = vand.u32 4294901760, %v16182_v9  ;;  %v2865_v21 = vand.u32 4294901760, %v2864_v52  ;;  %8536 = vmatprep.subr.bf16.mxu0 %v8535_v48 }
 0x301   :  { %v16187_v63 = vand.u32 4294901760, %v16183_v36  ;;  %v16188_v1 = vand.u32 4294901760, %v16184_v5  ;;  %v16189_v39 = vand.u32 4294901760, %v16185_v53  ;;  %v16192_v62 = vand.u32 4294901760, %v12749_v4 }
 0x302   :  { %v2858_v37 = vsub.f32 %v16182_v9, %v16186_v0  ;;  %v16191_v0 = vand.u32 4294901760, %v16190_v18  ;;  %v8539_v52 = vpack.c.bf16 %v2841_v30, %v2829_v50  ;;  %v8541_v54 = vpack.c.bf16 %v2847_v42, %v2835_v34 }
 0x303   :  { %v2870_v51 = vsub.f32 %v16183_v36, %v16187_v63  ;;  %v2876_v57 = vsub.f32 %v16184_v5, %v16188_v1  ;;  %v2888_v58 = vsub.f32 %v16185_v53, %v16189_v39  ;;  %v13150_v59 = vsub.f32 %v12749_v4, %v16192_v62  ;;  %v16193_v1 = vld [vmem:[#allocation117_spill] sm:$0xff]  ;;  %v7367_v4 = vpop.f32.mrb[14].mxu1  ;;  %8538 = vmatpush1.bf16.msra.mxu0 %v8537_v27 }
 0x304   :  { %v13145_v14 = vsub.f32 %v16190_v18, %v16191_v0  ;;  %v2882_v63 = vsub.f32 %v12848_v40, %v14978_v46  ;;  %v16194_v22 = vand.u32 4294901760, %v16193_v1  ;;  %v2894_v18 = vsub.f32 %v12864_v43, %v14981_v20  ;;  %8540 = vmatprep.subr.bf16.mxu0 %v8539_v52  ;;  %v16200_v52 = vld [vmem:[#allocation129_spill] sm:$0xff] }
 0x305   :  { %v2859_v62 = vand.u32 4294901760, %v2858_v37  ;;  %v16196_v48 = vand.u32 4294901760, %v12880_v29  ;;  %v16197_v30 = vand.u32 4294901760, %v12885_v47  ;;  %v8543_v34 = vpack.c.bf16 %v2865_v21, %v2853_v2 }
 0x306   :  { %v13158_v39 = vsub.f32 %v16193_v1, %v16194_v22  ;;  %v7368_v1 = vpop.f32.mrb[15].mxu1  ;;  %v2871_v42 = vand.u32 4294901760, %v2870_v51  ;;  %v2877_v40 = vand.u32 4294901760, %v2876_v57  ;;  %v2889_v20 = vand.u32 4294901760, %v2888_v58 }
 0x307   :  { %v2900_v50 = vsub.f32 %v12880_v29, %v16196_v48  ;;  %v2912_v46 = vsub.f32 %v12885_v47, %v16197_v30  ;;  %v7369_v43 = vadd.f32 %v7368_v1, %v7367_v4  ;;  %v2883_v0 = vand.u32 4294901760, %v2882_v63  ;;  %v16202_v4 = vld [vmem:[#allocation132_spill] sm:$0xff]  ;;  %8542 = vmatpush1.bf16.msra.mxu0 %v8541_v54  ;;  %v16207_v54 = vld [vmem:[#allocation19_spill] sm:$0xff] }
 0x308   :  { %16195 = vst [vmem:[#allocation42_spill] sm:$0xff] %v13158_v39  ;;  %v14988_v37 = vand.u32 4294901760, %v12932_v17  ;;  %v14987_v53 = vand.u32 4294901760, %v12981_v11  ;;  %v2895_v48 = vand.u32 4294901760, %v2894_v18  ;;  %v16198_v29 = vand.u32 4294901760, %v12914_v33  ;;  %8544 = vmatprep.subr.bf16.mxu0 %v8543_v34 }
 0x309   :  { %v14989_v22 = vand.u32 4294901760, %v13007_v56  ;;  %v13179_v2 = vadd.f32 %v7369_v43, %v12975_v28  ;;  %v2901_v21 = vand.u32 4294901760, %v2900_v50  ;;  %v2913_v51 = vand.u32 4294901760, %v2912_v46 }
 0x30a   :  { %v2906_v30 = vsub.f32 %v12914_v33, %v16198_v29  ;;  %v16199_v57 = vand.u32 4294901760, %v12919_v38  ;;  %v16201_v63 = vand.u32 4294901760, %v16200_v52  ;;  %v16203_v29 = vand.u32 4294901760, %v16202_v4 }
 0x30b   :  { %v8545_v27 = vpack.c.bf16 %v2871_v42, %v2859_v62  ;;  %v8547_v43 = vpack.c.bf16 %v2889_v20, %v2877_v40  ;;  %v2924_v28 = vsub.f32 %v12932_v17, %v14988_v37  ;;  %v2936_v46 = vsub.f32 %v12981_v11, %v14987_v53 }
 0x30c   :  { %v2918_v58 = vsub.f32 %v12919_v38, %v16199_v57  ;;  %v13187_v18 = vsub.f32 %v16200_v52, %v16201_v63  ;;  %v13192_v1 = vsub.f32 %v16202_v4, %v16203_v29  ;;  %v16204_v52 = vld [vmem:[#allocation23_spill] sm:$0xff]  ;;  %v16208_v40 = vand.u32 4294901760, %v16207_v54 }
 0x30d   :  { %v16205_v63 = vand.u32 4294901760, %v16204_v52  ;;  %v2930_v62 = vsub.f32 %v13007_v56, %v14989_v22  ;;  %v16210_v34 = vand.u32 4294901760, %v13023_v7  ;;  %v8549_v29 = vpack.c.bf16 %v2895_v48, %v2883_v0  ;;  %8546 = vmatpush1.bf16.msra.mxu0 %v8545_v27 }
 0x30e   :  { %v13210_v20 = vsub.f32 %v16207_v54, %v16208_v40  ;;  %v8551_v53 = vpack.c.bf16 %v2913_v51, %v2901_v21  ;;  %v2907_v37 = vand.u32 4294901760, %v2906_v30  ;;  %v2919_v57 = vand.u32 4294901760, %v2918_v58  ;;  %8548 = vmatprep.subr.bf16.mxu0 %v8547_v43  ;;  %v16213_v58 = vld [vmem:[#allocation22_spill] sm:$0xff] }
 0x30f   :  { %v13205_v4 = vsub.f32 %v16204_v52, %v16205_v63  ;;  %v2942_v42 = vsub.f32 %v13023_v7, %v16210_v34  ;;  %v14992_v52 = vand.u32 4294901760, %v13056_v25  ;;  %v14993_v63 = vand.u32 4294901760, %v13061_v32 }
 0x310   :  { %16209 = vst [vmem:[#allocation46_spill] sm:$0xff] %v13210_v20  ;;  %v14996_v40 = vand.u32 4294901760, %v13096_v26  ;;  %v2925_v50 = vand.u32 4294901760, %v2924_v28  ;;  %v2937_v22 = vand.u32 4294901760, %v2936_v46  ;;  %v16211_v56 = vand.u32 4294901760, %v13028_v45 }
 0x311   :  { %16206 = vst [vmem:[#allocation45_spill] sm:$0xff] %v13205_v4  ;;  %v16212_v0 = vand.u32 4294901760, %v13049_v13  ;;  %v2931_v30 = vand.u32 4294901760, %v2930_v62  ;;  %v2943_v27 = vand.u32 4294901760, %v2942_v42  ;;  %v16214_v54 = vand.u32 4294901760, %v16213_v58  ;;  %8550 = vmatpush1.bf16.msra.mxu0 %v8549_v29 }
 0x312   :  { %v2948_v34 = vsub.f32 %v13028_v45, %v16211_v56  ;;  %v8553_v28 = vpack.c.bf16 %v2919_v57, %v2907_v37  ;;  %v2954_v62 = vsub.f32 %v13056_v25, %v14992_v52  ;;  %v2966_v42 = vsub.f32 %v13061_v32, %v14993_v63  ;;  %v16216_v57 = vld [vmem:[#allocation24_spill] sm:$0xff]  ;;  %8552 = vmatprep.subr.bf16.mxu0 %v8551_v53 }
 0x313   :  { %v2960_v48 = vsub.f32 %v13049_v13, %v16212_v0  ;;  %v13233_v43 = vsub.f32 %v16213_v58, %v16214_v54  ;;  %v16215_v0 = vand.u32 4294901760, %v13090_v44  ;;  %v2984_v37 = vsub.f32 %v13096_v26, %v14996_v40 }
 0x314   :  { %v16217_v54 = vand.u32 4294901760, %v16216_v57  ;;  %v8555_v58 = vpack.c.bf16 %v2937_v22, %v2925_v50  ;;  %v2949_v52 = vand.u32 4294901760, %v2948_v34  ;;  %v16218_v46 = vand.u32 4294901760, %v12857_v41 }
 0x315   :  { %v2972_v51 = vsub.f32 %v13090_v44, %v16215_v0  ;;  %v2961_v56 = vand.u32 4294901760, %v2960_v48  ;;  %v8557_v21 = vpack.c.bf16 %v2943_v27, %v2931_v30  ;;  %v16220_v0 = vand.u32 4294901760, %v13114_v35  ;;  %8554 = vmatpush1.bf16.msra.mxu0 %v8553_v28 }
 0x316   :  { %v13252_v29 = vsub.f32 %v16216_v57, %v16217_v54  ;;  %v13257_v63 = vsub.f32 %v12857_v41, %v16218_v46  ;;  %v16221_v40 = vand.u32 4294901760, %v13145_v14  ;;  %v16222_v57 = vand.u32 4294901760, %v13150_v59  ;;  %8556 = vmatprep.subr.bf16.mxu0 %v8555_v58 }
 0x317   :  { %v2978_v44 = vsub.f32 %v13114_v35, %v16220_v0  ;;  %v16223_v22 = vand.u32 4294901760, %v13158_v39  ;;  %v2955_v48 = vand.u32 4294901760, %v2954_v62  ;;  %v2967_v30 = vand.u32 4294901760, %v2966_v42 }
 0x318   :  { %16219 = vst [vmem:[#allocation47_spill] sm:$0xff] %v13257_v63  ;;  %v2990_v26 = vsub.f32 %v13145_v14, %v16221_v40  ;;  %v2996_v53 = vsub.f32 %v13150_v59, %v16222_v57  ;;  %v2973_v27 = vand.u32 4294901760, %v2972_v51  ;;  %v2985_v46 = vand.u32 4294901760, %v2984_v37 }
 0x319   :  { %v3008_v50 = vsub.f32 %v13158_v39, %v16223_v22  ;;  %v16224_v54 = vand.u32 4294901760, %v12875_v49  ;;  %v8559_v0 = vpack.c.bf16 %v2961_v56, %v2949_v52  ;;  %v14999_v57 = vand.u32 4294901760, %v13205_v4  ;;  %8558 = vmatpush1.bf16.msra.mxu0 %v8557_v21 }
 0x31a   :  { %v16226_v41 = vand.u32 4294901760, %v12900_v12  ;;  %v16228_v28 = vand.u32 4294901760, %v12902_v61  ;;  %v2979_v62 = vand.u32 4294901760, %v2978_v44  ;;  %v2991_v42 = vand.u32 4294901760, %v2990_v26 }
 0x31b   :  { %v13276_v40 = vsub.f32 %v12875_v49, %v16224_v54  ;;  %v2997_v49 = vand.u32 4294901760, %v2996_v53  ;;  %v3009_v37 = vand.u32 4294901760, %v3008_v50  ;;  %v16230_v52 = vand.u32 4294901760, %v13187_v18  ;;  %8560 = vmatprep.subr.bf16.mxu0 %v8559_v0 }
 0x31c   :  { %v13283_v34 = vsub.f32 %v12900_v12, %v16226_v41  ;;  %v13288_v51 = vsub.f32 %v12902_v61, %v16228_v28  ;;  %v16231_v58 = vand.u32 4294901760, %v13192_v1  ;;  %v8561_v12 = vpack.c.bf16 %v2967_v30, %v2955_v48 }
 0x31d   :  { %16225 = vst [vmem:[#allocation50_spill] sm:$0xff] %v13276_v40  ;;  %v3002_v56 = vsub.f32 %v13187_v18, %v16230_v52  ;;  %v8563_v41 = vpack.c.bf16 %v2985_v46, %v2973_v27  ;;  %v15004_v22 = vand.u32 4294901760, %v13233_v43  ;;  %v15001_v61 = vand.u32 4294901760, %v13252_v29 }
 0x31e   :  { %16227 = vst [vmem:[#allocation51_spill] sm:$0xff] %v13283_v34  ;;  %16229 = vst [vmem:[#allocation52_spill] sm:$0xff] %v13288_v51  ;;  %v3014_v54 = vsub.f32 %v13192_v1, %v16231_v58  ;;  %v3020_v44 = vsub.f32 %v13205_v4, %v14999_v57  ;;  %v16232_v26 = vand.u32 4294901760, %v13210_v20  ;;  %v15000_v50 = vand.u32 4294901760, %v13257_v63  ;;  %8562 = vmatpush1.bf16.msra.mxu0 %v8561_v12 }
 0x31f   :  { %v15002_v28 = vand.u32 4294901760, %v13276_v40  ;;  %v8565_v21 = vpack.c.bf16 %v2991_v42, %v2979_v62  ;;  %v8567_v48 = vpack.c.bf16 %v3009_v37, %v2997_v49  ;;  %v3003_v30 = vand.u32 4294901760, %v3002_v56  ;;  %8564 = vmatprep.subr.bf16.mxu0 %v8563_v41 }
 0x320   :  { %v3032_v53 = vsub.f32 %v13210_v20, %v16232_v26  ;;  %v3015_v27 = vand.u32 4294901760, %v3014_v54  ;;  %v3026_v46 = vsub.f32 %v13233_v43, %v15004_v22  ;;  %v3038_v0 = vsub.f32 %v13252_v29, %v15001_v61  ;;  %v16233_v22 = vld [vmem:[#allocation140_spill] sm:$0xff] }
 0x321   :  { %v15003_v52 = vand.u32 4294901760, %v13283_v34  ;;  %v15005_v58 = vand.u32 4294901760, %v13288_v51  ;;  %v3021_v26 = vand.u32 4294901760, %v3020_v44  ;;  %v3044_v62 = vsub.f32 %v13257_v63, %v15000_v50  ;;  %v7402_v50 = vpop.f32.mrb[16].mxu1 }
 0x322   :  { %v3033_v57 = vand.u32 4294901760, %v3032_v53  ;;  %v3056_v42 = vsub.f32 %v13276_v40, %v15002_v28  ;;  %v8569_v49 = vpack.c.bf16 %v3015_v27, %v3003_v30  ;;  %8566 = vmatpush1.bf16.msra.mxu0 %v8565_v21  ;;  %v3027_v37 = vand.u32 4294901760, %v3026_v46  ;;  %v7403_v61 = vpop.f32.mrb[17].mxu1 }
 0x323   :  { %v3039_v56 = vand.u32 4294901760, %v3038_v0  ;;  %v3050_v54 = vsub.f32 %v13283_v34, %v15003_v52  ;;  %v3062_v12 = vsub.f32 %v13288_v51, %v15005_v58  ;;  %8568 = vmatprep.subr.bf16.mxu0 %v8567_v48  ;;  %v3045_v44 = vand.u32 4294901760, %v3044_v62  ;;  %v16234_v58 = vld [vmem:[#allocation145_spill] sm:$0xff] }
 0x324   :  { %v8571_v41 = vpack.c.bf16 %v3033_v57, %v3021_v26  ;;  %v3057_v53 = vand.u32 4294901760, %v3056_v42  ;;  %v7404_v27 = vadd.f32 %v7403_v61, %v7402_v50  ;;  %v8579_v48 = vpack.c.bf16 %v16234_v58, %v16233_v22  ;;  %v16235_v57 = vld [vmem:[#allocation151_spill] sm:$0xff]  ;;  %v16236_v26 = vld [vmem:[#allocation149_spill] sm:$0xff]  ;;  %v16239_v61 = vld [vmem:[#allocation158_spill] sm:$0xff] }
 0x325   :  { %v8573_v28 = vpack.c.bf16 %v3039_v56, %v3027_v37  ;;  %v3051_v30 = vand.u32 4294901760, %v3050_v54  ;;  %v3063_v21 = vand.u32 4294901760, %v3062_v12  ;;  %v8581_v62 = vpack.c.bf16 %v16236_v26, %v16235_v57  ;;  %v16237_v42 = vld [vmem:[#allocation15_spill] sm:$0xff]  ;;  %v16243_v12 = vld [vmem:[#allocation97_spill] sm:$0xff] }
 0x326   :  { %8570 = vmatpush1.bf16.msra.mxu0 %v8569_v49  ;;  %v8575_v46 = vpack.c.bf16 %v3057_v53, %v3045_v44  ;;  %v5023_v0 = vadd.f32 %v7404_v27, %v13179_v2  ;;  %v8583_v49 = vpack.c.bf16 %v16237_v42, %v12613_v6  ;;  %v16238_v37 = vld [vmem:[#allocation171_spill] sm:$0xff]  ;;  %v16240_v2 = vld [vmem:[#allocation185_spill] sm:$0xff]  ;;  %v8593_v44 = vpack.c.bf16 %v12695_v60, %v12690_v15  ;;  %v16245_v27 = vld [vmem:[#allocation72_spill] sm:$0xff] }
 0x327   :  { %8572 = vmatprep.subr.bf16.mxu0 %v8571_v41  ;;  %v8577_v52 = vpack.c.bf16 %v3063_v21, %v3051_v30  ;;  %v8585_v50 = vpack.c.bf16 %v16240_v2, %v12623_v55  ;;  %v16242_v54 = vld [vmem:[#allocation95_spill] sm:$0xff]  ;;  %v8595_v53 = vpack.c.bf16 %v12714_v10, %v12700_v16  ;;  %v16244_v30 = vld [vmem:[#allocation68_spill] sm:$0xff] }
 0x328   :  { %v8591_v41 = vpack.c.bf16 %v16243_v12, %v16242_v54  ;;  %v8597_v21 = vpack.c.bf16 %v16244_v30, %v12732_v31 }
 0x32a   :  { %8574 = vmatpush1.bf16.msra.mxu0 %v8573_v28  ;;  %v8587_v28 = vpack.c.bf16 %v12661_v3, %v12656_v24 }
 0x32b   :  { %8576 = vmatprep.subr.bf16.mxu0 %v8575_v46  ;;  %v16246_v46 = vld [vmem:[#allocation115_spill] sm:$0xff] }
 0x32e   :  { %8578 = vmatpush1.bf16.msra.mxu0 %v8577_v52  ;;  %v16241_v52 = vld [vmem:[#allocation155_spill] sm:$0xff] }
 0x32f   :  { %8580 = vmatprep.subr.bf16.mxu0 %v8579_v48  ;;  %v8589_v56 = vpack.c.bf16 %v16241_v52, %v12666_v23  ;;  %v8599_v48 = vpack.c.bf16 %v16246_v46, %v16245_v27 }
 0x331   :  { %3068 = vmatmul.mubr.f32.vlgmr.msra.gmra.mrb[2].mxu0 %v16238_v37  ;;  %v16250_v37 = vld [vmem:[#allocation18_spill] sm:$0xff] }
 0x332   :  { %8582 = vmatpush1.bf16.msra.mxu0 %v8581_v62  ;;  %3268 = vmatprep.mubr.f32.mxu0 %v16239_v61  ;;  %v16247_v62 = vld [vmem:[#allocation119_spill] sm:$0xff] }
 0x333   :  { %8584 = vmatprep.subr.bf16.mxu0 %v8583_v49  ;;  %v16248_v49 = vld [vmem:[#allocation121_spill] sm:$0xff] }
 0x334   :  { %v8601_v61 = vpack.c.bf16 %v16248_v49, %v16247_v62 }
 0x336   :  { %8586 = vmatpush1.bf16.msra.mxu0 %v8585_v50  ;;  %v16249_v50 = vld [vmem:[#allocation156_spill] sm:$0xff] }
 0x337   :  { %8588 = vmatprep.subr.bf16.mxu0 %v8587_v28  ;;  %v8603_v28 = vpack.c.bf16 %v16249_v50, %v16167_v19  ;;  %v16254_v19 = vld [vmem:[#allocation26_spill] sm:$0xff] }
 0x33a   :  { %8590 = vmatpush1.bf16.msra.mxu0 %v8589_v56  ;;  %v7437_v56 = vpop.f32.mrb[18].mxu1 }
 0x33b   :  { %8592 = vmatprep.subr.bf16.mxu0 %v8591_v41  ;;  %v7438_v41 = vpop.f32.mrb[19].mxu1 }
 0x33c   :  { %v7439_v16 = vadd.f32 %v7438_v41, %v7437_v56  ;;  %v8623_v56 = vpack.c.bf16 %v13049_v13, %v13028_v45  ;;  %v16259_v41 = vld [vmem:[#allocation41_spill] sm:$0xff] }
 0x33e   :  { %8594 = vmatpush1.bf16.msra.mxu0 %v8593_v44  ;;  %v16251_v44 = vld [vmem:[#allocation133_spill] sm:$0xff]  ;;  %v5161_v46 = vadd.f32 %v7439_v16, %v5023_v0  ;;  %v8617_v16 = vpack.c.bf16 %v12919_v38, %v12914_v33  ;;  %v16257_v0 = vld [vmem:[#allocation36_spill] sm:$0xff] }
 0x33f   :  { %8596 = vmatprep.subr.bf16.mxu0 %v8595_v53  ;;  %v8605_v10 = vpack.c.bf16 %v16251_v44, %v16250_v37  ;;  %v16252_v53 = vld [vmem:[#allocation137_spill] sm:$0xff]  ;;  %v16256_v44 = vld [vmem:[#allocation30_spill] sm:$0xff] }
 0x340   :  { %v8607_v30 = vpack.c.bf16 %v12813_v8, %v16252_v53 }
 0x342   :  { %8598 = vmatpush1.bf16.msra.mxu0 %v8597_v21  ;;  %v8609_v21 = vpack.c.bf16 %v16183_v36, %v16182_v9 }
 0x343   :  { %8600 = vmatprep.subr.bf16.mxu0 %v8599_v48  ;;  %v16253_v48 = vld [vmem:[#allocation21_spill] sm:$0xff] }
 0x344   :  { %v8611_v50 = vpack.c.bf16 %v16253_v48, %v16184_v5 }
 0x346   :  { %8602 = vmatpush1.bf16.msra.mxu0 %v8601_v61  ;;  %v16255_v61 = vld [vmem:[#allocation28_spill] sm:$0xff] }
 0x347   :  { %8604 = vmatprep.subr.bf16.mxu0 %v8603_v28  ;;  %v8613_v49 = vpack.c.bf16 %v16255_v61, %v16254_v19  ;;  %v8615_v28 = vpack.c.bf16 %v12885_v47, %v16256_v44 }
 0x34a   :  { %8606 = vmatpush1.bf16.msra.mxu0 %v8605_v10  ;;  %v8619_v10 = vpack.c.bf16 %v12981_v11, %v12932_v17 }
 0x34b   :  { %8608 = vmatprep.subr.bf16.mxu0 %v8607_v30  ;;  %v8621_v30 = vpack.c.bf16 %v13023_v7, %v16257_v0 }
 0x34e   :  { %8610 = vmatpush1.bf16.msra.mxu0 %v8609_v21 }
 0x34f   :  { %8612 = vmatprep.subr.bf16.mxu0 %v8611_v50  ;;  %v8625_v50 = vpack.c.bf16 %v13061_v32, %v13056_v25 }
 0x352   :  { %8614 = vmatpush1.bf16.msra.mxu0 %v8613_v49  ;;  %v16258_v49 = vld [vmem:[#allocation38_spill] sm:$0xff] }
 0x353   :  { %8616 = vmatprep.subr.bf16.mxu0 %v8615_v28  ;;  %v8627_v21 = vpack.c.bf16 %v16259_v41, %v16258_v49  ;;  %v8629_v28 = vpack.c.bf16 %v13145_v14, %v13114_v35 }
 0x356   :  { %8618 = vmatpush1.bf16.msra.mxu0 %v8617_v16  ;;  %v8631_v16 = vpack.c.bf16 %v13158_v39, %v13150_v59 }
 0x357   :  { %8620 = vmatprep.subr.bf16.mxu0 %v8619_v10  ;;  %v8633_v10 = vpack.c.bf16 %v13192_v1, %v13187_v18 }
 0x35a   :  { %8622 = vmatpush1.bf16.msra.mxu0 %v8621_v30  ;;  %v8635_v30 = vpack.c.bf16 %v13210_v20, %v13205_v4  ;;  %v16261_v20 = vld [vmem:[#allocation174_spill] sm:$0xff]  ;;  %v16263_v4 = vld [vmem:[#allocation159_spill] sm:$0xff] }
 0x35b   :  { %8624 = vmatprep.subr.bf16.mxu0 %v8623_v56  ;;  %v7472_v56 = vpop.f32.mrb[20].mxu1 }
 0x35c   :  { %v7473_v32 = vpop.f32.mrb[21].mxu1 }
 0x35d   :  { %v7474_v41 = vadd.f32 %v7473_v32, %v7472_v56  ;;  %v16264_v32 = vld [vmem:[#allocation67_spill] sm:$0xff]  ;;  %v16266_v56 = vld [vmem:[#allocation76_spill] sm:$0xff] }
 0x35e   :  { %8626 = vmatpush1.bf16.msra.mxu0 %v8625_v50  ;;  %v8637_v50 = vpack.c.bf16 %v13252_v29, %v13233_v43 }
 0x35f   :  { %8628 = vmatprep.subr.bf16.mxu0 %v8627_v21  ;;  %v8639_v21 = vpack.c.bf16 %v13276_v40, %v13257_v63  ;;  %v5269_v39 = vadd.f32 %v7474_v41, %v5161_v46  ;;  %v16267_v46 = vld [vmem:[#allocation75_spill] sm:$0xff]  ;;  %v16268_v41 = vld [vmem:[#allocation80_spill] sm:$0xff] }
 0x360   :  { %v5569_v63 = vld [vmem:[#allocation8 + $0xb0] sm:$0xff] }
 0x362   :  { %8630 = vmatpush1.bf16.msra.mxu0 %v8629_v28  ;;  %v8641_v28 = vpack.c.bf16 %v13288_v51, %v13283_v34  ;;  %v16275_v51 = vld [vmem:[#allocation124_spill] sm:$0xff]  ;;  %v16282_v34 = vld [vmem:[#allocation157_spill] sm:$0xff] }
 0x363   :  { %8632 = vmatprep.subr.bf16.mxu0 %v8631_v16  ;;  %v16260_v16 = vld [vmem:[#allocation62_spill] sm:$0xff] }
 0x366   :  { %8634 = vmatpush1.bf16.msra.mxu0 %v8633_v10  ;;  %v16262_v10 = vld [vmem:[#allocation70_spill] sm:$0xff] }
 0x367   :  { %8636 = vmatprep.subr.bf16.mxu0 %v8635_v30  ;;  %v16265_v30 = vld [vmem:[#allocation180_spill] sm:$0xff] }
 0x36a   :  { %8638 = vmatpush1.bf16.msra.mxu0 %v8637_v50  ;;  %v16269_v50 = vld [vmem:[#allocation79_spill] sm:$0xff] }
 0x36b   :  { %8640 = vmatprep.subr.bf16.mxu0 %v8639_v21  ;;  %v16270_v21 = vld [vmem:[#allocation86_spill] sm:$0xff] }
 0x36e   :  { %8642 = vmatpush1.bf16.msra.mxu0 %v8641_v28  ;;  %v16271_v28 = vld [vmem:[#allocation85_spill] sm:$0xff] }
 0x36f   :  { %8644 = vmatprep.subr.bf16.mxu0 %v16260_v16  ;;  %v16273_v16 = vld [vmem:[#allocation93_spill] sm:$0xff] }
 0x371   :  { %3271 = vmatmul.mubr.f32.vlgmr.msra.gmra.mrb[2].mxu0 %v16261_v20  ;;  %v16272_v20 = vld [vmem:[#allocation89_spill] sm:$0xff] }
 0x372   :  { %8646 = vmatpush1.bf16.msra.mxu0 %v16262_v10  ;;  %3408 = vmatprep.mubr.f32.mxu0 %v16263_v4 }
 0x373   :  { %8648 = vmatprep.subr.bf16.mxu0 %v16264_v32 }
 0x376   :  { %8650 = vmatpush1.bf16.msra.mxu0 %v16265_v30  ;;  %v16274_v30 = vld [vmem:[#allocation92_spill] sm:$0xff] }
 0x377   :  { %8652 = vmatprep.subr.bf16.mxu0 %v16266_v56 }
 0x378   :  { %v7507_v10 = vpop.f32.mrb[22].mxu1 }
 0x379   :  { %v7508_v4 = vpop.f32.mrb[23].mxu1 }
 0x37a   :  { %8654 = vmatpush1.bf16.msra.mxu0 %v16267_v46  ;;  %v7509_v32 = vadd.f32 %v7508_v4, %v7507_v10  ;;  %v16276_v46 = vld [vmem:[#allocation181_spill] sm:$0xff] }
 0x37b   :  { %8656 = vmatprep.subr.bf16.mxu0 %v16268_v41  ;;  %v16277_v41 = vld [vmem:[#allocation128_spill] sm:$0xff]  ;;  %v16283_v10 = vld [vmem:[#allocation101_spill] sm:$0xff] }
 0x37c   :  { %v5437_v56 = vadd.f32 %v7509_v32, %v5269_v39  ;;  %v16284_v4 = vld [vmem:[#allocation105_spill] sm:$0xff]  ;;  %v16286_v32 = vld [vmem:[#allocation136_spill] sm:$0xff] }
 0x37d   :  { %v16285_v39 = vld [vmem:[#allocation125_spill] sm:$0xff] }
 0x37e   :  { %8658 = vmatpush1.bf16.msra.mxu0 %v16269_v50  ;;  %v16278_v50 = vld [vmem:[#allocation182_spill] sm:$0xff] }
 0x37f   :  { %8660 = vmatprep.subr.bf16.mxu0 %v16270_v21  ;;  %v16279_v21 = vld [vmem:[#allocation183_spill] sm:$0xff] }
 0x382   :  { %8662 = vmatpush1.bf16.msra.mxu0 %v16271_v28  ;;  %v16280_v28 = vld [vmem:[#allocation184_spill] sm:$0xff] }
 0x383   :  { %8664 = vmatprep.subr.bf16.mxu0 %v16272_v20  ;;  %v16281_v20 = vld [vmem:[#allocation16_spill] sm:$0xff] }
 0x386   :  { %8666 = vmatpush1.bf16.msra.mxu0 %v16273_v16 }
 0x387   :  { %8668 = vmatprep.subr.bf16.mxu0 %v16274_v30  ;;  %v16296_v30 = vld [vmem:[#allocation35_spill] sm:$0xff] }
 0x38a   :  { %8670 = vmatpush1.bf16.msra.mxu0 %v16275_v51  ;;  %v16289_v51 = vld [vmem:[#allocation31_spill] sm:$0xff] }
 0x38b   :  { %8672 = vmatprep.subr.bf16.mxu0 %v16276_v46  ;;  %v16287_v46 = vld [vmem:[#allocation27_spill] sm:$0xff] }
 0x38e   :  { %8674 = vmatpush1.bf16.msra.mxu0 %v16277_v41  ;;  %v16288_v41 = vld [vmem:[#allocation29_spill] sm:$0xff] }
 0x38f   :  { %8676 = vmatprep.subr.bf16.mxu0 %v16278_v50 }
 0x392   :  { %8678 = vmatpush1.bf16.msra.mxu0 %v16279_v21 }
 0x393   :  { %8680 = vmatprep.subr.bf16.mxu0 %v16280_v28 }
 0x396   :  { %8682 = vmatpush1.bf16.msra.mxu0 %v16281_v20  ;;  %v16290_v20 = vld [vmem:[#allocation32_spill] sm:$0xff] }
 0x397   :  { %8684 = vmatprep.subr.bf16.mxu0 %v16282_v34 }
 0x398   :  { %v7542_v50 = vpop.f32.mrb[24].mxu1 }
 0x399   :  { %v7543_v21 = vpop.f32.mrb[25].mxu1 }
 0x39a   :  { %8686 = vmatpush1.bf16.msra.mxu0 %v16283_v10  ;;  %v7544_v28 = vadd.f32 %v7543_v21, %v7542_v50  ;;  %v16292_v10 = vld [vmem:[#allocation33_spill] sm:$0xff]  ;;  %v16300_v21 = vand.u32 4294901760, %v16237_v42  ;;  %v16307_v42 = vand.u32 4294901760, %v12666_v23 }
 0x39b   :  { %8688 = vmatprep.subr.bf16.mxu0 %v16284_v4  ;;  %v16293_v4 = vld [vmem:[#allocation34_spill] sm:$0xff]  ;;  %v5550_v23 = vld [vmem:[#allocation8 + $0x18] sm:$0xff] }
 0x39c   :  { %v13424_v34 = vadd.f32 %v7544_v28, %v5437_v56  ;;  %v16299_v56 = vand.u32 4294901760, %v12613_v6  ;;  %v16306_v6 = vld [vmem:[#allocation25_spill] sm:$0xff] }
 0x39e   :  { %8690 = vmatpush1.bf16.msra.mxu0 %v16285_v39  ;;  %16291 = vst [vmem:[#allocation53_spill] sm:$0xff] %v13424_v34  ;;  %v16294_v39 = vand.u32 4294901760, %v16233_v22  ;;  %v8711_v28 = vpack.c.bf16 %v16300_v21, %v16299_v56  ;;  %v16301_v34 = vld [vmem:[#allocation178_spill] sm:$0xff]  ;;  %v16302_v22 = vand.u32 4294901760, %v12623_v55 }
 0x39f   :  { %8692 = vmatprep.subr.bf16.mxu0 %v16286_v32  ;;  %v16295_v32 = vand.u32 4294901760, %v16234_v58  ;;  %v16303_v58 = vand.u32 4294901760, %v16240_v2  ;;  %v5548_v2 = vld [vmem:[#allocation8 + $0x8] sm:$0xff] }
 0x3a2   :  { %8694 = vmatpush1.bf16.msra.mxu0 %v16287_v46  ;;  %v8707_v46 = vpack.c.bf16 %v16295_v32, %v16294_v39  ;;  %v8713_v39 = vpack.c.bf16 %v16303_v58, %v16302_v22  ;;  %v16304_v32 = vand.u32 4294901760, %v12656_v24  ;;  %v5565_v22 = vld [vmem:[#allocation8 + $0x90] sm:$0xff]  ;;  %v5566_v24 = vld [vmem:[#allocation8 + $0x98] sm:$0xff]  ;;  %v16310_v58 = vand.u32 4294901760, %v16243_v12 }
 0x3a3   :  { %8696 = vmatprep.subr.bf16.mxu0 %v16288_v41  ;;  %v16297_v41 = vand.u32 4294901760, %v16235_v57  ;;  %v16305_v57 = vand.u32 4294901760, %v12661_v3  ;;  %v16309_v3 = vand.u32 4294901760, %v16242_v54  ;;  %v5552_v54 = vld [vmem:[#allocation8 + $0x28] sm:$0xff] }
 0x3a6   :  { %8698 = vmatpush1.bf16.msra.mxu0 %v16289_v51  ;;  %v16298_v51 = vand.u32 4294901760, %v16236_v26  ;;  %v5563_v26 = vld [vmem:[#allocation8 + $0x80] sm:$0xff] }
 0x3a7   :  { %8700 = vmatprep.subr.bf16.mxu0 %v16290_v20  ;;  %v5651_v55 = vand.u32 4294901760, %v5563_v26  ;;  %v5567_v20 = vld [vmem:[#allocation8 + $0xa0] sm:$0xff] }
 0x3a8   :  { %v8709_v50 = vpack.c.bf16 %v16298_v51, %v16297_v41  ;;  %v5564_v51 = vld [vmem:[#allocation8 + $0x88] sm:$0xff] }
 0x3a9   :  { %v5654_v56 = vand.u32 4294901760, %v5564_v51 }
 0x3aa   :  { %8702 = vmatpush1.bf16.msra.mxu0 %v16292_v10  ;;  %v5549_v10 = vld [vmem:[#allocation8 + $0x10] sm:$0xff] }
 0x3ab   :  { %8704 = vmatprep.subr.bf16.mxu0 %v16293_v4  ;;  %v5660_v4 = vand.u32 4294901760, %v5566_v24 }
 0x3ae   :  { %8706 = vmatpush1.bf16.msra.mxu0 %v16296_v30  ;;  %v8715_v30 = vpack.c.bf16 %v16305_v57, %v16304_v32  ;;  %v8719_v32 = vpack.c.bf16 %v16310_v58, %v16309_v3  ;;  %v5657_v57 = vand.u32 4294901760, %v5565_v22 }
 0x3af   :  { %8708 = vmatprep.subr.bf16.mxu0 %v8707_v46  ;;  %v5547_v46 = vld [vmem:[#allocation8] sm:$0xff] }
 0x3b0   :  { %v5603_v21 = vand.u32 4294901760, %v5547_v46  ;;  %v13471_v3 = vpack.c.bf16 %v5660_v4, %v5657_v57  ;;  %v13473_v58 = vsub.f32 %v5565_v22, %v5657_v57  ;;  %v5554_v57 = vld [vmem:[#allocation8 + $0x38] sm:$0xff] }
 0x3b1   :  { %3412 = vmatmul.mubr.f32.vlgmr.msra.gmra.mrb[2].mxu0 %v16301_v34  ;;  %v16308_v34 = vand.u32 4294901760, %v16241_v52  ;;  %v13459_v52 = vpack.c.bf16 %v5654_v56, %v5651_v55 }
 0x3b2   :  { %8710 = vmatpush1.bf16.msra.mxu0 %v8709_v50  ;;  %3675 = vmatprep.mubr.f32.mxu0 %v16306_v6  ;;  %v5606_v50 = vand.u32 4294901760, %v5548_v2  ;;  %v13465_v16 = vsub.f32 %v5547_v46, %v5603_v21  ;;  %v5551_v6 = vld [vmem:[#allocation8 + $0x20] sm:$0xff]  ;;  %16316 = vst [vmem:[#allocation66_spill] sm:$0xff] %v13471_v3  ;;  %16317 = vst [vmem:[#allocation166_spill] sm:$0xff] %v13473_v58  ;;  %v5612_v46 = vand.u32 4294901760, %v5550_v23 }
 0x3b3   :  { %v8717_v41 = vpack.c.bf16 %v16308_v34, %v16307_v42  ;;  %8712 = vmatprep.subr.bf16.mxu0 %v8711_v28  ;;  %16311 = vst [vmem:[#allocation54_spill] sm:$0xff] %v13459_v52  ;;  %v13461_v42 = vsub.f32 %v5563_v26, %v5651_v55  ;;  %v13463_v34 = vsub.f32 %v5564_v51, %v5654_v56  ;;  %v5568_v28 = vld [vmem:[#allocation8 + $0xa8] sm:$0xff]  ;;  %v5609_v51 = vand.u32 4294901760, %v5549_v10 }
 0x3b4   :  { %16313 = vst [vmem:[#allocation60_spill] sm:$0xff] %v13465_v16  ;;  %v13467_v40 = vpack.c.bf16 %v5606_v50, %v5603_v21  ;;  %v13469_v12 = vsub.f32 %v5548_v2, %v5606_v50  ;;  %9220 = vmatprep.subr.bf16.mxu1 %v13459_v52  ;;  %v13476_v26 = vsub.f32 %v5566_v24, %v5660_v4  ;;  %v5663_v55 = vand.u32 4294901760, %v5567_v20  ;;  %v5570_v50 = vld [vmem:[#allocation8 + $0xb8] sm:$0xff]  ;;  %v5553_v16 = vld [vmem:[#allocation8 + $0x30] sm:$0xff] }
 0x3b5   :  { %16312 = vst [vmem:[#allocation164_spill] sm:$0xff] %v13463_v34  ;;  %v5666_v56 = vand.u32 4294901760, %v5568_v28  ;;  %v5615_v21 = vand.u32 4294901760, %v5551_v6  ;;  %v5618_v2 = vand.u32 4294901760, %v5552_v54  ;;  %v13480_v22 = vpack.c.bf16 %v5612_v46, %v5609_v51 }
 0x3b6   :  { %16314 = vst [vmem:[#allocation61_spill] sm:$0xff] %v13467_v40  ;;  %16315 = vst [vmem:[#allocation65_spill] sm:$0xff] %v13469_v12  ;;  %8714 = vmatpush1.bf16.msra.mxu0 %v8713_v39  ;;  %9222 = vmatpush3.bf16.msra.mxu1 %v13467_v40  ;;  %v5669_v12 = vand.u32 4294901760, %v5569_v63  ;;  %v13482_v39 = vsub.f32 %v5549_v10, %v5609_v51  ;;  %v13484_v4 = vsub.f32 %v5550_v23, %v5612_v46  ;;  %v16322_v51 = vld [vmem:[#allocation99_spill] sm:$0xff] }
 0x3b7   :  { %16318 = vst [vmem:[#allocation71_spill] sm:$0xff] %v13476_v26  ;;  %8716 = vmatprep.subr.bf16.mxu0 %v8715_v30  ;;  %9224 = vmatprep.subr.bf16.mxu1 %v13471_v3  ;;  %v13486_v24 = vsub.f32 %v5567_v20, %v5663_v55  ;;  %v16320_v30 = vand.u32 4294901760, %v12690_v15  ;;  %v16321_v40 = vand.u32 4294901760, %v12695_v60  ;;  %v13492_v26 = vpack.c.bf16 %v5666_v56, %v5663_v55  ;;  %v16324_v15 = vld [vmem:[#allocation103_spill] sm:$0xff]  ;;  %v16331_v55 = vld [vmem:[#allocation68_spill] sm:$0xff] }
 0x3b8   :  { %v13494_v58 = vsub.f32 %v5568_v28, %v5666_v56  ;;  %v13496_v34 = vsub.f32 %v5551_v6, %v5615_v21  ;;  %v13498_v3 = vsub.f32 %v5552_v54, %v5618_v2  ;;  %v5672_v10 = vand.u32 4294901760, %v5570_v50 }
 0x3b9   :  { %16319 = vst [vmem:[#allocation74_spill] sm:$0xff] %v13486_v24  ;;  %v8721_v52 = vpack.c.bf16 %v16321_v40, %v16320_v30  ;;  %v13500_v23 = vsub.f32 %v5569_v63, %v5669_v12  ;;  %v5621_v20 = vand.u32 4294901760, %v5553_v16  ;;  %v16323_v46 = vand.u32 4294901760, %v16322_v51 }
 0x3ba   :  { %8718 = vmatpush1.bf16.msra.mxu0 %v8717_v41  ;;  %v16325_v24 = vand.u32 4294901760, %v16324_v15  ;;  %9226 = vmatpush3.bf16.msra.mxu1 %v13480_v22  ;;  %v13507_v40 = vpack.c.bf16 %v5618_v2, %v5615_v21  ;;  %v5624_v28 = vand.u32 4294901760, %v5554_v57  ;;  %v13510_v6 = vpack.c.bf16 %v5672_v10, %v5669_v12  ;;  %v16334_v2 = vld [vmem:[#allocation115_spill] sm:$0xff] }
 0x3bb   :  { %8720 = vmatprep.subr.bf16.mxu0 %v8719_v32  ;;  %9228 = vmatprep.subr.bf16.mxu1 %v13492_v26  ;;  %v13512_v41 = vsub.f32 %v5570_v50, %v5672_v10  ;;  %v13514_v63 = vsub.f32 %v5553_v16, %v5621_v20  ;;  %v16330_v32 = vand.u32 4294901760, %v12732_v31  ;;  %v16332_v56 = vand.u32 4294901760, %v16331_v55 }
 0x3bc   :  { %v8723_v60 = vpack.c.bf16 %v16325_v24, %v16323_v46  ;;  %16326 = vst [vmem:[#allocation77_spill] sm:$0xff] %v13507_v40  ;;  %16327 = vst [vmem:[#allocation78_spill] sm:$0xff] %v13510_v6  ;;  %v13516_v54 = vsub.f32 %v5554_v57, %v5624_v28  ;;  %v16333_v21 = vand.u32 4294901760, %v16245_v27  ;;  %v16335_v30 = vand.u32 4294901760, %v16334_v2  ;;  %v16340_v57 = vld [vmem:[#allocation150_spill] sm:$0xff]  ;;  %v16342_v46 = vld [vmem:[#allocation156_spill] sm:$0xff] }
 0x3bd   :  { %16328 = vst [vmem:[#allocation81_spill] sm:$0xff] %v13514_v63  ;;  %v8725_v24 = vpack.c.bf16 %v16332_v56, %v16330_v32  ;;  %v13527_v12 = vpack.c.bf16 %v5624_v28, %v5621_v20  ;;  %v16337_v16 = vand.u32 4294901760, %v16247_v62  ;;  %v16341_v10 = vand.u32 4294901760, %v16340_v57 }
 0x3be   :  { %16329 = vst [vmem:[#allocation82_spill] sm:$0xff] %v13516_v54  ;;  %8722 = vmatpush1.bf16.msra.mxu0 %v8721_v52  ;;  %v8727_v51 = vpack.c.bf16 %v16335_v30, %v16333_v21  ;;  %9230 = vmatpush3.bf16.msra.mxu1 %v13507_v40  ;;  %v16338_v52 = vld [vmem:[#allocation121_spill] sm:$0xff]  ;;  %v16343_v27 = vand.u32 4294901760, %v16342_v46  ;;  %v16344_v20 = vand.u32 4294901760, %v16250_v37  ;;  %v16347_v62 = vand.u32 4294901760, %v16252_v53 }
 0x3bf   :  { %8724 = vmatprep.subr.bf16.mxu0 %v8723_v60  ;;  %16336 = vst [vmem:[#allocation87_spill] sm:$0xff] %v13527_v12  ;;  %9232 = vmatprep.subr.bf16.mxu1 %v13510_v6  ;;  %v16339_v31 = vand.u32 4294901760, %v16338_v52  ;;  %v16345_v60 = vld [vmem:[#allocation133_spill] sm:$0xff]  ;;  %v16348_v55 = vand.u32 4294901760, %v12813_v8  ;;  %v16350_v21 = vand.u32 4294901760, %v16183_v36  ;;  %v16351_v30 = vand.u32 4294901760, %v16184_v5 }
 0x3c0   :  { %v8731_v15 = vpack.c.bf16 %v16343_v27, %v16341_v10  ;;  %v16346_v28 = vand.u32 4294901760, %v16345_v60  ;;  %v16352_v37 = vand.u32 4294901760, %v16253_v48  ;;  %v16354_v53 = vand.u32 4294901760, %v16255_v61  ;;  %v16366_v27 = vld [vmem:[#allocation37_spill] sm:$0xff] }
 0x3c1   :  { %v8729_v50 = vpack.c.bf16 %v16339_v31, %v16337_v16  ;;  %v8735_v56 = vpack.c.bf16 %v16348_v55, %v16347_v62  ;;  %v16353_v16 = vand.u32 4294901760, %v16254_v19  ;;  %v16355_v8 = vand.u32 4294901760, %v16256_v44 }
 0x3c2   :  { %8726 = vmatpush1.bf16.msra.mxu0 %v8725_v24  ;;  %9234 = vmatpush3.bf16.msra.mxu1 %v13527_v12  ;;  %v8733_v32 = vpack.c.bf16 %v16346_v28, %v16344_v20  ;;  %v16349_v24 = vand.u32 4294901760, %v16182_v9  ;;  %v16356_v9 = vand.u32 4294901760, %v12885_v47  ;;  %v16357_v36 = vand.u32 4294901760, %v12914_v33  ;;  %v16369_v20 = vld [vmem:[#allocation41_spill] sm:$0xff] }
 0x3c3   :  { %8728 = vmatprep.subr.bf16.mxu0 %v8727_v51  ;;  %v8739_v51 = vpack.c.bf16 %v16352_v37, %v16351_v30  ;;  %v8741_v52 = vpack.c.bf16 %v16354_v53, %v16353_v16  ;;  %v16358_v5 = vand.u32 4294901760, %v12919_v38  ;;  %v16359_v48 = vand.u32 4294901760, %v12932_v17  ;;  %v16386_v53 = vld [vmem:[#allocation50_spill] sm:$0xff] }
 0x3c4   :  { %v8737_v2 = vpack.c.bf16 %v16350_v21, %v16349_v24  ;;  %v8743_v31 = vpack.c.bf16 %v16356_v9, %v16355_v8  ;;  %v16360_v19 = vand.u32 4294901760, %v12981_v11  ;;  %v16361_v61 = vand.u32 4294901760, %v16257_v0  ;;  %v16378_v24 = vld [vmem:[#allocation45_spill] sm:$0xff]  ;;  %v16390_v9 = vld [vmem:[#allocation52_spill] sm:$0xff] }
 0x3c5   :  { %v16362_v44 = vand.u32 4294901760, %v13023_v7  ;;  %v16363_v47 = vand.u32 4294901760, %v13028_v45  ;;  %v16364_v33 = vand.u32 4294901760, %v13049_v13  ;;  %v16365_v38 = vand.u32 4294901760, %v13056_v25 }
 0x3c6   :  { %8730 = vmatpush1.bf16.msra.mxu0 %v8729_v50  ;;  %v8745_v50 = vpack.c.bf16 %v16358_v5, %v16357_v36  ;;  %v8747_v57 = vpack.c.bf16 %v16360_v19, %v16359_v48  ;;  %v16367_v17 = vand.u32 4294901760, %v16366_v27  ;;  %v16368_v11 = vand.u32 4294901760, %v16258_v49  ;;  %v16392_v5 = vld [vmem:[#allocation62_spill] sm:$0xff]  ;;  %v16396_v48 = vld [vmem:[#allocation67_spill] sm:$0xff]  ;;  %v16397_v19 = vld [vmem:[#allocation180_spill] sm:$0xff] }
 0x3c7   :  { %8732 = vmatprep.subr.bf16.mxu0 %v8731_v15  ;;  %v8749_v10 = vpack.c.bf16 %v16362_v44, %v16361_v61  ;;  %v8751_v46 = vpack.c.bf16 %v16364_v33, %v16363_v47  ;;  %v16370_v0 = vand.u32 4294901760, %v16369_v20  ;;  %v16371_v7 = vand.u32 4294901760, %v13114_v35  ;;  %v16399_v61 = vld [vmem:[#allocation75_spill] sm:$0xff]  ;;  %v16400_v44 = vld [vmem:[#allocation80_spill] sm:$0xff]  ;;  %v16402_v47 = vld [vmem:[#allocation86_spill] sm:$0xff] }
 0x3c8   :  { %v8753_v15 = vpack.c.bf16 %v16367_v17, %v16365_v38  ;;  %v16372_v45 = vand.u32 4294901760, %v13145_v14  ;;  %v16373_v13 = vand.u32 4294901760, %v13150_v59  ;;  %v16376_v55 = vand.u32 4294901760, %v13187_v18  ;;  %v16403_v33 = vld [vmem:[#allocation85_spill] sm:$0xff]  ;;  %v16406_v27 = vld [vmem:[#allocation92_spill] sm:$0xff]  ;;  %v16410_v20 = vld [vmem:[#allocation182_spill] sm:$0xff] }
 0x3c9   :  { %v8755_v60 = vpack.c.bf16 %v16370_v0, %v16368_v11  ;;  %v16377_v49 = vand.u32 4294901760, %v13192_v1  ;;  %v16379_v21 = vand.u32 4294901760, %v16378_v24  ;;  %v16382_v14 = vand.u32 4294901760, %v13233_v43  ;;  %v16388_v1 = vld [vmem:[#allocation51_spill] sm:$0xff]  ;;  %v16405_v38 = vld [vmem:[#allocation93_spill] sm:$0xff]  ;;  %v16407_v17 = vld [vmem:[#allocation124_spill] sm:$0xff] }
 0x3ca   :  { %8734 = vmatpush1.bf16.msra.mxu0 %v8733_v32  ;;  %v8757_v28 = vpack.c.bf16 %v16372_v45, %v16371_v7  ;;  %v16374_v32 = vld [vmem:[#allocation42_spill] sm:$0xff]  ;;  %v16383_v59 = vand.u32 4294901760, %v13252_v29  ;;  %v16387_v18 = vand.u32 4294901760, %v16386_v53  ;;  %v16389_v8 = vand.u32 4294901760, %v16388_v1  ;;  %v16393_v43 = vld [vmem:[#allocation171_spill] sm:$0xff]  ;;  %v16409_v11 = vld [vmem:[#allocation128_spill] sm:$0xff] }
 0x3cb   :  { %8736 = vmatprep.subr.bf16.mxu0 %v8735_v56  ;;  %v16375_v25 = vand.u32 4294901760, %v16374_v32  ;;  %v8761_v56 = vpack.c.bf16 %v16377_v49, %v16376_v55  ;;  %v16394_v29 = vld [vmem:[#allocation70_spill] sm:$0xff]  ;;  %v16411_v0 = vld [vmem:[#allocation183_spill] sm:$0xff]  ;;  %v16413_v7 = vld [vmem:[#allocation16_spill] sm:$0xff] }
 0x3cc   :  { %v8765_v37 = vpack.c.bf16 %v16383_v59, %v16382_v14  ;;  %v16414_v45 = vld [vmem:[#allocation157_spill] sm:$0xff]  ;;  %v16421_v49 = vld [vmem:[#allocation31_spill] sm:$0xff]  ;;  %v5573_v1 = vld [vmem:[#allocation8 + $0xd0] sm:$0xff] }
 0x3cd   :  { %v8759_v62 = vpack.c.bf16 %v16375_v25, %v16373_v13  ;;  %v16416_v13 = vld [vmem:[#allocation105_spill] sm:$0xff]  ;;  %v16418_v25 = vld [vmem:[#allocation136_spill] sm:$0xff] }
 0x3ce   :  { %8738 = vmatpush1.bf16.msra.mxu0 %v8737_v2  ;;  %v16380_v2 = vld [vmem:[#allocation46_spill] sm:$0xff]  ;;  %v16417_v32 = vld [vmem:[#allocation125_spill] sm:$0xff] }
 0x3cf   :  { %8740 = vmatprep.subr.bf16.mxu0 %v8739_v51  ;;  %v16381_v35 = vand.u32 4294901760, %v16380_v2  ;;  %v16384_v51 = vld [vmem:[#allocation47_spill] sm:$0xff]  ;;  %v16420_v55 = vld [vmem:[#allocation29_spill] sm:$0xff] }
 0x3d0   :  { %v16385_v16 = vand.u32 4294901760, %v16384_v51  ;;  %v16423_v24 = vld [vmem:[#allocation33_spill] sm:$0xff]  ;;  %v16425_v2 = vld [vmem:[#allocation35_spill] sm:$0xff] }
 0x3d1   :  { %v8763_v30 = vpack.c.bf16 %v16381_v35, %v16379_v21  ;;  %v16424_v21 = vld [vmem:[#allocation34_spill] sm:$0xff]  ;;  %v5556_v51 = vld [vmem:[#allocation8 + $0x48] sm:$0xff] }
 0x3d2   :  { %8742 = vmatpush1.bf16.msra.mxu0 %v8741_v52  ;;  %v8767_v52 = vpack.c.bf16 %v16387_v18, %v16385_v16  ;;  %v5571_v35 = vld [vmem:[#allocation8 + $0xc0] sm:$0xff]  ;;  %v5630_v53 = vand.u32 4294901760, %v5556_v51 }
 0x3d3   :  { %8744 = vmatprep.subr.bf16.mxu0 %v8743_v31  ;;  %v16391_v31 = vand.u32 4294901760, %v16390_v9  ;;  %v5675_v14 = vand.u32 4294901760, %v5571_v35  ;;  %v5681_v9 = vand.u32 4294901760, %v5573_v1 }
 0x3d5   :  { %v8769_v36 = vpack.c.bf16 %v16391_v31, %v16389_v8  ;;  %v5574_v8 = vld [vmem:[#allocation8 + $0xd8] sm:$0xff] }
 0x3d6   :  { %8746 = vmatpush1.bf16.msra.mxu0 %v8745_v50  ;;  %v16395_v50 = vld [vmem:[#allocation25_spill] sm:$0xff]  ;;  %v5684_v31 = vand.u32 4294901760, %v5574_v8 }
 0x3d7   :  { %8748 = vmatprep.subr.bf16.mxu0 %v8747_v57  ;;  %v16398_v57 = vld [vmem:[#allocation76_spill] sm:$0xff] }
 0x3da   :  { %8750 = vmatpush1.bf16.msra.mxu0 %v8749_v10  ;;  %v16401_v10 = vld [vmem:[#allocation79_spill] sm:$0xff] }
 0x3db   :  { %8752 = vmatprep.subr.bf16.mxu0 %v8751_v46  ;;  %v16404_v46 = vld [vmem:[#allocation89_spill] sm:$0xff] }
 0x3de   :  { %8754 = vmatpush1.bf16.msra.mxu0 %v8753_v15  ;;  %v16408_v15 = vld [vmem:[#allocation181_spill] sm:$0xff] }
 0x3df   :  { %8756 = vmatprep.subr.bf16.mxu0 %v8755_v60  ;;  %v16412_v60 = vld [vmem:[#allocation184_spill] sm:$0xff] }
 0x3e2   :  { %8758 = vmatpush1.bf16.msra.mxu0 %v8757_v28  ;;  %v16415_v28 = vld [vmem:[#allocation101_spill] sm:$0xff] }
 0x3e3   :  { %8760 = vmatprep.subr.bf16.mxu0 %v8759_v62  ;;  %v16419_v62 = vld [vmem:[#allocation27_spill] sm:$0xff] }
 0x3e6   :  { %8762 = vmatpush1.bf16.msra.mxu0 %v8761_v56  ;;  %v16422_v56 = vld [vmem:[#allocation32_spill] sm:$0xff] }
 0x3e7   :  { %8764 = vmatprep.subr.bf16.mxu0 %v8763_v30  ;;  %v5572_v30 = vld [vmem:[#allocation8 + $0xc8] sm:$0xff] }
 0x3e8   :  { %v5678_v59 = vand.u32 4294901760, %v5572_v30 }
 0x3ea   :  { %8766 = vmatpush1.bf16.msra.mxu0 %v8765_v37  ;;  %v5555_v37 = vld [vmem:[#allocation8 + $0x40] sm:$0xff]  ;;  %v13650_v18 = vpack.c.bf16 %v5678_v59, %v5675_v14 }
 0x3eb   :  { %8768 = vmatprep.subr.bf16.mxu0 %v8767_v52  ;;  %v5627_v16 = vand.u32 4294901760, %v5555_v37 }
 0x3ec   :  { %16426 = vst [vmem:[#allocation88_spill] sm:$0xff] %v13650_v18  ;;  %9236 = vmatprep.subr.bf16.mxu1 %v13650_v18 }
 0x3ed   :  { %v13652_v52 = vpack.c.bf16 %v5630_v53, %v5627_v16 }
 0x3ee   :  { %8770 = vmatpush1.bf16.msra.mxu0 %v8769_v36  ;;  %v5557_v36 = vld [vmem:[#allocation8 + $0x50] sm:$0xff] }
 0x3ef   :  { %8772 = vmatprep.subr.bf16.mxu0 %v16392_v5  ;;  %16427 = vst [vmem:[#allocation90_spill] sm:$0xff] %v13652_v52  ;;  %v5558_v5 = vld [vmem:[#allocation8 + $0x58] sm:$0xff]  ;;  %9238 = vmatpush3.bf16.msra.mxu1 %v13652_v52 }
 0x3f1   :  { %3677 = vmatmul.mubr.f32.vlgmr.msra.gmra.mrb[2].mxu0 %v16393_v43 }
 0x3f2   :  { %8774 = vmatpush1.bf16.msra.mxu0 %v16394_v29  ;;  %3812 = vmatprep.mubr.f32.mxu0 %v16395_v50  ;;  %v5636_v29 = vand.u32 4294901760, %v5558_v5  ;;  %v13656_v50 = vpack.c.bf16 %v5684_v31, %v5681_v9 }
 0x3f3   :  { %8776 = vmatprep.subr.bf16.mxu0 %v16396_v48 }
 0x3f4   :  { %16428 = vst [vmem:[#allocation91_spill] sm:$0xff] %v13656_v50  ;;  %9240 = vmatprep.subr.bf16.mxu1 %v13656_v50 }
 0x3f6   :  { %8778 = vmatpush1.bf16.msra.mxu0 %v16397_v19  ;;  %v5575_v19 = vld [vmem:[#allocation8 + $0xe0] sm:$0xff] }
 0x3f7   :  { %8780 = vmatprep.subr.bf16.mxu0 %v16398_v57  ;;  %v5576_v57 = vld [vmem:[#allocation8 + $0xe8] sm:$0xff] }
 0x3fa   :  { %8782 = vmatpush1.bf16.msra.mxu0 %v16399_v61  ;;  %v5687_v61 = vand.u32 4294901760, %v5575_v19 }
 0x3fb   :  { %8784 = vmatprep.subr.bf16.mxu0 %v16400_v44  ;;  %v5690_v44 = vand.u32 4294901760, %v5576_v57 }
 0x3fe   :  { %8786 = vmatpush1.bf16.msra.mxu0 %v16401_v10  ;;  %v5559_v10 = vld [vmem:[#allocation8 + $0x60] sm:$0xff] }
 0x3ff   :  { %8788 = vmatprep.subr.bf16.mxu0 %v16402_v47  ;;  %v5560_v47 = vld [vmem:[#allocation8 + $0x68] sm:$0xff] }
 0x402   :  { %8790 = vmatpush1.bf16.msra.mxu0 %v16403_v33  ;;  %v5639_v33 = vand.u32 4294901760, %v5559_v10 }
 0x403   :  { %8792 = vmatprep.subr.bf16.mxu0 %v16404_v46  ;;  %v5642_v46 = vand.u32 4294901760, %v5560_v47 }
 0x406   :  { %8794 = vmatpush1.bf16.msra.mxu0 %v16405_v38  ;;  %v13662_v38 = vpack.c.bf16 %v5690_v44, %v5687_v61 }
 0x407   :  { %8796 = vmatprep.subr.bf16.mxu0 %v16406_v27  ;;  %v13664_v27 = vpack.c.bf16 %v5642_v46, %v5639_v33 }
 0x408   :  { %16430 = vst [vmem:[#allocation123_spill] sm:$0xff] %v13662_v38 }
 0x409   :  { %16431 = vst [vmem:[#allocation126_spill] sm:$0xff] %v13664_v27 }
 0x40a   :  { %8798 = vmatpush1.bf16.msra.mxu0 %v16407_v17  ;;  %v5577_v17 = vld [vmem:[#allocation8 + $0xf0] sm:$0xff] }
 0x40b   :  { %8800 = vmatprep.subr.bf16.mxu0 %v16408_v15  ;;  %v5578_v15 = vld [vmem:[#allocation8 + $0xf8] sm:$0xff] }
 0x40e   :  { %8802 = vmatpush1.bf16.msra.mxu0 %v16409_v11  ;;  %v5693_v11 = vand.u32 4294901760, %v5577_v17 }
 0x40f   :  { %8804 = vmatprep.subr.bf16.mxu0 %v16410_v20  ;;  %v5696_v20 = vand.u32 4294901760, %v5578_v15 }
 0x412   :  { %8806 = vmatpush1.bf16.msra.mxu0 %v16411_v0  ;;  %v15040_v0 = vand.u32 4294901760, %v13461_v42 }
 0x413   :  { %8808 = vmatprep.subr.bf16.mxu0 %v16412_v60  ;;  %v16432_v60 = vld [vmem:[#allocation164_spill] sm:$0xff] }
 0x416   :  { %8810 = vmatpush1.bf16.msra.mxu0 %v16413_v7  ;;  %v15037_v7 = vand.u32 4294901760, %v16432_v60 }
 0x417   :  { %8812 = vmatprep.subr.bf16.mxu0 %v16414_v45  ;;  %v13669_v45 = vsub.f32 %v5571_v35, %v5675_v14  ;;  %v13690_v35 = vsub.f32 %v5559_v10, %v5639_v33  ;;  %v13694_v14 = vpack.c.bf16 %v5696_v20, %v5693_v11 }
 0x419   :  { %16433 = vst [vmem:[#allocation127_spill] sm:$0xff] %v13669_v45  ;;  %16443 = vst [vmem:[#allocation148_spill] sm:$0xff] %v13690_v35 }
 0x41a   :  { %8814 = vmatpush1.bf16.msra.mxu0 %v16415_v28  ;;  %v13671_v28 = vsub.f32 %v5572_v30, %v5678_v59  ;;  %v13692_v30 = vsub.f32 %v5560_v47, %v5642_v46  ;;  %16445 = vst [vmem:[#allocation154_spill] sm:$0xff] %v13694_v14  ;;  %v13696_v59 = vsub.f32 %v5577_v17, %v5693_v11 }
 0x41b   :  { %8816 = vmatprep.subr.bf16.mxu0 %v16416_v13  ;;  %v13673_v13 = vsub.f32 %v5555_v37, %v5627_v16  ;;  %v13698_v37 = vsub.f32 %v5578_v15, %v5696_v20  ;;  %v15033_v20 = vand.u32 4294901760, %v13482_v39 }
 0x41c   :  { %16434 = vst [vmem:[#allocation130_spill] sm:$0xff] %v13671_v28  ;;  %16444 = vst [vmem:[#allocation153_spill] sm:$0xff] %v13692_v30 }
 0x41d   :  { %16435 = vst [vmem:[#allocation131_spill] sm:$0xff] %v13673_v13  ;;  %16446 = vst [vmem:[#allocation83_spill] sm:$0xff] %v13696_v59 }
 0x41e   :  { %8818 = vmatpush1.bf16.msra.mxu0 %v16417_v32  ;;  %v13675_v32 = vsub.f32 %v5556_v51, %v5630_v53  ;;  %16447 = vst [vmem:[#allocation160_spill] sm:$0xff] %v13698_v37  ;;  %v5830_v53 = vsub.f32 %v13461_v42, %v15040_v0 }
 0x41f   :  { %8820 = vmatprep.subr.bf16.mxu0 %v16418_v25  ;;  %v5561_v25 = vld [vmem:[#allocation8 + $0x70] sm:$0xff] }
 0x420   :  { %16436 = vst [vmem:[#allocation134_spill] sm:$0xff] %v13675_v32  ;;  %v5645_v51 = vand.u32 4294901760, %v5561_v25  ;;  %v5831_v10 = vand.u32 4294901760, %v5830_v53 }
 0x422   :  { %8822 = vmatpush1.bf16.msra.mxu0 %v16419_v62  ;;  %v13678_v62 = vsub.f32 %v5573_v1, %v5681_v9  ;;  %v5837_v1 = vsub.f32 %v16432_v60, %v15037_v7 }
 0x423   :  { %8824 = vmatprep.subr.bf16.mxu0 %v16420_v55  ;;  %v13680_v55 = vsub.f32 %v5574_v8, %v5684_v31  ;;  %v16448_v8 = vld [vmem:[#allocation60_spill] sm:$0xff]  ;;  %v13708_v31 = vsub.f32 %v5561_v25, %v5645_v51  ;;  %v15034_v25 = vand.u32 4294901760, %v13484_v4 }
 0x424   :  { %16437 = vst [vmem:[#allocation135_spill] sm:$0xff] %v13678_v62  ;;  %v15032_v9 = vand.u32 4294901760, %v16448_v8  ;;  %v5838_v47 = vand.u32 4294901760, %v5837_v1 }
 0x425   :  { %16438 = vst [vmem:[#allocation138_spill] sm:$0xff] %v13680_v55  ;;  %16449 = vst [vmem:[#allocation17_spill] sm:$0xff] %v13708_v31 }
 0x426   :  { %8826 = vmatpush1.bf16.msra.mxu0 %v16421_v49  ;;  %v5718_v33 = vsub.f32 %v16448_v8, %v15032_v9  ;;  %v9251_v11 = vpack.c.bf16 %v5838_v47, %v5831_v10  ;;  %v15036_v47 = vand.u32 4294901760, %v13494_v58 }
 0x427   :  { %8828 = vmatprep.subr.bf16.mxu0 %v16422_v56  ;;  %v13684_v56 = vsub.f32 %v5558_v5, %v5636_v29 }
 0x429   :  { %16440 = vst [vmem:[#allocation142_spill] sm:$0xff] %v13684_v56 }
 0x42a   :  { %8830 = vmatpush1.bf16.msra.mxu0 %v16423_v24  ;;  %v5562_v24 = vld [vmem:[#allocation8 + $0x78] sm:$0xff] }
 0x42b   :  { %8832 = vmatprep.subr.bf16.mxu0 %v16424_v21  ;;  %v13686_v21 = vsub.f32 %v5575_v19, %v5687_v61  ;;  %v5648_v16 = vand.u32 4294901760, %v5562_v24  ;;  %v16452_v19 = vld [vmem:[#allocation71_spill] sm:$0xff] }
 0x42d   :  { %16441 = vst [vmem:[#allocation143_spill] sm:$0xff] %v13686_v21  ;;  %v13713_v61 = vpack.c.bf16 %v5648_v16, %v5645_v51 }
 0x42e   :  { %8834 = vmatpush1.bf16.msra.mxu0 %v16425_v2  ;;  %v13688_v2 = vsub.f32 %v5576_v57, %v5690_v44  ;;  %v15031_v57 = vand.u32 4294901760, %v16452_v19  ;;  %v13715_v44 = vsub.f32 %v5562_v24, %v5648_v16  ;;  %v16455_v24 = vld [vmem:[#allocation74_spill] sm:$0xff]  ;;  %v5719_v16 = vand.u32 4294901760, %v5718_v33 }
 0x42f   :  { %16453 = vst [vmem:[#allocation94_spill] sm:$0xff] %v13713_v61  ;;  %v15035_v51 = vand.u32 4294901760, %v16455_v24 }
 0x430   :  { %16442 = vst [vmem:[#allocation147_spill] sm:$0xff] %v13688_v2  ;;  %16454 = vst [vmem:[#allocation161_spill] sm:$0xff] %v13715_v44  ;;  %v5851_v15 = vsub.f32 %v16452_v19, %v15031_v57  ;;  %v5739_v57 = vsub.f32 %v13484_v4, %v15034_v25  ;;  %v5865_v25 = vsub.f32 %v13494_v58, %v15036_v47 }
 0x431   :  { %3814 = vmatmul.mubr.f32.vlgmr.msra.gmra.mrb[2].mxu0 %v16393_v43  ;;  %v5633_v43 = vand.u32 4294901760, %v5557_v36  ;;  %v5858_v10 = vsub.f32 %v16455_v24, %v15035_v51 }
 0x433   :  { %v13658_v48 = vpack.c.bf16 %v5636_v29, %v5633_v43  ;;  %v13682_v49 = vsub.f32 %v5557_v36, %v5633_v43  ;;  %v16450_v36 = vld [vmem:[#allocation65_spill] sm:$0xff]  ;;  %v16451_v43 = vld [vmem:[#allocation166_spill] sm:$0xff] }
 0x434   :  { %v15029_v5 = vand.u32 4294901760, %v16450_v36  ;;  %v15030_v29 = vand.u32 4294901760, %v16451_v43 }
 0x435   :  { %16429 = vst [vmem:[#allocation122_spill] sm:$0xff] %v13658_v48  ;;  %9242 = vmatpush3.bf16.msra.mxu1 %v13658_v48  ;;  %16439 = vst [vmem:[#allocation139_spill] sm:$0xff] %v13682_v49  ;;  %v15068_v48 = vand.u32 4294901760, %v13688_v2 }
 0x436   :  { %9244 = vmatprep.subr.bf16.mxu1 %v13662_v38  ;;  %v5725_v46 = vsub.f32 %v16450_v36, %v15029_v5  ;;  %v5844_v17 = vsub.f32 %v16451_v43, %v15030_v29  ;;  %v5852_v5 = vand.u32 4294901760, %v5851_v15  ;;  %v5732_v29 = vsub.f32 %v13482_v39, %v15033_v20 }
 0x437   :  { %v5859_v20 = vand.u32 4294901760, %v5858_v10  ;;  %v15048_v10 = vand.u32 4294901760, %v13516_v54 }
 0x438   :  { %v5726_v53 = vand.u32 4294901760, %v5725_v46  ;;  %v5845_v1 = vand.u32 4294901760, %v5844_v17  ;;  %v15038_v46 = vand.u32 4294901760, %v13496_v34  ;;  %v15039_v17 = vand.u32 4294901760, %v13498_v3 }
 0x439   :  { %9246 = vmatpush3.bf16.msra.mxu1 %v13664_v27  ;;  %v5733_v15 = vand.u32 4294901760, %v5732_v29  ;;  %v5866_v29 = vand.u32 4294901760, %v5865_v25 }
 0x43a   :  { %9248 = vmatprep.subr.bf16.mxu1 %v13694_v14  ;;  %v13743_v9 = vpack.c.bf16 %v5726_v53, %v5719_v16  ;;  %v13745_v33 = vpack.c.bf16 %v5852_v5, %v5845_v1  ;;  %v5746_v51 = vsub.f32 %v13496_v34, %v15038_v46  ;;  %v5753_v5 = vsub.f32 %v13498_v3, %v15039_v17 }
 0x43b   :  { %v15041_v16 = vand.u32 4294901760, %v13500_v23  ;;  %v15046_v53 = vand.u32 4294901760, %v13512_v41  ;;  %v13770_v0 = vpack.c.bf16 %v5866_v29, %v5859_v20  ;;  %v15051_v29 = vand.u32 4294901760, %v13673_v13 }
 0x43c   :  { %v5747_v47 = vand.u32 4294901760, %v5746_v51  ;;  %v5754_v7 = vand.u32 4294901760, %v5753_v5  ;;  %v15049_v51 = vand.u32 4294901760, %v13669_v45 }
 0x43d   :  { %9250 = vmatpush3.bf16.msra.mxu1 %v13713_v61  ;;  %v5872_v46 = vsub.f32 %v13500_v23, %v15041_v16  ;;  %v5879_v17 = vsub.f32 %v13512_v41, %v15046_v53  ;;  %v15050_v61 = vand.u32 4294901760, %v13671_v28 }
 0x43e   :  { %9252 = vmatprep.subr.bf16.mxu1 %v9251_v11  ;;  %v5740_v11 = vand.u32 4294901760, %v5739_v57  ;;  %v15047_v57 = vand.u32 4294901760, %v13514_v63  ;;  %v5886_v20 = vsub.f32 %v13669_v45, %v15049_v51 }
 0x43f   :  { %v5873_v5 = vand.u32 4294901760, %v5872_v46  ;;  %v5880_v16 = vand.u32 4294901760, %v5879_v17 }
 0x440   :  { %v13760_v1 = vpack.c.bf16 %v5740_v11, %v5733_v15  ;;  %v5760_v25 = vsub.f32 %v13514_v63, %v15047_v57  ;;  %v5767_v15 = vsub.f32 %v13516_v54, %v15048_v10  ;;  %v13779_v11 = vpack.c.bf16 %v5754_v7, %v5747_v47 }
 0x441   :  { %v13786_v57 = vpack.c.bf16 %v5880_v16, %v5873_v5  ;;  %v5893_v10 = vsub.f32 %v13671_v28, %v15050_v61  ;;  %v15054_v7 = vand.u32 4294901760, %v13675_v32  ;;  %v15057_v47 = vand.u32 4294901760, %v13678_v62 }
 0x442   :  { %v5761_v14 = vand.u32 4294901760, %v5760_v25  ;;  %v5768_v53 = vand.u32 4294901760, %v5767_v15  ;;  %v5887_v17 = vand.u32 4294901760, %v5886_v20  ;;  %v5774_v25 = vsub.f32 %v13673_v13, %v15051_v29 }
 0x443   :  { %v15060_v15 = vand.u32 4294901760, %v13680_v55  ;;  %v5894_v51 = vand.u32 4294901760, %v5893_v10  ;;  %v5781_v16 = vsub.f32 %v13675_v32, %v15054_v7  ;;  %v5900_v5 = vsub.f32 %v13678_v62, %v15057_v47 }
 0x444   :  { %v13793_v46 = vpack.c.bf16 %v5768_v53, %v5761_v14  ;;  %v15065_v61 = vand.u32 4294901760, %v13682_v49  ;;  %v5775_v14 = vand.u32 4294901760, %v5774_v25  ;;  %v15063_v20 = vand.u32 4294901760, %v13684_v56 }
 0x445   :  { %v5907_v53 = vsub.f32 %v13680_v55, %v15060_v15  ;;  %v13810_v29 = vpack.c.bf16 %v5894_v51, %v5887_v17  ;;  %v5782_v10 = vand.u32 4294901760, %v5781_v16  ;;  %v5901_v27 = vand.u32 4294901760, %v5900_v5 }
 0x446   :  { %v5788_v7 = vsub.f32 %v13682_v49, %v15065_v61  ;;  %v5795_v47 = vsub.f32 %v13684_v56, %v15063_v20  ;;  %v15064_v25 = vand.u32 4294901760, %v13686_v21  ;;  %v15069_v51 = vand.u32 4294901760, %v13690_v35 }
 0x447   :  { %v5908_v38 = vand.u32 4294901760, %v5907_v53  ;;  %v13820_v15 = vpack.c.bf16 %v5782_v10, %v5775_v14  ;;  %v15070_v17 = vand.u32 4294901760, %v13692_v30  ;;  %v5921_v20 = vsub.f32 %v13688_v2, %v15068_v48 }
 0x448   :  { %v5789_v50 = vand.u32 4294901760, %v5788_v7  ;;  %v5796_v5 = vand.u32 4294901760, %v5795_v47  ;;  %v5914_v53 = vsub.f32 %v13686_v21, %v15064_v25  ;;  %v5802_v14 = vsub.f32 %v13690_v35, %v15069_v51 }
 0x449   :  { %v13824_v16 = vpack.c.bf16 %v5908_v38, %v5901_v27  ;;  %v5809_v7 = vsub.f32 %v13692_v30, %v15070_v17  ;;  %v15075_v38 = vand.u32 4294901760, %v13696_v59  ;;  %v15082_v27 = vand.u32 4294901760, %v13698_v37 }
 0x44a   :  { %v13840_v47 = vpack.c.bf16 %v5796_v5, %v5789_v50  ;;  %v5915_v10 = vand.u32 4294901760, %v5914_v53  ;;  %v5922_v25 = vand.u32 4294901760, %v5921_v20  ;;  %v15080_v61 = vand.u32 4294901760, %v13708_v31 }
 0x44b   :  { %v5803_v52 = vand.u32 4294901760, %v5802_v14  ;;  %v5810_v48 = vand.u32 4294901760, %v5809_v7  ;;  %v5928_v51 = vsub.f32 %v13696_v59, %v15075_v38  ;;  %v5935_v17 = vsub.f32 %v13698_v37, %v15082_v27 }
 0x44c   :  { %v9275_v18 = vpack.c.bf16 %v5922_v25, %v5915_v10  ;;  %v5816_v50 = vsub.f32 %v13708_v31, %v15080_v61  ;;  %v15081_v5 = vand.u32 4294901760, %v13715_v44  ;;  %v9283_v25 = vpack.c.bf16 %v16432_v60, %v13461_v42 }
 0x44d   :  { %v9277_v20 = vpack.c.bf16 %v5810_v48, %v5803_v52  ;;  %v5929_v53 = vand.u32 4294901760, %v5928_v51  ;;  %v5936_v12 = vand.u32 4294901760, %v5935_v17  ;;  %v9285_v10 = vpack.c.bf16 %v16450_v36, %v16448_v8 }
 0x44e   :  { %v5817_v14 = vand.u32 4294901760, %v5816_v50  ;;  %v5823_v7 = vsub.f32 %v13715_v44, %v15081_v5  ;;  %v9287_v61 = vpack.c.bf16 %v16452_v19, %v16451_v43  ;;  %v9289_v52 = vpack.c.bf16 %v13484_v4, %v13482_v39 }
 0x44f   :  { %v9279_v38 = vpack.c.bf16 %v5936_v12, %v5929_v53  ;;  %v9291_v48 = vpack.c.bf16 %v13494_v58, %v16455_v24  ;;  %v9293_v12 = vpack.c.bf16 %v13498_v3, %v13496_v34  ;;  %v9297_v51 = vpack.c.bf16 %v13516_v54, %v13514_v63 }
 0x450   :  { %v5824_v6 = vand.u32 4294901760, %v5823_v7  ;;  %v9299_v17 = vpack.c.bf16 %v13671_v28, %v13669_v45  ;;  %v9301_v50 = vpack.c.bf16 %v13675_v32, %v13673_v13  ;;  %v9303_v53 = vpack.c.bf16 %v13680_v55, %v13678_v62  ;;  %v9628_v32 = vld [vmem:[%s14314_s4] sm:$0x7]  ;;  %v16456_v55 = vld [vmem:[#allocation186_spill] sm:$0xff] }
 0x451   :  { %v9307_v7 = vpack.c.bf16 %v13688_v2, %v13686_v21  ;;  %v9309_v5 = vpack.c.bf16 %v13692_v30, %v13690_v35  ;;  %v9311_v27 = vpack.c.bf16 %v13698_v37, %v13696_v59  ;;  %v9313_v28 = vpack.c.bf16 %v13715_v44, %v13708_v31 }
 0x452   :  { %v9281_v40 = vpack.c.bf16 %v5824_v6, %v5817_v14  ;;  %v9295_v6 = vpack.c.bf16 %v13512_v41, %v13500_v23  ;;  %v9305_v14 = vpack.c.bf16 %v13684_v56, %v13682_v49  ;;  %v16457_v62 = vsub.s32 0, %v16456_v55 }
 0x453   :  { %v16458_v56 = vsub.s32 1, %v16456_v55 }
 0x454   :  { %v1240_v13 = vrot.slane %v9628_v32, %v16457_v62 }
 0x455   :  { %v1244_v49 = vrot.slane %v9628_v32, %v16458_v56  ;;  %v16464_v56 = vld [vmem:[#allocation87_spill] sm:$0xff] }
 0x504   :  { %v3815_v2 = vpop.f32.mrb[2].mxu0 }
 0x505   :  { %v9559_v21 = vadd.f32 %v3815_v2, %v1240_v13  ;;  %v3817_v45 = vpop.f32.mrb[3].mxu0  ;;  %v16467_v2 = vld [vmem:[#allocation91_spill] sm:$0xff] }
 0x506   :  { %v9560_v30 = vadd.f32 %v3817_v45, %v1244_v49  ;;  %v16463_v49 = vld [vmem:[#allocation78_spill] sm:$0xff] }
 0x507   :  { %v5544_v35 = vmax.f32 %v9559_v21, 0.0  ;;  %v16466_v21 = vld [vmem:[#allocation90_spill] sm:$0xff] }
 0x508   :  { %v5545_v54 = vmax.f32 %v9560_v30, 0.0  ;;  %v16470_v30 = vld [vmem:[#allocation126_spill] sm:$0xff] }
 0x509   :  { %v13895_v37 = vand.u32 4294901760, %v5544_v35 }
 0x50a   :  { %v13897_v59 = vand.u32 4294901760, %v5545_v54 }
 0x50b   :  { %v13900_v44 = vsub.f32 %v5544_v35, %v13895_v37  ;;  %v16468_v35 = vld [vmem:[#allocation122_spill] sm:$0xff] }
 0x50c   :  { %v5699_v31 = vsub.f32 %v5545_v54, %v13897_v59  ;;  %v16460_v54 = vld [vmem:[#allocation61_spill] sm:$0xff] }
 0x50d   :  { %v5706_v62 = vand.u32 4294901760, %v13900_v44 }
 0x50e   :  { %v5700_v63 = vand.u32 4294901760, %v5699_v31 }
 0x50f   :  { %v5707_v13 = vsub.f32 %v13900_v44, %v5706_v62 }
 0x510   :  { %v5701_v32 = vsub.f32 %v5699_v31, %v5700_v63 }
 0x511   :  { %v5708_v55 = vand.u32 4294901760, %v5707_v13 }
 0x512   :  { %v5702_v45 = vand.u32 4294901760, %v5701_v32  ;;  %v16505_v32 = vld [vmem:[#allocation142_spill] sm:$0xff] }
 0x514   :  { %5703 = vmatprep.mubr.f32.mxu1 %v5702_v45  ;;  %v16506_v45 = vand.u32 4294901760, %v16505_v32 }
 0x515   :  { %5709 = vmatmul.mubr.f32.vlgmr.msra.gmra.mrb[26].mxu1 %v5708_v55 }
 0x516   :  { %9254 = vmatpush3.bf16.msra.mxu1 %v13743_v9  ;;  %5939 = vmatprep.mubr.f32.mxu1 %v13897_v59  ;;  %v16471_v9 = vld [vmem:[#allocation154_spill] sm:$0xff] }
 0x517   :  { %9256 = vmatprep.subr.bf16.mxu1 %v13745_v33 }
 0x51a   :  { %9258 = vmatpush3.bf16.msra.mxu1 %v13760_v1  ;;  %v16474_v1 = vld [vmem:[#allocation94_spill] sm:$0xff] }
 0x51b   :  { %9260 = vmatprep.subr.bf16.mxu1 %v13770_v0  ;;  %v16462_v0 = vld [vmem:[#allocation77_spill] sm:$0xff] }
 0x51e   :  { %9262 = vmatpush3.bf16.msra.mxu1 %v13779_v11  ;;  %v16476_v11 = vand.u32 4294901760, %v16450_v36  ;;  %v16481_v36 = vand.u32 4294901760, %v16455_v24 }
 0x51f   :  { %9264 = vmatprep.subr.bf16.mxu1 %v13786_v57  ;;  %v16475_v57 = vand.u32 4294901760, %v16448_v8 }
 0x522   :  { %9266 = vmatpush3.bf16.msra.mxu1 %v13793_v46  ;;  %v16477_v46 = vand.u32 4294901760, %v16451_v43 }
 0x523   :  { %9268 = vmatprep.subr.bf16.mxu1 %v13810_v29  ;;  %v9349_v29 = vpack.c.bf16 %v16476_v11, %v16475_v57 }
 0x526   :  { %9270 = vmatpush3.bf16.msra.mxu1 %v13820_v15  ;;  %v16478_v15 = vand.u32 4294901760, %v16452_v19  ;;  %v16483_v19 = vand.u32 4294901760, %v13496_v34 }
 0x527   :  { %9272 = vmatprep.subr.bf16.mxu1 %v13824_v16 }
 0x528   :  { %v9351_v16 = vpack.c.bf16 %v16478_v15, %v16477_v46  ;;  %v16513_v15 = vld [vmem:[#allocation153_spill] sm:$0xff] }
 0x52a   :  { %9274 = vmatpush3.bf16.msra.mxu1 %v13840_v47  ;;  %v16485_v47 = vand.u32 4294901760, %v13500_v23 }
 0x52b   :  { %9276 = vmatprep.subr.bf16.mxu1 %v9275_v18  ;;  %v16461_v18 = vld [vmem:[#allocation66_spill] sm:$0xff] }
 0x52e   :  { %9278 = vmatpush3.bf16.msra.mxu1 %v9277_v20 }
 0x52f   :  { %9280 = vmatprep.subr.bf16.mxu1 %v9279_v38  ;;  %v16482_v38 = vand.u32 4294901760, %v13494_v58  ;;  %v16491_v58 = vld [vmem:[#allocation127_spill] sm:$0xff] }
 0x531   :  { %v9355_v43 = vpack.c.bf16 %v16482_v38, %v16481_v36  ;;  %v16517_v36 = vld [vmem:[#allocation160_spill] sm:$0xff] }
 0x532   :  { %9282 = vmatpush3.bf16.msra.mxu1 %v9281_v40  ;;  %v16459_v40 = vld [vmem:[#allocation54_spill] sm:$0xff]  ;;  %v16518_v38 = vand.u32 4294901760, %v16517_v36 }
 0x533   :  { %9284 = vmatprep.subr.bf16.mxu1 %v9283_v25  ;;  %v16489_v25 = vld [vmem:[#allocation82_spill] sm:$0xff] }
 0x534   :  { %v16490_v24 = vand.u32 4294901760, %v16489_v25  ;;  %v5587_v25 = vld [vmem:[#allocation8 + $0x140] sm:$0xff] }
 0x535   :  { %5941 = vmatmul.mubr.f32.vlgmr.msra.gmra.mrb[28].mxu1 %v13895_v37 }
 0x536   :  { %9286 = vmatpush3.bf16.msra.mxu1 %v9285_v10  ;;  %6076 = vmatprep.mubr.f32.mxu1 %v5699_v31  ;;  %v16472_v31 = vand.u32 4294901760, %v13461_v42  ;;  %v16479_v42 = vand.u32 4294901760, %v13482_v39  ;;  %v16486_v39 = vand.u32 4294901760, %v13512_v41  ;;  %v16499_v41 = vld [vmem:[#allocation135_spill] sm:$0xff] }
 0x537   :  { %9288 = vmatprep.subr.bf16.mxu1 %v9287_v61  ;;  %v16473_v61 = vand.u32 4294901760, %v16432_v60  ;;  %v16480_v60 = vand.u32 4294901760, %v13484_v4  ;;  %v16487_v4 = vld [vmem:[#allocation81_spill] sm:$0xff] }
 0x538   :  { %v16488_v20 = vand.u32 4294901760, %v16487_v4 }
 0x539   :  { %v9347_v33 = vpack.c.bf16 %v16473_v61, %v16472_v31  ;;  %v9353_v8 = vpack.c.bf16 %v16480_v60, %v16479_v42  ;;  %v16507_v31 = vld [vmem:[#allocation143_spill] sm:$0xff] }
 0x53a   :  { %9290 = vmatpush3.bf16.msra.mxu1 %v9289_v52  ;;  %v9361_v10 = vpack.c.bf16 %v16490_v24, %v16488_v20  ;;  %v16492_v52 = vand.u32 4294901760, %v16491_v58  ;;  %v16508_v61 = vand.u32 4294901760, %v16507_v31  ;;  %v16515_v60 = vld [vmem:[#allocation83_spill] sm:$0xff]  ;;  %v6489_v58 = vand.u32 4294901760, %v5587_v25 }
 0x53b   :  { %9292 = vmatprep.subr.bf16.mxu1 %v9291_v48  ;;  %v16493_v48 = vld [vmem:[#allocation130_spill] sm:$0xff]  ;;  %v5588_v24 = vld [vmem:[#allocation8 + $0x148] sm:$0xff] }
 0x53c   :  { %v16494_v34 = vand.u32 4294901760, %v16493_v48  ;;  %v16524_v48 = vld [vmem:[#allocation53_spill] sm:$0xff] }
 0x53e   :  { %9294 = vmatpush3.bf16.msra.mxu1 %v9293_v12  ;;  %v9363_v12 = vpack.c.bf16 %v16494_v34, %v16492_v52  ;;  %v6492_v52 = vand.u32 4294901760, %v5588_v24  ;;  %v5546_v34 = vmax.f32 %v16524_v48, 0.0 }
 0x53f   :  { %9296 = vmatprep.subr.bf16.mxu1 %v9295_v6 }
 0x542   :  { %9298 = vmatpush3.bf16.msra.mxu1 %v9297_v51  ;;  %v16497_v51 = vld [vmem:[#allocation134_spill] sm:$0xff] }
 0x543   :  { %9300 = vmatprep.subr.bf16.mxu1 %v9299_v17  ;;  %v16498_v23 = vand.u32 4294901760, %v16497_v51 }
 0x546   :  { %9302 = vmatpush3.bf16.msra.mxu1 %v9301_v50  ;;  %v16500_v50 = vand.u32 4294901760, %v16499_v41 }
 0x547   :  { %9304 = vmatprep.subr.bf16.mxu1 %v9303_v53  ;;  %v16501_v53 = vld [vmem:[#allocation138_spill] sm:$0xff] }
 0x54a   :  { %9306 = vmatpush3.bf16.msra.mxu1 %v9305_v14  ;;  %v16502_v14 = vand.u32 4294901760, %v16501_v53  ;;  %v14051_v53 = vld [vmem:[#allocation8 + $0x160] sm:$0xff] }
 0x54b   :  { %9308 = vmatprep.subr.bf16.mxu1 %v9307_v7 }
 0x54c   :  { %v9367_v7 = vpack.c.bf16 %v16502_v14, %v16500_v50  ;;  %v14048_v50 = vand.u32 4294901760, %v5546_v34  ;;  %v14053_v14 = vld [vmem:[#allocation8 + $0x168] sm:$0xff] }
 0x54d   :  { %v6504_v31 = vand.u32 4294901760, %v14053_v14 }
 0x54e   :  { %9310 = vmatpush3.bf16.msra.mxu1 %v9309_v5  ;;  %v9359_v5 = vpack.c.bf16 %v16486_v39, %v16485_v47 }
 0x54f   :  { %9312 = vmatprep.subr.bf16.mxu1 %v9311_v27 }
 0x552   :  { %9314 = vmatpush3.bf16.msra.mxu1 %v9313_v28  ;;  %v16465_v28 = vld [vmem:[#allocation88_spill] sm:$0xff] }
 0x553   :  { %9316 = vmatprep.subr.bf16.mxu1 %v16459_v40 }
 0x555   :  { %6079 = vmatmul.mubr.f32.vlgmr.msra.gmra.mrb[30].mxu1 %v13900_v44  ;;  %v16484_v44 = vand.u32 4294901760, %v13498_v3  ;;  %v16495_v3 = vld [vmem:[#allocation131_spill] sm:$0xff] }
 0x556   :  { %9318 = vmatpush3.bf16.msra.mxu1 %v16460_v54  ;;  %6183 = vmatprep.mubr.f32.mxu1 %v5700_v63  ;;  %v16469_v63 = vld [vmem:[#allocation123_spill] sm:$0xff]  ;;  %v16496_v6 = vand.u32 4294901760, %v16495_v3  ;;  %v5590_v3 = vld [vmem:[#allocation8 + $0x158] sm:$0xff] }
 0x557   :  { %9320 = vmatprep.subr.bf16.mxu1 %v16461_v18  ;;  %v9357_v27 = vpack.c.bf16 %v16484_v44, %v16483_v19  ;;  %v16519_v19 = vld [vmem:[#allocation17_spill] sm:$0xff]  ;;  %v6498_v41 = vand.u32 4294901760, %v5590_v3 }
 0x558   :  { %v9365_v17 = vpack.c.bf16 %v16498_v23, %v16496_v6  ;;  %v16520_v44 = vand.u32 4294901760, %v16519_v19  ;;  %v14046_v23 = vpack.c.bf16 %v6492_v52, %v6489_v58 }
 0x55a   :  { %9322 = vmatpush3.bf16.msra.mxu1 %v13480_v22 }
 0x55b   :  { %9324 = vmatprep.subr.bf16.mxu1 %v13492_v26 }
 0x55e   :  { %9326 = vmatpush3.bf16.msra.mxu1 %v16462_v0 }
 0x55f   :  { %9328 = vmatprep.subr.bf16.mxu1 %v16463_v49 }
 0x562   :  { %9330 = vmatpush3.bf16.msra.mxu1 %v16464_v56 }
 0x563   :  { %9332 = vmatprep.subr.bf16.mxu1 %v16465_v28 }
 0x566   :  { %9334 = vmatpush3.bf16.msra.mxu1 %v16466_v21 }
 0x567   :  { %9336 = vmatprep.subr.bf16.mxu1 %v16467_v2 }
 0x56a   :  { %9338 = vmatpush3.bf16.msra.mxu1 %v16468_v35 }
 0x56b   :  { %9340 = vmatprep.subr.bf16.mxu1 %v16469_v63 }
 0x56e   :  { %9342 = vmatpush3.bf16.msra.mxu1 %v16470_v30 }
 0x56f   :  { %9344 = vmatprep.subr.bf16.mxu1 %v16471_v9 }
 0x572   :  { %9346 = vmatpush3.bf16.msra.mxu1 %v16474_v1 }
 0x573   :  { %9348 = vmatprep.subr.bf16.mxu1 %v9347_v33  ;;  %v16509_v33 = vld [vmem:[#allocation147_spill] sm:$0xff] }
 0x574   :  { %v16510_v57 = vand.u32 4294901760, %v16509_v33  ;;  %v5593_v33 = vld [vmem:[#allocation8 + $0x170] sm:$0xff] }
 0x575   :  { %6187 = vmatmul.mubr.f32.vlgmr.msra.gmra.mrb[32].mxu1 %v5706_v62  ;;  %v16503_v62 = vld [vmem:[#allocation139_spill] sm:$0xff] }
 0x576   :  { %9350 = vmatpush3.bf16.msra.mxu1 %v9349_v29  ;;  %6353 = vmatprep.mubr.f32.mxu1 %v13897_v59  ;;  %v16504_v13 = vand.u32 4294901760, %v16503_v62  ;;  %v9371_v11 = vpack.c.bf16 %v16510_v57, %v16508_v61  ;;  %v16511_v29 = vld [vmem:[#allocation148_spill] sm:$0xff]  ;;  %v14067_v61 = vsub.f32 %v5546_v34, %v14048_v50  ;;  %v14070_v57 = vld [vmem:[#allocation8 + $0x178] sm:$0xff] }
 0x577   :  { %9352 = vmatprep.subr.bf16.mxu1 %v9351_v16  ;;  %v16512_v46 = vand.u32 4294901760, %v16511_v29  ;;  %v16514_v16 = vand.u32 4294901760, %v16513_v15  ;;  %v6510_v36 = vand.u32 4294901760, %v14070_v57 }
 0x578   :  { %v9369_v55 = vpack.c.bf16 %v16506_v45, %v16504_v13 }
 0x579   :  { %v9373_v42 = vpack.c.bf16 %v16514_v16, %v16512_v46 }
 0x57a   :  { %9354 = vmatpush3.bf16.msra.mxu1 %v9353_v8  ;;  %v16516_v8 = vand.u32 4294901760, %v16515_v60 }
 0x57b   :  { %9356 = vmatprep.subr.bf16.mxu1 %v9355_v43 }
 0x57c   :  { %v9375_v43 = vpack.c.bf16 %v16518_v38, %v16516_v8  ;;  %v6507_v8 = vand.u32 4294901760, %v5593_v33  ;;  %v6547_v38 = vand.u32 4294901760, %v14067_v61 }
 0x57e   :  { %9358 = vmatpush3.bf16.msra.mxu1 %v9357_v27  ;;  %v16521_v27 = vld [vmem:[#allocation161_spill] sm:$0xff] }
 0x57f   :  { %9360 = vmatprep.subr.bf16.mxu1 %v9359_v5  ;;  %v16522_v47 = vand.u32 4294901760, %v16521_v27  ;;  %v5586_v5 = vld [vmem:[#allocation8 + $0x138] sm:$0xff] }
 0x581   :  { %v9377_v39 = vpack.c.bf16 %v16522_v47, %v16520_v44 }
 0x582   :  { %9362 = vmatpush3.bf16.msra.mxu1 %v9361_v10 }
 0x583   :  { %9364 = vmatprep.subr.bf16.mxu1 %v9363_v12  ;;  %v5589_v12 = vld [vmem:[#allocation8 + $0x150] sm:$0xff] }
 0x586   :  { %9366 = vmatpush3.bf16.msra.mxu1 %v9365_v17  ;;  %v6495_v17 = vand.u32 4294901760, %v5589_v12 }
 0x587   :  { %9368 = vmatprep.subr.bf16.mxu1 %v9367_v7 }
 0x588   :  { %v14062_v45 = vpack.c.bf16 %v6498_v41, %v6495_v17 }
 0x58a   :  { %9370 = vmatpush3.bf16.msra.mxu1 %v9369_v55  ;;  %v6501_v55 = vand.u32 4294901760, %v14051_v53 }
 0x58b   :  { %9372 = vmatprep.subr.bf16.mxu1 %v9371_v11 }
 0x58c   :  { %v14085_v60 = vpack.c.bf16 %v6504_v31, %v6501_v55 }
 0x58e   :  { %9374 = vmatpush3.bf16.msra.mxu1 %v9373_v42 }
 0x58f   :  { %9376 = vmatprep.subr.bf16.mxu1 %v9375_v43 }
 0x592   :  { %9378 = vmatpush3.bf16.msra.mxu1 %v9377_v39 }
 0x593   :  { %9380 = vmatprep.subr.bf16.mxu1 %v16459_v40 }
 0x595   :  { %6355 = vmatmul.mubr.f32.vlgmr.msra.gmra.mrb[34].mxu1 %v13895_v37 }
 0x596   :  { %9382 = vmatpush3.bf16.msra.mxu1 %v16460_v54  ;;  %6457 = vmatprep.mubr.f32.mxu1 %v13897_v59  ;;  %v5579_v59 = vld [vmem:[#allocation8 + $0x100] sm:$0xff]  ;;  %v5581_v54 = vld [vmem:[#allocation8 + $0x110] sm:$0xff] }
 0x597   :  { %9384 = vmatprep.subr.bf16.mxu1 %v16461_v18  ;;  %v5582_v18 = vld [vmem:[#allocation8 + $0x118] sm:$0xff] }
 0x59a   :  { %9386 = vmatpush3.bf16.msra.mxu1 %v13480_v22  ;;  %v5580_v22 = vld [vmem:[#allocation8 + $0x108] sm:$0xff] }
 0x59b   :  { %9388 = vmatprep.subr.bf16.mxu1 %v13492_v26  ;;  %v6465_v26 = vand.u32 4294901760, %v5579_v59  ;;  %v6468_v40 = vand.u32 4294901760, %v5580_v22 }
 0x59d   :  { %v14041_v6 = vsub.f32 %v5579_v59, %v6465_v26  ;;  %v14043_v51 = vsub.f32 %v5580_v22, %v6468_v40  ;;  %v14101_v59 = vpack.c.bf16 %v6510_v36, %v6507_v8 }
 0x59e   :  { %9390 = vmatpush3.bf16.msra.mxu1 %v16462_v0  ;;  %v14022_v0 = vpack.c.bf16 %v6468_v40, %v6465_v26  ;;  %v6548_v40 = vsub.f32 %v14067_v61, %v6547_v38 }
 0x59f   :  { %9392 = vmatprep.subr.bf16.mxu1 %v16463_v49  ;;  %v6471_v49 = vand.u32 4294901760, %v5581_v54  ;;  %v6558_v13 = vand.u32 4294901760, %v14041_v6  ;;  %v6565_v32 = vand.u32 4294901760, %v14043_v51 }
 0x5a1   :  { %v14055_v7 = vsub.f32 %v5581_v54, %v6471_v49  ;;  %v6559_v29 = vsub.f32 %v14041_v6, %v6558_v13  ;;  %v6566_v46 = vsub.f32 %v14043_v51, %v6565_v32  ;;  %v14109_v54 = vsub.f32 %v5587_v25, %v6489_v58 }
 0x5a2   :  { %9394 = vmatpush3.bf16.msra.mxu1 %v16464_v56  ;;  %v6474_v56 = vand.u32 4294901760, %v5582_v18 }
 0x5a3   :  { %9396 = vmatprep.subr.bf16.mxu1 %v16465_v28  ;;  %v9756_v28 = vmov 0.0|0.0   ;;  %v6572_v15 = vand.u32 4294901760, %v14055_v7  ;;  %v6560_v19 = vand.u32 4294901760, %v6559_v29  ;;  %v6567_v44 = vand.u32 4294901760, %v6566_v46 }
 0x5a4   :  { %v14057_v62 = vsub.f32 %v5582_v18, %v6474_v56  ;;  %v14111_v18 = vsub.f32 %v5588_v24, %v6492_v52  ;;  %v6614_v24 = vand.u32 4294901760, %v14109_v54 }
 0x5a5   :  { %v6573_v27 = vsub.f32 %v14055_v7, %v6572_v15 }
 0x5a6   :  { %9398 = vmatpush3.bf16.msra.mxu1 %v16466_v21  ;;  %v5583_v21 = vld [vmem:[#allocation8 + $0x120] sm:$0xff]  ;;  %v6579_v16 = vand.u32 4294901760, %v14057_v62  ;;  %v6621_v58 = vand.u32 4294901760, %v14111_v18 }
 0x5a7   :  { %9400 = vmatprep.subr.bf16.mxu1 %v16467_v2  ;;  %v5584_v2 = vld [vmem:[#allocation8 + $0x128] sm:$0xff] }
 0x5a8   :  { %v6580_v47 = vsub.f32 %v14057_v62, %v6579_v16 }
 0x5aa   :  { %9402 = vmatpush3.bf16.msra.mxu1 %v16468_v35  ;;  %v14027_v35 = vpack.c.bf16 %v6474_v56, %v6471_v49  ;;  %v9436_v49 = vpack.c.bf16 %v6567_v44, %v6560_v19  ;;  %v6574_v56 = vand.u32 4294901760, %v6573_v27  ;;  %v14150_v19 = vsub.f32 %v14053_v14, %v6504_v31 }
 0x5ab   :  { %9404 = vmatprep.subr.bf16.mxu1 %v16469_v63  ;;  %v6477_v63 = vand.u32 4294901760, %v5583_v21  ;;  %v14162_v14 = vsub.f32 %v14070_v57, %v6510_v36 }
 0x5ad   :  { %v14072_v11 = vsub.f32 %v5583_v21, %v6477_v63  ;;  %v6581_v21 = vand.u32 4294901760, %v6580_v47 }
 0x5ae   :  { %9406 = vmatpush3.bf16.msra.mxu1 %v16470_v30  ;;  %v6480_v30 = vand.u32 4294901760, %v5584_v2 }
 0x5af   :  { %9408 = vmatprep.subr.bf16.mxu1 %v16471_v9  ;;  %v16523_v9 = vmov 0.0   ;;  %v6586_v22 = vand.u32 4294901760, %v14072_v11  ;;  %v9439_v25 = vpack.c.bf16 %v6581_v21, %v6574_v56 }
 0x5b0   :  { %v14033_v4 = vpack.c.bf16 %v6480_v30, %v6477_v63  ;;  %v14082_v42 = vsub.f32 %v5584_v2, %v6480_v30 }
 0x5b1   :  { %v6587_v2 = vsub.f32 %v14072_v11, %v6586_v22 }
 0x5b2   :  { %9410 = vmatpush3.bf16.msra.mxu1 %v16474_v1  ;;  %v5585_v1 = vld [vmem:[#allocation8 + $0x130] sm:$0xff]  ;;  %v6593_v26 = vand.u32 4294901760, %v14082_v42 }
 0x5b3   :  { %9411 = vmatprep.subr.bf16.mxu1 %v9756_v28  ;;  %v6483_v20 = vand.u32 4294901760, %v5585_v1  ;;  %v6588_v52 = vand.u32 4294901760, %v6587_v2 }
 0x5b4   :  { %v6594_v63 = vsub.f32 %v14082_v42, %v6593_v26 }
 0x5b5   :  { %6459 = vmatmul.mubr.f32.vlgmr.msra.gmra.mrb[36].mxu1 %v13895_v37  ;;  %v6486_v37 = vand.u32 4294901760, %v5586_v5  ;;  %v14090_v43 = vsub.f32 %v5585_v1, %v6483_v20 }
 0x5b6   :  { %9413 = vmatpush3.bf16.msra.mxu1 %v14022_v0  ;;  %7889 = vmatprep.mubr.msk.f32.mxu1 %vm9757_vm1, %v16523_v9  ;;  %v6595_v48 = vand.u32 4294901760, %v6594_v63 }
 0x5b7   :  { %9414 = vmatprep.subr.bf16.mxu1 %v9756_v28  ;;  %v14037_v10 = vpack.c.bf16 %v6486_v37, %v6483_v20  ;;  %v14098_v39 = vsub.f32 %v5586_v5, %v6486_v37  ;;  %v6600_v30 = vand.u32 4294901760, %v14090_v43  ;;  %v6549_v5 = vand.u32 4294901760, %v6548_v40 }
 0x5b8   :  { %v14123_v20 = vsub.f32 %v5589_v12, %v6495_v17  ;;  %v14125_v37 = vsub.f32 %v5590_v3, %v6498_v41  ;;  %v14139_v3 = vsub.f32 %v14051_v53, %v6501_v55  ;;  %v6615_v17 = vsub.f32 %v14109_v54, %v6614_v24 }
 0x5b9   :  { %v6607_v1 = vand.u32 4294901760, %v14098_v39  ;;  %v6601_v34 = vsub.f32 %v14090_v43, %v6600_v30  ;;  %v6622_v41 = vsub.f32 %v14111_v18, %v6621_v58  ;;  %v9442_v44 = vpack.c.bf16 %v6595_v48, %v6588_v52 }
 0x5ba   :  { %9416 = vmatpush3.bf16.msra.mxu1 %v14027_v35  ;;  %v6628_v29 = vand.u32 4294901760, %v14123_v20  ;;  %v6635_v46 = vand.u32 4294901760, %v14125_v37  ;;  %v14153_v55 = vsub.f32 %v5593_v33, %v6507_v8  ;;  %v6616_v47 = vand.u32 4294901760, %v6615_v17 }
 0x5bb   :  { %9417 = vmatprep.subr.bf16.mxu1 %v9756_v28  ;;  %v6608_v12 = vsub.f32 %v14098_v39, %v6607_v1  ;;  %v6602_v27 = vand.u32 4294901760, %v6601_v34  ;;  %v6623_v40 = vand.u32 4294901760, %v6622_v41  ;;  %v6642_v21 = vand.u32 4294901760, %v14139_v3 }
 0x5bc   :  { %v6636_v56 = vsub.f32 %v14125_v37, %v6635_v46  ;;  %v6649_v33 = vand.u32 4294901760, %v14150_v19  ;;  %v6656_v36 = vand.u32 4294901760, %v14153_v55 }
 0x5bd   :  { %v6609_v53 = vand.u32 4294901760, %v6608_v12  ;;  %v9448_v8 = vpack.c.bf16 %v6623_v40, %v6616_v47 }
 0x5be   :  { %9419 = vmatpush3.bf16.msra.mxu1 %v14033_v4  ;;  %v6637_v63 = vand.u32 4294901760, %v6636_v56  ;;  %v6650_v57 = vsub.f32 %v14150_v19, %v6649_v33  ;;  %v6657_v12 = vsub.f32 %v14153_v55, %v6656_v36  ;;  %v9460_v56 = vpack.c.bf16 %v14043_v51, %v14041_v6 }
 0x5bf   :  { %9420 = vmatprep.subr.bf16.mxu1 %v9756_v28  ;;  %v9445_v31 = vpack.c.bf16 %v6609_v53, %v6602_v27  ;;  %v9514_v6 = vpack.c.bf16 %v6593_v26, %v6586_v22  ;;  %v9517_v51 = vpack.c.bf16 %v6607_v1, %v6600_v30 }
 0x5c0   :  { %v6651_v34 = vand.u32 4294901760, %v6650_v57  ;;  %v6658_v47 = vand.u32 4294901760, %v6657_v12  ;;  %v7124_v57 = vld [vmem:[%s14316_s6] ss:$0 sm:$0xff]  ;;  %s9758_s6 = smov [#allocation10]  }
 0x5c1   :  { %s7113_s9 = sshll.u32 %s9758_s6, 4  ;;  %s7114_s9 = int_to_ptr.vmem [resolvable:$true] %s7113_s9 }
 0x5c2   :  { %9422 = vmatpush3.bf16.msra.mxu1 %v14037_v10  ;;  %s9717_s10 = scalar_lea.vmem %s7114_s9, 128  ;;  %p9722_p5 = scmp.lt.s32.totalorder %s7114_s9, %s7114_s9 }
 0x5c3   :  { %9423 = vmatprep.subr.bf16.mxu1 %v9756_v28  ;;  %p9718_p4 = scmp.ne.s32.totalorder %s7114_s9, %s9717_s10  ;;  %p9723_p6 = scmp.lt.s32.totalorder %s9717_s10, %s9717_s10 }
 0x5c5   :  { %p9724_p7 = por %p9723_p6, %p9722_p5 }
 0x5c6   :  { %9425 = vmatpush3.bf16.msra.mxu1 %v14046_v23 }
 0x5c7   :  { %9426 = vmatprep.subr.bf16.mxu1 %v9756_v28  ;;  %p9725_p8 = pnand %p9724_p7, %p9718_p4 }
 0x5ca   :  { %9428 = vmatpush3.bf16.msra.mxu1 %v14062_v45 }
 0x5cb   :  { %9429 = vmatprep.subr.bf16.mxu1 %v9756_v28 }
 0x5ce   :  { %9431 = vmatpush3.bf16.msra.mxu1 %v14085_v60 }
 0x5cf   :  { %9432 = vmatprep.subr.bf16.mxu1 %v9756_v28 }
 0x5d2   :  { %9434 = vmatpush3.bf16.msra.mxu1 %v14101_v59 }
 0x5d3   :  { %9435 = vmatprep.subr.bf16.mxu1 %v9756_v28 }
 0x5d5   :  { %7890 = vmatmul.mubr.f32.vlgmr.msra.gmra.mrb[38].mxu1 %v6549_v5  ;;  %v6643_v5 = vsub.f32 %v14139_v3, %v6642_v21 }
 0x5d6   :  { %9437 = vmatpush3.bf16.msra.mxu1 %v9436_v49  ;;  %7924 = vmatprep.mubr.msk.f32.mxu1 %vm9757_vm1, %v16523_v9  ;;  %v6629_v49 = vsub.f32 %v14123_v20, %v6628_v29 }
 0x5d7   :  { %9438 = vmatprep.subr.bf16.mxu1 %v9756_v28  ;;  %v6644_v48 = vand.u32 4294901760, %v6643_v5  ;;  %v9475_v5 = vpack.c.bf16 %v14125_v37, %v14123_v20 }
 0x5d8   :  { %v6630_v2 = vand.u32 4294901760, %v6629_v49 }
 0x5d9   :  { %v9454_v53 = vpack.c.bf16 %v6651_v34, %v6644_v48 }
 0x5da   :  { %9440 = vmatpush3.bf16.msra.mxu1 %v9439_v25  ;;  %v6663_v25 = vand.u32 4294901760, %v14162_v14  ;;  %v9451_v52 = vpack.c.bf16 %v6637_v63, %v6630_v2  ;;  %v9469_v2 = vpack.c.bf16 %v14098_v39, %v14090_v43  ;;  %v9472_v63 = vpack.c.bf16 %v14111_v18, %v14109_v54 }
 0x5db   :  { %9441 = vmatprep.subr.bf16.mxu1 %v9756_v28 }
 0x5dc   :  { %v6664_v17 = vsub.f32 %v14162_v14, %v6663_v25 }
 0x5de   :  { %9443 = vmatpush3.bf16.msra.mxu1 %v9442_v44  ;;  %v6665_v40 = vand.u32 4294901760, %v6664_v17  ;;  %v9478_v17 = vpack.c.bf16 %v14150_v19, %v14139_v3 }
 0x5df   :  { %9444 = vmatprep.subr.bf16.mxu1 %v9756_v28 }
 0x5e0   :  { %v9457_v49 = vpack.c.bf16 %v6665_v40, %v6658_v47 }
 0x5e2   :  { %9446 = vmatpush3.bf16.msra.mxu1 %v9445_v31  ;;  %v9463_v31 = vpack.c.bf16 %v14057_v62, %v14055_v7  ;;  %v9520_v7 = vpack.c.bf16 %v6621_v58, %v6614_v24  ;;  %v9523_v62 = vpack.c.bf16 %v6635_v46, %v6628_v29 }
 0x5e3   :  { %9447 = vmatprep.subr.bf16.mxu1 %v9756_v28 }
 0x5e6   :  { %9449 = vmatpush3.bf16.msra.mxu1 %v9448_v8  ;;  %v9466_v8 = vpack.c.bf16 %v14082_v42, %v14072_v11  ;;  %v9526_v11 = vpack.c.bf16 %v6649_v33, %v6642_v21 }
 0x5e7   :  { %9450 = vmatprep.subr.bf16.mxu1 %v9756_v28 }
 0x5e8   :  { %v7577_v41 = vpop.f32.mrb[26].mxu1 }
 0x5e9   :  { %v7578_v44 = vpop.f32.mrb[27].mxu1 }
 0x5ea   :  { %v7579_v27 = vadd.f32 %v7578_v44, %v7577_v41  ;;  %9452 = vmatpush3.bf16.msra.mxu1 %v9451_v52  ;;  %v9481_v44 = vpack.c.bf16 %v14162_v14, %v14153_v55 }
 0x5eb   :  { %9453 = vmatprep.subr.bf16.mxu1 %v9756_v28 }
 0x5ec   :  { %v5711_v34 = vadd.f32 %v7579_v27, %v7124_v57 }
 0x5ee   :  { %9455 = vmatpush3.bf16.msra.mxu1 %v9454_v53 }
 0x5ef   :  { %9456 = vmatprep.subr.bf16.mxu1 %v9756_v28 }
 0x5f2   :  { %9458 = vmatpush3.bf16.msra.mxu1 %v9457_v49  ;;  %v9508_v49 = vpack.c.bf16 %v6565_v32, %v6558_v13 }
 0x5f3   :  { %9459 = vmatprep.subr.bf16.mxu1 %v9756_v28 }
 0x5f5   :  { %7925 = vmatmul.mubr.f32.vlgmr.msra.gmra.mrb[38].mxu1 %v14048_v50 }
 0x5f6   :  { %9461 = vmatpush3.bf16.msra.mxu1 %v9460_v56  ;;  %7959 = vmatprep.mubr.msk.f32.mxu1 %vm9757_vm1, %v16523_v9  ;;  %v9511_v56 = vpack.c.bf16 %v6579_v16, %v6572_v15  ;;  %v9529_v16 = vpack.c.bf16 %v6663_v25, %v6656_v36 }
 0x5f7   :  { %9462 = vmatprep.subr.bf16.mxu1 %v9756_v28 }
 0x5fa   :  { %9464 = vmatpush3.bf16.msra.mxu1 %v9463_v31 }
 0x5fb   :  { %9465 = vmatprep.subr.bf16.mxu1 %v9756_v28 }
 0x5fe   :  { %9467 = vmatpush3.bf16.msra.mxu1 %v9466_v8 }
 0x5ff   :  { %9468 = vmatprep.subr.bf16.mxu1 %v9756_v28 }
 0x602   :  { %9470 = vmatpush3.bf16.msra.mxu1 %v9469_v2 }
 0x603   :  { %9471 = vmatprep.subr.bf16.mxu1 %v9756_v28 }
 0x606   :  { %9473 = vmatpush3.bf16.msra.mxu1 %v9472_v63 }
 0x607   :  { %9474 = vmatprep.subr.bf16.mxu1 %v9756_v28 }
 0x608   :  { %v7612_v52 = vpop.f32.mrb[28].mxu1 }
 0x609   :  { %v7613_v48 = vpop.f32.mrb[29].mxu1 }
 0x60a   :  { %v7614_v12 = vadd.f32 %v7613_v48, %v7612_v52  ;;  %9476 = vmatpush3.bf16.msra.mxu1 %v9475_v5 }
 0x60b   :  { %9477 = vmatprep.subr.bf16.mxu1 %v9756_v28 }
 0x60c   :  { %v5943_v41 = vadd.f32 %v7614_v12, %v5711_v34 }
 0x60e   :  { %9479 = vmatpush3.bf16.msra.mxu1 %v9478_v17 }
 0x60f   :  { %9480 = vmatprep.subr.bf16.mxu1 %v9756_v28 }
 0x612   :  { %9482 = vmatpush3.bf16.msra.mxu1 %v9481_v44 }
 0x613   :  { %9483 = vmatprep.subr.bf16.mxu1 %v9756_v28 }
 0x615   :  { %7960 = vmatmul.mubr.f32.vlgmr.msra.gmra.mrb[38].mxu1 %v14067_v61 }
 0x616   :  { %9485 = vmatpush3.bf16.msra.mxu1 %v14022_v0  ;;  %7994 = vmatprep.mubr.msk.f32.mxu1 %vm9757_vm1, %v16523_v9 }
 0x617   :  { %9486 = vmatprep.subr.bf16.mxu1 %v9756_v28 }
 0x61a   :  { %9488 = vmatpush3.bf16.msra.mxu1 %v14027_v35 }
 0x61b   :  { %9489 = vmatprep.subr.bf16.mxu1 %v9756_v28 }
 0x61e   :  { %9491 = vmatpush3.bf16.msra.mxu1 %v14033_v4 }
 0x61f   :  { %9492 = vmatprep.subr.bf16.mxu1 %v9756_v28 }
 0x622   :  { %9494 = vmatpush3.bf16.msra.mxu1 %v14037_v10 }
 0x623   :  { %9495 = vmatprep.subr.bf16.mxu1 %v9756_v28 }
 0x626   :  { %9497 = vmatpush3.bf16.msra.mxu1 %v14046_v23 }
 0x627   :  { %9498 = vmatprep.subr.bf16.mxu1 %v9756_v28 }
 0x628   :  { %v7647_v27 = vpop.f32.mrb[30].mxu1 }
 0x629   :  { %v7648_v53 = vpop.f32.mrb[31].mxu1 }
 0x62a   :  { %v7649_v47 = vadd.f32 %v7648_v53, %v7647_v27  ;;  %9500 = vmatpush3.bf16.msra.mxu1 %v14062_v45 }
 0x62b   :  { %9501 = vmatprep.subr.bf16.mxu1 %v9756_v28 }
 0x62c   :  { %v6081_v40 = vadd.f32 %v7649_v47, %v5943_v41 }
 0x62e   :  { %9503 = vmatpush3.bf16.msra.mxu1 %v14085_v60 }
 0x62f   :  { %9504 = vmatprep.subr.bf16.mxu1 %v9756_v28 }
 0x632   :  { %9506 = vmatpush3.bf16.msra.mxu1 %v14101_v59 }
 0x633   :  { %9507 = vmatprep.subr.bf16.mxu1 %v9756_v28 }
 0x635   :  { %7995 = vmatmul.mubr.f32.vlgmr.msra.gmra.mrb[38].mxu1 %v6547_v38 }
 0x636   :  { %9509 = vmatpush3.bf16.msra.mxu1 %v9508_v49  ;;  %8029 = vmatprep.mubr.msk.f32.mxu1 %vm9757_vm1, %v16523_v9 }
 0x637   :  { %9510 = vmatprep.subr.bf16.mxu1 %v9756_v28 }
 0x63a   :  { %9512 = vmatpush3.bf16.msra.mxu1 %v9511_v56 }
 0x63b   :  { %9513 = vmatprep.subr.bf16.mxu1 %v9756_v28 }
 0x63e   :  { %9515 = vmatpush3.bf16.msra.mxu1 %v9514_v6 }
 0x63f   :  { %9516 = vmatprep.subr.bf16.mxu1 %v9756_v28 }
 0x642   :  { %9518 = vmatpush3.bf16.msra.mxu1 %v9517_v51 }
 0x643   :  { %9519 = vmatprep.subr.bf16.mxu1 %v9756_v28 }
 0x646   :  { %9521 = vmatpush3.bf16.msra.mxu1 %v9520_v7 }
 0x647   :  { %9522 = vmatprep.subr.bf16.mxu1 %v9756_v28 }
 0x648   :  { %v7682_v13 = vpop.f32.mrb[32].mxu1 }
 0x649   :  { %v7683_v32 = vpop.f32.mrb[33].mxu1 }
 0x64a   :  { %v7684_v61 = vadd.f32 %v7683_v32, %v7682_v13  ;;  %9524 = vmatpush3.bf16.msra.mxu1 %v9523_v62 }
 0x64b   :  { %9525 = vmatprep.subr.bf16.mxu1 %v9756_v28 }
 0x64c   :  { %v6189_v15 = vadd.f32 %v7684_v61, %v6081_v40 }
 0x64e   :  { %9527 = vmatpush3.bf16.msra.mxu1 %v9526_v11 }
 0x64f   :  { %9528 = vmatprep.subr.bf16.mxu1 %v9756_v28 }
 0x652   :  { %9530 = vmatpush3.bf16.msra.mxu1 %v9529_v16 }
 0x653   :  { %9531 = vmatprep.subr.bf16.mxu1 %v9756_v28 }
 0x655   :  { %8030 = vmatmul.mubr.f32.vlgmr.msra.gmra.mrb[38].mxu1 %v14048_v50 }
 0x656   :  { %9533 = vmatpush3.bf16.msra.mxu1 %v14022_v0  ;;  %8064 = vmatprep.mubr.msk.f32.mxu1 %vm9757_vm1, %v16523_v9 }
 0x657   :  { %9534 = vmatprep.subr.bf16.mxu1 %v9756_v28 }
 0x65a   :  { %9536 = vmatpush3.bf16.msra.mxu1 %v14027_v35 }
 0x65b   :  { %9537 = vmatprep.subr.bf16.mxu1 %v9756_v28 }
 0x65e   :  { %9539 = vmatpush3.bf16.msra.mxu1 %v14033_v4 }
 0x65f   :  { %9540 = vmatprep.subr.bf16.mxu1 %v9756_v28 }
 0x662   :  { %9542 = vmatpush3.bf16.msra.mxu1 %v14037_v10 }
 0x663   :  { %9543 = vmatprep.subr.bf16.mxu1 %v9756_v28 }
 0x666   :  { %9545 = vmatpush3.bf16.msra.mxu1 %v14046_v23 }
 0x667   :  { %9546 = vmatprep.subr.bf16.mxu1 %v9756_v28 }
 0x668   :  { %v7717_v0 = vpop.f32.mrb[34].mxu1 }
 0x669   :  { %v7718_v9 = vpop.f32.mrb[35].mxu1 }
 0x66a   :  { %v7719_v42 = vadd.f32 %v7718_v9, %v7717_v0  ;;  %9548 = vmatpush3.bf16.msra.mxu1 %v14062_v45 }
 0x66b   :  { %9549 = vmatprep.subr.bf16.mxu1 %v9756_v28 }
 0x66c   :  { %v6357_v35 = vadd.f32 %v7719_v42, %v6189_v15 }
 0x66e   :  { %9551 = vmatpush3.bf16.msra.mxu1 %v14085_v60 }
 0x66f   :  { %9552 = vmatprep.subr.bf16.mxu1 %v9756_v28 }
 0x672   :  { %9554 = vmatpush3.bf16.msra.mxu1 %v14101_v59 }
 0x675   :  { %8065 = vmatmul.mubr.f32.vlgmr.msra.gmra.mrb[38].mxu1 %v14048_v50 }
 0x688   :  { %v7752_v4 = vpop.f32.mrb[36].mxu1 }
 0x689   :  { %v7753_v10 = vpop.f32.mrb[37].mxu1 }
 0x68a   :  { %v7754_v23 = vadd.f32 %v7753_v10, %v7752_v4 }
 0x68c   :  { %v6461_v38 = vadd.f32 %v7754_v23, %v6357_v35 }
 0x748   :  { %v7101_v43 = vpop.f32.mrb[38].mxu1 }
 0x749   :  { %v9561_v39 = vadd.f32 %v7101_v43, %v6461_v38  ;;  %v8066_v22 = vpop.f32.mrb[39].mxu1 }
 0x74b   :  { %9626 = vtanh.f32 %v9561_v39 }
 0x755   :  { %v9627_v45 = vpop.eup %9626 }
 0x756   :  { %7106 = vst [vmem:[#allocation10] sm:$0xff] %v9627_v45 }
 0x757   :  { %9728 = shalt.err (!%p9725_p8)
}
 0x758   :  { %s9729_s27 = scalar_lea.hbm %s14317_s7, 128 }
 0x759   :  { %p9730_p9 = scmp.ne.s32.totalorder %s14317_s7, %s9729_s27  ;;  %p9733_p10 = scmp.lt.u32.totalorder %s9729_s27, %s14317_s7 }
 0x75b   :  { %p9735_p11 = pnand %p9733_p10, %p9730_p9 }
 0x75d   :  { %9738 = shalt.err (!%p9735_p11)
}
 0x75e   :  { %7116 = dma.vmem_to_hbm [thread:$0]  %s7114_s9, 128, %s14317_s7, [#allocation4]  }
 0x75f   :  { %9745 = dma.done.wait [#allocation4], 128  }
 0x760   :  { %9746 = vsyncadd [#allocation4], 4294967168 }
 0x761   :  { %7120 = vsyncpa [#allocation3], 1 }
 0x762   :  { %7121 = vsyncpa [#allocation6], 1 }
 0x763   :  { %7122 = vsyncpa [#allocation9], 1 }
 0x764   :  { %7123 = vsyncpa [#allocation4], 1 }

</bundles_post_ra>
